<compile_context>
chip_gen: v7x
topology: tpu7x:2x2x1
jax: 0.10.0
libtpu: 0.0.40
codegen_flags: <defaults>
</compile_context>

<pallas_src>
import jax
import jax.numpy as jnp
from jax.experimental import pallas as pl
from jax.experimental.pallas import tpu as pltpu

NUM_SCENE_PCD = 512
NUM_HAND_PCD = 96
N_POINTS = NUM_SCENE_PCD + 2 * NUM_HAND_PCD   # 704 points after slicing
PC_XYZ = 3                                    # only xyz enters the kernel
STATE_DIM = 9                                 # 3 + 4 + 2
PN_BLOCKS = (64, 128, 256, 512)               # PointNetEncoderXYZRGB block_channel
PN_OUT = 256                                  # DP3Encoder out_channel
STATE_OUT = 64                                # state_mlp_size[-1]
OUT_DIM = PN_OUT + STATE_OUT                  # 320


def _seg_onehot():
    """(704, 3) one-hot segmentation pattern appended by DP3Encoder.forward."""
    return jnp.concatenate([
        jnp.tile(jnp.array([[1.0, 0.0, 0.0]], jnp.float32), (NUM_SCENE_PCD, 1)),
        jnp.tile(jnp.array([[0.0, 1.0, 0.0]], jnp.float32), (NUM_HAND_PCD, 1)),
        jnp.tile(jnp.array([[0.0, 0.0, 1.0]], jnp.float32), (NUM_HAND_PCD, 1)),
    ], axis=0)


def dp3_kernel(x_ref, s_ref,
               w1x, b1map, w2, b2, w3, b3, w4, b4, wp, bp,
               ws1, bs1, ws2, bs2,
               pn_ref, sf_ref):
    bt = x_ref.shape[0]

    def bf16(v):
        return v.astype(jnp.bfloat16)

    # --- PointNetEncoderXYZRGB.mlp over all BT*704 points (shared weights) ---
    xf = x_ref[...].reshape(bt * N_POINTS, PC_XYZ)                       # f32
    # Layer 1: xyz-only K=3 matmul; one-hot seg channels folded into b1map.
    h = jnp.dot(bf16(xf), w1x[...], preferred_element_type=jnp.float32)  # (bt*704, 64)
    h = jnp.maximum(h.reshape(bt, N_POINTS, PN_BLOCKS[0]) + b1map[...], 0.0)
    h = h.reshape(bt * N_POINTS, PN_BLOCKS[0])
    h = jnp.maximum(jnp.dot(bf16(h), w2[...],
                            preferred_element_type=jnp.float32) + b2[...], 0.0)
    h = jnp.maximum(jnp.dot(bf16(h), w3[...],
                            preferred_element_type=jnp.float32) + b3[...], 0.0)
    h = jnp.dot(bf16(h), w4[...],
                preferred_element_type=jnp.float32) + b4[...]            # (bt*704, 512), no ReLU
    # --- torch.max(x, 1)[0]: per-element max over the point axis ---
    g = jnp.max(h.reshape(bt, N_POINTS, PN_BLOCKS[-1]), axis=1)          # (bt, 512)
    # --- final_projection (final_norm='none') ---
    pn_ref[...] = jnp.dot(bf16(g), wp[...],
                          preferred_element_type=jnp.float32) + bp[...]  # (bt, 256)
    # --- state_mlp: Linear(9,64) -> ReLU -> Linear(64,64) ---
    s = s_ref[...]                                                       # (bt, 9)
    hs = jnp.maximum(jnp.dot(bf16(s), ws1[...],
                             preferred_element_type=jnp.float32) + bs1[...], 0.0)
    sf_ref[...] = jnp.dot(bf16(hs), ws2[...],
                          preferred_element_type=jnp.float32) + bs2[...]  # (bt, 64)


def linear_params(key, fan_in, fan_out):
    """PyTorch nn.Linear default init (uniform +-1/sqrt(fan_in)); W stored (in, out)."""
    kw, kb = jax.random.split(key)
    bound = 1.0 / jnp.sqrt(float(fan_in))
    w = jax.random.uniform(kw, (fan_in, fan_out), jnp.float32, -bound, bound)
    b = jax.random.uniform(kb, (1, fan_out), jnp.float32, -bound, bound)
    return w, b


def make_params(key):
    keys = jax.random.split(key, 7)
    params = []
    dims = [PC_XYZ + 3] + list(PN_BLOCKS)               # first layer sees 6 channels
    for i in range(4):                                  # PointNet MLP: 6->64->128->256->512
        params += linear_params(keys[i], dims[i], dims[i + 1])
    params += linear_params(keys[4], PN_BLOCKS[-1], PN_OUT)   # final projection 512->256
    params += linear_params(keys[5], STATE_DIM, STATE_OUT)    # state mlp 9->64
    params += linear_params(keys[6], STATE_OUT, STATE_OUT)    # state mlp 64->64
    return params


def dp3_encoder_forward(point_cloud, state, params, *, block_batch=8):
    """point_cloud: (B, N_in, 3) with N_in >= N_POINTS; state: (B, 9)."""
    (w1, b1, w2, b2, w3, b3, w4, b4, wp, bp, ws1, bs1, ws2, bs2) = params
    B = point_cloud.shape[0]

    # Fold the fixed one-hot segmentation channels into a per-point first-layer
    # bias table:  [xyz, seg] @ W1 + b1 == xyz @ W1[:3] + (seg @ W1[3:] + b1).
    # The table is (704, 64) f32 and shared across the batch, so no (B, 704, 6)
    # array is ever materialized in HBM.
    b1map = _seg_onehot() @ w1[3:] + b1                     # (704, 64) f32
    kern_params = [
        w1[:3].astype(jnp.bfloat16), b1map,
        w2.astype(jnp.bfloat16), b2,
        w3.astype(jnp.bfloat16), b3,
        w4.astype(jnp.bfloat16), b4,
        wp.astype(jnp.bfloat16), bp,
        ws1.astype(jnp.bfloat16), bs1,
        ws2.astype(jnp.bfloat16), bs2,
    ]

    xyz = point_cloud[:, :N_POINTS, :3].astype(jnp.float32)   # (B, 704, 3)
    s = state.astype(jnp.float32)                             # (B, 9)

    # Batch tiling (fuse BT elements per grid step); pad B to a multiple of BT.
    bt = max(1, min(block_batch, B))
    b_pad = pl.cdiv(B, bt) * bt
    if b_pad != B:
        xyz = jnp.pad(xyz, ((0, b_pad - B), (0, 0), (0, 0)))
        s = jnp.pad(s, ((0, b_pad - B), (0, 0)))
    grid = (b_pad // bt,)

    param_specs = [pl.BlockSpec(p.shape, lambda b: (0, 0)) for p in kern_params]
    pn, sf = pl.pallas_call(
        dp3_kernel,
        out_shape=(jax.ShapeDtypeStruct((b_pad, PN_OUT), jnp.float32),
                   jax.ShapeDtypeStruct((b_pad, STATE_OUT), jnp.float32)),
        grid=grid,
        in_specs=[pl.BlockSpec((bt, N_POINTS, PC_XYZ), lambda b: (b, 0, 0)),
                  pl.BlockSpec((bt, STATE_DIM), lambda b: (b, 0))] + param_specs,
        out_specs=(pl.BlockSpec((bt, PN_OUT), lambda b: (b, 0)),
                   pl.BlockSpec((bt, STATE_OUT), lambda b: (b, 0))),
        compiler_params=pltpu.CompilerParams(
            dimension_semantics=("parallel",),
            vmem_limit_bytes=48 * 1024 * 1024),
    )(xyz, s, *kern_params)

    return jnp.concatenate([pn[:B], sf[:B]], axis=-1)          # (B, 320)


def dp3_encoder_reference(point_cloud, state, params):
    """Pure-JAX reference mirroring the PyTorch forward (with the same bf16
    matmul-operand rounding the kernel uses, so tolerances stay tight)."""
    (w1, b1, w2, b2, w3, b3, w4, b4, wp, bp, ws1, bs1, ws2, bs2) = params

    def bdot(a, w):
        return jnp.dot(a.astype(jnp.bfloat16), w.astype(jnp.bfloat16),
                       preferred_element_type=jnp.float32)

    xyz = point_cloud[:, :N_POINTS, :3].astype(jnp.float32)
    b1map = _seg_onehot() @ w1[3:] + b1
    h = jax.nn.relu(bdot(xyz, w1[:3]) + b1map)     # == relu([xyz, seg] @ W1 + b1)
    h = jax.nn.relu(bdot(h, w2) + b2)
    h = jax.nn.relu(bdot(h, w3) + b3)
    h = bdot(h, w4) + b4
    g = jnp.max(h, axis=1)                         # torch.max(x, 1)[0]
    pn = bdot(g, wp) + bp
    s = state.astype(jnp.float32)
    hs = jax.nn.relu(bdot(s, ws1) + bs1)
    sf = bdot(hs, ws2) + bs2
    return jnp.concatenate([pn, sf], axis=-1)


if __name__ == "__main__":
    key = jax.random.PRNGKey(0)
    k_pc, k_pos, k_quat, k_grip, k_par = jax.random.split(key, 5)

    B = 2
    N_IN = 720  # observation_space['point_cloud'] = (720, 3); forward slices to 704
    point_cloud = jax.random.normal(k_pc, (B, N_IN, 3), jnp.float32)
    eef_pos = jax.random.normal(k_pos, (B, 3), jnp.float32)
    eef_quat = jax.random.normal(k_quat, (B, 4), jnp.float32)
    gripper_qpos = jax.random.normal(k_grip, (B, 2), jnp.float32)
    state = jnp.concatenate([eef_pos, eef_quat, gripper_qpos], axis=-1)  # (B, 9)

    params = make_params(k_par)

    out = dp3_encoder_forward(point_cloud, state, params)
    out = jax.block_until_ready(out)

    ref = dp3_encoder_reference(point_cloud, state, params)
    assert out.shape == (B, OUT_DIM), out.shape
    assert jnp.allclose(out, ref, rtol=1e-2, atol=1e-2), \
        float(jnp.max(jnp.abs(out - ref)))

    print("KERNEL_OK")
</pallas_src>

<mosaic_0001>
module attributes {stable_mosaic.version = 11 : i64} {
  func.func @dp3_kernel(%arg0: i32, %arg1: memref<2x704x3xf32, #tpu.memory_space<vmem>>, %arg2: memref<2x9xf32, #tpu.memory_space<vmem>>, %arg3: memref<3x64xbf16, #tpu.memory_space<vmem>>, %arg4: memref<704x64xf32, #tpu.memory_space<vmem>>, %arg5: memref<64x128xbf16, #tpu.memory_space<vmem>>, %arg6: memref<1x128xf32, #tpu.memory_space<vmem>>, %arg7: memref<128x256xbf16, #tpu.memory_space<vmem>>, %arg8: memref<1x256xf32, #tpu.memory_space<vmem>>, %arg9: memref<256x512xbf16, #tpu.memory_space<vmem>>, %arg10: memref<1x512xf32, #tpu.memory_space<vmem>>, %arg11: memref<512x256xbf16, #tpu.memory_space<vmem>>, %arg12: memref<1x256xf32, #tpu.memory_space<vmem>>, %arg13: memref<9x64xbf16, #tpu.memory_space<vmem>>, %arg14: memref<1x64xf32, #tpu.memory_space<vmem>>, %arg15: memref<64x64xbf16, #tpu.memory_space<vmem>>, %arg16: memref<1x64xf32, #tpu.memory_space<vmem>>, %arg17: memref<2x256xf32, #tpu.memory_space<vmem>>, %arg18: memref<2x64xf32, #tpu.memory_space<vmem>>) attributes {dimension_semantics = [#tpu.dimension_semantics<parallel>], iteration_bounds = array<i64: 1>, scalar_prefetch = 0 : i64, scratch_operands = 0 : i64, tpu.core_type = #tpu.core_type<tc>, window_params = [{transform_indices = @transform_0, window_bounds = array<i64: 2, 704, 3>}, {transform_indices = @transform_1, window_bounds = array<i64: 2, 9>}, {pipeline_mode = #tpu.pipeline_mode<synchronous>, transform_indices = @transform_2, window_bounds = array<i64: 3, 64>}, {pipeline_mode = #tpu.pipeline_mode<synchronous>, transform_indices = @transform_3, window_bounds = array<i64: 704, 64>}, {pipeline_mode = #tpu.pipeline_mode<synchronous>, transform_indices = @transform_4, window_bounds = array<i64: 64, 128>}, {pipeline_mode = #tpu.pipeline_mode<synchronous>, transform_indices = @transform_5, window_bounds = array<i64: 1, 128>}, {pipeline_mode = #tpu.pipeline_mode<synchronous>, transform_indices = @transform_6, window_bounds = array<i64: 128, 256>}, {pipeline_mode = #tpu.pipeline_mode<synchronous>, transform_indices = @transform_7, window_bounds = array<i64: 1, 256>}, {pipeline_mode = #tpu.pipeline_mode<synchronous>, transform_indices = @transform_8, window_bounds = array<i64: 256, 512>}, {pipeline_mode = #tpu.pipeline_mode<synchronous>, transform_indices = @transform_9, window_bounds = array<i64: 1, 512>}, {pipeline_mode = #tpu.pipeline_mode<synchronous>, transform_indices = @transform_10, window_bounds = array<i64: 512, 256>}, {pipeline_mode = #tpu.pipeline_mode<synchronous>, transform_indices = @transform_11, window_bounds = array<i64: 1, 256>}, {pipeline_mode = #tpu.pipeline_mode<synchronous>, transform_indices = @transform_12, window_bounds = array<i64: 9, 64>}, {pipeline_mode = #tpu.pipeline_mode<synchronous>, transform_indices = @transform_13, window_bounds = array<i64: 1, 64>}, {pipeline_mode = #tpu.pipeline_mode<synchronous>, transform_indices = @transform_14, window_bounds = array<i64: 64, 64>}, {pipeline_mode = #tpu.pipeline_mode<synchronous>, transform_indices = @transform_15, window_bounds = array<i64: 1, 64>}, {transform_indices = @transform_16, window_bounds = array<i64: 2, 256>}, {transform_indices = @transform_17, window_bounds = array<i64: 2, 64>}]} {
    %c0 = arith.constant 0 : index
    %c0_0 = arith.constant 0 : index
    %c0_1 = arith.constant 0 : index
    %0 = vector.load %arg1[%c0, %c0_0, %c0_1] : memref<2x704x3xf32, #tpu.memory_space<vmem>>, vector<2x704x3xf32>
    %1 = vector.shape_cast %0 : vector<2x704x3xf32> to vector<1408x3xf32>
    %2 = arith.truncf %1 : vector<1408x3xf32> to vector<1408x3xbf16>
    %c0_2 = arith.constant 0 : index
    %c0_3 = arith.constant 0 : index
    %3 = vector.load %arg3[%c0_2, %c0_3] : memref<3x64xbf16, #tpu.memory_space<vmem>>, vector<3x64xbf16>
    %cst = arith.constant dense<0.000000e+00> : vector<1408x64xf32>
    %4 = tpu.matmul %2, %3, %cst {dimension_numbers = #tpu.dot_dimension_numbers<[1], [0], [0], [1], [0, 0, 1, 1], [], []>} : vector<1408x3xbf16>, vector<3x64xbf16>, vector<1408x64xf32> -> vector<1408x64xf32>
    %5 = vector.shape_cast %4 : vector<1408x64xf32> to vector<2x704x64xf32>
    %c0_4 = arith.constant 0 : index
    %c0_5 = arith.constant 0 : index
    %6 = vector.load %arg4[%c0_4, %c0_5] : memref<704x64xf32, #tpu.memory_space<vmem>>, vector<704x64xf32>
    %7 = vector.shape_cast %6 : vector<704x64xf32> to vector<1x704x64xf32>
    %8 = vector.broadcast %7 : vector<1x704x64xf32> to vector<2x704x64xf32>
    %9 = arith.addf %5, %8 : vector<2x704x64xf32>
    %cst_6 = arith.constant 0.000000e+00 : f32
    %10 = vector.broadcast %cst_6 : f32 to vector<2x704x64xf32>
    %11 = arith.maximumf %9, %10 : vector<2x704x64xf32>
    %12 = vector.shape_cast %11 : vector<2x704x64xf32> to vector<1408x64xf32>
    %13 = arith.truncf %12 : vector<1408x64xf32> to vector<1408x64xbf16>
    %c0_7 = arith.constant 0 : index
    %c0_8 = arith.constant 0 : index
    %14 = vector.load %arg5[%c0_7, %c0_8] : memref<64x128xbf16, #tpu.memory_space<vmem>>, vector<64x128xbf16>
    %cst_9 = arith.constant dense<0.000000e+00> : vector<1408x128xf32>
    %15 = tpu.matmul %13, %14, %cst_9 {dimension_numbers = #tpu.dot_dimension_numbers<[1], [0], [0], [1], [0, 0, 1, 1], [], []>} : vector<1408x64xbf16>, vector<64x128xbf16>, vector<1408x128xf32> -> vector<1408x128xf32>
    %c0_10 = arith.constant 0 : index
    %c0_11 = arith.constant 0 : index
    %16 = vector.load %arg6[%c0_10, %c0_11] : memref<1x128xf32, #tpu.memory_space<vmem>>, vector<1x128xf32>
    %17 = vector.broadcast %16 : vector<1x128xf32> to vector<1408x128xf32>
    %18 = arith.addf %15, %17 : vector<1408x128xf32>
    %cst_12 = arith.constant 0.000000e+00 : f32
    %19 = vector.broadcast %cst_12 : f32 to vector<1408x128xf32>
    %20 = arith.maximumf %18, %19 : vector<1408x128xf32>
    %21 = arith.truncf %20 : vector<1408x128xf32> to vector<1408x128xbf16>
    %c0_13 = arith.constant 0 : index
    %c0_14 = arith.constant 0 : index
    %22 = vector.load %arg7[%c0_13, %c0_14] : memref<128x256xbf16, #tpu.memory_space<vmem>>, vector<128x256xbf16>
    %cst_15 = arith.constant dense<0.000000e+00> : vector<1408x256xf32>
    %23 = tpu.matmul %21, %22, %cst_15 {dimension_numbers = #tpu.dot_dimension_numbers<[1], [0], [0], [1], [0, 0, 1, 1], [], []>} : vector<1408x128xbf16>, vector<128x256xbf16>, vector<1408x256xf32> -> vector<1408x256xf32>
    %c0_16 = arith.constant 0 : index
    %c0_17 = arith.constant 0 : index
    %24 = vector.load %arg8[%c0_16, %c0_17] : memref<1x256xf32, #tpu.memory_space<vmem>>, vector<1x256xf32>
    %25 = vector.broadcast %24 : vector<1x256xf32> to vector<1408x256xf32>
    %26 = arith.addf %23, %25 : vector<1408x256xf32>
    %cst_18 = arith.constant 0.000000e+00 : f32
    %27 = vector.broadcast %cst_18 : f32 to vector<1408x256xf32>
    %28 = arith.maximumf %26, %27 : vector<1408x256xf32>
    %29 = arith.truncf %28 : vector<1408x256xf32> to vector<1408x256xbf16>
    %c0_19 = arith.constant 0 : index
    %c0_20 = arith.constant 0 : index
    %30 = vector.load %arg9[%c0_19, %c0_20] : memref<256x512xbf16, #tpu.memory_space<vmem>>, vector<256x512xbf16>
    %cst_21 = arith.constant dense<0.000000e+00> : vector<1408x512xf32>
    %31 = tpu.matmul %29, %30, %cst_21 {dimension_numbers = #tpu.dot_dimension_numbers<[1], [0], [0], [1], [0, 0, 1, 1], [], []>} : vector<1408x256xbf16>, vector<256x512xbf16>, vector<1408x512xf32> -> vector<1408x512xf32>
    %c0_22 = arith.constant 0 : index
    %c0_23 = arith.constant 0 : index
    %32 = vector.load %arg10[%c0_22, %c0_23] : memref<1x512xf32, #tpu.memory_space<vmem>>, vector<1x512xf32>
    %33 = vector.broadcast %32 : vector<1x512xf32> to vector<1408x512xf32>
    %34 = arith.addf %31, %33 : vector<1408x512xf32>
    %35 = vector.shape_cast %34 : vector<1408x512xf32> to vector<2x704x512xf32>
    %cst_24 = arith.constant dense<0xFF800000> : vector<2x512xf32>
    %36 = vector.multi_reduction <maximumf>, %35, %cst_24 [1] : vector<2x704x512xf32> to vector<2x512xf32>
    %37 = arith.truncf %36 : vector<2x512xf32> to vector<2x512xbf16>
    %c0_25 = arith.constant 0 : index
    %c0_26 = arith.constant 0 : index
    %38 = vector.load %arg11[%c0_25, %c0_26] : memref<512x256xbf16, #tpu.memory_space<vmem>>, vector<512x256xbf16>
    %cst_27 = arith.constant dense<0.000000e+00> : vector<2x256xf32>
    %39 = tpu.matmul %37, %38, %cst_27 {dimension_numbers = #tpu.dot_dimension_numbers<[1], [0], [0], [1], [0, 0, 1, 1], [], []>} : vector<2x512xbf16>, vector<512x256xbf16>, vector<2x256xf32> -> vector<2x256xf32>
    %c0_28 = arith.constant 0 : index
    %c0_29 = arith.constant 0 : index
    %40 = vector.load %arg12[%c0_28, %c0_29] : memref<1x256xf32, #tpu.memory_space<vmem>>, vector<1x256xf32>
    %41 = vector.broadcast %40 : vector<1x256xf32> to vector<2x256xf32>
    %42 = arith.addf %39, %41 : vector<2x256xf32>
    %c0_30 = arith.constant 0 : index
    %c0_31 = arith.constant 0 : index
    %43 = vector.load %arg17[%c0_30, %c0_31] : memref<2x256xf32, #tpu.memory_space<vmem>>, vector<2x256xf32>
    tpu.vector_store %arg17[%c0_30, %c0_31], %42 {strides = array<i32>} : memref<2x256xf32, #tpu.memory_space<vmem>>, vector<2x256xf32>,
    %c0_32 = arith.constant 0 : index
    %c0_33 = arith.constant 0 : index
    %44 = vector.load %arg2[%c0_32, %c0_33] : memref<2x9xf32, #tpu.memory_space<vmem>>, vector<2x9xf32>
    %45 = arith.truncf %44 : vector<2x9xf32> to vector<2x9xbf16>
    %c0_34 = arith.constant 0 : index
    %c0_35 = arith.constant 0 : index
    %46 = vector.load %arg13[%c0_34, %c0_35] : memref<9x64xbf16, #tpu.memory_space<vmem>>, vector<9x64xbf16>
    %cst_36 = arith.constant dense<0.000000e+00> : vector<2x64xf32>
    %47 = tpu.matmul %45, %46, %cst_36 {dimension_numbers = #tpu.dot_dimension_numbers<[1], [0], [0], [1], [0, 0, 1, 1], [], []>} : vector<2x9xbf16>, vector<9x64xbf16>, vector<2x64xf32> -> vector<2x64xf32>
    %c0_37 = arith.constant 0 : index
    %c0_38 = arith.constant 0 : index
    %48 = vector.load %arg14[%c0_37, %c0_38] : memref<1x64xf32, #tpu.memory_space<vmem>>, vector<1x64xf32>
    %49 = vector.broadcast %48 : vector<1x64xf32> to vector<2x64xf32>
    %50 = arith.addf %47, %49 : vector<2x64xf32>
    %cst_39 = arith.constant 0.000000e+00 : f32
    %51 = vector.broadcast %cst_39 : f32 to vector<2x64xf32>
    %52 = arith.maximumf %50, %51 : vector<2x64xf32>
    %53 = arith.truncf %52 : vector<2x64xf32> to vector<2x64xbf16>
    %c0_40 = arith.constant 0 : index
    %c0_41 = arith.constant 0 : index
    %54 = vector.load %arg15[%c0_40, %c0_41] : memref<64x64xbf16, #tpu.memory_space<vmem>>, vector<64x64xbf16>
    %cst_42 = arith.constant dense<0.000000e+00> : vector<2x64xf32>
    %55 = tpu.matmul %53, %54, %cst_42 {dimension_numbers = #tpu.dot_dimension_numbers<[1], [0], [0], [1], [0, 0, 1, 1], [], []>} : vector<2x64xbf16>, vector<64x64xbf16>, vector<2x64xf32> -> vector<2x64xf32>
    %c0_43 = arith.constant 0 : index
    %c0_44 = arith.constant 0 : index
    %56 = vector.load %arg16[%c0_43, %c0_44] : memref<1x64xf32, #tpu.memory_space<vmem>>, vector<1x64xf32>
    %57 = vector.broadcast %56 : vector<1x64xf32> to vector<2x64xf32>
    %58 = arith.addf %55, %57 : vector<2x64xf32>
    %c0_45 = arith.constant 0 : index
    %c0_46 = arith.constant 0 : index
    %59 = vector.load %arg18[%c0_45, %c0_46] : memref<2x64xf32, #tpu.memory_space<vmem>>, vector<2x64xf32>
    tpu.vector_store %arg18[%c0_45, %c0_46], %58 {strides = array<i32>} : memref<2x64xf32, #tpu.memory_space<vmem>>, vector<2x64xf32>,
    return
  }
  func.func @transform_0(%arg0: i32) -> (i32, i32, i32) {
    %c0_i32 = arith.constant 0 : i32
    %c0_i32_0 = arith.constant 0 : i32
    %c0_i32_1 = arith.constant 0 : i32
    return %arg0, %c0_i32, %c0_i32_0 : i32, i32, i32
  }
  func.func @transform_1(%arg0: i32) -> (i32, i32) {
    %c0_i32 = arith.constant 0 : i32
    %c0_i32_0 = arith.constant 0 : i32
    return %arg0, %c0_i32 : i32, i32
  }
  func.func @transform_2(%arg0: i32) -> (i32, i32) {
    %c0_i32 = arith.constant 0 : i32
    %c0_i32_0 = arith.constant 0 : i32
    %c0_i32_1 = arith.constant 0 : i32
    return %c0_i32, %c0_i32_0 : i32, i32
  }
  func.func @transform_3(%arg0: i32) -> (i32, i32) {
    %c0_i32 = arith.constant 0 : i32
    %c0_i32_0 = arith.constant 0 : i32
    %c0_i32_1 = arith.constant 0 : i32
    return %c0_i32, %c0_i32_0 : i32, i32
  }
  func.func @transform_4(%arg0: i32) -> (i32, i32) {
    %c0_i32 = arith.constant 0 : i32
    %c0_i32_0 = arith.constant 0 : i32
    %c0_i32_1 = arith.constant 0 : i32
    return %c0_i32, %c0_i32_0 : i32, i32
  }
  func.func @transform_5(%arg0: i32) -> (i32, i32) {
    %c0_i32 = arith.constant 0 : i32
    %c0_i32_0 = arith.constant 0 : i32
    %c0_i32_1 = arith.constant 0 : i32
    return %c0_i32, %c0_i32_0 : i32, i32
  }
  func.func @transform_6(%arg0: i32) -> (i32, i32) {
    %c0_i32 = arith.constant 0 : i32
    %c0_i32_0 = arith.constant 0 : i32
    %c0_i32_1 = arith.constant 0 : i32
    return %c0_i32, %c0_i32_0 : i32, i32
  }
  func.func @transform_7(%arg0: i32) -> (i32, i32) {
    %c0_i32 = arith.constant 0 : i32
    %c0_i32_0 = arith.constant 0 : i32
    %c0_i32_1 = arith.constant 0 : i32
    return %c0_i32, %c0_i32_0 : i32, i32
  }
  func.func @transform_8(%arg0: i32) -> (i32, i32) {
    %c0_i32 = arith.constant 0 : i32
    %c0_i32_0 = arith.constant 0 : i32
    %c0_i32_1 = arith.constant 0 : i32
    return %c0_i32, %c0_i32_0 : i32, i32
  }
  func.func @transform_9(%arg0: i32) -> (i32, i32) {
    %c0_i32 = arith.constant 0 : i32
    %c0_i32_0 = arith.constant 0 : i32
    %c0_i32_1 = arith.constant 0 : i32
    return %c0_i32, %c0_i32_0 : i32, i32
  }
  func.func @transform_10(%arg0: i32) -> (i32, i32) {
    %c0_i32 = arith.constant 0 : i32
    %c0_i32_0 = arith.constant 0 : i32
    %c0_i32_1 = arith.constant 0 : i32
    return %c0_i32, %c0_i32_0 : i32, i32
  }
  func.func @transform_11(%arg0: i32) -> (i32, i32) {
    %c0_i32 = arith.constant 0 : i32
    %c0_i32_0 = arith.constant 0 : i32
    %c0_i32_1 = arith.constant 0 : i32
    return %c0_i32, %c0_i32_0 : i32, i32
  }
  func.func @transform_12(%arg0: i32) -> (i32, i32) {
    %c0_i32 = arith.constant 0 : i32
    %c0_i32_0 = arith.constant 0 : i32
    %c0_i32_1 = arith.constant 0 : i32
    return %c0_i32, %c0_i32_0 : i32, i32
  }
  func.func @transform_13(%arg0: i32) -> (i32, i32) {
    %c0_i32 = arith.constant 0 : i32
    %c0_i32_0 = arith.constant 0 : i32
    %c0_i32_1 = arith.constant 0 : i32
    return %c0_i32, %c0_i32_0 : i32, i32
  }
  func.func @transform_14(%arg0: i32) -> (i32, i32) {
    %c0_i32 = arith.constant 0 : i32
    %c0_i32_0 = arith.constant 0 : i32
    %c0_i32_1 = arith.constant 0 : i32
    return %c0_i32, %c0_i32_0 : i32, i32
  }
  func.func @transform_15(%arg0: i32) -> (i32, i32) {
    %c0_i32 = arith.constant 0 : i32
    %c0_i32_0 = arith.constant 0 : i32
    %c0_i32_1 = arith.constant 0 : i32
    return %c0_i32, %c0_i32_0 : i32, i32
  }
  func.func @transform_16(%arg0: i32) -> (i32, i32) {
    %c0_i32 = arith.constant 0 : i32
    %c0_i32_0 = arith.constant 0 : i32
    return %arg0, %c0_i32 : i32, i32
  }
  func.func @transform_17(%arg0: i32) -> (i32, i32) {
    %c0_i32 = arith.constant 0 : i32
    %c0_i32_0 = arith.constant 0 : i32
    return %arg0, %c0_i32 : i32, i32
  }
}

</mosaic_0001>

<bundles_post_ra>
// kernel: tpu_custom_call.1
= control target key start
LH: loop header
LB: loop body
LE: loop exit
PB: predicated region body
PF: predicated region fallthrough
CT: control target
= control target key end

     0   :  { %s14124_s0 = inlined_call_operand.vmem [shape: f32[2,704,3], index: 0, kind: input, shape index: {}]   ;;  %s14125_s1 = inlined_call_operand.vmem [shape: f32[2,9], index: 1, kind: input, shape index: {}]   ;;  %s14126_s2 = inlined_call_operand.vmem [shape: bf16[3,64], index: 2, kind: input, shape index: {}]   ;;  %s14127_s3 = inlined_call_operand.vmem [shape: f32[704,64], index: 3, kind: input, shape index: {}]   ;;  %s14128_s4 = inlined_call_operand.vmem [shape: bf16[64,128], index: 4, kind: input, shape index: {}]   ;;  %s14129_s5 = inlined_call_operand.vmem [shape: f32[1,128], index: 5, kind: input, shape index: {}]   ;;  %s14130_s6 = inlined_call_operand.vmem [shape: bf16[128,256], index: 6, kind: input, shape index: {}]   ;;  %s14131_s7 = inlined_call_operand.vmem [shape: f32[1,256], index: 7, kind: input, shape index: {}]   ;;  %s14132_s8 = inlined_call_operand.vmem [shape: bf16[256,512], index: 8, kind: input, shape index: {}]   ;;  %s14133_s9 = inlined_call_operand.vmem [shape: f32[1,512], index: 9, kind: input, shape index: {}]   ;;  %s14134_s10 = inlined_call_operand.vmem [shape: bf16[512,256], index: 10, kind: input, shape index: {}]   ;;  %s14135_s11 = inlined_call_operand.vmem [shape: f32[1,256], index: 11, kind: input, shape index: {}]   ;;  %s14136_s12 = inlined_call_operand.vmem [shape: bf16[9,64], index: 12, kind: input, shape index: {}]   ;;  %s14137_s13 = inlined_call_operand.vmem [shape: f32[1,64], index: 13, kind: input, shape index: {}]   ;;  %s14138_s14 = inlined_call_operand.vmem [shape: bf16[64,64], index: 14, kind: input, shape index: {}]   ;;  %s14139_s15 = inlined_call_operand.vmem [shape: f32[1,64], index: 15, kind: input, shape index: {}]   ;;  %s14140_s16 = inlined_call_operand.hbm [shape: f32[2,256], index: 16, kind: output, shape index: {0}]   ;;  %s14141_s17 = inlined_call_operand.hbm [shape: f32[2,64], index: 17, kind: output, shape index: {1}]  }
   0x1   :  { %14323 = sst [smem:[#allocation97_spill]] %s14124_s0 }
   0x2   :  { %14324 = sst [smem:[#allocation98_spill]] %s14125_s1 }
   0x3   :  { %23 = vsyncpa [#allocation3], 0  ;;  %v322_v0 = vld [vmem:[%s14126_s2] sm:$0x3]  ;;  %vm588_vm0 = vcmask 1040384   ;;  %vm589_vm1 = vcmask 1041408  }
   0x4   :  { %s14325_s28 = sld [smem:[#allocation97_spill]]  ;;  %v14143_v2 = vmov 65535   ;;  %vm323_vm2 = vcmask 23552   ;;  %v9315_v10 = vld [vmem:[%s14128_s4] sm:$0xff]   ;;  %v9316_v21 = vld [vmem:[%s14128_s4 + $0x8] sm:$0xff]  }
   0x5   :  { %v590_v3 = vsel %vm588_vm0, 4294967295, %v14143_v2 }
   0x6   :  { %v591_v6 = vsel %vm589_vm1, %v590_v3, 0 }
   0x7   :  { %v593_v9 = vand.u32 %v591_v6, %v322_v0 }
   0x9   :  { %9301 = vmatprep.subr.bf16.mxu1 %v593_v9  ;;  %8921 = vmatprep.subr.bf16.mxu0 %v593_v9 }
   0xa   :  { %v82_v1 = vld [vmem:[%s14325_s28 + $0xc0] sm:$0xff]  ;;  %v83_v4 = vld [vmem:[%s14325_s28 + $0xc8] sm:$0xff]  ;;  %v84_v5 = vld [vmem:[%s14325_s28 + $0xd0] sm:$0xff]  ;;  %9302 = vmatpush3.bf16.msra.mxu1 %v593_v9  ;;  %8922 = vmatpush3.bf16.msra.mxu0 %v593_v9 }
   0xb   :  { %v246_v7 = vpack.c.bf16 %v83_v4, %v82_v1  ;;  %v85_v8 = vld [vmem:[%s14325_s28 + $0xd8] sm:$0xff]  ;;  %v86_v11 = vld [vmem:[%s14325_s28 + $0xe0] sm:$0xff]  ;;  %v87_v12 = vld [vmem:[%s14325_s28 + $0xe8] sm:$0xff]  ;;  %9099 = vmatprep.subr.bf16.mxu1 %v9315_v10 }
   0xc   :  { %v247_v13 = vpack.c.bf16 %v85_v8, %v84_v5  ;;  %v248_v14 = vpack.c.bf16 %v87_v12, %v86_v11  ;;  %v88_v15 = vld [vmem:[%s14325_s28 + $0xf0] sm:$0xff]  ;;  %v89_v16 = vld [vmem:[%s14325_s28 + $0xf8] sm:$0xff]  ;;  %v90_v17 = vld [vmem:[%s14325_s28 + $0x100] sm:$0xff] }
   0xd   :  { %8947 = vmatprep.mubr.msk.bf16.mxu1 %vm323_vm2, %v246_v7  ;;  %v91_v18 = vld [vmem:[%s14325_s28 + $0x108] sm:$0xff]  ;;  %v249_v19 = vpack.c.bf16 %v89_v16, %v88_v15  ;;  %v58_v22 = vld [vmem:[%s14325_s28] sm:$0xff]  ;;  %v60_v25 = vld [vmem:[%s14325_s28 + $0x10] sm:$0xff] }
   0xe   :  { %8948 = vmatmul.mubr.msk.bf16.vlgmr.msra.gmra.mrb[0].mxu1 %vm323_vm2, %v247_v13  ;;  %v250_v20 = vpack.c.bf16 %v91_v18, %v90_v17  ;;  %v59_v23 = vld [vmem:[%s14325_s28 + $0x8] sm:$0xff]  ;;  %v61_v26 = vld [vmem:[%s14325_s28 + $0x18] sm:$0xff]  ;;  %v92_v27 = vld [vmem:[%s14325_s28 + $0x110] sm:$0xff] }
   0xf   :  { %9100 = vmatpush3.bf16.msra.mxu1 %v9315_v10  ;;  %8951 = vmatprep.mubr.msk.bf16.mxu1 %vm323_vm2, %v248_v14  ;;  %v234_v24 = vpack.c.bf16 %v59_v23, %v58_v22  ;;  %v93_v28 = vld [vmem:[%s14325_s28 + $0x118] sm:$0xff]  ;;  %v235_v29 = vpack.c.bf16 %v61_v26, %v60_v25  ;;  %v94_v30 = vld [vmem:[%s14325_s28 + $0x120] sm:$0xff]  ;;  %v95_v31 = vld [vmem:[%s14325_s28 + $0x128] sm:$0xff] }
  0x10   :  { %9101 = vmatprep.subr.bf16.mxu1 %v9316_v21  ;;  %v62_v32 = vld [vmem:[%s14325_s28 + $0x20] sm:$0xff]  ;;  %v63_v33 = vld [vmem:[%s14325_s28 + $0x28] sm:$0xff]  ;;  %v251_v34 = vpack.c.bf16 %v93_v28, %v92_v27  ;;  %v64_v36 = vld [vmem:[%s14325_s28 + $0x30] sm:$0xff]  ;;  %v252_v38 = vpack.c.bf16 %v95_v31, %v94_v30 }
  0x11   :  { %8923 = vmatprep.mubr.msk.bf16.mxu0 %vm323_vm2, %v234_v24  ;;  %v236_v35 = vpack.c.bf16 %v63_v33, %v62_v32  ;;  %v65_v37 = vld [vmem:[%s14325_s28 + $0x38] sm:$0xff]  ;;  %v66_v39 = vld [vmem:[%s14325_s28 + $0x40] sm:$0xff]  ;;  %v67_v40 = vld [vmem:[%s14325_s28 + $0x48] sm:$0xff] }
  0x12   :  { %8924 = vmatmul.mubr.msk.bf16.vlgmr.msra.gmra.mrb[0].mxu0 %vm323_vm2, %v235_v29  ;;  %v237_v41 = vpack.c.bf16 %v65_v37, %v64_v36  ;;  %v238_v42 = vpack.c.bf16 %v67_v40, %v66_v39  ;;  %v96_v43 = vld [vmem:[%s14325_s28 + $0x130] sm:$0xff]  ;;  %v97_v44 = vld [vmem:[%s14325_s28 + $0x138] sm:$0xff]  ;;  %v98_v45 = vld [vmem:[%s14325_s28 + $0x140] sm:$0xff] }
  0x13   :  { %9102 = vmatpush3.bf16.msra.mxu1 %v9316_v21  ;;  %8927 = vmatprep.mubr.msk.bf16.mxu0 %vm323_vm2, %v236_v35  ;;  %v99_v46 = vld [vmem:[%s14325_s28 + $0x148] sm:$0xff]  ;;  %v253_v47 = vpack.c.bf16 %v97_v44, %v96_v43  ;;  %v68_v48 = vld [vmem:[%s14325_s28 + $0x50] sm:$0xff]  ;;  %v69_v49 = vld [vmem:[%s14325_s28 + $0x58] sm:$0xff] }
  0x14   :  { %v254_v50 = vpack.c.bf16 %v99_v46, %v98_v45  ;;  %v70_v51 = vld [vmem:[%s14325_s28 + $0x60] sm:$0xff]  ;;  %v71_v52 = vld [vmem:[%s14325_s28 + $0x68] sm:$0xff]  ;;  %v239_v53 = vpack.c.bf16 %v69_v49, %v68_v48  ;;  %v100_v55 = vld [vmem:[%s14325_s28 + $0x150] sm:$0xff] }
  0x15   :  { %v240_v54 = vpack.c.bf16 %v71_v52, %v70_v51  ;;  %v101_v56 = vld [vmem:[%s14325_s28 + $0x158] sm:$0xff]  ;;  %v102_v57 = vld [vmem:[%s14325_s28 + $0x160] sm:$0xff]  ;;  %v103_v58 = vld [vmem:[%s14325_s28 + $0x168] sm:$0xff] }
  0x16   :  { %8952 = vmatmul.mubr.msk.bf16.gmra.mrb[4].mxu1 %vm323_vm2, %v249_v19  ;;  %v72_v59 = vld [vmem:[%s14325_s28 + $0x70] sm:$0xff]  ;;  %v255_v60 = vpack.c.bf16 %v101_v56, %v100_v55  ;;  %v73_v61 = vld [vmem:[%s14325_s28 + $0x78] sm:$0xff]  ;;  %v256_v62 = vpack.c.bf16 %v103_v58, %v102_v57  ;;  %v74_v63 = vld [vmem:[%s14325_s28 + $0x80] sm:$0xff] }
  0x17   :  { %8955 = vmatprep.mubr.msk.bf16.mxu1 %vm323_vm2, %v250_v20  ;;  %v75_v0 = vld [vmem:[%s14325_s28 + $0x88] sm:$0xff]  ;;  %v9317_v1 = vld [vmem:[%s14128_s4 + $0x10] sm:$0xff]   ;;  %v241_v3 = vpack.c.bf16 %v73_v61, %v72_v59  ;;  %v105_v5 = vld [vmem:[%s14325_s28 + $0x178] sm:$0xff] }
  0x18   :  { %9103 = vmatprep.subr.bf16.mxu1 %v9317_v1  ;;  %v104_v4 = vld [vmem:[%s14325_s28 + $0x170] sm:$0xff]  ;;  %v242_v6 = vpack.c.bf16 %v75_v0, %v74_v63  ;;  %v106_v7 = vld [vmem:[%s14325_s28 + $0x180] sm:$0xff]  ;;  %v107_v8 = vld [vmem:[%s14325_s28 + $0x188] sm:$0xff] }
  0x19   :  { %9104 = vmatpush3.bf16.msra.mxu1 %v9317_v1  ;;  %v76_v9 = vld [vmem:[%s14325_s28 + $0x90] sm:$0xff]  ;;  %v77_v10 = vld [vmem:[%s14325_s28 + $0x98] sm:$0xff]  ;;  %v78_v11 = vld [vmem:[%s14325_s28 + $0xa0] sm:$0xff]  ;;  %v257_v13 = vpack.c.bf16 %v105_v5, %v104_v4  ;;  %v258_v14 = vpack.c.bf16 %v107_v8, %v106_v7 }
  0x1a   :  { %8928 = vmatmul.mubr.msk.bf16.gmra.mrb[4].mxu0 %vm323_vm2, %v237_v41  ;;  %v79_v12 = vld [vmem:[%s14325_s28 + $0xa8] sm:$0xff]  ;;  %v243_v15 = vpack.c.bf16 %v77_v10, %v76_v9  ;;  %v108_v16 = vld [vmem:[%s14325_s28 + $0x190] sm:$0xff]  ;;  %v109_v17 = vld [vmem:[%s14325_s28 + $0x198] sm:$0xff] }
  0x1b   :  { %8931 = vmatprep.mubr.msk.bf16.mxu0 %vm323_vm2, %v238_v42  ;;  %v244_v18 = vpack.c.bf16 %v79_v12, %v78_v11  ;;  %v110_v19 = vld [vmem:[%s14325_s28 + $0x1a0] sm:$0xff]  ;;  %v111_v20 = vld [vmem:[%s14325_s28 + $0x1a8] sm:$0xff]  ;;  %v80_v21 = vld [vmem:[%s14325_s28 + $0xb0] sm:$0xff]  ;;  %v259_v23 = vpack.c.bf16 %v109_v17, %v108_v16 }
  0x1c   :  { %v81_v22 = vld [vmem:[%s14325_s28 + $0xb8] sm:$0xff]  ;;  %v260_v24 = vpack.c.bf16 %v111_v20, %v110_v19  ;;  %v112_v26 = vld [vmem:[%s14325_s28 + $0x1b0] sm:$0xff]  ;;  %v114_v28 = vld [vmem:[%s14325_s28 + $0x1c0] sm:$0xff] }
  0x1d   :  { %v245_v25 = vpack.c.bf16 %v81_v22, %v80_v21  ;;  %v113_v27 = vld [vmem:[%s14325_s28 + $0x1b8] sm:$0xff]  ;;  %v115_v29 = vld [vmem:[%s14325_s28 + $0x1c8] sm:$0xff]  ;;  %v116_v32 = vld [vmem:[%s14325_s28 + $0x1d0] sm:$0xff] }
  0x1e   :  { %8956 = vmatmul.mubr.msk.bf16.gmra.mrb[8].mxu1 %vm323_vm2, %v251_v34  ;;  %v261_v30 = vpack.c.bf16 %v113_v27, %v112_v26  ;;  %v262_v31 = vpack.c.bf16 %v115_v29, %v114_v28  ;;  %v117_v33 = vld [vmem:[%s14325_s28 + $0x1d8] sm:$0xff]  ;;  %v118_v34 = vld [vmem:[%s14325_s28 + $0x1e0] sm:$0xff]  ;;  %v119_v35 = vld [vmem:[%s14325_s28 + $0x1e8] sm:$0xff] }
  0x1f   :  { %8959 = vmatprep.mubr.msk.bf16.mxu1 %vm323_vm2, %v252_v38  ;;  %v263_v36 = vpack.c.bf16 %v117_v33, %v116_v32  ;;  %v264_v37 = vpack.c.bf16 %v119_v35, %v118_v34  ;;  %v120_v38 = vld [vmem:[%s14325_s28 + $0x1f0] sm:$0xff]  ;;  %v121_v39 = vld [vmem:[%s14325_s28 + $0x1f8] sm:$0xff]  ;;  %v122_v40 = vld [vmem:[%s14325_s28 + $0x200] sm:$0xff] }
  0x20   :  { %v123_v41 = vld [vmem:[%s14325_s28 + $0x208] sm:$0xff]  ;;  %v265_v42 = vpack.c.bf16 %v121_v39, %v120_v38  ;;  %v124_v44 = vld [vmem:[%s14325_s28 + $0x210] sm:$0xff]  ;;  %v125_v45 = vld [vmem:[%s14325_s28 + $0x218] sm:$0xff] }
  0x21   :  { %v266_v43 = vpack.c.bf16 %v123_v41, %v122_v40  ;;  %v126_v46 = vld [vmem:[%s14325_s28 + $0x220] sm:$0xff]  ;;  %v267_v48 = vpack.c.bf16 %v125_v45, %v124_v44  ;;  %v129_v51 = vld [vmem:[%s14325_s28 + $0x238] sm:$0xff]  ;;  %v132_v56 = vld [vmem:[%s14325_s28 + $0x250] sm:$0xff] }
  0x22   :  { %8932 = vmatmul.mubr.msk.bf16.gmra.mrb[8].mxu0 %vm323_vm2, %v239_v53  ;;  %v130_v52 = vld [vmem:[%s14325_s28 + $0x240] sm:$0xff]  ;;  %v131_v53 = vld [vmem:[%s14325_s28 + $0x248] sm:$0xff]  ;;  %v133_v57 = vld [vmem:[%s14325_s28 + $0x258] sm:$0xff] }
  0x23   :  { %8935 = vmatprep.mubr.msk.bf16.mxu0 %vm323_vm2, %v240_v54  ;;  %v270_v55 = vpack.c.bf16 %v131_v53, %v130_v52  ;;  %v134_v58 = vld [vmem:[%s14325_s28 + $0x260] sm:$0xff]  ;;  %v135_v59 = vld [vmem:[%s14325_s28 + $0x268] sm:$0xff] }
  0x24   :  { %v272_v61 = vpack.c.bf16 %v135_v59, %v134_v58 }
  0x26   :  { %8960 = vmatmul.mubr.msk.bf16.gmra.mrb[12].mxu1 %vm323_vm2, %v253_v47  ;;  %v127_v47 = vld [vmem:[%s14325_s28 + $0x228] sm:$0xff] }
  0x27   :  { %8963 = vmatprep.mubr.msk.bf16.mxu1 %vm323_vm2, %v254_v50  ;;  %v268_v49 = vpack.c.bf16 %v127_v47, %v126_v46  ;;  %v128_v50 = vld [vmem:[%s14325_s28 + $0x230] sm:$0xff] }
  0x28   :  { %v269_v54 = vpack.c.bf16 %v129_v51, %v128_v50 }
  0x2a   :  { %8936 = vmatmul.mubr.msk.bf16.gmra.mrb[12].mxu0 %vm323_vm2, %v241_v3 }
  0x2b   :  { %8939 = vmatprep.mubr.msk.bf16.mxu0 %vm323_vm2, %v242_v6 }
  0x2e   :  { %8964 = vmatmul.mubr.msk.bf16.gmra.mrb[16].mxu1 %vm323_vm2, %v255_v60  ;;  %v271_v60 = vpack.c.bf16 %v133_v57, %v132_v56 }
  0x2f   :  { %8967 = vmatprep.mubr.msk.bf16.mxu1 %vm323_vm2, %v256_v62 }
  0x32   :  { %8940 = vmatmul.mubr.msk.bf16.gmra.mrb[16].mxu0 %vm323_vm2, %v243_v15 }
  0x33   :  { %8943 = vmatprep.mubr.msk.bf16.mxu0 %vm323_vm2, %v244_v18 }
  0x36   :  { %8968 = vmatmul.mubr.msk.bf16.gmra.mrb[20].mxu1 %vm323_vm2, %v257_v13 }
  0x37   :  { %8971 = vmatprep.mubr.msk.bf16.mxu1 %vm323_vm2, %v258_v14 }
  0x3a   :  { %8944 = vmatmul.mubr.msk.bf16.gmra.mrb[20].mxu0 %vm323_vm2, %v245_v25 }
  0x3e   :  { %8972 = vmatmul.mubr.msk.bf16.gmra.mrb[24].mxu1 %vm323_vm2, %v259_v23 }
  0x3f   :  { %8975 = vmatprep.mubr.msk.bf16.mxu1 %vm323_vm2, %v260_v24 }
  0x46   :  { %8976 = vmatmul.mubr.msk.bf16.gmra.mrb[28].mxu1 %vm323_vm2, %v261_v30 }
  0x47   :  { %8979 = vmatprep.mubr.msk.bf16.mxu1 %vm323_vm2, %v262_v31 }
  0x4e   :  { %8980 = vmatmul.mubr.msk.bf16.gmra.mrb[32].mxu1 %vm323_vm2, %v263_v36 }
  0x4f   :  { %8983 = vmatprep.mubr.msk.bf16.mxu1 %vm323_vm2, %v264_v37 }
  0x56   :  { %8984 = vmatmul.mubr.msk.bf16.gmra.mrb[36].mxu1 %vm323_vm2, %v265_v42 }
  0x57   :  { %8987 = vmatprep.mubr.msk.bf16.mxu1 %vm323_vm2, %v266_v43 }
  0x5e   :  { %8988 = vmatmul.mubr.msk.bf16.gmra.mrb[40].mxu1 %vm323_vm2, %v267_v48 }
  0x5f   :  { %8991 = vmatprep.mubr.msk.bf16.mxu1 %vm323_vm2, %v268_v49 }
  0x66   :  { %8992 = vmatmul.mubr.msk.bf16.gmra.mrb[44].mxu1 %vm323_vm2, %v269_v54 }
  0x67   :  { %8995 = vmatprep.mubr.msk.bf16.mxu1 %vm323_vm2, %v270_v55 }
  0x6e   :  { %8996 = vmatmul.mubr.msk.bf16.gmra.mrb[48].mxu1 %vm323_vm2, %v271_v60 }
  0x6f   :  { %24 = vsyncpa [#allocation5], 0  ;;  %8999 = vmatprep.mubr.msk.bf16.mxu1 %vm323_vm2, %v272_v61  ;;  %v136_v62 = vld [vmem:[%s14325_s28 + $0x270] sm:$0xff]  ;;  %v137_v63 = vld [vmem:[%s14325_s28 + $0x278] sm:$0xff]  ;;  %vm1899_vm3 = vcmask 523264   ;;  %vm7790_vm4 = vcmask 1041409  }
  0x70   :  { %v138_v0 = vld [vmem:[%s14325_s28 + $0x280] sm:$0xff]  ;;  %v139_v1 = vld [vmem:[%s14325_s28 + $0x288] sm:$0xff]  ;;  %v273_v3 = vpack.c.bf16 %v137_v63, %v136_v62  ;;  %v9318_v5 = vld [vmem:[%s14128_s4 + $0x18] sm:$0xff]   ;;  %vm8237_vm5 = vcmask 1043456   ;;  %vm8238_vm6 = vcmask 1044480   ;;  %vm9615_vm7 = vmmov 0  }
  0x71   :  { %v274_v4 = vpack.c.bf16 %v139_v1, %v138_v0  ;;  %v140_v6 = vld [vmem:[%s14325_s28 + $0x290] sm:$0xff]  ;;  %v141_v7 = vld [vmem:[%s14325_s28 + $0x298] sm:$0xff]  ;;  %9105 = vmatprep.subr.bf16.mxu1 %v9318_v5  ;;  %v142_v8 = vld [vmem:[%s14325_s28 + $0x2a0] sm:$0xff]  ;;  %vm8233_vm8 = vcmask 72704  }
  0x72   :  { %v143_v9 = vld [vmem:[%s14325_s28 + $0x2a8] sm:$0xff]  ;;  %9106 = vmatpush3.bf16.msra.mxu1 %v9318_v5  ;;  %v275_v10 = vpack.c.bf16 %v141_v7, %v140_v6  ;;  %v144_v12 = vld [vmem:[%s14325_s28 + $0x2b0] sm:$0xff]  ;;  %v145_v13 = vld [vmem:[%s14325_s28 + $0x2b8] sm:$0xff] }
  0x73   :  { %v276_v11 = vpack.c.bf16 %v143_v9, %v142_v8  ;;  %v146_v14 = vld [vmem:[%s14325_s28 + $0x2c0] sm:$0xff]  ;;  %v147_v15 = vld [vmem:[%s14325_s28 + $0x2c8] sm:$0xff]  ;;  %v277_v16 = vpack.c.bf16 %v145_v13, %v144_v12  ;;  %v148_v18 = vld [vmem:[%s14325_s28 + $0x2d0] sm:$0xff] }
  0x74   :  { %v278_v17 = vpack.c.bf16 %v147_v15, %v146_v14  ;;  %v149_v19 = vld [vmem:[%s14325_s28 + $0x2d8] sm:$0xff]  ;;  %v150_v20 = vld [vmem:[%s14325_s28 + $0x2e0] sm:$0xff]  ;;  %v151_v21 = vld [vmem:[%s14325_s28 + $0x2e8] sm:$0xff] }
  0x75   :  { %v279_v22 = vpack.c.bf16 %v149_v19, %v148_v18  ;;  %v280_v23 = vpack.c.bf16 %v151_v21, %v150_v20  ;;  %v152_v24 = vld [vmem:[%s14325_s28 + $0x2f0] sm:$0xff]  ;;  %v153_v25 = vld [vmem:[%s14325_s28 + $0x2f8] sm:$0xff]  ;;  %v154_v26 = vld [vmem:[%s14325_s28 + $0x300] sm:$0xff] }
  0x76   :  { %9000 = vmatmul.mubr.msk.bf16.gmra.mrb[52].mxu1 %vm323_vm2, %v273_v3  ;;  %v155_v27 = vld [vmem:[%s14325_s28 + $0x308] sm:$0xff]  ;;  %v281_v28 = vpack.c.bf16 %v153_v25, %v152_v24  ;;  %v156_v30 = vld [vmem:[%s14325_s28 + $0x310] sm:$0xff]  ;;  %v157_v31 = vld [vmem:[%s14325_s28 + $0x318] sm:$0xff] }
  0x77   :  { %9003 = vmatprep.mubr.msk.bf16.mxu1 %vm323_vm2, %v274_v4  ;;  %v282_v29 = vpack.c.bf16 %v155_v27, %v154_v26  ;;  %v158_v32 = vld [vmem:[%s14325_s28 + $0x320] sm:$0xff]  ;;  %v159_v33 = vld [vmem:[%s14325_s28 + $0x328] sm:$0xff]  ;;  %v283_v34 = vpack.c.bf16 %v157_v31, %v156_v30  ;;  %v160_v36 = vld [vmem:[%s14325_s28 + $0x330] sm:$0xff] }
  0x78   :  { %v284_v35 = vpack.c.bf16 %v159_v33, %v158_v32  ;;  %v161_v37 = vld [vmem:[%s14325_s28 + $0x338] sm:$0xff]  ;;  %v162_v38 = vld [vmem:[%s14325_s28 + $0x340] sm:$0xff]  ;;  %v163_v39 = vld [vmem:[%s14325_s28 + $0x348] sm:$0xff] }
  0x79   :  { %v285_v40 = vpack.c.bf16 %v161_v37, %v160_v36  ;;  %v286_v41 = vpack.c.bf16 %v163_v39, %v162_v38  ;;  %v164_v42 = vld [vmem:[%s14325_s28 + $0x350] sm:$0xff]  ;;  %v165_v43 = vld [vmem:[%s14325_s28 + $0x358] sm:$0xff]  ;;  %v166_v44 = vld [vmem:[%s14325_s28 + $0x360] sm:$0xff] }
  0x7a   :  { %v167_v45 = vld [vmem:[%s14325_s28 + $0x368] sm:$0xff]  ;;  %v287_v46 = vpack.c.bf16 %v165_v43, %v164_v42  ;;  %v168_v48 = vld [vmem:[%s14325_s28 + $0x370] sm:$0xff]  ;;  %v169_v49 = vld [vmem:[%s14325_s28 + $0x378] sm:$0xff] }
  0x7b   :  { %v288_v47 = vpack.c.bf16 %v167_v45, %v166_v44  ;;  %v170_v50 = vld [vmem:[%s14325_s28 + $0x380] sm:$0xff]  ;;  %v171_v51 = vld [vmem:[%s14325_s28 + $0x388] sm:$0xff]  ;;  %v289_v52 = vpack.c.bf16 %v169_v49, %v168_v48  ;;  %v172_v54 = vld [vmem:[%s14325_s28 + $0x390] sm:$0xff] }
  0x7c   :  { %v290_v53 = vpack.c.bf16 %v171_v51, %v170_v50  ;;  %v173_v55 = vld [vmem:[%s14325_s28 + $0x398] sm:$0xff]  ;;  %v174_v56 = vld [vmem:[%s14325_s28 + $0x3a0] sm:$0xff]  ;;  %v175_v57 = vld [vmem:[%s14325_s28 + $0x3a8] sm:$0xff] }
  0x7d   :  { %v291_v58 = vpack.c.bf16 %v173_v55, %v172_v54  ;;  %v292_v59 = vpack.c.bf16 %v175_v57, %v174_v56  ;;  %v176_v60 = vld [vmem:[%s14325_s28 + $0x3b0] sm:$0xff]  ;;  %v177_v61 = vld [vmem:[%s14325_s28 + $0x3b8] sm:$0xff]  ;;  %v178_v62 = vld [vmem:[%s14325_s28 + $0x3c0] sm:$0xff] }
  0x7e   :  { %9004 = vmatmul.mubr.msk.bf16.gmra.mrb[56].mxu1 %vm323_vm2, %v275_v10  ;;  %v179_v63 = vld [vmem:[%s14325_s28 + $0x3c8] sm:$0xff]  ;;  %v293_v0 = vpack.c.bf16 %v177_v61, %v176_v60  ;;  %v180_v3 = vld [vmem:[%s14325_s28 + $0x3d0] sm:$0xff]  ;;  %v181_v4 = vld [vmem:[%s14325_s28 + $0x3d8] sm:$0xff] }
  0x7f   :  { %9007 = vmatprep.mubr.msk.bf16.mxu1 %vm323_vm2, %v276_v11  ;;  %v294_v1 = vpack.c.bf16 %v179_v63, %v178_v62  ;;  %v182_v5 = vld [vmem:[%s14325_s28 + $0x3e0] sm:$0xff]  ;;  %v183_v6 = vld [vmem:[%s14325_s28 + $0x3e8] sm:$0xff]  ;;  %v295_v7 = vpack.c.bf16 %v181_v4, %v180_v3  ;;  %v184_v9 = vld [vmem:[%s14325_s28 + $0x3f0] sm:$0xff] }
  0x80   :  { %v296_v8 = vpack.c.bf16 %v183_v6, %v182_v5  ;;  %v185_v10 = vld [vmem:[%s14325_s28 + $0x3f8] sm:$0xff]  ;;  %v186_v11 = vld [vmem:[%s14325_s28 + $0x400] sm:$0xff]  ;;  %v187_v12 = vld [vmem:[%s14325_s28 + $0x408] sm:$0xff] }
  0x81   :  { %v297_v13 = vpack.c.bf16 %v185_v10, %v184_v9  ;;  %v298_v14 = vpack.c.bf16 %v187_v12, %v186_v11  ;;  %v188_v15 = vld [vmem:[%s14325_s28 + $0x410] sm:$0xff]  ;;  %v191_v18 = vld [vmem:[%s14325_s28 + $0x428] sm:$0xff]  ;;  %v1356_v24 = vld [vmem:[%s14127_s3 + $0xc0] sm:$0xff] }
  0x82   :  { %v1358_v21 = vld [vmem:[%s14127_s3 + $0xd0] sm:$0xff]  ;;  %v194_v25 = vld [vmem:[%s14325_s28 + $0x440] sm:$0xff]  ;;  %v195_v26 = vld [vmem:[%s14325_s28 + $0x448] sm:$0xff] }
  0x83   :  { %v1357_v31 = vld [vmem:[%s14127_s3 + $0xc8] sm:$0xff]  ;;  %v1362_v43 = vld [vmem:[%s14127_s3 + $0xf0] sm:$0xff]  ;;  %v197_v45 = vld [vmem:[%s14325_s28 + $0x458] sm:$0xff] }
  0x84   :  { %v196_v44 = vld [vmem:[%s14325_s28 + $0x450] sm:$0xff]  ;;  %v198_v48 = vld [vmem:[%s14325_s28 + $0x460] sm:$0xff]  ;;  %v199_v49 = vld [vmem:[%s14325_s28 + $0x468] sm:$0xff] }
  0x85   :  { %v1361_v55 = vld [vmem:[%s14127_s3 + $0xe8] sm:$0xff]  ;;  %v303_v56 = vpack.c.bf16 %v197_v45, %v196_v44  ;;  %v10250_v57 = vld [vmem:[%s14127_s3 + $0x10] sm:$0xff]  ;;  %v304_v60 = vpack.c.bf16 %v199_v49, %v198_v48  ;;  %v10255_v61 = vld [vmem:[%s14127_s3] sm:$0xff] }
  0x86   :  { %9008 = vmatmul.mubr.msk.bf16.gmra.mrb[60].mxu1 %vm323_vm2, %v277_v16  ;;  %v189_v16 = vld [vmem:[%s14325_s28 + $0x418] sm:$0xff]  ;;  %v10266_v6 = vld [vmem:[%s14127_s3 + $0x8] sm:$0xff]  ;;  %v1366_v9 = vld [vmem:[%s14127_s3 + $0x110] sm:$0xff] }
  0x87   :  { %9011 = vmatprep.mubr.msk.bf16.mxu1 %vm323_vm2, %v278_v17  ;;  %v190_v17 = vld [vmem:[%s14325_s28 + $0x420] sm:$0xff]  ;;  %v299_v19 = vpack.c.bf16 %v189_v16, %v188_v15  ;;  %v201_v15 = vld [vmem:[%s14325_s28 + $0x478] sm:$0xff]  ;;  %v10324_v49 = vld [vmem:[%s14127_s3 + $0x28] sm:$0xff] }
  0x88   :  { %v300_v20 = vpack.c.bf16 %v191_v18, %v190_v17  ;;  %v10318_v44 = vld [vmem:[%s14127_s3 + $0x38] sm:$0xff] }
  0x8e   :  { %9012 = vmatmul.mubr.msk.bf16.gmra.mrb[64].mxu1 %vm323_vm2, %v279_v22  ;;  %v192_v22 = vld [vmem:[%s14325_s28 + $0x430] sm:$0xff] }
  0x8f   :  { %9015 = vmatprep.mubr.msk.bf16.mxu1 %vm323_vm2, %v280_v23  ;;  %v193_v23 = vld [vmem:[%s14325_s28 + $0x438] sm:$0xff] }
  0x90   :  { %v301_v32 = vpack.c.bf16 %v193_v23, %v192_v22  ;;  %v203_v22 = vld [vmem:[%s14325_s28 + $0x488] sm:$0xff] }
  0x96   :  { %9016 = vmatmul.mubr.msk.bf16.gmra.mrb[68].mxu1 %vm323_vm2, %v281_v28  ;;  %v1359_v28 = vld [vmem:[%s14127_s3 + $0xd8] sm:$0xff] }
  0x97   :  { %9019 = vmatprep.mubr.msk.bf16.mxu1 %vm323_vm2, %v282_v29 }
  0x9e   :  { %9020 = vmatmul.mubr.msk.bf16.gmra.mrb[72].mxu1 %vm323_vm2, %v283_v34 }
  0x9f   :  { %9023 = vmatprep.mubr.msk.bf16.mxu1 %vm323_vm2, %v284_v35  ;;  %v302_v35 = vpack.c.bf16 %v195_v26, %v194_v25 }
  0xa6   :  { %9024 = vmatmul.mubr.msk.bf16.gmra.mrb[76].mxu1 %vm323_vm2, %v285_v40 }
  0xa7   :  { %9027 = vmatprep.mubr.msk.bf16.mxu1 %vm323_vm2, %v286_v41 }
  0xae   :  { %9028 = vmatmul.mubr.msk.bf16.gmra.mrb[80].mxu1 %vm323_vm2, %v287_v46 }
  0xaf   :  { %9031 = vmatprep.mubr.msk.bf16.mxu1 %vm323_vm2, %v288_v47  ;;  %v1360_v47 = vld [vmem:[%s14127_s3 + $0xe0] sm:$0xff] }
  0xb6   :  { %9032 = vmatmul.mubr.msk.bf16.gmra.mrb[84].mxu1 %vm323_vm2, %v289_v52  ;;  %v1363_v52 = vld [vmem:[%s14127_s3 + $0xf8] sm:$0xff] }
  0xb7   :  { %9035 = vmatprep.mubr.msk.bf16.mxu1 %vm323_vm2, %v290_v53 }
  0xbe   :  { %9036 = vmatmul.mubr.msk.bf16.gmra.mrb[88].mxu1 %vm323_vm2, %v291_v58 }
  0xbf   :  { %9039 = vmatprep.mubr.msk.bf16.mxu1 %vm323_vm2, %v292_v59 }
  0xc6   :  { %9040 = vmatmul.mubr.msk.bf16.gmra.mrb[92].mxu1 %vm323_vm2, %v293_v0 }
  0xc7   :  { %9043 = vmatprep.mubr.msk.bf16.mxu1 %vm323_vm2, %v294_v1  ;;  %v10260_v1 = vld [vmem:[%s14127_s3 + $0x18] sm:$0xff] }
  0xce   :  { %9044 = vmatmul.mubr.msk.bf16.gmra.mrb[96].mxu1 %vm323_vm2, %v295_v7 }
  0xcf   :  { %9047 = vmatprep.mubr.msk.bf16.mxu1 %vm323_vm2, %v296_v8 }
  0xd6   :  { %9048 = vmatmul.mubr.msk.bf16.gmra.mrb[100].mxu1 %vm323_vm2, %v297_v13 }
  0xd7   :  { %9051 = vmatprep.mubr.msk.bf16.mxu1 %vm323_vm2, %v298_v14  ;;  %v200_v14 = vld [vmem:[%s14325_s28 + $0x470] sm:$0xff] }
  0xde   :  { %9052 = vmatmul.mubr.msk.bf16.gmra.mrb[104].mxu1 %vm323_vm2, %v299_v19 }
  0xdf   :  { %9055 = vmatprep.mubr.msk.bf16.mxu1 %vm323_vm2, %v300_v20  ;;  %v1364_v20 = vld [vmem:[%s14127_s3 + $0x100] sm:$0xff] }
  0xe1   :  { %v8949_v27 = vpop.f32.mrb[0].mxu1 }
  0xe2   :  { %v1446_v29 = vadd.f32 %v8949_v27, %v1358_v21  ;;  %v725_v30 = vpop.f32.mrb[1].mxu1  ;;  %v202_v21 = vld [vmem:[%s14325_s28 + $0x480] sm:$0xff]  ;;  %v1367_v27 = vld [vmem:[%s14127_s3 + $0x118] sm:$0xff] }
  0xe3   :  { %v1444_v33 = vadd.f32 %v1356_v24, %v725_v30  ;;  %v8950_v34 = vpop.f32.mrb[2].mxu1 }
  0xe4   :  { %v1447_v36 = vadd.f32 %v8950_v34, %v1359_v28  ;;  %v728_v37 = vpop.f32.mrb[3].mxu1  ;;  %v1622_v39 = vmax.f32 %v1446_v29, 0.0  ;;  %v10304_v34 = vld [vmem:[%s14127_s3 + $0x30] sm:$0xff] }
  0xe5   :  { %v1445_v38 = vadd.f32 %v1357_v31, %v728_v37  ;;  %v1620_v41 = vmax.f32 %v1444_v33, 0.0  ;;  %v8925_v0 = vpop.f32.mrb[0].mxu0  ;;  %v1365_v31 = vld [vmem:[%s14127_s3 + $0x108] sm:$0xff]  ;;  %v306_v37 = vpack.c.bf16 %v203_v22, %v202_v21 }
  0xe6   :  { %v1623_v40 = vmax.f32 %v1447_v36, 0.0  ;;  %9056 = vmatmul.mubr.msk.bf16.gmra.mrb[108].mxu1 %vm323_vm2, %v301_v32  ;;  %v1422_v4 = vadd.f32 %v8925_v0, %v10250_v57  ;;  %v629_v5 = vpop.f32.mrb[1].mxu0  ;;  %v305_v32 = vpack.c.bf16 %v201_v15, %v200_v14 }
  0xe7   :  { %v1621_v42 = vmax.f32 %v1445_v38, 0.0  ;;  %9059 = vmatprep.mubr.msk.bf16.mxu1 %vm323_vm2, %v302_v35  ;;  %v1420_v10 = vadd.f32 %v10255_v61, %v629_v5  ;;  %v8926_v11 = vpop.f32.mrb[2].mxu0  ;;  %v206_v5 = vld [vmem:[%s14325_s28 + $0x4a0] sm:$0xff] }
  0xe8   :  { %v10228_v46 = vpack.c.bf16 %v1623_v40, %v1622_v39  ;;  %v1598_v16 = vmax.f32 %v1422_v4, 0.0  ;;  %v1423_v17 = vadd.f32 %v8926_v11, %v10260_v1  ;;  %v632_v18 = vpop.f32.mrb[3].mxu0  ;;  %v10311_v39 = vld [vmem:[%s14127_s3 + $0x20] sm:$0xff] }
  0xe9   :  { %v10239_v50 = vpack.c.bf16 %v1621_v42, %v1620_v41  ;;  %v8953_v51 = vpop.f32.mrb[4].mxu1  ;;  %v1596_v23 = vmax.f32 %v1420_v10, 0.0  ;;  %v1421_v24 = vadd.f32 %v10266_v6, %v632_v18  ;;  %v1368_v4 = vld [vmem:[%s14127_s3 + $0x120] sm:$0xff] }
  0xea   :  { %v1450_v53 = vadd.f32 %v8953_v51, %v1362_v43  ;;  %v741_v54 = vpop.f32.mrb[5].mxu1  ;;  %v1599_v28 = vmax.f32 %v1423_v17, 0.0 }
  0xeb   :  { %v1448_v58 = vadd.f32 %v1360_v47, %v741_v54  ;;  %v8954_v59 = vpop.f32.mrb[6].mxu1  ;;  %v1597_v33 = vmax.f32 %v1421_v24, 0.0 }
  0xec   :  { %v1451_v62 = vadd.f32 %v8954_v59, %v1363_v52  ;;  %v744_v63 = vpop.f32.mrb[7].mxu1  ;;  %v1626_v7 = vmax.f32 %v1450_v53, 0.0  ;;  %v10306_v38 = vpack.c.bf16 %v1599_v28, %v1598_v16  ;;  %v1370_v53 = vld [vmem:[%s14127_s3 + $0x130] sm:$0xff]  ;;  %v1369_v16 = vld [vmem:[%s14127_s3 + $0x128] sm:$0xff] }
  0xed   :  { %v1449_v3 = vadd.f32 %v1361_v55, %v744_v63  ;;  %v1624_v12 = vmax.f32 %v1448_v58, 0.0  ;;  %v10313_v42 = vpack.c.bf16 %v1597_v33, %v1596_v23  ;;  %v8929_v43 = vpop.f32.mrb[4].mxu0  ;;  %v204_v59 = vld [vmem:[%s14325_s28 + $0x490] sm:$0xff] }
  0xee   :  { %v1627_v8 = vmax.f32 %v1451_v62, 0.0  ;;  %9060 = vmatmul.mubr.msk.bf16.gmra.mrb[112].mxu1 %vm323_vm2, %v303_v56  ;;  %v1426_v47 = vadd.f32 %v8929_v43, %v10304_v34  ;;  %v645_v48 = vpop.f32.mrb[5].mxu0 }
  0xef   :  { %v1625_v13 = vmax.f32 %v1449_v3, 0.0  ;;  %9063 = vmatprep.mubr.msk.bf16.mxu1 %vm323_vm2, %v304_v60  ;;  %v1424_v54 = vadd.f32 %v10311_v39, %v645_v48  ;;  %v8930_v55 = vpop.f32.mrb[6].mxu0  ;;  %v205_v60 = vld [vmem:[%s14325_s28 + $0x498] sm:$0xff] }
  0xf0   :  { %v10281_v19 = vpack.c.bf16 %v1627_v8, %v1626_v7  ;;  %v1602_v62 = vmax.f32 %v1426_v47, 0.0  ;;  %v1427_v63 = vadd.f32 %v8930_v55, %v10318_v44  ;;  %v648_v0 = vpop.f32.mrb[7].mxu0  ;;  %v207_v7 = vld [vmem:[%s14325_s28 + $0x4a8] sm:$0xff]  ;;  %v307_v17 = vpack.c.bf16 %v205_v60, %v204_v59  ;;  %v210_v59 = vld [vmem:[%s14325_s28 + $0x4c0] sm:$0xff] }
  0xf1   :  { %v10293_v25 = vpack.c.bf16 %v1625_v13, %v1624_v12  ;;  %v8957_v26 = vpop.f32.mrb[8].mxu1  ;;  %v1600_v8 = vmax.f32 %v1424_v54, 0.0  ;;  %v1371_v12 = vld [vmem:[%s14127_s3 + $0x138] sm:$0xff]  ;;  %v308_v23 = vpack.c.bf16 %v207_v7, %v206_v5  ;;  %v211_v60 = vld [vmem:[%s14325_s28 + $0x4c8] sm:$0xff] }
  0xf2   :  { %v1454_v29 = vadd.f32 %v8957_v26, %v1366_v9  ;;  %v757_v30 = vpop.f32.mrb[9].mxu1  ;;  %v1425_v9 = vadd.f32 %v10324_v49, %v648_v0  ;;  %v1603_v13 = vmax.f32 %v1427_v63, 0.0  ;;  %v10369_v26 = vld [vmem:[%s14127_s3 + $0x40] sm:$0xff]  ;;  %v1375_v5 = vld [vmem:[%s14127_s3 + $0x158] sm:$0xff] }
  0xf3   :  { %v1452_v35 = vadd.f32 %v1364_v20, %v757_v30  ;;  %v8958_v36 = vpop.f32.mrb[10].mxu1  ;;  %v10362_v20 = vld [vmem:[%s14127_s3 + $0x50] sm:$0xff] }
  0xf4   :  { %v1455_v40 = vadd.f32 %v8958_v36, %v1367_v27  ;;  %v760_v41 = vpop.f32.mrb[11].mxu1  ;;  %v1630_v51 = vmax.f32 %v1454_v29, 0.0  ;;  %v1601_v18 = vmax.f32 %v1425_v9, 0.0  ;;  %v10364_v24 = vpack.c.bf16 %v1603_v13, %v1602_v62  ;;  %v10382_v36 = vld [vmem:[%s14127_s3 + $0x48] sm:$0xff] }
  0xf5   :  { %v1453_v45 = vadd.f32 %v1365_v31, %v760_v41  ;;  %v1628_v56 = vmax.f32 %v1452_v35, 0.0  ;;  %v8933_v30 = vpop.f32.mrb[8].mxu0  ;;  %v10376_v31 = vld [vmem:[%s14127_s3 + $0x58] sm:$0xff]  ;;  %v1374_v41 = vld [vmem:[%s14127_s3 + $0x150] sm:$0xff] }
  0xf6   :  { %v1631_v52 = vmax.f32 %v1455_v40, 0.0  ;;  %9064 = vmatmul.mubr.msk.bf16.gmra.mrb[116].mxu1 %vm323_vm2, %v305_v32  ;;  %v10371_v29 = vpack.c.bf16 %v1601_v18, %v1600_v8  ;;  %v1430_v33 = vadd.f32 %v8933_v30, %v10362_v20  ;;  %v661_v35 = vpop.f32.mrb[9].mxu0  ;;  %v10434_v30 = vld [vmem:[%s14127_s3 + $0x78] sm:$0xff] }
  0xf7   :  { %v1629_v58 = vmax.f32 %v1453_v45, 0.0  ;;  %9067 = vmatprep.mubr.msk.bf16.mxu1 %vm323_vm2, %v306_v37  ;;  %v1428_v43 = vadd.f32 %v10369_v26, %v661_v35  ;;  %v8934_v45 = vpop.f32.mrb[10].mxu0 }
  0xf8   :  { %v10339_v3 = vpack.c.bf16 %v1631_v52, %v1630_v51  ;;  %v208_v51 = vld [vmem:[%s14325_s28 + $0x4b0] sm:$0xff]  ;;  %v209_v52 = vld [vmem:[%s14325_s28 + $0x4b8] sm:$0xff]  ;;  %v1431_v54 = vadd.f32 %v8934_v45, %v10376_v31  ;;  %v664_v55 = vpop.f32.mrb[11].mxu0 }
  0xf9   :  { %v10351_v10 = vpack.c.bf16 %v1629_v58, %v1628_v56  ;;  %v8961_v11 = vpop.f32.mrb[12].mxu1  ;;  %v1372_v58 = vld [vmem:[%s14127_s3 + $0x140] sm:$0xff]  ;;  %v1604_v62 = vmax.f32 %v1428_v43, 0.0  ;;  %v1429_v63 = vadd.f32 %v10382_v36, %v664_v55  ;;  %v1378_v43 = vld [vmem:[%s14127_s3 + $0x170] sm:$0xff] }
  0xfa   :  { %v1458_v14 = vadd.f32 %v8961_v11, %v1370_v53  ;;  %v773_v15 = vpop.f32.mrb[13].mxu1  ;;  %v1606_v53 = vmax.f32 %v1430_v33, 0.0  ;;  %v1607_v7 = vmax.f32 %v1431_v54, 0.0  ;;  %v1373_v11 = vld [vmem:[%s14127_s3 + $0x148] sm:$0xff] }
  0xfb   :  { %v1456_v21 = vadd.f32 %v1368_v4, %v773_v15  ;;  %v8962_v22 = vpop.f32.mrb[14].mxu1  ;;  %v1605_v13 = vmax.f32 %v1429_v63, 0.0  ;;  %v215_v63 = vld [vmem:[%s14325_s28 + $0x4e8] sm:$0xff] }
  0xfc   :  { %v1459_v27 = vadd.f32 %v8962_v22, %v1371_v12  ;;  %v776_v28 = vpop.f32.mrb[15].mxu1  ;;  %v1634_v37 = vmax.f32 %v1458_v14, 0.0  ;;  %v309_v12 = vpack.c.bf16 %v209_v52, %v208_v51  ;;  %v10420_v14 = vld [vmem:[%s14127_s3 + $0x70] sm:$0xff]  ;;  %v10422_v18 = vpack.c.bf16 %v1607_v7, %v1606_v53  ;;  %v213_v53 = vld [vmem:[%s14325_s28 + $0x4d8] sm:$0xff] }
  0xfd   :  { %v1457_v32 = vadd.f32 %v1369_v16, %v776_v28  ;;  %v1632_v47 = vmax.f32 %v1456_v21, 0.0  ;;  %v10427_v21 = vld [vmem:[%s14127_s3 + $0x60] sm:$0xff]  ;;  %v8937_v28 = vpop.f32.mrb[12].mxu0  ;;  %v212_v52 = vld [vmem:[%s14325_s28 + $0x4d0] sm:$0xff] }
  0xfe   :  { %v1635_v40 = vmax.f32 %v1459_v27, 0.0  ;;  %9068 = vmatmul.mubr.msk.bf16.gmra.mrb[120].mxu1 %vm323_vm2, %v307_v17  ;;  %v310_v17 = vpack.c.bf16 %v211_v60, %v210_v59  ;;  %v10429_v27 = vpack.c.bf16 %v1605_v13, %v1604_v62  ;;  %v1434_v33 = vadd.f32 %v8937_v28, %v10420_v14  ;;  %v677_v35 = vpop.f32.mrb[13].mxu0  ;;  %v10460_v60 = vld [vmem:[%s14127_s3 + $0x160] sm:$0xff] }
  0xff   :  { %v1633_v48 = vmax.f32 %v1457_v32, 0.0  ;;  %9071 = vmatprep.mubr.msk.bf16.mxu1 %vm323_vm2, %v308_v23  ;;  %v1432_v45 = vadd.f32 %v10427_v21, %v677_v35  ;;  %14327 = vst [vmem:[#allocation9_spill] sm:$0xff] %v10460_v60  ;;  %v214_v62 = vld [vmem:[%s14325_s28 + $0x4e0] sm:$0xff] }
 0x100   :  { %v10397_v56 = vpack.c.bf16 %v1635_v40, %v1634_v37  ;;  %v10440_v37 = vld [vmem:[%s14127_s3 + $0x68] sm:$0xff]  ;;  %v1610_v54 = vmax.f32 %v1434_v33, 0.0  ;;  %v10492_v35 = vld [vmem:[%s14127_s3 + $0x80] sm:$0xff] }
 0x101   :  { %v10409_v0 = vpack.c.bf16 %v1633_v48, %v1632_v47  ;;  %v8965_v4 = vpop.f32.mrb[16].mxu1  ;;  %v8938_v47 = vpop.f32.mrb[14].mxu0 }
 0x102   :  { %v1462_v8 = vadd.f32 %v8965_v4, %v1374_v41  ;;  %v789_v9 = vpop.f32.mrb[17].mxu1  ;;  %v1435_v55 = vadd.f32 %v8938_v47, %v10434_v30  ;;  %v1608_v4 = vmax.f32 %v1432_v45, 0.0  ;;  %v10500_v47 = vld [vmem:[%s14127_s3 + $0x98] sm:$0xff] }
 0x103   :  { %v1460_v15 = vadd.f32 %v1372_v58, %v789_v9  ;;  %v8966_v16 = vpop.f32.mrb[18].mxu1  ;;  %v680_v58 = vpop.f32.mrb[15].mxu0  ;;  %v10474_v9 = vld [vmem:[%s14127_s3 + $0x178] sm:$0xff] }
 0x104   :  { %v1463_v22 = vadd.f32 %v8966_v16, %v1375_v5  ;;  %v792_v23 = vpop.f32.mrb[19].mxu1  ;;  %v1638_v40 = vmax.f32 %v1462_v8, 0.0  ;;  %v1433_v5 = vadd.f32 %v10440_v37, %v680_v58  ;;  %14329 = vst [vmem:[#allocation11_spill] sm:$0xff] %v10474_v9  ;;  %v311_v16 = vpack.c.bf16 %v213_v53, %v212_v52  ;;  %v10507_v53 = vld [vmem:[%s14127_s3 + $0x88] sm:$0xff]  ;;  %v10513_v58 = vld [vmem:[%s14127_s3 + $0x190] sm:$0xff] }
 0x105   :  { %v1461_v32 = vadd.f32 %v1373_v11, %v792_v23  ;;  %v1636_v48 = vmax.f32 %v1460_v15, 0.0  ;;  %v1611_v11 = vmax.f32 %v1435_v55, 0.0  ;;  %v10479_v15 = vld [vmem:[%s14127_s3 + $0x168] sm:$0xff]  ;;  %v8941_v45 = vpop.f32.mrb[16].mxu0  ;;  %14331 = vst [vmem:[#allocation13_spill] sm:$0xff] %v10513_v58 }
 0x106   :  { %v1639_v41 = vmax.f32 %v1463_v22, 0.0  ;;  %9072 = vmatmul.mubr.msk.bf16.gmra.mrb[124].mxu1 %vm323_vm2, %v309_v12  ;;  %14330 = vst [vmem:[#allocation12_spill] sm:$0xff] %v10479_v15  ;;  %v10484_v22 = vld [vmem:[%s14127_s3 + $0x90] sm:$0xff]  ;;  %v693_v52 = vpop.f32.mrb[17].mxu0 }
 0x107   :  { %v1637_v51 = vmax.f32 %v1461_v32, 0.0  ;;  %9075 = vmatprep.mubr.msk.bf16.mxu1 %vm323_vm2, %v310_v17  ;;  %v1609_v17 = vmax.f32 %v1433_v5, 0.0  ;;  %v312_v32 = vpack.c.bf16 %v215_v63, %v214_v62  ;;  %v10487_v33 = vpack.c.bf16 %v1611_v11, %v1610_v54  ;;  %v8942_v63 = vpop.f32.mrb[18].mxu0  ;;  %v217_v11 = vld [vmem:[%s14325_s28 + $0x4f8] sm:$0xff] }
 0x108   :  { %v10455_v59 = vpack.c.bf16 %v1639_v41, %v1638_v40  ;;  %v1436_v62 = vadd.f32 %v10492_v35, %v693_v52 }
 0x109   :  { %v10469_v7 = vpack.c.bf16 %v1637_v51, %v1636_v48  ;;  %v8969_v8 = vpop.f32.mrb[20].mxu1  ;;  %v1438_v51 = vadd.f32 %v8941_v45, %v10484_v22 }
 0x10a   :  { %14326 = vst [vmem:[#allocation8_spill] sm:$0xff] %v10455_v59  ;;  %v1466_v12 = vadd.f32 %v8969_v8, %v1378_v43  ;;  %v805_v13 = vpop.f32.mrb[21].mxu1  ;;  %v10495_v43 = vpack.c.bf16 %v1609_v17, %v1608_v4  ;;  %v216_v8 = vld [vmem:[%s14325_s28 + $0x4f0] sm:$0xff]  ;;  %v10619_v59 = vld [vmem:[%s14127_s3 + $0x1a8] sm:$0xff] }
 0x10b   :  { %14328 = vst [vmem:[#allocation10_spill] sm:$0xff] %v10469_v7  ;;  %v1464_v23 = vadd.f32 %v10460_v60, %v805_v13  ;;  %v8970_v28 = vpop.f32.mrb[22].mxu1  ;;  %v1439_v13 = vadd.f32 %v8942_v63, %v10500_v47  ;;  %v10549_v63 = vld [vmem:[%s14127_s3 + $0x188] sm:$0xff]  ;;  %14346 = vst [vmem:[#allocation28_spill] sm:$0xff] %v10619_v59 }
 0x10c   :  { %v1467_v40 = vadd.f32 %v8970_v28, %v10474_v9  ;;  %v808_v41 = vpop.f32.mrb[23].mxu1  ;;  %v1642_v54 = vmax.f32 %v1466_v12, 0.0  ;;  %v1614_v12 = vmax.f32 %v1438_v51, 0.0  ;;  %v218_v28 = vld [vmem:[%s14325_s28 + $0x500] sm:$0xff]  ;;  %v10543_v51 = vld [vmem:[%s14127_s3 + $0x198] sm:$0xff]  ;;  %14336 = vst [vmem:[#allocation18_spill] sm:$0xff] %v10549_v63 }
 0x10d   :  { %v1465_v48 = vadd.f32 %v10479_v15, %v808_v41  ;;  %v1640_v4 = vmax.f32 %v1464_v23, 0.0  ;;  %v10529_v23 = vld [vmem:[%s14127_s3 + $0x180] sm:$0xff]  ;;  %14335 = vst [vmem:[#allocation17_spill] sm:$0xff] %v10543_v51  ;;  %v1615_v52 = vmax.f32 %v1439_v13, 0.0  ;;  %v10570_v9 = vld [vmem:[%s14127_s3 + $0xb8] sm:$0xff] }
 0x10e   :  { %v1643_v55 = vmax.f32 %v1467_v40, 0.0  ;;  %9076 = vmatmul.mubr.msk.bf16.gmra.mrb[128].mxu1 %vm323_vm2, %v311_v16  ;;  %v696_v16 = vpop.f32.mrb[19].mxu0  ;;  %14333 = vst [vmem:[#allocation15_spill] sm:$0xff] %v10529_v23  ;;  %v1612_v40 = vmax.f32 %v1436_v62, 0.0  ;;  %v313_v62 = vpack.c.bf16 %v217_v11, %v216_v8  ;;  %14339 = vst [vmem:[#allocation21_spill] sm:$0xff] %v10570_v9 }
 0x10f   :  { %v1641_v5 = vmax.f32 %v1465_v48, 0.0  ;;  %9079 = vmatprep.mubr.msk.bf16.mxu1 %vm323_vm2, %v312_v32  ;;  %v219_v32 = vld [vmem:[%s14325_s28 + $0x508] sm:$0xff]  ;;  %v1437_v41 = vadd.f32 %v10507_v53, %v696_v16  ;;  %v10557_v13 = vpack.c.bf16 %v1615_v52, %v1614_v12 }
 0x110   :  { %v10524_v17 = vpack.c.bf16 %v1643_v55, %v1642_v54  ;;  %v314_v15 = vpack.c.bf16 %v219_v32, %v218_v28  ;;  %v10577_v52 = vld [vmem:[%s14127_s3 + $0xa8] sm:$0xff] }
 0x111   :  { %v10538_v45 = vpack.c.bf16 %v1641_v5, %v1640_v4  ;;  %v8973_v48 = vpop.f32.mrb[24].mxu1  ;;  %v1613_v2 = vmax.f32 %v1437_v41, 0.0  ;;  %v10554_v4 = vld [vmem:[%s14127_s3 + $0xb0] sm:$0xff]  ;;  %v8945_v41 = vpop.f32.mrb[20].mxu0  ;;  %14340 = vst [vmem:[#allocation22_spill] sm:$0xff] %v10577_v52 }
 0x112   :  { %14332 = vst [vmem:[#allocation14_spill] sm:$0xff] %v10524_v17  ;;  %v1470_v54 = vadd.f32 %v8973_v48, %v10513_v58  ;;  %v821_v55 = vpop.f32.mrb[25].mxu1  ;;  %14337 = vst [vmem:[#allocation19_spill] sm:$0xff] %v10554_v4  ;;  %v10562_v48 = vld [vmem:[%s14127_s3 + $0xa0] sm:$0xff]  ;;  %v1442_v12 = vadd.f32 %v8945_v41, %v10554_v4  ;;  %v709_v32 = vpop.f32.mrb[21].mxu0 }
 0x113   :  { %14334 = vst [vmem:[#allocation16_spill] sm:$0xff] %v10538_v45  ;;  %v1468_v5 = vadd.f32 %v10529_v23, %v821_v55  ;;  %v8974_v16 = vpop.f32.mrb[26].mxu1  ;;  %14338 = vst [vmem:[#allocation20_spill] sm:$0xff] %v10562_v48  ;;  %v10565_v11 = vpack.c.bf16 %v1613_v2, %v1612_v40  ;;  %v10583_v2 = vld [vmem:[%s14127_s3 + $0x1b0] sm:$0xff]  ;;  %v1440_v40 = vadd.f32 %v10562_v48, %v709_v32 }
 0x114   :  { %v1471_v58 = vadd.f32 %v8974_v16, %v10543_v51  ;;  %v824_v8 = vpop.f32.mrb[27].mxu1  ;;  %v1646_v55 = vmax.f32 %v1470_v54, 0.0  ;;  %14341 = vst [vmem:[#allocation23_spill] sm:$0xff] %v10583_v2  ;;  %v220_v51 = vld [vmem:[%s14325_s28 + $0x510] sm:$0xff]  ;;  %v1618_v54 = vmax.f32 %v1442_v12, 0.0 }
 0x115   :  { %v1469_v28 = vadd.f32 %v10549_v63, %v824_v8  ;;  %v8946_v8 = vpop.f32.mrb[22].mxu0  ;;  %v1644_v63 = vmax.f32 %v1468_v5, 0.0  ;;  %v10599_v5 = vld [vmem:[%s14127_s3 + $0x1a0] sm:$0xff]  ;;  %v1616_v32 = vmax.f32 %v1440_v40, 0.0 }
 0x116   :  { %v1647_v16 = vmax.f32 %v1471_v58, 0.0  ;;  %9080 = vmatmul.mubr.msk.bf16.gmra.mrb[132].mxu1 %vm323_vm2, %v313_v62  ;;  %v221_v58 = vld [vmem:[%s14325_s28 + $0x518] sm:$0xff]  ;;  %v1443_v62 = vadd.f32 %v8946_v8, %v10570_v9  ;;  %v712_v23 = vpop.f32.mrb[23].mxu0  ;;  %14343 = vst [vmem:[#allocation25_spill] sm:$0xff] %v10599_v5 }
 0x117   :  { %v1645_v41 = vmax.f32 %v1469_v28, 0.0  ;;  %9083 = vmatprep.mubr.msk.bf16.mxu1 %vm323_vm2, %v314_v15  ;;  %v222_v15 = vld [vmem:[%s14325_s28 + $0x520] sm:$0xff]  ;;  %v223_v28 = vld [vmem:[%s14325_s28 + $0x528] sm:$0xff]  ;;  %v1441_v12 = vadd.f32 %v10577_v52, %v712_v23  ;;  %v315_v40 = vpack.c.bf16 %v221_v58, %v220_v51 }
 0x118   :  { %v10594_v60 = vpack.c.bf16 %v1647_v16, %v1646_v55  ;;  %v10613_v16 = vld [vmem:[%s14127_s3 + $0x1b8] sm:$0xff]  ;;  %v227_v58 = vld [vmem:[%s14325_s28 + $0x548] sm:$0xff] }
 0x119   :  { %v10608_v8 = vpack.c.bf16 %v1645_v41, %v1644_v63  ;;  %v8977_v55 = vpop.f32.mrb[28].mxu1  ;;  %14345 = vst [vmem:[#allocation27_spill] sm:$0xff] %v10613_v16  ;;  %v1617_v9 = vmax.f32 %v1441_v12, 0.0  ;;  %v316_v41 = vpack.c.bf16 %v223_v28, %v222_v15 }
 0x11a   :  { %14342 = vst [vmem:[#allocation24_spill] sm:$0xff] %v10594_v60  ;;  %v1619_v60 = vmax.f32 %v1443_v62, 0.0  ;;  %v1474_v17 = vadd.f32 %v8977_v55, %v10583_v2  ;;  %v837_v45 = vpop.f32.mrb[29].mxu1 }
 0x11b   :  { %14344 = vst [vmem:[#allocation26_spill] sm:$0xff] %v10608_v8  ;;  %v1472_v23 = vadd.f32 %v10599_v5, %v837_v45  ;;  %v8978_v63 = vpop.f32.mrb[30].mxu1  ;;  %v10625_v62 = vpack.c.bf16 %v1617_v9, %v1616_v32  ;;  %v10632_v45 = vld [vmem:[%s14127_s3 + $0x1d0] sm:$0xff]  ;;  %v225_v9 = vld [vmem:[%s14325_s28 + $0x538] sm:$0xff]  ;;  %v10665_v32 = vld [vmem:[%s14127_s3 + $0x1c8] sm:$0xff] }
 0x11c   :  { %v10622_v8 = vpack.c.bf16 %v1619_v60, %v1618_v54  ;;  %v1475_v52 = vadd.f32 %v8978_v63, %v10613_v16  ;;  %v840_v48 = vpop.f32.mrb[31].mxu1  ;;  %v1650_v2 = vmax.f32 %v1474_v17, 0.0  ;;  %14347 = vst [vmem:[#allocation29_spill] sm:$0xff] %v10632_v45  ;;  %v224_v60 = vld [vmem:[%s14325_s28 + $0x530] sm:$0xff]  ;;  %14350 = vst [vmem:[#allocation32_spill] sm:$0xff] %v10665_v32 }
 0x11d   :  { %v1473_v55 = vadd.f32 %v10619_v59, %v840_v48  ;;  %v1648_v7 = vmax.f32 %v1472_v23, 0.0  ;;  %v10646_v48 = vld [vmem:[%s14127_s3 + $0x1c0] sm:$0xff]  ;;  %v317_v12 = vpack.c.bf16 %v225_v9, %v224_v60  ;;  %v10674_v16 = vld [vmem:[%s14127_s3 + $0x1f0] sm:$0xff]  ;;  %v229_v9 = vld [vmem:[%s14325_s28 + $0x558] sm:$0xff] }
 0x11e   :  { %v1651_v4 = vmax.f32 %v1475_v52, 0.0  ;;  %9084 = vmatmul.mubr.msk.bf16.gmra.mrb[136].mxu1 %vm323_vm2, %v315_v40  ;;  %14348 = vst [vmem:[#allocation30_spill] sm:$0xff] %v10646_v48  ;;  %v226_v52 = vld [vmem:[%s14325_s28 + $0x540] sm:$0xff]  ;;  %14351 = vst [vmem:[#allocation33_spill] sm:$0xff] %v10674_v16  ;;  %v228_v60 = vld [vmem:[%s14325_s28 + $0x550] sm:$0xff] }
 0x11f   :  { %v1649_v51 = vmax.f32 %v1473_v55, 0.0  ;;  %9087 = vmatprep.mubr.msk.bf16.mxu1 %vm323_vm2, %v316_v41 }
 0x120   :  { %v10641_v17 = vpack.c.bf16 %v1651_v4, %v1650_v2  ;;  %v10659_v4 = vld [vmem:[%s14127_s3 + $0x1d8] sm:$0xff] }
 0x121   :  { %v10654_v54 = vpack.c.bf16 %v1649_v51, %v1648_v7  ;;  %v8981_v15 = vpop.f32.mrb[32].mxu1  ;;  %14349 = vst [vmem:[#allocation31_spill] sm:$0xff] %v10659_v4  ;;  %v318_v7 = vpack.c.bf16 %v227_v58, %v226_v52  ;;  %v10688_v58 = vld [vmem:[%s14127_s3 + $0x1e0] sm:$0xff] }
 0x122   :  { %v1478_v2 = vadd.f32 %v8981_v15, %v10632_v45  ;;  %v853_v28 = vpop.f32.mrb[33].mxu1 }
 0x123   :  { %v1476_v40 = vadd.f32 %v10646_v48, %v853_v28  ;;  %v8982_v23 = vpop.f32.mrb[34].mxu1  ;;  %v231_v28 = vld [vmem:[%s14325_s28 + $0x568] sm:$0xff] }
 0x124   :  { %v1479_v63 = vadd.f32 %v8982_v23, %v10659_v4  ;;  %v856_v41 = vpop.f32.mrb[35].mxu1  ;;  %v1654_v51 = vmax.f32 %v1478_v2, 0.0  ;;  %v230_v2 = vld [vmem:[%s14325_s28 + $0x560] sm:$0xff] }
 0x125   :  { %v1477_v55 = vadd.f32 %v10665_v32, %v856_v41  ;;  %v1652_v15 = vmax.f32 %v1476_v40, 0.0  ;;  %v319_v41 = vpack.c.bf16 %v229_v9, %v228_v60  ;;  %v232_v60 = vld [vmem:[%s14325_s28 + $0x570] sm:$0xff] }
 0x126   :  { %v1655_v59 = vmax.f32 %v1479_v63, 0.0  ;;  %9088 = vmatmul.mubr.msk.bf16.gmra.mrb[140].mxu1 %vm323_vm2, %v317_v12  ;;  %v10707_v63 = vld [vmem:[%s14127_s3 + $0x1e8] sm:$0xff] }
 0x127   :  { %v1653_v45 = vmax.f32 %v1477_v55, 0.0  ;;  %9091 = vmatprep.mubr.msk.bf16.mxu1 %vm323_vm2, %v318_v7  ;;  %14354 = vst [vmem:[#allocation36_spill] sm:$0xff] %v10707_v63 }
 0x128   :  { %v10683_v52 = vpack.c.bf16 %v1655_v59, %v1654_v51  ;;  %v10701_v59 = vld [vmem:[%s14127_s3 + $0x1f8] sm:$0xff] }
 0x129   :  { %v10696_v12 = vpack.c.bf16 %v1653_v45, %v1652_v15  ;;  %v8985_v40 = vpop.f32.mrb[36].mxu1  ;;  %14353 = vst [vmem:[#allocation35_spill] sm:$0xff] %v10701_v59  ;;  %v320_v45 = vpack.c.bf16 %v231_v28, %v230_v2 }
 0x12a   :  { %14352 = vst [vmem:[#allocation34_spill] sm:$0xff] %v10683_v52  ;;  %v1482_v23 = vadd.f32 %v8985_v40, %v10674_v16  ;;  %v869_v7 = vpop.f32.mrb[37].mxu1  ;;  %v10716_v52 = vld [vmem:[%s14127_s3 + $0x210] sm:$0xff] }
 0x12b   :  { %v1480_v55 = vadd.f32 %v10688_v58, %v869_v7  ;;  %v8986_v51 = vpop.f32.mrb[38].mxu1  ;;  %14355 = vst [vmem:[#allocation37_spill] sm:$0xff] %v10716_v52 }
 0x12c   :  { %v1483_v15 = vadd.f32 %v8986_v51, %v10701_v59  ;;  %v872_v32 = vpop.f32.mrb[39].mxu1  ;;  %v1658_v48 = vmax.f32 %v1482_v23, 0.0  ;;  %v10737_v23 = vld [vmem:[%s14127_s3 + $0x218] sm:$0xff]  ;;  %v10752_v59 = vld [vmem:[%s14127_s3 + $0x230] sm:$0xff] }
 0x12d   :  { %v1481_v4 = vadd.f32 %v10707_v63, %v872_v32  ;;  %v1656_v40 = vmax.f32 %v1480_v55, 0.0  ;;  %v233_v32 = vld [vmem:[%s14325_s28 + $0x578] sm:$0xff]  ;;  %14356 = vst [vmem:[#allocation38_spill] sm:$0xff] %v10737_v23  ;;  %14358 = vst [vmem:[#allocation40_spill] sm:$0xff] %v10752_v59 }
 0x12e   :  { %v1659_v5 = vmax.f32 %v1483_v15, 0.0  ;;  %9092 = vmatmul.mubr.msk.bf16.gmra.mrb[144].mxu1 %vm323_vm2, %v319_v41 }
 0x12f   :  { %v1657_v16 = vmax.f32 %v1481_v4, 0.0  ;;  %9095 = vmatprep.mubr.msk.bf16.mxu1 %vm323_vm2, %v320_v45  ;;  %v10730_v4 = vld [vmem:[%s14127_s3 + $0x200] sm:$0xff] }
 0x130   :  { %v10725_v9 = vpack.c.bf16 %v1659_v5, %v1658_v48  ;;  %v10743_v5 = vld [vmem:[%s14127_s3 + $0x208] sm:$0xff]  ;;  %v321_v48 = vpack.c.bf16 %v233_v32, %v232_v60  ;;  %v10761_v32 = vld [vmem:[%s14127_s3 + $0x220] sm:$0xff] }
 0x131   :  { %v10732_v2 = vpack.c.bf16 %v1657_v16, %v1656_v40  ;;  %v8989_v28 = vpop.f32.mrb[40].mxu1  ;;  %14357 = vst [vmem:[#allocation39_spill] sm:$0xff] %v10743_v5  ;;  %14359 = vst [vmem:[#allocation41_spill] sm:$0xff] %v10761_v32 }
 0x132   :  { %v1486_v7 = vadd.f32 %v8989_v28, %v10716_v52  ;;  %v885_v41 = vpop.f32.mrb[41].mxu1 }
 0x133   :  { %v1484_v55 = vadd.f32 %v10730_v4, %v885_v41  ;;  %v8990_v51 = vpop.f32.mrb[42].mxu1 }
 0x134   :  { %v1487_v16 = vadd.f32 %v8990_v51, %v10737_v23  ;;  %v888_v45 = vpop.f32.mrb[43].mxu1  ;;  %v1662_v40 = vmax.f32 %v1486_v7, 0.0 }
 0x135   :  { %v1485_v15 = vadd.f32 %v10743_v5, %v888_v45  ;;  %v1660_v28 = vmax.f32 %v1484_v55, 0.0  ;;  %v10784_v5 = vld [vmem:[%s14127_s3 + $0x250] sm:$0xff] }
 0x136   :  { %v1663_v63 = vmax.f32 %v1487_v16, 0.0  ;;  %9096 = vmatmul.mubr.msk.bf16.gmra.mrb[148].mxu1 %vm323_vm2, %v321_v48  ;;  %v10768_v48 = vld [vmem:[%s14127_s3 + $0x238] sm:$0xff]  ;;  %14362 = vst [vmem:[#allocation44_spill] sm:$0xff] %v10784_v5 }
 0x137   :  { %v1661_v52 = vmax.f32 %v1485_v15, 0.0  ;;  %9107 = vmatprep.mubr.msk.bf16.mxu1 %vm1899_vm3, %v10313_v42  ;;  %14360 = vst [vmem:[#allocation42_spill] sm:$0xff] %v10768_v48  ;;  %v10774_v42 = vld [vmem:[%s14127_s3 + $0x228] sm:$0xff] }
 0x138   :  { %v10756_v60 = vpack.c.bf16 %v1663_v63, %v1662_v40  ;;  %14361 = vst [vmem:[#allocation43_spill] sm:$0xff] %v10774_v42 }
 0x139   :  { %v10763_v7 = vpack.c.bf16 %v1661_v52, %v1660_v28  ;;  %v8993_v41 = vpop.f32.mrb[44].mxu1 }
 0x13a   :  { %v1490_v55 = vadd.f32 %v8993_v41, %v10752_v59  ;;  %v901_v51 = vpop.f32.mrb[45].mxu1 }
 0x13b   :  { %v1488_v63 = vadd.f32 %v10761_v32, %v901_v51  ;;  %v8994_v16 = vpop.f32.mrb[46].mxu1  ;;  %v10816_v32 = vld [vmem:[%s14127_s3 + $0x270] sm:$0xff] }
 0x13c   :  { %v1491_v52 = vadd.f32 %v8994_v16, %v10768_v48  ;;  %v904_v45 = vpop.f32.mrb[47].mxu1  ;;  %v1666_v40 = vmax.f32 %v1490_v55, 0.0  ;;  %v10793_v55 = vld [vmem:[%s14127_s3 + $0x240] sm:$0xff]  ;;  %14366 = vst [vmem:[#allocation48_spill] sm:$0xff] %v10816_v32 }
 0x13d   :  { %v1489_v15 = vadd.f32 %v10774_v42, %v904_v45  ;;  %v1664_v41 = vmax.f32 %v1488_v63, 0.0  ;;  %14363 = vst [vmem:[#allocation45_spill] sm:$0xff] %v10793_v55  ;;  %v10800_v63 = vld [vmem:[%s14127_s3 + $0x258] sm:$0xff] }
 0x13e   :  { %v1667_v28 = vmax.f32 %v1491_v52, 0.0  ;;  %9108 = vmatmul.mubr.msk.bf16.vlgmr.msra.gmra.mrb[152].mxu1 %vm1899_vm3, %v10306_v38  ;;  %14364 = vst [vmem:[#allocation46_spill] sm:$0xff] %v10800_v63 }
 0x13f   :  { %v1665_v59 = vmax.f32 %v1489_v15, 0.0  ;;  %9111 = vmatprep.mubr.msk.bf16.mxu1 %vm1899_vm3, %v10371_v29  ;;  %v10806_v29 = vld [vmem:[%s14127_s3 + $0x248] sm:$0xff] }
 0x140   :  { %v10788_v51 = vpack.c.bf16 %v1667_v28, %v1666_v40  ;;  %14365 = vst [vmem:[#allocation47_spill] sm:$0xff] %v10806_v29 }
 0x141   :  { %v10795_v16 = vpack.c.bf16 %v1665_v59, %v1664_v41  ;;  %v8997_v38 = vpop.f32.mrb[48].mxu1 }
 0x142   :  { %v1494_v52 = vadd.f32 %v8997_v38, %v10784_v5  ;;  %v917_v45 = vpop.f32.mrb[49].mxu1 }
 0x143   :  { %v1492_v15 = vadd.f32 %v10793_v55, %v917_v45  ;;  %v8998_v40 = vpop.f32.mrb[50].mxu1  ;;  %v10848_v55 = vld [vmem:[%s14127_s3 + $0x290] sm:$0xff] }
 0x144   :  { %v1495_v59 = vadd.f32 %v8998_v40, %v10800_v63  ;;  %v920_v28 = vpop.f32.mrb[51].mxu1  ;;  %v1670_v42 = vmax.f32 %v1494_v52, 0.0  ;;  %v10825_v52 = vld [vmem:[%s14127_s3 + $0x260] sm:$0xff]  ;;  %14370 = vst [vmem:[#allocation52_spill] sm:$0xff] %v10848_v55 }
 0x145   :  { %v1493_v41 = vadd.f32 %v10806_v29, %v920_v28  ;;  %v1668_v38 = vmax.f32 %v1492_v15, 0.0  ;;  %14367 = vst [vmem:[#allocation49_spill] sm:$0xff] %v10825_v52  ;;  %v10832_v15 = vld [vmem:[%s14127_s3 + $0x278] sm:$0xff] }
 0x146   :  { %v1671_v48 = vmax.f32 %v1495_v59, 0.0  ;;  %9112 = vmatmul.mubr.msk.bf16.gmra.mrb[156].mxu1 %vm1899_vm3, %v10364_v24  ;;  %14368 = vst [vmem:[#allocation50_spill] sm:$0xff] %v10832_v15 }
 0x147   :  { %v1669_v5 = vmax.f32 %v1493_v41, 0.0  ;;  %9115 = vmatprep.mubr.msk.bf16.mxu1 %vm1899_vm3, %v10429_v27  ;;  %v10838_v27 = vld [vmem:[%s14127_s3 + $0x268] sm:$0xff] }
 0x148   :  { %v10820_v45 = vpack.c.bf16 %v1671_v48, %v1670_v42  ;;  %14369 = vst [vmem:[#allocation51_spill] sm:$0xff] %v10838_v27 }
 0x149   :  { %v10827_v40 = vpack.c.bf16 %v1669_v5, %v1668_v38  ;;  %v9001_v24 = vpop.f32.mrb[52].mxu1 }
 0x14a   :  { %v1498_v59 = vadd.f32 %v9001_v24, %v10816_v32  ;;  %v933_v28 = vpop.f32.mrb[53].mxu1 }
 0x14b   :  { %v1496_v48 = vadd.f32 %v10825_v52, %v933_v28  ;;  %v9002_v42 = vpop.f32.mrb[54].mxu1  ;;  %v10880_v52 = vld [vmem:[%s14127_s3 + $0x2b0] sm:$0xff] }
 0x14c   :  { %v1499_v5 = vadd.f32 %v9002_v42, %v10832_v15  ;;  %v936_v41 = vpop.f32.mrb[55].mxu1  ;;  %v1674_v29 = vmax.f32 %v1498_v59, 0.0  ;;  %v10857_v59 = vld [vmem:[%s14127_s3 + $0x280] sm:$0xff]  ;;  %14374 = vst [vmem:[#allocation56_spill] sm:$0xff] %v10880_v52 }
 0x14d   :  { %v1497_v38 = vadd.f32 %v10838_v27, %v936_v41  ;;  %v1672_v24 = vmax.f32 %v1496_v48, 0.0  ;;  %14371 = vst [vmem:[#allocation53_spill] sm:$0xff] %v10857_v59  ;;  %v10864_v48 = vld [vmem:[%s14127_s3 + $0x298] sm:$0xff] }
 0x14e   :  { %v1675_v63 = vmax.f32 %v1499_v5, 0.0  ;;  %9116 = vmatmul.mubr.msk.bf16.gmra.mrb[160].mxu1 %vm1899_vm3, %v10422_v18  ;;  %14372 = vst [vmem:[#allocation54_spill] sm:$0xff] %v10864_v48 }
 0x14f   :  { %v1673_v32 = vmax.f32 %v1497_v38, 0.0  ;;  %9119 = vmatprep.mubr.msk.bf16.mxu1 %vm1899_vm3, %v10495_v43  ;;  %v10870_v43 = vld [vmem:[%s14127_s3 + $0x288] sm:$0xff] }
 0x150   :  { %v10852_v28 = vpack.c.bf16 %v1675_v63, %v1674_v29  ;;  %14373 = vst [vmem:[#allocation55_spill] sm:$0xff] %v10870_v43 }
 0x151   :  { %v10859_v42 = vpack.c.bf16 %v1673_v32, %v1672_v24  ;;  %v9005_v18 = vpop.f32.mrb[56].mxu1 }
 0x152   :  { %v1502_v5 = vadd.f32 %v9005_v18, %v10848_v55  ;;  %v949_v41 = vpop.f32.mrb[57].mxu1 }
 0x153   :  { %v1500_v63 = vadd.f32 %v10857_v59, %v949_v41  ;;  %v9006_v29 = vpop.f32.mrb[58].mxu1 }
 0x154   :  { %v1503_v32 = vadd.f32 %v9006_v29, %v10864_v48  ;;  %v952_v38 = vpop.f32.mrb[59].mxu1  ;;  %v1678_v27 = vmax.f32 %v1502_v5, 0.0  ;;  %v10889_v5 = vld [vmem:[%s14127_s3 + $0x2a0] sm:$0xff] }
 0x155   :  { %v1501_v24 = vadd.f32 %v10870_v43, %v952_v38  ;;  %v1676_v18 = vmax.f32 %v1500_v63, 0.0  ;;  %v10896_v63 = vld [vmem:[%s14127_s3 + $0x2b8] sm:$0xff] }
 0x156   :  { %v1679_v15 = vmax.f32 %v1503_v32, 0.0  ;;  %9120 = vmatmul.mubr.msk.bf16.gmra.mrb[164].mxu1 %vm1899_vm3, %v10487_v33  ;;  %14375 = vst [vmem:[#allocation57_spill] sm:$0xff] %v10896_v63 }
 0x157   :  { %v1677_v55 = vmax.f32 %v1501_v24, 0.0  ;;  %9123 = vmatprep.mubr.msk.bf16.mxu1 %vm1899_vm3, %v10565_v11  ;;  %v10902_v11 = vld [vmem:[%s14127_s3 + $0x2a8] sm:$0xff] }
 0x158   :  { %v10884_v41 = vpack.c.bf16 %v1679_v15, %v1678_v27  ;;  %14376 = vst [vmem:[#allocation58_spill] sm:$0xff] %v10902_v11 }
 0x159   :  { %v10891_v29 = vpack.c.bf16 %v1677_v55, %v1676_v18  ;;  %v9009_v33 = vpop.f32.mrb[60].mxu1 }
 0x15a   :  { %v1506_v32 = vadd.f32 %v9009_v33, %v10880_v52  ;;  %v965_v38 = vpop.f32.mrb[61].mxu1 }
 0x15b   :  { %v1504_v15 = vadd.f32 %v10889_v5, %v965_v38  ;;  %v9010_v27 = vpop.f32.mrb[62].mxu1 }
 0x15c   :  { %v1507_v55 = vadd.f32 %v9010_v27, %v10896_v63  ;;  %v968_v24 = vpop.f32.mrb[63].mxu1  ;;  %v1682_v43 = vmax.f32 %v1506_v32, 0.0 }
 0x15d   :  { %v1505_v18 = vadd.f32 %v10902_v11, %v968_v24  ;;  %v1680_v33 = vmax.f32 %v1504_v15, 0.0 }
 0x15e   :  { %v1683_v48 = vmax.f32 %v1507_v55, 0.0  ;;  %9124 = vmatmul.mubr.msk.bf16.gmra.mrb[168].mxu1 %vm1899_vm3, %v10557_v13 }
 0x15f   :  { %v1681_v52 = vmax.f32 %v1505_v18, 0.0  ;;  %9127 = vmatprep.mubr.msk.bf16.mxu1 %vm1899_vm3, %v10625_v62 }
 0x160   :  { %v10911_v59 = vpack.c.bf16 %v1683_v48, %v1682_v43 }
 0x161   :  { %v10913_v23 = vpack.c.bf16 %v1681_v52, %v1680_v33  ;;  %v9013_v38 = vpop.f32.mrb[64].mxu1 }
 0x162   :  { %v1510_v27 = vadd.f32 %v9013_v38, %v10250_v57  ;;  %v981_v63 = vpop.f32.mrb[65].mxu1 }
 0x163   :  { %v1508_v24 = vadd.f32 %v10255_v61, %v981_v63  ;;  %v9014_v32 = vpop.f32.mrb[66].mxu1 }
 0x164   :  { %v1511_v55 = vadd.f32 %v9014_v32, %v10260_v1  ;;  %v984_v11 = vpop.f32.mrb[67].mxu1  ;;  %v1686_v15 = vmax.f32 %v1510_v27, 0.0 }
 0x165   :  { %v1509_v13 = vadd.f32 %v10266_v6, %v984_v11  ;;  %v1684_v62 = vmax.f32 %v1508_v24, 0.0 }
 0x166   :  { %v1687_v18 = vmax.f32 %v1511_v55, 0.0  ;;  %9128 = vmatmul.mubr.msk.bf16.gmra.mrb[172].mxu1 %vm1899_vm3, %v10622_v8 }
 0x167   :  { %v1685_v52 = vmax.f32 %v1509_v13, 0.0  ;;  %9131 = vmatprep.mubr.msk.bf16.mxu1 %vm1899_vm3, %v10239_v50 }
 0x168   :  { %v10923_v57 = vpack.c.bf16 %v1687_v18, %v1686_v15 }
 0x169   :  { %v10925_v48 = vpack.c.bf16 %v1685_v52, %v1684_v62  ;;  %v9017_v61 = vpop.f32.mrb[68].mxu1  ;;  %v9322_v62 = vld [vmem:[%s14130_s6 + $0x10] ss:$8 sps:$4 sm:$0xff]   ;;  %v9324_v52 = vld [vmem:[%s14130_s6 + $0x14] ss:$8 sps:$4 sm:$0xff]  }
 0x16a   :  { %v1514_v1 = vadd.f32 %v9017_v61, %v10304_v34  ;;  %v997_v43 = vpop.f32.mrb[69].mxu1 }
 0x16b   :  { %v1512_v6 = vadd.f32 %v10311_v39, %v997_v43  ;;  %v9018_v63 = vpop.f32.mrb[70].mxu1  ;;  %v9319_v39 = vld [vmem:[%s14130_s6] ss:$8 sps:$4 sm:$0xff]  }
 0x16c   :  { %v1515_v11 = vadd.f32 %v9018_v63, %v10318_v44  ;;  %v1000_v33 = vpop.f32.mrb[71].mxu1  ;;  %v1690_v38 = vmax.f32 %v1514_v1, 0.0  ;;  %v9321_v44 = vld [vmem:[%s14130_s6 + $0x4] ss:$8 sps:$4 sm:$0xff]  }
 0x16d   :  { %v1513_v8 = vadd.f32 %v10324_v49, %v1000_v33  ;;  %v1688_v50 = vmax.f32 %v1512_v6, 0.0  ;;  %3273 = vmatprep.subr.bf16.mxu0 %v9321_v44 }
 0x16e   :  { %v1691_v27 = vmax.f32 %v1515_v11, 0.0  ;;  %9132 = vmatmul.mubr.msk.bf16.gmra.mrb[176].mxu1 %vm1899_vm3, %v10228_v46  ;;  %3274 = vmatpush1.bf16.msra.mxu0 %v9319_v39 }
 0x16f   :  { %v1689_v24 = vmax.f32 %v1513_v8, 0.0  ;;  %9135 = vmatprep.mubr.msk.bf16.mxu1 %vm1899_vm3, %v10293_v25  ;;  %3275 = vmatprep.subr.bf16.mxu0 %v9324_v52 }
 0x170   :  { %v10935_v34 = vpack.c.bf16 %v1691_v27, %v1690_v38 }
 0x171   :  { %v10943_v49 = vpack.c.bf16 %v1689_v24, %v1688_v50  ;;  %v9021_v32 = vpop.f32.mrb[72].mxu1 }
 0x172   :  { %v1518_v46 = vadd.f32 %v9021_v32, %v10362_v20  ;;  %v1013_v55 = vpop.f32.mrb[73].mxu1  ;;  %3276 = vmatpush1.bf16.msra.mxu0 %v9322_v62 }
 0x173   :  { %v1516_v13 = vadd.f32 %v10369_v26, %v1013_v55  ;;  %v9022_v25 = vpop.f32.mrb[74].mxu1 }
 0x174   :  { %v1519_v15 = vadd.f32 %v9022_v25, %v10376_v31  ;;  %v1016_v18 = vpop.f32.mrb[75].mxu1  ;;  %v1694_v20 = vmax.f32 %v1518_v46, 0.0 }
 0x175   :  { %v1517_v61 = vadd.f32 %v10382_v36, %v1016_v18  ;;  %v1692_v26 = vmax.f32 %v1516_v13, 0.0  ;;  %v9325_v36 = vld [vmem:[%s14130_s6 + $0x20] ss:$8 sps:$4 sm:$0xff]  }
 0x176   :  { %v1695_v1 = vmax.f32 %v1519_v15, 0.0  ;;  %9136 = vmatmul.mubr.msk.bf16.gmra.mrb[180].mxu1 %vm1899_vm3, %v10281_v19  ;;  %v9327_v19 = vld [vmem:[%s14130_s6 + $0x24] ss:$8 sps:$4 sm:$0xff]  }
 0x177   :  { %v1693_v43 = vmax.f32 %v1517_v61, 0.0  ;;  %9139 = vmatprep.mubr.msk.bf16.mxu1 %vm1899_vm3, %v10351_v10  ;;  %3277 = vmatprep.subr.bf16.mxu0 %v9327_v19 }
 0x178   :  { %v10959_v31 = vpack.c.bf16 %v1695_v1, %v1694_v20  ;;  %3278 = vmatpush1.bf16.msra.mxu0 %v9325_v36  ;;  %v14377_v1 = vld [vmem:[#allocation10_spill] sm:$0xff]  ;;  %v14379_v36 = vld [vmem:[#allocation20_spill] sm:$0xff] }
 0x179   :  { %v10961_v6 = vpack.c.bf16 %v1693_v43, %v1692_v26  ;;  %v9025_v63 = vpop.f32.mrb[76].mxu1  ;;  %v14378_v43 = vld [vmem:[#allocation19_spill] sm:$0xff] }
 0x17a   :  { %v1522_v11 = vadd.f32 %v9025_v63, %v10420_v14  ;;  %v1029_v33 = vpop.f32.mrb[77].mxu1 }
 0x17b   :  { %v1520_v8 = vadd.f32 %v10427_v21, %v1029_v33  ;;  %v9026_v10 = vpop.f32.mrb[78].mxu1  ;;  %v14380_v33 = vld [vmem:[#allocation21_spill] sm:$0xff] }
 0x17c   :  { %v1523_v38 = vadd.f32 %v9026_v10, %v10434_v30  ;;  %v1032_v27 = vpop.f32.mrb[79].mxu1  ;;  %v1698_v24 = vmax.f32 %v1522_v11, 0.0  ;;  %v9328_v30 = vld [vmem:[%s14130_s6 + $0x30] ss:$8 sps:$4 sm:$0xff]  }
 0x17d   :  { %v1521_v50 = vadd.f32 %v10440_v37, %v1032_v27  ;;  %v1696_v44 = vmax.f32 %v1520_v8, 0.0  ;;  %v9330_v37 = vld [vmem:[%s14130_s6 + $0x34] ss:$8 sps:$4 sm:$0xff]  }
 0x17e   :  { %v1699_v39 = vmax.f32 %v1523_v38, 0.0  ;;  %9140 = vmatmul.mubr.msk.bf16.gmra.mrb[184].mxu1 %vm1899_vm3, %v10339_v3  ;;  %3279 = vmatprep.subr.bf16.mxu0 %v9330_v37  ;;  %v9334_v38 = vld [vmem:[%s14130_s6 + $0x50] ss:$8 sps:$4 sm:$0xff]   ;;  %v9336_v27 = vld [vmem:[%s14130_s6 + $0x54] ss:$8 sps:$4 sm:$0xff]   ;;  %v14383_v37 = vld [vmem:[#allocation16_spill] sm:$0xff] }
 0x17f   :  { %v1697_v32 = vmax.f32 %v1521_v50, 0.0  ;;  %9143 = vmatprep.mubr.msk.bf16.mxu1 %vm1899_vm3, %v10409_v0  ;;  %3280 = vmatpush1.bf16.msra.mxu0 %v9328_v30  ;;  %v14381_v50 = vld [vmem:[#allocation22_spill] sm:$0xff] }
 0x180   :  { %v10977_v14 = vpack.c.bf16 %v1699_v39, %v1698_v24 }
 0x181   :  { %v10979_v21 = vpack.c.bf16 %v1697_v32, %v1696_v44  ;;  %v9029_v46 = vpop.f32.mrb[80].mxu1  ;;  %v14382_v32 = vld [vmem:[#allocation8_spill] sm:$0xff] }
 0x182   :  { %v1526_v3 = vadd.f32 %v9029_v46, %v10484_v22  ;;  %v1045_v55 = vpop.f32.mrb[81].mxu1 }
 0x183   :  { %v1524_v13 = vadd.f32 %v10492_v35, %v1045_v55  ;;  %v9030_v25 = vpop.f32.mrb[82].mxu1  ;;  %v9331_v35 = vld [vmem:[%s14130_s6 + $0x40] ss:$8 sps:$4 sm:$0xff]  }
 0x184   :  { %v1527_v0 = vadd.f32 %v9030_v25, %v10500_v47  ;;  %v1048_v15 = vpop.f32.mrb[83].mxu1  ;;  %v1702_v62 = vmax.f32 %v1526_v3, 0.0  ;;  %v9333_v47 = vld [vmem:[%s14130_s6 + $0x44] ss:$8 sps:$4 sm:$0xff]   ;;  %v9337_v25 = vld [vmem:[%s14130_s6 + $0x60] ss:$8 sps:$4 sm:$0xff]  }
 0x185   :  { %v1525_v18 = vadd.f32 %v10507_v53, %v1048_v15  ;;  %v1700_v61 = vmax.f32 %v1524_v13, 0.0  ;;  %3281 = vmatprep.subr.bf16.mxu0 %v9333_v47  ;;  %v9540_v15 = vld [vmem:[%s14127_s3 + $0xd0] sm:$0xff] }
 0x186   :  { %v1703_v52 = vmax.f32 %v1527_v0, 0.0  ;;  %9144 = vmatmul.mubr.msk.bf16.gmra.mrb[188].mxu1 %vm1899_vm3, %v10397_v56  ;;  %3282 = vmatpush1.bf16.msra.mxu0 %v9331_v35  ;;  %v9339_v0 = vld [vmem:[%s14130_s6 + $0x64] ss:$8 sps:$4 sm:$0xff]  }
 0x187   :  { %v1701_v20 = vmax.f32 %v1525_v18, 0.0  ;;  %9147 = vmatprep.mubr.msk.bf16.mxu1 %vm1899_vm3, %v14377_v1  ;;  %3283 = vmatprep.subr.bf16.mxu0 %v9336_v27  ;;  %v9542_v1 = vld [vmem:[%s14127_s3 + $0xd8] sm:$0xff] }
 0x188   :  { %v10995_v22 = vpack.c.bf16 %v1703_v52, %v1702_v62  ;;  %v9541_v52 = vld [vmem:[%s14127_s3 + $0xc0] sm:$0xff] }
 0x189   :  { %v11003_v53 = vpack.c.bf16 %v1701_v20, %v1700_v61  ;;  %v9033_v26 = vpop.f32.mrb[84].mxu1 }
 0x18a   :  { %v1530_v56 = vadd.f32 %v9033_v26, %v14378_v43  ;;  %v1061_v63 = vpop.f32.mrb[85].mxu1  ;;  %3284 = vmatpush1.bf16.msra.mxu0 %v9334_v38  ;;  %v9543_v26 = vld [vmem:[%s14127_s3 + $0xc8] sm:$0xff] }
 0x18b   :  { %v1528_v19 = vadd.f32 %v14379_v36, %v1061_v63  ;;  %v9034_v11 = vpop.f32.mrb[86].mxu1  ;;  %3285 = vmatprep.subr.bf16.mxu0 %v9339_v0 }
 0x18c   :  { %v1531_v8 = vadd.f32 %v9034_v11, %v14380_v33  ;;  %v1064_v10 = vpop.f32.mrb[87].mxu1  ;;  %v1706_v39 = vmax.f32 %v1530_v56, 0.0  ;;  %v9342_v56 = vld [vmem:[%s14130_s6 + $0x74] ss:$8 sps:$4 sm:$0xff]   ;;  %v9340_v11 = vld [vmem:[%s14130_s6 + $0x70] ss:$8 sps:$4 sm:$0xff]  }
 0x18d   :  { %v1529_v24 = vadd.f32 %v14381_v50, %v1064_v10  ;;  %v1704_v46 = vmax.f32 %v1528_v19, 0.0  ;;  %v14384_v19 = vld [vmem:[#allocation14_spill] sm:$0xff] }
 0x18e   :  { %v1707_v44 = vmax.f32 %v1531_v8, 0.0  ;;  %9148 = vmatmul.mubr.msk.bf16.gmra.mrb[192].mxu1 %vm1899_vm3, %v14382_v32  ;;  %3286 = vmatpush1.bf16.msra.mxu0 %v9337_v25  ;;  %v14385_v10 = vld [vmem:[#allocation26_spill] sm:$0xff]  ;;  %v14202_v32 = vmov 0  }
 0x18f   :  { %v1705_v30 = vmax.f32 %v1529_v24, 0.0  ;;  %9151 = vmatprep.mubr.msk.bf16.mxu1 %vm1899_vm3, %v14383_v37  ;;  %3287 = vmatprep.subr.bf16.mxu0 %v9342_v56  ;;  %v9544_v24 = vld [vmem:[%s14127_s3 + $0xf0] sm:$0xff] }
 0x190   :  { %v11019_v3 = vpack.c.bf16 %v1707_v44, %v1706_v39  ;;  %3305 = vmatprep.mubr.bf16.mxu0 %v14202_v32  ;;  %v9548_v56 = vld [vmem:[%s14127_s3 + $0x110] sm:$0xff] }
 0x191   :  { %v11021_v55 = vpack.c.bf16 %v1705_v30, %v1704_v46  ;;  %v9037_v13 = vpop.f32.mrb[88].mxu1  ;;  %v9545_v46 = vld [vmem:[%s14127_s3 + $0xe0] sm:$0xff] }
 0x192   :  { %v1534_v18 = vadd.f32 %v9540_v15, %v9037_v13  ;;  %v1077_v62 = vpop.f32.mrb[89].mxu1  ;;  %3288 = vmatpush1.bf16.msra.mxu0 %v9340_v11  ;;  %v9546_v13 = vld [vmem:[%s14127_s3 + $0xf8] sm:$0xff] }
 0x193   :  { %v1532_v61 = vadd.f32 %v9541_v52, %v1077_v62  ;;  %v9038_v20 = vpop.f32.mrb[90].mxu1  ;;  %v9345_v15 = vld [vmem:[%s14132_s8 + $0xc] ss:$16 sps:$4 sm:$0xff]  }
 0x194   :  { %v1535_v35 = vadd.f32 %v9542_v1, %v9038_v20  ;;  %v1080_v47 = vpop.f32.mrb[91].mxu1  ;;  %v1710_v63 = vmax.f32 %v1534_v18, 0.0  ;;  %v9547_v18 = vld [vmem:[%s14127_s3 + $0xe8] sm:$0xff]  ;;  %6033 = vmatprep.subr.bf16.mxu0 %v9345_v15 }
 0x195   :  { %v1533_v43 = vadd.f32 %v9543_v26, %v1080_v47  ;;  %v1708_v33 = vmax.f32 %v1532_v61, 0.0  ;;  %v14386_v20 = vld [vmem:[#allocation24_spill] sm:$0xff] }
 0x196   :  { %v1711_v36 = vmax.f32 %v1535_v35, 0.0  ;;  %9152 = vmatmul.mubr.msk.bf16.gmra.mrb[196].mxu1 %vm1899_vm3, %v14384_v19  ;;  %v9549_v19 = vld [vmem:[%s14127_s3 + $0x100] sm:$0xff] }
 0x197   :  { %v1709_v8 = vmax.f32 %v1533_v43, 0.0  ;;  %9155 = vmatprep.mubr.msk.bf16.mxu1 %vm1899_vm3, %v14385_v10 }
 0x198   :  { %v11051_v38 = vpack.c.bf16 %v1711_v36, %v1710_v63 }
 0x199   :  { %v11053_v27 = vpack.c.bf16 %v1709_v8, %v1708_v33  ;;  %v9041_v50 = vpop.f32.mrb[92].mxu1 }
 0x19a   :  { %v1538_v39 = vadd.f32 %v9544_v24, %v9041_v50  ;;  %v1093_v44 = vpop.f32.mrb[93].mxu1  ;;  %v9551_v50 = vld [vmem:[%s14127_s3 + $0x108] sm:$0xff] }
 0x19b   :  { %v1536_v30 = vadd.f32 %v9545_v46, %v1093_v44  ;;  %v9042_v37 = vpop.f32.mrb[94].mxu1 }
 0x19c   :  { %v1539_v25 = vadd.f32 %v9546_v13, %v9042_v37  ;;  %v1096_v0 = vpop.f32.mrb[95].mxu1  ;;  %v1714_v52 = vmax.f32 %v1538_v39, 0.0 }
 0x19d   :  { %v1537_v62 = vadd.f32 %v9547_v18, %v1096_v0  ;;  %v1712_v1 = vmax.f32 %v1536_v30, 0.0  ;;  %v9552_v0 = vld [vmem:[%s14127_s3 + $0x130] sm:$0xff] }
 0x19e   :  { %v1715_v61 = vmax.f32 %v1539_v25, 0.0  ;;  %9156 = vmatmul.mubr.msk.bf16.gmra.mrb[200].mxu1 %vm1899_vm3, %v14386_v20 }
 0x19f   :  { %v1713_v35 = vmax.f32 %v1537_v62, 0.0  ;;  %9159 = vmatprep.mubr.msk.bf16.mxu1 %vm1899_vm3, %v10654_v54  ;;  %v9550_v54 = vld [vmem:[%s14127_s3 + $0x118] sm:$0xff] }
 0x1a0   :  { %v11075_v47 = vpack.c.bf16 %v1715_v61, %v1714_v52 }
 0x1a1   :  { %v11077_v26 = vpack.c.bf16 %v1713_v35, %v1712_v1  ;;  %v9045_v43 = vpop.f32.mrb[96].mxu1  ;;  %v9555_v1 = vld [vmem:[%s14127_s3 + $0x128] sm:$0xff] }
 0x1a2   :  { %v1542_v63 = vadd.f32 %v9548_v56, %v9045_v43  ;;  %v1109_v36 = vpop.f32.mrb[97].mxu1 }
 0x1a3   :  { %v1540_v11 = vadd.f32 %v9549_v19, %v1109_v36  ;;  %v9046_v33 = vpop.f32.mrb[98].mxu1 }
 0x1a4   :  { %v1543_v8 = vadd.f32 %v9550_v54, %v9046_v33  ;;  %v1112_v10 = vpop.f32.mrb[99].mxu1  ;;  %v1718_v39 = vmax.f32 %v1542_v63, 0.0  ;;  %v14387_v63 = vld [vmem:[#allocation34_spill] sm:$0xff] }
 0x1a5   :  { %v1541_v24 = vadd.f32 %v9551_v50, %v1112_v10  ;;  %v1716_v46 = vmax.f32 %v1540_v11, 0.0 }
 0x1a6   :  { %v1719_v44 = vmax.f32 %v1543_v8, 0.0  ;;  %9160 = vmatmul.mubr.msk.bf16.gmra.mrb[204].mxu1 %vm1899_vm3, %v10641_v17  ;;  %v9553_v17 = vld [vmem:[%s14127_s3 + $0x120] sm:$0xff]  ;;  %v9556_v8 = vld [vmem:[%s14127_s3 + $0x150] sm:$0xff] }
 0x1a7   :  { %v1717_v30 = vmax.f32 %v1541_v24, 0.0  ;;  %9163 = vmatprep.mubr.msk.bf16.mxu1 %vm1899_vm3, %v10696_v12  ;;  %v9554_v12 = vld [vmem:[%s14127_s3 + $0x138] sm:$0xff]  ;;  %v9557_v24 = vld [vmem:[%s14127_s3 + $0x140] sm:$0xff] }
 0x1a8   :  { %v11095_v37 = vpack.c.bf16 %v1719_v44, %v1718_v39 }
 0x1a9   :  { %v11097_v13 = vpack.c.bf16 %v1717_v30, %v1716_v46  ;;  %v9049_v25 = vpop.f32.mrb[100].mxu1 }
 0x1aa   :  { %v1546_v15 = vadd.f32 %v9552_v0, %v9049_v25  ;;  %v1125_v18 = vpop.f32.mrb[101].mxu1  ;;  %v9559_v25 = vld [vmem:[%s14127_s3 + $0x148] sm:$0xff] }
 0x1ab   :  { %v1544_v62 = vadd.f32 %v9553_v17, %v1125_v18  ;;  %v9050_v52 = vpop.f32.mrb[102].mxu1 }
 0x1ac   :  { %v1547_v61 = vadd.f32 %v9554_v12, %v9050_v52  ;;  %v1128_v20 = vpop.f32.mrb[103].mxu1  ;;  %v1722_v43 = vmax.f32 %v1546_v15, 0.0 }
 0x1ad   :  { %v1545_v35 = vadd.f32 %v9555_v1, %v1128_v20  ;;  %v1720_v36 = vmax.f32 %v1544_v62, 0.0  ;;  %v9560_v20 = vld [vmem:[%s14127_s3 + $0x170] sm:$0xff] }
 0x1ae   :  { %v1723_v56 = vmax.f32 %v1547_v61, 0.0  ;;  %9164 = vmatmul.mubr.msk.bf16.gmra.mrb[208].mxu1 %vm1899_vm3, %v14387_v63 }
 0x1af   :  { %v1721_v19 = vmax.f32 %v1545_v35, 0.0  ;;  %9167 = vmatprep.mubr.msk.bf16.mxu1 %vm1899_vm3, %v10732_v2  ;;  %v9558_v2 = vld [vmem:[%s14127_s3 + $0x158] sm:$0xff] }
 0x1b0   :  { %v11115_v11 = vpack.c.bf16 %v1723_v56, %v1722_v43  ;;  %v14388_v43 = vld [vmem:[#allocation9_spill] sm:$0xff] }
 0x1b1   :  { %v11117_v33 = vpack.c.bf16 %v1721_v19, %v1720_v36  ;;  %v9053_v54 = vpop.f32.mrb[104].mxu1 }
 0x1b2   :  { %v1550_v10 = vadd.f32 %v9556_v8, %v9053_v54  ;;  %v1141_v50 = vpop.f32.mrb[105].mxu1  ;;  %v14390_v54 = vld [vmem:[#allocation12_spill] sm:$0xff] }
 0x1b3   :  { %v1548_v39 = vadd.f32 %v9557_v24, %v1141_v50  ;;  %v9054_v44 = vpop.f32.mrb[106].mxu1 }
 0x1b4   :  { %v1551_v46 = vadd.f32 %v9558_v2, %v9054_v44  ;;  %v1144_v30 = vpop.f32.mrb[107].mxu1  ;;  %v1726_v15 = vmax.f32 %v1550_v10, 0.0 }
 0x1b5   :  { %v1549_v0 = vadd.f32 %v9559_v25, %v1144_v30  ;;  %v1724_v17 = vmax.f32 %v1548_v39, 0.0 }
 0x1b6   :  { %v1727_v18 = vmax.f32 %v1551_v46, 0.0  ;;  %9168 = vmatmul.mubr.msk.bf16.gmra.mrb[212].mxu1 %vm1899_vm3, %v10725_v9  ;;  %v14389_v9 = vld [vmem:[#allocation11_spill] sm:$0xff]  ;;  %v14391_v46 = vld [vmem:[#allocation13_spill] sm:$0xff] }
 0x1b7   :  { %v1725_v62 = vmax.f32 %v1549_v0, 0.0  ;;  %9171 = vmatprep.mubr.msk.bf16.mxu1 %vm1899_vm3, %v10763_v7  ;;  %v14392_v0 = vld [vmem:[#allocation15_spill] sm:$0xff] }
 0x1b8   :  { %v11135_v52 = vpack.c.bf16 %v1727_v18, %v1726_v15 }
 0x1b9   :  { %v11137_v12 = vpack.c.bf16 %v1725_v62, %v1724_v17  ;;  %v9057_v61 = vpop.f32.mrb[108].mxu1  ;;  %v14393_v17 = vld [vmem:[#allocation17_spill] sm:$0xff] }
 0x1ba   :  { %v1554_v1 = vadd.f32 %v9560_v20, %v9057_v61  ;;  %v1157_v35 = vpop.f32.mrb[109].mxu1 }
 0x1bb   :  { %v1552_v56 = vadd.f32 %v14388_v43, %v1157_v35  ;;  %v9058_v63 = vpop.f32.mrb[110].mxu1 }
 0x1bc   :  { %v1555_v36 = vadd.f32 %v9058_v63, %v14389_v9  ;;  %v1160_v19 = vpop.f32.mrb[111].mxu1  ;;  %v1730_v7 = vmax.f32 %v1554_v1, 0.0 }
 0x1bd   :  { %v1553_v8 = vadd.f32 %v14390_v54, %v1160_v19  ;;  %v1728_v50 = vmax.f32 %v1552_v56, 0.0 }
 0x1be   :  { %v1731_v10 = vmax.f32 %v1555_v36, 0.0  ;;  %9172 = vmatmul.mubr.msk.bf16.gmra.mrb[216].mxu1 %vm1899_vm3, %v10756_v60  ;;  %v14394_v60 = vld [vmem:[#allocation18_spill] sm:$0xff]  ;;  %v14395_v36 = vld [vmem:[#allocation23_spill] sm:$0xff] }
 0x1bf   :  { %v1729_v24 = vmax.f32 %v1553_v8, 0.0  ;;  %9175 = vmatprep.mubr.msk.bf16.mxu1 %vm1899_vm3, %v10795_v16  ;;  %v14396_v8 = vld [vmem:[#allocation25_spill] sm:$0xff] }
 0x1c0   :  { %v11149_v39 = vpack.c.bf16 %v1731_v10, %v1730_v7 }
 0x1c1   :  { %v11151_v44 = vpack.c.bf16 %v1729_v24, %v1728_v50  ;;  %v9061_v2 = vpop.f32.mrb[112].mxu1  ;;  %v14397_v50 = vld [vmem:[#allocation27_spill] sm:$0xff] }
 0x1c2   :  { %v1558_v30 = vadd.f32 %v9061_v2, %v14391_v46  ;;  %v1173_v25 = vpop.f32.mrb[113].mxu1 }
 0x1c3   :  { %v1556_v15 = vadd.f32 %v14392_v0, %v1173_v25  ;;  %v9062_v18 = vpop.f32.mrb[114].mxu1 }
 0x1c4   :  { %v1559_v62 = vadd.f32 %v9062_v18, %v14393_v17  ;;  %v1176_v61 = vpop.f32.mrb[115].mxu1  ;;  %v1734_v1 = vmax.f32 %v1558_v30, 0.0 }
 0x1c5   :  { %v1557_v20 = vadd.f32 %v14394_v60, %v1176_v61  ;;  %v1732_v16 = vmax.f32 %v1556_v15, 0.0 }
 0x1c6   :  { %v1735_v35 = vmax.f32 %v1559_v62, 0.0  ;;  %9176 = vmatmul.mubr.msk.bf16.gmra.mrb[220].mxu1 %vm1899_vm3, %v10788_v51  ;;  %v14398_v51 = vld [vmem:[#allocation28_spill] sm:$0xff]  ;;  %v14399_v62 = vld [vmem:[#allocation29_spill] sm:$0xff] }
 0x1c7   :  { %v1733_v43 = vmax.f32 %v1557_v20, 0.0  ;;  %9179 = vmatprep.mubr.msk.bf16.mxu1 %vm1899_vm3, %v10827_v40  ;;  %v14400_v20 = vld [vmem:[#allocation30_spill] sm:$0xff] }
 0x1c8   :  { %v11161_v56 = vpack.c.bf16 %v1735_v35, %v1734_v1 }
 0x1c9   :  { %v11163_v63 = vpack.c.bf16 %v1733_v43, %v1732_v16  ;;  %v9065_v9 = vpop.f32.mrb[116].mxu1  ;;  %v14401_v16 = vld [vmem:[#allocation31_spill] sm:$0xff] }
 0x1ca   :  { %v1562_v19 = vadd.f32 %v9065_v9, %v14395_v36  ;;  %v1189_v54 = vpop.f32.mrb[117].mxu1 }
 0x1cb   :  { %v1560_v7 = vadd.f32 %v14396_v8, %v1189_v54  ;;  %v9066_v10 = vpop.f32.mrb[118].mxu1 }
 0x1cc   :  { %v1563_v24 = vadd.f32 %v9066_v10, %v14397_v50  ;;  %v1192_v2 = vpop.f32.mrb[119].mxu1  ;;  %v1738_v30 = vmax.f32 %v1562_v19, 0.0 }
 0x1cd   :  { %v1561_v46 = vadd.f32 %v14398_v51, %v1192_v2  ;;  %v1736_v40 = vmax.f32 %v1560_v7, 0.0 }
 0x1ce   :  { %v1739_v25 = vmax.f32 %v1563_v24, 0.0  ;;  %9180 = vmatmul.mubr.msk.bf16.gmra.mrb[224].mxu1 %vm1899_vm3, %v10820_v45  ;;  %v14402_v45 = vld [vmem:[#allocation32_spill] sm:$0xff]  ;;  %v14403_v24 = vld [vmem:[#allocation33_spill] sm:$0xff] }
 0x1cf   :  { %v1737_v0 = vmax.f32 %v1561_v46, 0.0  ;;  %9183 = vmatprep.mubr.msk.bf16.mxu1 %vm1899_vm3, %v10859_v42 }
 0x1d0   :  { %v11173_v15 = vpack.c.bf16 %v1739_v25, %v1738_v30  ;;  %v14404_v25 = vld [vmem:[#allocation35_spill] sm:$0xff] }
 0x1d1   :  { %v11175_v18 = vpack.c.bf16 %v1737_v0, %v1736_v40  ;;  %v9069_v17 = vpop.f32.mrb[120].mxu1 }
 0x1d2   :  { %v1566_v61 = vadd.f32 %v9069_v17, %v14399_v62  ;;  %v1205_v60 = vpop.f32.mrb[121].mxu1 }
 0x1d3   :  { %v1564_v1 = vadd.f32 %v14400_v20, %v1205_v60  ;;  %v9070_v35 = vpop.f32.mrb[122].mxu1 }
 0x1d4   :  { %v1567_v43 = vadd.f32 %v9070_v35, %v14401_v16  ;;  %v1208_v9 = vpop.f32.mrb[123].mxu1  ;;  %v1742_v19 = vmax.f32 %v1566_v61, 0.0  ;;  %v14406_v35 = vld [vmem:[#allocation37_spill] sm:$0xff] }
 0x1d5   :  { %v1565_v36 = vadd.f32 %v14402_v45, %v1208_v9  ;;  %v1740_v42 = vmax.f32 %v1564_v1, 0.0 }
 0x1d6   :  { %v1743_v54 = vmax.f32 %v1567_v43, 0.0  ;;  %9184 = vmatmul.mubr.msk.bf16.gmra.mrb[228].mxu1 %vm1899_vm3, %v10852_v28  ;;  %v14405_v28 = vld [vmem:[#allocation36_spill] sm:$0xff] }
 0x1d7   :  { %v1741_v8 = vmax.f32 %v1565_v36, 0.0  ;;  %9187 = vmatprep.mubr.msk.bf16.mxu1 %vm1899_vm3, %v10891_v29  ;;  %v14407_v36 = vld [vmem:[#allocation38_spill] sm:$0xff] }
 0x1d8   :  { %v11185_v7 = vpack.c.bf16 %v1743_v54, %v1742_v19 }
 0x1d9   :  { %v11187_v10 = vpack.c.bf16 %v1741_v8, %v1740_v42  ;;  %v9073_v50 = vpop.f32.mrb[124].mxu1 }
 0x1da   :  { %v1570_v2 = vadd.f32 %v9073_v50, %v14403_v24  ;;  %v1221_v51 = vpop.f32.mrb[125].mxu1 }
 0x1db   :  { %v1568_v46 = vadd.f32 %v10688_v58, %v1221_v51  ;;  %v9074_v30 = vpop.f32.mrb[126].mxu1 }
 0x1dc   :  { %v1571_v40 = vadd.f32 %v9074_v30, %v14404_v25  ;;  %v1224_v0 = vpop.f32.mrb[127].mxu1  ;;  %v1746_v62 = vmax.f32 %v1570_v2, 0.0 }
 0x1dd   :  { %v1569_v17 = vadd.f32 %v14405_v28, %v1224_v0  ;;  %v1744_v29 = vmax.f32 %v1568_v46, 0.0  ;;  %v14409_v46 = vld [vmem:[#allocation40_spill] sm:$0xff] }
 0x1de   :  { %v1747_v61 = vmax.f32 %v1571_v40, 0.0  ;;  %9188 = vmatmul.mubr.msk.bf16.gmra.mrb[232].mxu1 %vm1899_vm3, %v10884_v41  ;;  %v14408_v41 = vld [vmem:[#allocation39_spill] sm:$0xff]  ;;  %v14410_v40 = vld [vmem:[#allocation41_spill] sm:$0xff] }
 0x1df   :  { %v1745_v60 = vmax.f32 %v1569_v17, 0.0  ;;  %9191 = vmatprep.mubr.msk.bf16.mxu1 %vm1899_vm3, %v10913_v23  ;;  %v14411_v17 = vld [vmem:[#allocation42_spill] sm:$0xff] }
 0x1e0   :  { %v11197_v20 = vpack.c.bf16 %v1747_v61, %v1746_v62 }
 0x1e1   :  { %v11199_v1 = vpack.c.bf16 %v1745_v60, %v1744_v29  ;;  %v9077_v58 = vpop.f32.mrb[128].mxu1 }
 0x1e2   :  { %v1574_v16 = vadd.f32 %v9077_v58, %v14406_v35  ;;  %v1237_v43 = vpop.f32.mrb[129].mxu1 }
 0x1e3   :  { %v1572_v9 = vadd.f32 %v10730_v4, %v1237_v43  ;;  %v9078_v45 = vpop.f32.mrb[130].mxu1 }
 0x1e4   :  { %v1575_v19 = vadd.f32 %v9078_v45, %v14407_v36  ;;  %v1240_v54 = vpop.f32.mrb[131].mxu1  ;;  %v1750_v8 = vmax.f32 %v1574_v16, 0.0  ;;  %v14413_v45 = vld [vmem:[#allocation44_spill] sm:$0xff] }
 0x1e5   :  { %v1573_v42 = vadd.f32 %v14408_v41, %v1240_v54  ;;  %v1748_v23 = vmax.f32 %v1572_v9, 0.0  ;;  %v14414_v54 = vld [vmem:[#allocation45_spill] sm:$0xff] }
 0x1e6   :  { %v1751_v50 = vmax.f32 %v1575_v19, 0.0  ;;  %9192 = vmatmul.mubr.msk.bf16.gmra.mrb[236].mxu1 %vm1899_vm3, %v10911_v59  ;;  %v14412_v59 = vld [vmem:[#allocation43_spill] sm:$0xff] }
 0x1e7   :  { %v1749_v24 = vmax.f32 %v1573_v42, 0.0  ;;  %9195 = vmatprep.mubr.msk.bf16.mxu1 %vm1899_vm3, %v10925_v48 }
 0x1e8   :  { %v11209_v2 = vpack.c.bf16 %v1751_v50, %v1750_v8  ;;  %v14415_v8 = vld [vmem:[#allocation46_spill] sm:$0xff] }
 0x1e9   :  { %v11211_v51 = vpack.c.bf16 %v1749_v24, %v1748_v23  ;;  %v9081_v4 = vpop.f32.mrb[132].mxu1 }
 0x1ea   :  { %v1578_v30 = vadd.f32 %v9081_v4, %v14409_v46  ;;  %v1253_v25 = vpop.f32.mrb[133].mxu1 }
 0x1eb   :  { %v1576_v0 = vadd.f32 %v14410_v40, %v1253_v25  ;;  %v9082_v28 = vpop.f32.mrb[134].mxu1 }
 0x1ec   :  { %v1579_v62 = vadd.f32 %v9082_v28, %v14411_v17  ;;  %v1256_v61 = vpop.f32.mrb[135].mxu1  ;;  %v1754_v60 = vmax.f32 %v1578_v30, 0.0  ;;  %v14417_v28 = vld [vmem:[#allocation48_spill] sm:$0xff] }
 0x1ed   :  { %v1577_v29 = vadd.f32 %v14412_v59, %v1256_v61  ;;  %v1752_v48 = vmax.f32 %v1576_v0, 0.0  ;;  %v14418_v61 = vld [vmem:[#allocation49_spill] sm:$0xff] }
 0x1ee   :  { %v1755_v58 = vmax.f32 %v1579_v62, 0.0  ;;  %9196 = vmatmul.mubr.msk.bf16.gmra.mrb[240].mxu1 %vm1899_vm3, %v10923_v57  ;;  %v14416_v57 = vld [vmem:[#allocation47_spill] sm:$0xff] }
 0x1ef   :  { %v1753_v35 = vmax.f32 %v1577_v29, 0.0  ;;  %9199 = vmatprep.mubr.msk.bf16.mxu1 %vm1899_vm3, %v10943_v49 }
 0x1f0   :  { %v11221_v16 = vpack.c.bf16 %v1755_v58, %v1754_v60  ;;  %v14419_v60 = vld [vmem:[#allocation50_spill] sm:$0xff] }
 0x1f1   :  { %v11223_v43 = vpack.c.bf16 %v1753_v35, %v1752_v48  ;;  %v9085_v9 = vpop.f32.mrb[136].mxu1 }
 0x1f2   :  { %v1582_v36 = vadd.f32 %v9085_v9, %v14413_v45  ;;  %v1269_v19 = vpop.f32.mrb[137].mxu1 }
 0x1f3   :  { %v1580_v41 = vadd.f32 %v14414_v54, %v1269_v19  ;;  %v9086_v42 = vpop.f32.mrb[138].mxu1 }
 0x1f4   :  { %v1583_v50 = vadd.f32 %v9086_v42, %v14415_v8  ;;  %v1272_v23 = vpop.f32.mrb[139].mxu1  ;;  %v1758_v4 = vmax.f32 %v1582_v36, 0.0  ;;  %v14421_v42 = vld [vmem:[#allocation52_spill] sm:$0xff] }
 0x1f5   :  { %v1581_v24 = vadd.f32 %v14416_v57, %v1272_v23  ;;  %v1756_v49 = vmax.f32 %v1580_v41, 0.0  ;;  %v14422_v23 = vld [vmem:[#allocation53_spill] sm:$0xff] }
 0x1f6   :  { %v1759_v46 = vmax.f32 %v1583_v50, 0.0  ;;  %9200 = vmatmul.mubr.msk.bf16.gmra.mrb[244].mxu1 %vm1899_vm3, %v10935_v34  ;;  %v14420_v34 = vld [vmem:[#allocation51_spill] sm:$0xff] }
 0x1f7   :  { %v1757_v30 = vmax.f32 %v1581_v24, 0.0  ;;  %9203 = vmatprep.mubr.msk.bf16.mxu1 %vm1899_vm3, %v10961_v6 }
 0x1f8   :  { %v11233_v25 = vpack.c.bf16 %v1759_v46, %v1758_v4  ;;  %v14423_v4 = vld [vmem:[#allocation54_spill] sm:$0xff] }
 0x1f9   :  { %v11235_v40 = vpack.c.bf16 %v1757_v30, %v1756_v49  ;;  %v9089_v0 = vpop.f32.mrb[140].mxu1 }
 0x1fa   :  { %v1586_v17 = vadd.f32 %v9089_v0, %v14417_v28  ;;  %v1285_v62 = vpop.f32.mrb[141].mxu1 }
 0x1fb   :  { %v1584_v59 = vadd.f32 %v14418_v61, %v1285_v62  ;;  %v9090_v29 = vpop.f32.mrb[142].mxu1 }
 0x1fc   :  { %v1587_v58 = vadd.f32 %v9090_v29, %v14419_v60  ;;  %v1288_v48 = vpop.f32.mrb[143].mxu1  ;;  %v1762_v9 = vmax.f32 %v1586_v17, 0.0  ;;  %v14425_v29 = vld [vmem:[#allocation56_spill] sm:$0xff] }
 0x1fd   :  { %v1585_v35 = vadd.f32 %v14420_v34, %v1288_v48  ;;  %v1760_v6 = vmax.f32 %v1584_v59, 0.0 }
 0x1fe   :  { %v1763_v45 = vmax.f32 %v1587_v58, 0.0  ;;  %9204 = vmatmul.mubr.msk.bf16.gmra.mrb[248].mxu1 %vm1899_vm3, %v10959_v31  ;;  %v14424_v31 = vld [vmem:[#allocation55_spill] sm:$0xff] }
 0x1ff   :  { %v1761_v36 = vmax.f32 %v1585_v35, 0.0  ;;  %9207 = vmatprep.mubr.msk.bf16.mxu1 %vm1899_vm3, %v10979_v21  ;;  %v14426_v35 = vld [vmem:[#allocation57_spill] sm:$0xff] }
 0x200   :  { %v11245_v19 = vpack.c.bf16 %v1763_v45, %v1762_v9 }
 0x201   :  { %v11247_v54 = vpack.c.bf16 %v1761_v36, %v1760_v6  ;;  %v9093_v41 = vpop.f32.mrb[144].mxu1 }
 0x202   :  { %v1590_v8 = vadd.f32 %v9093_v41, %v14421_v42  ;;  %v1301_v50 = vpop.f32.mrb[145].mxu1 }
 0x203   :  { %v1588_v57 = vadd.f32 %v14422_v23, %v1301_v50  ;;  %v9094_v24 = vpop.f32.mrb[146].mxu1 }
 0x204   :  { %v1591_v46 = vadd.f32 %v9094_v24, %v14423_v4  ;;  %v1304_v49 = vpop.f32.mrb[147].mxu1  ;;  %v1766_v0 = vmax.f32 %v1590_v8, 0.0 }
 0x205   :  { %v1589_v30 = vadd.f32 %v14424_v31, %v1304_v49  ;;  %v1764_v21 = vmax.f32 %v1588_v57, 0.0 }
 0x206   :  { %v1767_v28 = vmax.f32 %v1591_v46, 0.0  ;;  %9208 = vmatmul.mubr.msk.bf16.gmra.mrb[252].mxu1 %vm1899_vm3, %v10977_v14  ;;  %v14427_v14 = vld [vmem:[#allocation58_spill] sm:$0xff] }
 0x207   :  { %v1765_v17 = vmax.f32 %v1589_v30, 0.0  ;;  %9211 = vmatprep.mubr.msk.bf16.mxu1 %vm1899_vm3, %v11003_v53 }
 0x208   :  { %v11257_v62 = vpack.c.bf16 %v1767_v28, %v1766_v0 }
 0x209   :  { %v11259_v61 = vpack.c.bf16 %v1765_v17, %v1764_v21  ;;  %v9097_v59 = vpop.f32.mrb[148].mxu1  ;;  %v9343_v21 = vld [vmem:[%s14132_s8 + $0x8] ss:$16 sps:$4 sm:$0xff]  }
 0x20a   :  { %v1594_v60 = vadd.f32 %v9097_v59, %v14425_v29  ;;  %v1317_v58 = vpop.f32.mrb[149].mxu1 }
 0x20b   :  { %v1592_v48 = vadd.f32 %v10889_v5, %v1317_v58  ;;  %v9098_v34 = vpop.f32.mrb[150].mxu1  ;;  %v11272_v5 = vld [vmem:[%s14129_s5] ss:$0 sm:$0xff] }
 0x20c   :  { %v1595_v9 = vadd.f32 %v9098_v34, %v14426_v35  ;;  %v1320_v45 = vpop.f32.mrb[151].mxu1  ;;  %v1770_v36 = vmax.f32 %v1594_v60, 0.0  ;;  %v9348_v60 = vld [vmem:[%s14132_s8 + $0x2c] ss:$16 sps:$4 sm:$0xff]  }
 0x20d   :  { %v1593_v6 = vadd.f32 %v14427_v14, %v1320_v45  ;;  %v1768_v53 = vmax.f32 %v1592_v48, 0.0  ;;  %v9346_v45 = vld [vmem:[%s14132_s8 + $0x28] ss:$16 sps:$4 sm:$0xff]  }
 0x20e   :  { %v1771_v41 = vmax.f32 %v1595_v9, 0.0  ;;  %9212 = vmatmul.mubr.msk.bf16.gmra.mrb[0].mxu1 %vm1899_vm3, %v10995_v22 }
 0x20f   :  { %v1769_v42 = vmax.f32 %v1593_v6, 0.0  ;;  %9215 = vmatprep.mubr.msk.bf16.mxu1 %vm1899_vm3, %v11021_v55 }
 0x210   :  { %v11274_v8 = vpack.c.bf16 %v1771_v41, %v1770_v36  ;;  %v9351_v36 = vld [vmem:[%s14132_s8 + $0x4c] ss:$16 sps:$4 sm:$0xff]  }
 0x211   :  { %v11276_v50 = vpack.c.bf16 %v1769_v42, %v1768_v53  ;;  %v9109_v23 = vpop.f32.mrb[152].mxu1 }
 0x212   :  { %v2207_v57 = vadd.f32 %v9109_v23, %v11272_v5  ;;  %v2198_v24 = vpop.f32.mrb[153].mxu1  ;;  %v9349_v23 = vld [vmem:[%s14132_s8 + $0x48] ss:$16 sps:$4 sm:$0xff]  }
 0x213   :  { %v2199_v22 = vadd.f32 %v11272_v5, %v2198_v24  ;;  %v9110_v4 = vpop.f32.mrb[154].mxu1 }
 0x214   :  { %v2210_v46 = vadd.f32 %v9110_v4, %v11272_v5  ;;  %v2201_v49 = vpop.f32.mrb[155].mxu1  ;;  %v2903_v31 = vmax.f32 %v2207_v57, 0.0 }
 0x215   :  { %v2202_v55 = vadd.f32 %v11272_v5, %v2201_v49  ;;  %v2901_v0 = vmax.f32 %v2199_v22, 0.0  ;;  %v9354_v22 = vld [vmem:[%s14132_s8 + $0x6c] ss:$16 sps:$4 sm:$0xff]  }
 0x216   :  { %v2904_v30 = vmax.f32 %v2210_v46, 0.0  ;;  %9216 = vmatmul.mubr.msk.bf16.gmra.mrb[4].mxu1 %vm1899_vm3, %v11019_v3 }
 0x217   :  { %v2902_v28 = vmax.f32 %v2202_v55, 0.0  ;;  %9219 = vmatprep.mubr.msk.bf16.mxu1 %vm1899_vm3, %v11053_v27 }
 0x218   :  { %v3078_v17 = vpack.c.bf16 %v2904_v30, %v2903_v31  ;;  %v9352_v30 = vld [vmem:[%s14132_s8 + $0x68] ss:$16 sps:$4 sm:$0xff]  }
 0x219   :  { %v3077_v59 = vpack.c.bf16 %v2902_v28, %v2901_v0  ;;  %v9113_v29 = vpop.f32.mrb[156].mxu1 }
 0x21a   :  { %v2223_v58 = vadd.f32 %v9113_v29, %v11272_v5  ;;  %v2214_v48 = vpop.f32.mrb[157].mxu1 }
 0x21b   :  { %3306 = vmatmul.mubr.bf16.vlgmr.msra.gmra.mrb[24].mxu0 %v3077_v59  ;;  %v2215_v3 = vadd.f32 %v11272_v5, %v2214_v48  ;;  %v9114_v34 = vpop.f32.mrb[158].mxu1 }
 0x21c   :  { %v2907_v35 = vmax.f32 %v2223_v58, 0.0  ;;  %6034 = vmatpush1.bf16.msra.mxu0 %v9343_v21  ;;  %v2226_v27 = vadd.f32 %v9114_v34, %v11272_v5  ;;  %v2217_v9 = vpop.f32.mrb[159].mxu1  ;;  %3315 = vmatprep.mubr.bf16.mxu0 %v14202_v32 }
 0x21d   :  { %v2905_v14 = vmax.f32 %v2215_v3, 0.0  ;;  %v2218_v6 = vadd.f32 %v11272_v5, %v2217_v9  ;;  %6035 = vmatprep.subr.bf16.mxu0 %v9348_v60 }
 0x21e   :  { %v2908_v41 = vmax.f32 %v2226_v27, 0.0  ;;  %9220 = vmatmul.mubr.msk.bf16.gmra.mrb[8].mxu1 %vm1899_vm3, %v11051_v38 }
 0x21f   :  { %v2906_v53 = vmax.f32 %v2218_v6, 0.0  ;;  %9223 = vmatprep.mubr.msk.bf16.mxu1 %vm1899_vm3, %v11077_v26 }
 0x220   :  { %v3080_v42 = vpack.c.bf16 %v2908_v41, %v2907_v35  ;;  %6036 = vmatpush1.bf16.msra.mxu0 %v9346_v45 }
 0x221   :  { %v9117_v57 = vpop.f32.mrb[160].mxu1  ;;  %v3079_v24 = vpack.c.bf16 %v2906_v53, %v2905_v14  ;;  %6037 = vmatprep.subr.bf16.mxu0 %v9351_v36 }
 0x222   :  { %v2239_v4 = vadd.f32 %v9117_v57, %v11272_v5  ;;  %v2230_v38 = vpop.f32.mrb[161].mxu1 }
 0x223   :  { %3316 = vmatmul.mubr.bf16.gmra.mrb[28].mxu0 %v3078_v17  ;;  %v2231_v46 = vadd.f32 %v11272_v5, %v2230_v38  ;;  %v9118_v26 = vpop.f32.mrb[162].mxu1 }
 0x224   :  { %3325 = vmatprep.mubr.bf16.mxu0 %v14202_v32  ;;  %v2911_v49 = vmax.f32 %v2239_v4, 0.0  ;;  %v2242_v55 = vadd.f32 %v9118_v26, %v11272_v5  ;;  %v2233_v31 = vpop.f32.mrb[163].mxu1  ;;  %6038 = vmatpush1.bf16.msra.mxu0 %v9349_v23  ;;  %v9357_v26 = vld [vmem:[%s14132_s8 + $0x4] ss:$16 sps:$4 sm:$0xff]  }
 0x225   :  { %v2909_v0 = vmax.f32 %v2231_v46, 0.0  ;;  %v2234_v28 = vadd.f32 %v11272_v5, %v2233_v31  ;;  %6039 = vmatprep.subr.bf16.mxu0 %v9354_v22  ;;  %5120 = vmatprep.subr.bf16.mxu1 %v9357_v26 }
 0x226   :  { %9224 = vmatmul.mubr.msk.bf16.gmra.mrb[12].mxu1 %vm1899_vm3, %v11075_v47  ;;  %v2912_v21 = vmax.f32 %v2242_v55, 0.0  ;;  %v9355_v55 = vld [vmem:[%s14132_s8] ss:$16 sps:$4 sm:$0xff]  }
 0x227   :  { %9227 = vmatprep.mubr.msk.bf16.mxu1 %vm1899_vm3, %v11097_v13  ;;  %v2910_v17 = vmax.f32 %v2234_v28, 0.0  ;;  %5121 = vmatpush1.bf16.msra.mxu1 %v9355_v55 }
 0x228   :  { %v11325_v59 = vpack.c.bf16 %v2912_v21, %v2911_v49  ;;  %6040 = vmatpush1.bf16.msra.mxu0 %v9352_v30  ;;  %v9360_v21 = vld [vmem:[%s14132_s8 + $0x24] ss:$16 sps:$4 sm:$0xff]  }
 0x229   :  { %v9121_v29 = vpop.f32.mrb[164].mxu1  ;;  %v3081_v60 = vpack.c.bf16 %v2910_v17, %v2909_v0  ;;  %5122 = vmatprep.subr.bf16.mxu1 %v9360_v21  ;;  %v9373_v21 = vld [vmem:[%s14132_s8 + $0xa0] ss:$16 sps:$4 sm:$0xff]  }
 0x22a   :  { %v2255_v58 = vadd.f32 %v9121_v29, %v11272_v5  ;;  %v2246_v48 = vpop.f32.mrb[165].mxu1 }
 0x22b   :  { %3326 = vmatmul.mubr.bf16.gmra.mrb[32].mxu0 %v3079_v24  ;;  %v2247_v3 = vadd.f32 %v11272_v5, %v2246_v48  ;;  %v9122_v34 = vpop.f32.mrb[166].mxu1  ;;  %v9358_v48 = vld [vmem:[%s14132_s8 + $0x20] ss:$16 sps:$4 sm:$0xff]  }
 0x22c   :  { %3335 = vmatprep.mubr.bf16.mxu0 %v14202_v32  ;;  %v2915_v47 = vmax.f32 %v2255_v58, 0.0  ;;  %v2258_v35 = vadd.f32 %v9122_v34, %v11272_v5  ;;  %v2249_v27 = vpop.f32.mrb[167].mxu1  ;;  %5123 = vmatpush1.bf16.msra.mxu1 %v9358_v48  ;;  %v9372_v48 = vld [vmem:[%s14132_s8 + $0x8c] ss:$16 sps:$4 sm:$0xff]  }
 0x22d   :  { %v2913_v13 = vmax.f32 %v2247_v3, 0.0  ;;  %v2250_v9 = vadd.f32 %v11272_v5, %v2249_v27  ;;  %6041 = vmatprep.subr.bf16.mxu0 %v9372_v48 }
 0x22e   :  { %9228 = vmatmul.mubr.msk.bf16.gmra.mrb[16].mxu1 %vm1899_vm3, %v11095_v37  ;;  %v2916_v45 = vmax.f32 %v2258_v35, 0.0  ;;  %v9363_v35 = vld [vmem:[%s14132_s8 + $0x44] ss:$16 sps:$4 sm:$0xff]  }
 0x22f   :  { %9231 = vmatprep.mubr.msk.bf16.mxu1 %vm1899_vm3, %v11117_v33  ;;  %v2914_v14 = vmax.f32 %v2250_v9, 0.0  ;;  %5124 = vmatprep.subr.bf16.mxu1 %v9363_v35 }
 0x230   :  { %v11336_v6 = vpack.c.bf16 %v2916_v45, %v2915_v47 }
 0x231   :  { %v9125_v36 = vpop.f32.mrb[168].mxu1  ;;  %v11338_v41 = vpack.c.bf16 %v2914_v14, %v2913_v13  ;;  %v9361_v13 = vld [vmem:[%s14132_s8 + $0x40] ss:$16 sps:$4 sm:$0xff]  }
 0x232   :  { %v2271_v53 = vadd.f32 %v9125_v36, %v11272_v5  ;;  %v2262_v23 = vpop.f32.mrb[169].mxu1  ;;  %5125 = vmatpush1.bf16.msra.mxu1 %v9361_v13 }
 0x233   :  { %3336 = vmatmul.mubr.bf16.gmra.mrb[36].mxu0 %v3080_v42  ;;  %v2263_v57 = vadd.f32 %v11272_v5, %v2262_v23  ;;  %v9126_v24 = vpop.f32.mrb[170].mxu1 }
 0x234   :  { %v2919_v22 = vmax.f32 %v2271_v53, 0.0  ;;  %3345 = vmatprep.mubr.bf16.mxu0 %v14202_v32  ;;  %v2274_v37 = vadd.f32 %v9126_v24, %v11272_v5  ;;  %v2265_v4 = vpop.f32.mrb[171].mxu1  ;;  %v9366_v53 = vld [vmem:[%s14132_s8 + $0x64] ss:$16 sps:$4 sm:$0xff]   ;;  %v9364_v24 = vld [vmem:[%s14132_s8 + $0x60] ss:$16 sps:$4 sm:$0xff]  }
 0x235   :  { %v2917_v33 = vmax.f32 %v2263_v57, 0.0  ;;  %v2266_v38 = vadd.f32 %v11272_v5, %v2265_v4  ;;  %5126 = vmatprep.subr.bf16.mxu1 %v9366_v53 }
 0x236   :  { %9232 = vmatmul.mubr.msk.bf16.gmra.mrb[20].mxu1 %vm1899_vm3, %v11115_v11  ;;  %v2920_v46 = vmax.f32 %v2274_v37, 0.0 }
 0x237   :  { %9235 = vmatprep.mubr.msk.bf16.mxu1 %vm1899_vm3, %v11137_v12  ;;  %v2918_v42 = vmax.f32 %v2266_v38, 0.0  ;;  %5127 = vmatpush1.bf16.msra.mxu1 %v9364_v24  ;;  %v9369_v38 = vld [vmem:[%s14132_s8 + $0x84] ss:$16 sps:$4 sm:$0xff]  }
 0x238   :  { %v11352_v49 = vpack.c.bf16 %v2920_v46, %v2919_v22  ;;  %5128 = vmatprep.subr.bf16.mxu1 %v9369_v38 }
 0x239   :  { %v9129_v31 = vpop.f32.mrb[172].mxu1  ;;  %v11357_v30 = vpack.c.bf16 %v2918_v42, %v2917_v33  ;;  %v9367_v42 = vld [vmem:[%s14132_s8 + $0x80] ss:$16 sps:$4 sm:$0xff]  }
 0x23a   :  { %v2287_v11 = vadd.f32 %v9129_v31, %v11272_v5  ;;  %v2278_v0 = vpop.f32.mrb[173].mxu1 }
 0x23b   :  { %3346 = vmatmul.mubr.bf16.gmra.mrb[40].mxu0 %v3081_v60  ;;  %v2279_v12 = vadd.f32 %v11272_v5, %v2278_v0  ;;  %v9130_v28 = vpop.f32.mrb[174].mxu1  ;;  %5129 = vmatpush1.bf16.msra.mxu1 %v9367_v42  ;;  %v9375_v0 = vld [vmem:[%s14132_s8 + $0xa4] ss:$16 sps:$4 sm:$0xff]  }
 0x23c   :  { %v2923_v17 = vmax.f32 %v2287_v11, 0.0  ;;  %v2290_v29 = vadd.f32 %v9130_v28, %v11272_v5  ;;  %v2281_v58 = vpop.f32.mrb[175].mxu1  ;;  %3355 = vmatprep.mubr.bf16.mxu0 %v14202_v32  ;;  %5130 = vmatprep.subr.bf16.mxu1 %v9375_v0  ;;  %v9385_v0 = vld [vmem:[%s14132_s8 + $0x120] ss:$16 sps:$4 sm:$0xff]  }
 0x23d   :  { %v2921_v3 = vmax.f32 %v2279_v12, 0.0  ;;  %v2282_v60 = vadd.f32 %v11272_v5, %v2281_v58 }
 0x23e   :  { %9236 = vmatmul.mubr.msk.bf16.gmra.mrb[24].mxu1 %vm1899_vm3, %v11135_v52  ;;  %v2924_v34 = vmax.f32 %v2290_v29, 0.0 }
 0x23f   :  { %9239 = vmatprep.mubr.msk.bf16.mxu1 %vm1899_vm3, %v11151_v44  ;;  %v2922_v47 = vmax.f32 %v2282_v60, 0.0  ;;  %5131 = vmatpush1.bf16.msra.mxu1 %v9373_v21 }
 0x240   :  { %v11377_v27 = vpack.c.bf16 %v2924_v34, %v2923_v17  ;;  %v9378_v34 = vld [vmem:[%s14132_s8 + $0xc4] ss:$16 sps:$4 sm:$0xff]  }
 0x241   :  { %v9133_v9 = vpop.f32.mrb[176].mxu1  ;;  %v11382_v45 = vpack.c.bf16 %v2922_v47, %v2921_v3  ;;  %5132 = vmatprep.subr.bf16.mxu1 %v9378_v34 }
 0x242   :  { %v2303_v52 = vadd.f32 %v9133_v9, %v11272_v5  ;;  %v2294_v14 = vpop.f32.mrb[177].mxu1 }
 0x243   :  { %v2295_v44 = vadd.f32 %v11272_v5, %v2294_v14  ;;  %v9134_v36 = vpop.f32.mrb[178].mxu1  ;;  %3356 = vmatmul.mubr.bf16.gmra.mrb[44].mxu0 %v11325_v59 }
 0x244   :  { %v2306_v23 = vadd.f32 %v9134_v36, %v11272_v5  ;;  %v2297_v57 = vpop.f32.mrb[179].mxu1  ;;  %3365 = vmatprep.mubr.bf16.mxu0 %v14202_v32  ;;  %v2927_v37 = vmax.f32 %v2303_v52, 0.0 }
 0x245   :  { %v2298_v22 = vadd.f32 %v11272_v5, %v2297_v57  ;;  %v2925_v59 = vmax.f32 %v2295_v44, 0.0  ;;  %v9381_v44 = vld [vmem:[%s14132_s8 + $0xe4] ss:$16 sps:$4 sm:$0xff]  }
 0x246   :  { %v2928_v4 = vmax.f32 %v2306_v23, 0.0  ;;  %9240 = vmatmul.mubr.msk.bf16.gmra.mrb[28].mxu1 %vm1899_vm3, %v11149_v39  ;;  %v9379_v23 = vld [vmem:[%s14132_s8 + $0xe0] ss:$16 sps:$4 sm:$0xff]  }
 0x247   :  { %v2926_v33 = vmax.f32 %v2298_v22, 0.0  ;;  %9243 = vmatprep.mubr.msk.bf16.mxu1 %vm1899_vm3, %v11163_v63 }
 0x248   :  { %v11403_v46 = vpack.c.bf16 %v2928_v4, %v2927_v37  ;;  %v9384_v4 = vld [vmem:[%s14132_s8 + $0x104] ss:$16 sps:$4 sm:$0xff]  }
 0x249   :  { %v9137_v26 = vpop.f32.mrb[180].mxu1  ;;  %v11408_v55 = vpack.c.bf16 %v2926_v33, %v2925_v59  ;;  %v9382_v33 = vld [vmem:[%s14132_s8 + $0x100] ss:$16 sps:$4 sm:$0xff]  }
 0x24a   :  { %v2319_v39 = vadd.f32 %v9137_v26, %v11272_v5  ;;  %v2310_v31 = vpop.f32.mrb[181].mxu1 }
 0x24b   :  { %v2311_v63 = vadd.f32 %v11272_v5, %v2310_v31  ;;  %v9138_v11 = vpop.f32.mrb[182].mxu1  ;;  %3366 = vmatmul.mubr.bf16.gmra.mrb[48].mxu0 %v11338_v41  ;;  %v9370_v41 = vld [vmem:[%s14132_s8 + $0x88] ss:$16 sps:$4 sm:$0xff]   ;;  %v9387_v31 = vld [vmem:[%s14132_s8 + $0x124] ss:$16 sps:$4 sm:$0xff]  }
 0x24c   :  { %v2322_v12 = vadd.f32 %v9138_v11, %v11272_v5  ;;  %v2313_v28 = vpop.f32.mrb[183].mxu1  ;;  %3375 = vmatprep.mubr.bf16.mxu0 %v14202_v32  ;;  %v2931_v29 = vmax.f32 %v2319_v39, 0.0  ;;  %6042 = vmatpush1.bf16.msra.mxu0 %v9370_v41  ;;  %v9388_v41 = vld [vmem:[%s14132_s8 + $0x140] ss:$16 sps:$4 sm:$0xff]  }
 0x24d   :  { %v2314_v17 = vadd.f32 %v11272_v5, %v2313_v28  ;;  %v2929_v3 = vmax.f32 %v2311_v63, 0.0 }
 0x24e   :  { %v2932_v58 = vmax.f32 %v2322_v12, 0.0  ;;  %9244 = vmatmul.mubr.msk.bf16.gmra.mrb[32].mxu1 %vm1899_vm3, %v11161_v56  ;;  %v9376_v56 = vld [vmem:[%s14132_s8 + $0xc0] ss:$16 sps:$4 sm:$0xff]  }
 0x24f   :  { %v2930_v60 = vmax.f32 %v2314_v17, 0.0  ;;  %9247 = vmatprep.mubr.msk.bf16.mxu1 %vm1899_vm3, %v11175_v18  ;;  %5133 = vmatpush1.bf16.msra.mxu1 %v9376_v56  ;;  %v9393_v56 = vld [vmem:[%s14132_s8 + $0x164] ss:$16 sps:$4 sm:$0xff]  }
 0x250   :  { %v11435_v47 = vpack.c.bf16 %v2932_v58, %v2931_v29  ;;  %5134 = vmatprep.subr.bf16.mxu1 %v9381_v44  ;;  %v9390_v29 = vld [vmem:[%s14132_s8 + $0x144] ss:$16 sps:$4 sm:$0xff]  }
 0x251   :  { %v9141_v35 = vpop.f32.mrb[184].mxu1  ;;  %v11440_v13 = vpack.c.bf16 %v2930_v60, %v2929_v3 }
 0x252   :  { %v2335_v9 = vadd.f32 %v9141_v35, %v11272_v5  ;;  %v2326_v18 = vpop.f32.mrb[185].mxu1 }
 0x253   :  { %v2327_v52 = vadd.f32 %v11272_v5, %v2326_v18  ;;  %v9142_v14 = vpop.f32.mrb[186].mxu1  ;;  %3376 = vmatmul.mubr.bf16.gmra.mrb[52].mxu0 %v11336_v6  ;;  %5135 = vmatpush1.bf16.msra.mxu1 %v9379_v23  ;;  %v9391_v18 = vld [vmem:[%s14132_s8 + $0x160] ss:$16 sps:$4 sm:$0xff]  }
 0x254   :  { %v2338_v36 = vadd.f32 %v9142_v14, %v11272_v5  ;;  %v2329_v53 = vpop.f32.mrb[187].mxu1  ;;  %3385 = vmatprep.mubr.bf16.mxu0 %v14202_v32  ;;  %v2935_v24 = vmax.f32 %v2335_v9, 0.0  ;;  %5136 = vmatprep.subr.bf16.mxu1 %v9384_v4  ;;  %v9399_v4 = vld [vmem:[%s14132_s8 + $0x1a4] ss:$16 sps:$4 sm:$0xff]  }
 0x255   :  { %v2330_v57 = vadd.f32 %v11272_v5, %v2329_v53  ;;  %v2933_v6 = vmax.f32 %v2327_v52, 0.0  ;;  %v9396_v53 = vld [vmem:[%s14132_s8 + $0x184] ss:$16 sps:$4 sm:$0xff]  }
 0x256   :  { %v2936_v22 = vmax.f32 %v2338_v36, 0.0  ;;  %9248 = vmatmul.mubr.msk.bf16.gmra.mrb[36].mxu1 %vm1899_vm3, %v11173_v15 }
 0x257   :  { %v2934_v37 = vmax.f32 %v2330_v57, 0.0  ;;  %9251 = vmatprep.mubr.msk.bf16.mxu1 %vm1899_vm3, %v11187_v10  ;;  %5137 = vmatpush1.bf16.msra.mxu1 %v9382_v33  ;;  %v9394_v57 = vld [vmem:[%s14132_s8 + $0x180] ss:$16 sps:$4 sm:$0xff]  }
 0x258   :  { %v11461_v59 = vpack.c.bf16 %v2936_v22, %v2935_v24  ;;  %5138 = vmatprep.subr.bf16.mxu1 %v9387_v31 }
 0x259   :  { %v9145_v38 = vpop.f32.mrb[188].mxu1  ;;  %v11466_v42 = vpack.c.bf16 %v2934_v37, %v2933_v6 }
 0x25a   :  { %v2351_v15 = vadd.f32 %v9145_v38, %v11272_v5  ;;  %v2342_v26 = vpop.f32.mrb[189].mxu1 }
 0x25b   :  { %v2343_v10 = vadd.f32 %v11272_v5, %v2342_v26  ;;  %v9146_v39 = vpop.f32.mrb[190].mxu1  ;;  %3386 = vmatmul.mubr.bf16.gmra.mrb[56].mxu0 %v11357_v30  ;;  %5139 = vmatpush1.bf16.msra.mxu1 %v9385_v0  ;;  %v9400_v0 = vld [vmem:[%s14132_s8 + $0x1c0] ss:$16 sps:$4 sm:$0xff]  }
 0x25c   :  { %v2354_v63 = vadd.f32 %v9146_v39, %v11272_v5  ;;  %v2345_v11 = vpop.f32.mrb[191].mxu1  ;;  %3395 = vmatprep.mubr.bf16.mxu0 %v14202_v32  ;;  %v2939_v28 = vmax.f32 %v2351_v15, 0.0  ;;  %5140 = vmatprep.subr.bf16.mxu1 %v9390_v29  ;;  %v9397_v15 = vld [vmem:[%s14132_s8 + $0x1a0] ss:$16 sps:$4 sm:$0xff]  }
 0x25d   :  { %v2346_v12 = vadd.f32 %v11272_v5, %v2345_v11  ;;  %v2937_v30 = vmax.f32 %v2343_v10, 0.0 }
 0x25e   :  { %v2940_v21 = vmax.f32 %v2354_v63, 0.0  ;;  %9252 = vmatmul.mubr.msk.bf16.gmra.mrb[40].mxu1 %vm1899_vm3, %v11185_v7  ;;  %v9402_v63 = vld [vmem:[%s14132_s8 + $0x1c4] ss:$16 sps:$4 sm:$0xff]  }
 0x25f   :  { %v2938_v17 = vmax.f32 %v2346_v12, 0.0  ;;  %9255 = vmatprep.mubr.msk.bf16.mxu1 %vm1899_vm3, %v11199_v1  ;;  %5141 = vmatpush1.bf16.msra.mxu1 %v9388_v41 }
 0x260   :  { %v11487_v58 = vpack.c.bf16 %v2940_v21, %v2939_v28  ;;  %5142 = vmatprep.subr.bf16.mxu1 %v9393_v56 }
 0x261   :  { %v9149_v48 = vpop.f32.mrb[192].mxu1  ;;  %v11492_v3 = vpack.c.bf16 %v2938_v17, %v2937_v30  ;;  %v9405_v17 = vld [vmem:[%s14132_s8 + $0x1e4] ss:$16 sps:$4 sm:$0xff]  }
 0x262   :  { %v2367_v7 = vadd.f32 %v9149_v48, %v11272_v5  ;;  %v2358_v60 = vpop.f32.mrb[193].mxu1  ;;  %v9403_v48 = vld [vmem:[%s14132_s8 + $0x1e0] ss:$16 sps:$4 sm:$0xff]  }
 0x263   :  { %v2359_v1 = vadd.f32 %v11272_v5, %v2358_v60  ;;  %v9150_v34 = vpop.f32.mrb[194].mxu1  ;;  %3396 = vmatmul.mubr.bf16.gmra.mrb[60].mxu0 %v11352_v49  ;;  %5143 = vmatpush1.bf16.msra.mxu1 %v9391_v18 }
 0x264   :  { %v2370_v35 = vadd.f32 %v9150_v34, %v11272_v5  ;;  %v2361_v9 = vpop.f32.mrb[195].mxu1  ;;  %3405 = vmatprep.mubr.bf16.mxu0 %v14202_v32  ;;  %v2943_v14 = vmax.f32 %v2367_v7, 0.0  ;;  %5144 = vmatprep.subr.bf16.mxu1 %v9396_v53 }
 0x265   :  { %v2362_v52 = vadd.f32 %v11272_v5, %v2361_v9  ;;  %v2941_v49 = vmax.f32 %v2359_v1, 0.0 }
 0x266   :  { %v2944_v44 = vmax.f32 %v2370_v35, 0.0  ;;  %9256 = vmatmul.mubr.msk.bf16.gmra.mrb[44].mxu1 %vm1899_vm3, %v11197_v20 }
 0x267   :  { %v2942_v36 = vmax.f32 %v2362_v52, 0.0  ;;  %9259 = vmatprep.mubr.msk.bf16.mxu1 %vm1899_vm3, %v11211_v51  ;;  %5145 = vmatpush1.bf16.msra.mxu1 %v9394_v57 }
 0x268   :  { %v11513_v23 = vpack.c.bf16 %v2944_v44, %v2943_v14  ;;  %5146 = vmatprep.subr.bf16.mxu1 %v9399_v4  ;;  %v9406_v14 = vld [vmem:[%s14132_s8 + $0xa8] ss:$16 sps:$4 sm:$0xff]  }
 0x269   :  { %v9153_v24 = vpop.f32.mrb[196].mxu1  ;;  %v11518_v22 = vpack.c.bf16 %v2942_v36, %v2941_v49 }
 0x26a   :  { %v2383_v20 = vadd.f32 %v9153_v24, %v11272_v5  ;;  %v2374_v6 = vpop.f32.mrb[197].mxu1 }
 0x26b   :  { %v2375_v51 = vadd.f32 %v11272_v5, %v2374_v6  ;;  %v9154_v37 = vpop.f32.mrb[198].mxu1  ;;  %3406 = vmatmul.mubr.bf16.gmra.mrb[64].mxu0 %v11382_v45  ;;  %5147 = vmatpush1.bf16.msra.mxu1 %v9397_v15 }
 0x26c   :  { %v2386_v33 = vadd.f32 %v9154_v37, %v11272_v5  ;;  %v2377_v38 = vpop.f32.mrb[199].mxu1  ;;  %3415 = vmatprep.mubr.bf16.mxu0 %v14202_v32  ;;  %v2947_v10 = vmax.f32 %v2383_v20, 0.0  ;;  %5148 = vmatprep.subr.bf16.mxu1 %v9402_v63 }
 0x26d   :  { %v2378_v26 = vadd.f32 %v11272_v5, %v2377_v38  ;;  %v2945_v45 = vmax.f32 %v2375_v51, 0.0 }
 0x26e   :  { %v2948_v39 = vmax.f32 %v2386_v33, 0.0  ;;  %9260 = vmatmul.mubr.msk.bf16.gmra.mrb[48].mxu1 %vm1899_vm3, %v11209_v2 }
 0x26f   :  { %v2946_v31 = vmax.f32 %v2378_v26, 0.0  ;;  %9263 = vmatprep.mubr.msk.bf16.mxu1 %vm1899_vm3, %v11223_v43  ;;  %5149 = vmatpush1.bf16.msra.mxu1 %v9400_v0 }
 0x270   :  { %v11539_v11 = vpack.c.bf16 %v2948_v39, %v2947_v10  ;;  %5150 = vmatprep.subr.bf16.mxu1 %v9405_v17 }
 0x271   :  { %v9157_v12 = vpop.f32.mrb[200].mxu1  ;;  %v11544_v28 = vpack.c.bf16 %v2946_v31, %v2945_v45 }
 0x272   :  { %v2399_v2 = vadd.f32 %v9157_v12, %v11272_v5  ;;  %v2390_v21 = vpop.f32.mrb[201].mxu1 }
 0x273   :  { %v2391_v43 = vadd.f32 %v11272_v5, %v2390_v21  ;;  %v9158_v30 = vpop.f32.mrb[202].mxu1  ;;  %3416 = vmatmul.mubr.bf16.gmra.mrb[68].mxu0 %v11377_v27  ;;  %5151 = vmatpush1.bf16.msra.mxu1 %v9403_v48 }
 0x274   :  { %v2402_v29 = vadd.f32 %v9158_v30, %v11272_v5  ;;  %v2393_v41 = vpop.f32.mrb[203].mxu1  ;;  %3425 = vmatprep.mubr.bf16.mxu0 %v14202_v32  ;;  %v2951_v60 = vmax.f32 %v2399_v2, 0.0 }
 0x275   :  { %v2394_v7 = vadd.f32 %v11272_v5, %v2393_v41  ;;  %v2949_v27 = vmax.f32 %v2391_v43, 0.0 }
 0x276   :  { %v2952_v1 = vmax.f32 %v2402_v29, 0.0  ;;  %9264 = vmatmul.mubr.msk.bf16.gmra.mrb[52].mxu1 %vm1899_vm3, %v11221_v16  ;;  %v9408_v16 = vld [vmem:[%s14132_s8 + $0xac] ss:$16 sps:$4 sm:$0xff]  }
 0x277   :  { %v2950_v34 = vmax.f32 %v2394_v7, 0.0  ;;  %9267 = vmatprep.mubr.msk.bf16.mxu1 %vm1899_vm3, %v11235_v40  ;;  %6043 = vmatprep.subr.bf16.mxu0 %v9408_v16 }
 0x278   :  { %v11562_v56 = vpack.c.bf16 %v2952_v1, %v2951_v60  ;;  %6044 = vmatpush1.bf16.msra.mxu0 %v9406_v14 }
 0x279   :  { %v9161_v35 = vpop.f32.mrb[204].mxu1  ;;  %v11564_v9 = vpack.c.bf16 %v2950_v34, %v2949_v27 }
 0x27a   :  { %v2415_v18 = vadd.f32 %v9161_v35, %v11272_v5  ;;  %v2406_v52 = vpop.f32.mrb[205].mxu1 }
 0x27b   :  { %v2407_v44 = vadd.f32 %v11272_v5, %v2406_v52  ;;  %v9162_v40 = vpop.f32.mrb[206].mxu1  ;;  %3426 = vmatmul.mubr.bf16.gmra.mrb[72].mxu0 %v11408_v55 }
 0x27c   :  { %v2418_v49 = vadd.f32 %v9162_v40, %v11272_v5  ;;  %v2409_v36 = vpop.f32.mrb[207].mxu1  ;;  %3435 = vmatprep.mubr.bf16.mxu0 %v14202_v32  ;;  %v2955_v57 = vmax.f32 %v2415_v18, 0.0 }
 0x27d   :  { %v2410_v53 = vadd.f32 %v11272_v5, %v2409_v36  ;;  %v2953_v20 = vmax.f32 %v2407_v44, 0.0 }
 0x27e   :  { %v2956_v24 = vmax.f32 %v2418_v49, 0.0  ;;  %9268 = vmatmul.mubr.msk.bf16.gmra.mrb[56].mxu1 %vm1899_vm3, %v11233_v25 }
 0x27f   :  { %v2954_v6 = vmax.f32 %v2410_v53, 0.0  ;;  %9271 = vmatprep.mubr.msk.bf16.mxu1 %vm1899_vm3, %v11247_v54 }
 0x280   :  { %v11582_v55 = vpack.c.bf16 %v2956_v24, %v2955_v57 }
 0x281   :  { %v9165_v51 = vpop.f32.mrb[208].mxu1  ;;  %v11584_v37 = vpack.c.bf16 %v2954_v6, %v2953_v20 }
 0x282   :  { %v2431_v4 = vadd.f32 %v9165_v51, %v11272_v5  ;;  %v2422_v33 = vpop.f32.mrb[209].mxu1 }
 0x283   :  { %v2423_v38 = vadd.f32 %v11272_v5, %v2422_v33  ;;  %v9166_v15 = vpop.f32.mrb[210].mxu1  ;;  %3436 = vmatmul.mubr.bf16.gmra.mrb[76].mxu0 %v11403_v46 }
 0x284   :  { %v2434_v25 = vadd.f32 %v9166_v15, %v11272_v5  ;;  %v2425_v26 = vpop.f32.mrb[211].mxu1  ;;  %3445 = vmatprep.mubr.bf16.mxu0 %v14202_v32  ;;  %v2959_v10 = vmax.f32 %v2431_v4, 0.0 }
 0x285   :  { %v2426_v54 = vadd.f32 %v11272_v5, %v2425_v26  ;;  %v2957_v45 = vmax.f32 %v2423_v38, 0.0 }
 0x286   :  { %v2960_v39 = vmax.f32 %v2434_v25, 0.0  ;;  %9272 = vmatmul.mubr.msk.bf16.gmra.mrb[60].mxu1 %vm1899_vm3, %v11245_v19 }
 0x287   :  { %v2958_v31 = vmax.f32 %v2426_v54, 0.0  ;;  %9275 = vmatprep.mubr.msk.bf16.mxu1 %vm1899_vm3, %v11259_v61 }
 0x288   :  { %v11596_v63 = vpack.c.bf16 %v2960_v39, %v2959_v10 }
 0x289   :  { %v9169_v46 = vpop.f32.mrb[212].mxu1  ;;  %v11598_v0 = vpack.c.bf16 %v2958_v31, %v2957_v45 }
 0x28a   :  { %v2447_v12 = vadd.f32 %v9169_v46, %v11272_v5  ;;  %v2438_v2 = vpop.f32.mrb[213].mxu1 }
 0x28b   :  { %v2439_v21 = vadd.f32 %v11272_v5, %v2438_v2  ;;  %v9170_v43 = vpop.f32.mrb[214].mxu1  ;;  %3446 = vmatmul.mubr.bf16.gmra.mrb[80].mxu0 %v11440_v13 }
 0x28c   :  { %v2450_v19 = vadd.f32 %v9170_v43, %v11272_v5  ;;  %v2441_v30 = vpop.f32.mrb[215].mxu1  ;;  %3455 = vmatprep.mubr.bf16.mxu0 %v14202_v32  ;;  %v2963_v17 = vmax.f32 %v2447_v12, 0.0 }
 0x28d   :  { %v2442_v61 = vadd.f32 %v11272_v5, %v2441_v30  ;;  %v2961_v41 = vmax.f32 %v2439_v21, 0.0  ;;  %v9411_v30 = vld [vmem:[%s14132_s8 + $0xcc] ss:$16 sps:$4 sm:$0xff]  }
 0x28e   :  { %v2964_v29 = vmax.f32 %v2450_v19, 0.0  ;;  %9276 = vmatmul.mubr.msk.bf16.gmra.mrb[64].mxu1 %vm1899_vm3, %v11257_v62  ;;  %v9409_v19 = vld [vmem:[%s14132_s8 + $0xc8] ss:$16 sps:$4 sm:$0xff]   ;;  %6045 = vmatprep.subr.bf16.mxu0 %v9411_v30 }
 0x28f   :  { %v2962_v48 = vmax.f32 %v2442_v61, 0.0  ;;  %9279 = vmatprep.mubr.msk.bf16.mxu1 %vm1899_vm3, %v11276_v50  ;;  %6046 = vmatpush1.bf16.msra.mxu0 %v9409_v19 }
 0x290   :  { %v11610_v7 = vpack.c.bf16 %v2964_v29, %v2963_v17 }
 0x291   :  { %v9173_v13 = vpop.f32.mrb[216].mxu1  ;;  %v11612_v60 = vpack.c.bf16 %v2962_v48, %v2961_v41 }
 0x292   :  { %v2463_v1 = vadd.f32 %v9173_v13, %v11272_v5  ;;  %v2454_v27 = vpop.f32.mrb[217].mxu1 }
 0x293   :  { %v2455_v34 = vadd.f32 %v11272_v5, %v2454_v27  ;;  %v9174_v35 = vpop.f32.mrb[218].mxu1  ;;  %3456 = vmatmul.mubr.bf16.gmra.mrb[84].mxu0 %v11435_v47 }
 0x294   :  { %v2466_v62 = vadd.f32 %v9174_v35, %v11272_v5  ;;  %v2457_v18 = vpop.f32.mrb[219].mxu1  ;;  %3465 = vmatprep.mubr.bf16.mxu0 %v14202_v32  ;;  %v2967_v52 = vmax.f32 %v2463_v1, 0.0 }
 0x295   :  { %v2458_v50 = vadd.f32 %v11272_v5, %v2457_v18  ;;  %v2965_v16 = vmax.f32 %v2455_v34, 0.0 }
 0x296   :  { %v2968_v14 = vmax.f32 %v2466_v62, 0.0  ;;  %9280 = vmatmul.mubr.msk.bf16.gmra.mrb[68].mxu1 %vm1899_vm3, %v11274_v8 }
 0x297   :  { %v2966_v44 = vmax.f32 %v2458_v50, 0.0 }
 0x298   :  { %v11622_v40 = vpack.c.bf16 %v2968_v14, %v2967_v52 }
 0x299   :  { %v9177_v49 = vpop.f32.mrb[220].mxu1  ;;  %v11624_v36 = vpack.c.bf16 %v2966_v44, %v2965_v16 }
 0x29a   :  { %v2479_v47 = vadd.f32 %v9177_v49, %v11272_v5  ;;  %v2470_v53 = vpop.f32.mrb[221].mxu1 }
 0x29b   :  { %v2471_v57 = vadd.f32 %v11272_v5, %v2470_v53  ;;  %v9178_v24 = vpop.f32.mrb[222].mxu1  ;;  %3466 = vmatmul.mubr.bf16.gmra.mrb[88].mxu0 %v11466_v42 }
 0x29c   :  { %v2482_v20 = vadd.f32 %v9178_v24, %v11272_v5  ;;  %v2473_v6 = vpop.f32.mrb[223].mxu1  ;;  %3475 = vmatprep.mubr.bf16.mxu0 %v14202_v32  ;;  %v2971_v51 = vmax.f32 %v2479_v47, 0.0 }
 0x29d   :  { %v2474_v8 = vadd.f32 %v11272_v5, %v2473_v6  ;;  %v2969_v33 = vmax.f32 %v2471_v57, 0.0 }
 0x29e   :  { %v2972_v4 = vmax.f32 %v2482_v20, 0.0 }
 0x29f   :  { %v2970_v38 = vmax.f32 %v2474_v8, 0.0 }
 0x2a0   :  { %v11632_v15 = vpack.c.bf16 %v2972_v4, %v2971_v51 }
 0x2a1   :  { %v9181_v25 = vpop.f32.mrb[224].mxu1  ;;  %v11634_v26 = vpack.c.bf16 %v2970_v38, %v2969_v33 }
 0x2a2   :  { %v2495_v54 = vadd.f32 %v9181_v25, %v11272_v5  ;;  %v2486_v10 = vpop.f32.mrb[225].mxu1 }
 0x2a3   :  { %v2487_v42 = vadd.f32 %v11272_v5, %v2486_v10  ;;  %v9182_v39 = vpop.f32.mrb[226].mxu1  ;;  %3476 = vmatmul.mubr.bf16.gmra.mrb[92].mxu0 %v11461_v59 }
 0x2a4   :  { %v2498_v45 = vadd.f32 %v9182_v39, %v11272_v5  ;;  %v2489_v31 = vpop.f32.mrb[227].mxu1  ;;  %3485 = vmatprep.mubr.bf16.mxu0 %v14202_v32  ;;  %v2975_v12 = vmax.f32 %v2495_v54, 0.0 }
 0x2a5   :  { %v2490_v46 = vadd.f32 %v11272_v5, %v2489_v31  ;;  %v2973_v21 = vmax.f32 %v2487_v42, 0.0 }
 0x2a6   :  { %v2976_v2 = vmax.f32 %v2498_v45, 0.0 }
 0x2a7   :  { %v2974_v43 = vmax.f32 %v2490_v46, 0.0 }
 0x2a8   :  { %v11648_v59 = vpack.c.bf16 %v2976_v2, %v2975_v12 }
 0x2a9   :  { %v9185_v61 = vpop.f32.mrb[228].mxu1  ;;  %v11650_v17 = vpack.c.bf16 %v2974_v43, %v2973_v21 }
 0x2aa   :  { %v2511_v29 = vadd.f32 %v9185_v61, %v11272_v5  ;;  %v2502_v41 = vpop.f32.mrb[229].mxu1 }
 0x2ab   :  { %v2503_v48 = vadd.f32 %v11272_v5, %v2502_v41  ;;  %v9186_v13 = vpop.f32.mrb[230].mxu1  ;;  %3486 = vmatmul.mubr.bf16.gmra.mrb[96].mxu0 %v11492_v3 }
 0x2ac   :  { %v2514_v1 = vadd.f32 %v9186_v13, %v11272_v5  ;;  %v2505_v27 = vpop.f32.mrb[231].mxu1  ;;  %3495 = vmatprep.mubr.bf16.mxu0 %v14202_v32  ;;  %v2979_v35 = vmax.f32 %v2511_v29, 0.0 }
 0x2ad   :  { %v2506_v34 = vadd.f32 %v11272_v5, %v2505_v27  ;;  %v2977_v18 = vmax.f32 %v2503_v48, 0.0 }
 0x2ae   :  { %v2980_v62 = vmax.f32 %v2514_v1, 0.0 }
 0x2af   :  { %v2978_v50 = vmax.f32 %v2506_v34, 0.0 }
 0x2b0   :  { %v11658_v52 = vpack.c.bf16 %v2980_v62, %v2979_v35 }
 0x2b1   :  { %v9189_v14 = vpop.f32.mrb[232].mxu1  ;;  %v11660_v16 = vpack.c.bf16 %v2978_v50, %v2977_v18 }
 0x2b2   :  { %v2527_v44 = vadd.f32 %v9189_v14, %v11272_v5  ;;  %v2518_v3 = vpop.f32.mrb[233].mxu1 }
 0x2b3   :  { %v2519_v49 = vadd.f32 %v11272_v5, %v2518_v3  ;;  %v9190_v47 = vpop.f32.mrb[234].mxu1  ;;  %3496 = vmatmul.mubr.bf16.gmra.mrb[100].mxu0 %v11487_v58 }
 0x2b4   :  { %v2530_v53 = vadd.f32 %v9190_v47, %v11272_v5  ;;  %v2521_v57 = vpop.f32.mrb[235].mxu1  ;;  %3505 = vmatprep.mubr.bf16.mxu0 %v14202_v32  ;;  %v2983_v20 = vmax.f32 %v2527_v44, 0.0 }
 0x2b5   :  { %v2522_v24 = vadd.f32 %v11272_v5, %v2521_v57  ;;  %v2981_v8 = vmax.f32 %v2519_v49, 0.0 }
 0x2b6   :  { %v2984_v6 = vmax.f32 %v2530_v53, 0.0 }
 0x2b7   :  { %v2982_v51 = vmax.f32 %v2522_v24, 0.0 }
 0x2b8   :  { %v11668_v4 = vpack.c.bf16 %v2984_v6, %v2983_v20 }
 0x2b9   :  { %v9193_v33 = vpop.f32.mrb[236].mxu1  ;;  %v11670_v38 = vpack.c.bf16 %v2982_v51, %v2981_v8 }
 0x2ba   :  { %v2543_v25 = vadd.f32 %v9193_v33, %v11272_v5  ;;  %v2534_v54 = vpop.f32.mrb[237].mxu1 }
 0x2bb   :  { %v2535_v58 = vadd.f32 %v11272_v5, %v2534_v54  ;;  %v9194_v10 = vpop.f32.mrb[238].mxu1  ;;  %3506 = vmatmul.mubr.bf16.gmra.mrb[104].mxu0 %v11518_v22 }
 0x2bc   :  { %v2546_v42 = vadd.f32 %v9194_v10, %v11272_v5  ;;  %v2537_v39 = vpop.f32.mrb[239].mxu1  ;;  %3515 = vmatprep.mubr.bf16.mxu0 %v14202_v32  ;;  %v2987_v31 = vmax.f32 %v2543_v25, 0.0  ;;  %v11712_v10 = vld [vmem:[%s14129_s5] ss:$0 sm:$0xff] }
 0x2bd   :  { %v2538_v45 = vadd.f32 %v11272_v5, %v2537_v39  ;;  %v2985_v12 = vmax.f32 %v2535_v58, 0.0  ;;  %v9414_v58 = vld [vmem:[%s14132_s8 + $0xec] ss:$16 sps:$4 sm:$0xff]  }
 0x2be   :  { %v2988_v46 = vmax.f32 %v2546_v42, 0.0  ;;  %6047 = vmatprep.subr.bf16.mxu0 %v9414_v58 }
 0x2bf   :  { %v2986_v2 = vmax.f32 %v2538_v45, 0.0 }
 0x2c0   :  { %v11678_v21 = vpack.c.bf16 %v2988_v46, %v2987_v31 }
 0x2c1   :  { %v9197_v43 = vpop.f32.mrb[240].mxu1  ;;  %v11680_v19 = vpack.c.bf16 %v2986_v2, %v2985_v12 }
 0x2c2   :  { %v2559_v30 = vadd.f32 %v9197_v43, %v11272_v5  ;;  %v2550_v61 = vpop.f32.mrb[241].mxu1 }
 0x2c3   :  { %v2551_v22 = vadd.f32 %v11272_v5, %v2550_v61  ;;  %v9198_v29 = vpop.f32.mrb[242].mxu1  ;;  %3516 = vmatmul.mubr.bf16.gmra.mrb[108].mxu0 %v11513_v23 }
 0x2c4   :  { %v2562_v41 = vadd.f32 %v9198_v29, %v11272_v5  ;;  %v2553_v48 = vpop.f32.mrb[243].mxu1  ;;  %3525 = vmatprep.mubr.bf16.mxu0 %v14202_v32  ;;  %v2991_v1 = vmax.f32 %v2559_v30, 0.0 }
 0x2c5   :  { %v2554_v13 = vadd.f32 %v11272_v5, %v2553_v48  ;;  %v2989_v34 = vmax.f32 %v2551_v22, 0.0 }
 0x2c6   :  { %v2992_v27 = vmax.f32 %v2562_v41, 0.0 }
 0x2c7   :  { %v2990_v35 = vmax.f32 %v2554_v13, 0.0 }
 0x2c8   :  { %v11688_v62 = vpack.c.bf16 %v2992_v27, %v2991_v1 }
 0x2c9   :  { %v9201_v18 = vpop.f32.mrb[244].mxu1  ;;  %v11690_v50 = vpack.c.bf16 %v2990_v35, %v2989_v34 }
 0x2ca   :  { %v2575_v14 = vadd.f32 %v9201_v18, %v11272_v5  ;;  %v2566_v44 = vpop.f32.mrb[245].mxu1 }
 0x2cb   :  { %v2567_v23 = vadd.f32 %v11272_v5, %v2566_v44  ;;  %v9202_v3 = vpop.f32.mrb[246].mxu1  ;;  %3526 = vmatmul.mubr.bf16.gmra.mrb[112].mxu0 %v11544_v28  ;;  %v9412_v28 = vld [vmem:[%s14132_s8 + $0xe8] ss:$16 sps:$4 sm:$0xff]   ;;  %v3183_v44 = vlaneseq }
 0x2cc   :  { %v2578_v49 = vadd.f32 %v9202_v3, %v11272_v5  ;;  %v2569_v47 = vpop.f32.mrb[247].mxu1  ;;  %3535 = vmatprep.mubr.bf16.mxu0 %v14202_v32  ;;  %v2995_v57 = vmax.f32 %v2575_v14, 0.0  ;;  %6048 = vmatpush1.bf16.msra.mxu0 %v9412_v28 }
 0x2cd   :  { %v2570_v53 = vadd.f32 %v11272_v5, %v2569_v47  ;;  %v2993_v20 = vmax.f32 %v2567_v23, 0.0 }
 0x2ce   :  { %v2996_v24 = vmax.f32 %v2578_v49, 0.0 }
 0x2cf   :  { %v2994_v6 = vmax.f32 %v2570_v53, 0.0 }
 0x2d0   :  { %v11698_v8 = vpack.c.bf16 %v2996_v24, %v2995_v57  ;;  %v11736_v24 = vshrl.u32 %v3183_v44, 7 }
 0x2d1   :  { %v9205_v51 = vpop.f32.mrb[248].mxu1  ;;  %v11700_v33 = vpack.c.bf16 %v2994_v6, %v2993_v20 }
 0x2d2   :  { %v2591_v25 = vadd.f32 %v9205_v51, %v11272_v5  ;;  %v2582_v54 = vpop.f32.mrb[249].mxu1  ;;  %14428 = vst [vmem:[#allocation10_spill] sm:$0xff] %v11736_v24 }
 0x2d3   :  { %v2583_v42 = vadd.f32 %v11712_v10, %v2582_v54  ;;  %v9206_v39 = vpop.f32.mrb[250].mxu1  ;;  %3536 = vmatmul.mubr.bf16.gmra.mrb[116].mxu0 %v11539_v11 }
 0x2d4   :  { %v2594_v5 = vadd.f32 %v11712_v10, %v9206_v39  ;;  %v2585_v45 = vpop.f32.mrb[251].mxu1  ;;  %3545 = vmatprep.mubr.bf16.mxu0 %v14202_v32  ;;  %v2999_v46 = vmax.f32 %v2591_v25, 0.0  ;;  %v11748_v39 = vsub.s32 1, %v11736_v24 }
 0x2d5   :  { %v2586_v31 = vadd.f32 %v11712_v10, %v2585_v45  ;;  %v2997_v2 = vmax.f32 %v2583_v42, 0.0  ;;  %v11742_v42 = vsub.s32 0, %v11736_v24 }
 0x2d6   :  { %v3000_v12 = vmax.f32 %v2594_v5, 0.0  ;;  %14430 = vst [vmem:[#allocation20_spill] sm:$0xff] %v11748_v39 }
 0x2d7   :  { %v2998_v43 = vmax.f32 %v2586_v31, 0.0  ;;  %14429 = vst [vmem:[#allocation19_spill] sm:$0xff] %v11742_v42 }
 0x2d8   :  { %v11719_v30 = vpack.c.bf16 %v3000_v12, %v2999_v46 }
 0x2d9   :  { %v9209_v61 = vpop.f32.mrb[252].mxu1  ;;  %v11721_v22 = vpack.c.bf16 %v2998_v43, %v2997_v2 }
 0x2da   :  { %v2607_v11 = vadd.f32 %v11712_v10, %v9209_v61  ;;  %v2598_v29 = vpop.f32.mrb[253].mxu1 }
 0x2db   :  { %v2599_v41 = vadd.f32 %v11712_v10, %v2598_v29  ;;  %v9210_v48 = vpop.f32.mrb[254].mxu1  ;;  %3546 = vmatmul.mubr.bf16.gmra.mrb[120].mxu0 %v11564_v9 }
 0x2dc   :  { %v2610_v13 = vadd.f32 %v11712_v10, %v9210_v48  ;;  %v2601_v1 = vpop.f32.mrb[255].mxu1  ;;  %3555 = vmatprep.mubr.bf16.mxu0 %v14202_v32  ;;  %v3003_v34 = vmax.f32 %v2607_v11, 0.0 }
 0x2dd   :  { %v2602_v27 = vadd.f32 %v11712_v10, %v2601_v1  ;;  %v3001_v18 = vmax.f32 %v2599_v41, 0.0 }
 0x2de   :  { %v3004_v35 = vmax.f32 %v2610_v13, 0.0 }
 0x2df   :  { %v3002_v14 = vmax.f32 %v2602_v27, 0.0 }
 0x2e0   :  { %v11729_v23 = vpack.c.bf16 %v3004_v35, %v3003_v34 }
 0x2e1   :  { %v9213_v3 = vpop.f32.mrb[0].mxu1  ;;  %v11731_v49 = vpack.c.bf16 %v3002_v14, %v3001_v18 }
 0x2e2   :  { %v2623_v47 = vadd.f32 %v11712_v10, %v9213_v3  ;;  %v2614_v9 = vpop.f32.mrb[1].mxu1 }
 0x2e3   :  { %v2615_v53 = vadd.f32 %v11712_v10, %v2614_v9  ;;  %v9214_v57 = vpop.f32.mrb[2].mxu1  ;;  %3556 = vmatmul.mubr.bf16.gmra.mrb[124].mxu0 %v11562_v56  ;;  %v3181_v56 = vld [vmem:[%s14131_s7] sm:$0x3] }
 0x2e4   :  { %v2626_v20 = vadd.f32 %v11712_v10, %v9214_v57  ;;  %v2617_v6 = vpop.f32.mrb[3].mxu1  ;;  %3565 = vmatprep.mubr.bf16.mxu0 %v14202_v32  ;;  %v3007_v25 = vmax.f32 %v2623_v47, 0.0  ;;  %v11758_v61 = vrot.slane %v3181_v56, %v11742_v42  ;;  %v11762_v41 = vrot.slane %v3181_v56, %v11748_v39 }
 0x2e5   :  { %v2618_v51 = vadd.f32 %v11712_v10, %v2617_v6  ;;  %v3005_v28 = vmax.f32 %v2615_v53, 0.0 }
 0x2e6   :  { %v3008_v54 = vmax.f32 %v2626_v20, 0.0 }
 0x2e7   :  { %v3006_v58 = vmax.f32 %v2618_v51, 0.0 }
 0x2e8   :  { %v11750_v5 = vpack.c.bf16 %v3008_v54, %v3007_v25 }
 0x2e9   :  { %v9217_v45 = vpop.f32.mrb[4].mxu1  ;;  %v11752_v31 = vpack.c.bf16 %v3006_v58, %v3005_v28 }
 0x2ea   :  { %v2639_v46 = vadd.f32 %v11712_v10, %v9217_v45  ;;  %v2630_v12 = vpop.f32.mrb[5].mxu1 }
 0x2eb   :  { %v2631_v2 = vadd.f32 %v11712_v10, %v2630_v12  ;;  %v9218_v43 = vpop.f32.mrb[6].mxu1  ;;  %3566 = vmatmul.mubr.bf16.gmra.mrb[128].mxu0 %v11584_v37 }
 0x2ec   :  { %v2642_v11 = vadd.f32 %v11712_v10, %v9218_v43  ;;  %v2633_v29 = vpop.f32.mrb[7].mxu1  ;;  %3575 = vmatprep.mubr.bf16.mxu0 %v14202_v32  ;;  %v3011_v13 = vmax.f32 %v2639_v46, 0.0 }
 0x2ed   :  { %v2634_v48 = vadd.f32 %v11712_v10, %v2633_v29  ;;  %v3009_v34 = vmax.f32 %v2631_v2, 0.0 }
 0x2ee   :  { %v3012_v1 = vmax.f32 %v2642_v11, 0.0  ;;  %v3307_v27 = vpop.f32.mrb[24].mxu0 }
 0x2ef   :  { %v3010_v35 = vmax.f32 %v2634_v48, 0.0  ;;  %v3308_v37 = vadd.f32 %v3307_v27, %v11758_v61  ;;  %v3309_v18 = vpop.f32.mrb[25].mxu0 }
 0x2f0   :  { %v3310_v14 = vadd.f32 %v3309_v18, %v11762_v41  ;;  %v3311_v44 = vpop.f32.mrb[26].mxu0  ;;  %v11768_v3 = vpack.c.bf16 %v3012_v1, %v3011_v13 }
 0x2f1   :  { %v3312_v47 = vadd.f32 %v3311_v44, %v11758_v61  ;;  %v9221_v9 = vpop.f32.mrb[8].mxu1  ;;  %v3313_v53 = vpop.f32.mrb[27].mxu0  ;;  %v11771_v57 = vpack.c.bf16 %v3010_v35, %v3009_v34  ;;  %v4186_v25 = vmax.f32 %v3308_v37, 0.0 }
 0x2f2   :  { %v2655_v20 = vadd.f32 %v11712_v10, %v9221_v9  ;;  %v3314_v6 = vadd.f32 %v3313_v53, %v11762_v41  ;;  %v2646_v51 = vpop.f32.mrb[9].mxu1  ;;  %v4187_v56 = vmax.f32 %v3310_v14, 0.0 }
 0x2f3   :  { %v4188_v54 = vmax.f32 %v3312_v47, 0.0  ;;  %v2647_v28 = vadd.f32 %v11712_v10, %v2646_v51  ;;  %v9222_v58 = vpop.f32.mrb[10].mxu1  ;;  %3576 = vmatmul.mubr.bf16.gmra.mrb[132].mxu0 %v11582_v55 }
 0x2f4   :  { %v4189_v45 = vmax.f32 %v3314_v6, 0.0  ;;  %v2658_v46 = vadd.f32 %v11712_v10, %v9222_v58  ;;  %v2649_v12 = vpop.f32.mrb[11].mxu1  ;;  %3585 = vmatprep.mubr.bf16.mxu0 %v14202_v32  ;;  %v3015_v11 = vmax.f32 %v2655_v20, 0.0 }
 0x2f5   :  { %v11779_v2 = vpack.c.bf16 %v4188_v54, %v4186_v25  ;;  %v2650_v43 = vadd.f32 %v11712_v10, %v2649_v12  ;;  %v3013_v1 = vmax.f32 %v2647_v28, 0.0 }
 0x2f6   :  { %v3016_v29 = vmax.f32 %v2658_v46, 0.0  ;;  %v3317_v48 = vpop.f32.mrb[28].mxu0  ;;  %v11782_v13 = vpack.c.bf16 %v4189_v45, %v4187_v56 }
 0x2f7   :  { %14431 = vst [vmem:[#allocation21_spill] sm:$0xff] %v11779_v2  ;;  %v3014_v27 = vmax.f32 %v2650_v43, 0.0  ;;  %v3318_v55 = vadd.f32 %v3317_v48, %v11758_v61  ;;  %v3319_v34 = vpop.f32.mrb[29].mxu0 }
 0x2f8   :  { %14432 = vst [vmem:[#allocation22_spill] sm:$0xff] %v11782_v13  ;;  %v3320_v35 = vadd.f32 %v3319_v34, %v11762_v41  ;;  %v3321_v37 = vpop.f32.mrb[30].mxu0  ;;  %5152 = vmatprep.mubr.bf16.mxu1 %v11782_v13  ;;  %v11787_v18 = vpack.c.bf16 %v3016_v29, %v3015_v11  ;;  %v9415_v11 = vld [vmem:[%s14132_s8 + $0x108] ss:$16 sps:$4 sm:$0xff]   ;;  %v9417_v29 = vld [vmem:[%s14132_s8 + $0x10c] ss:$16 sps:$4 sm:$0xff]  }
 0x2f9   :  { %v3322_v14 = vadd.f32 %v3321_v37, %v11758_v61  ;;  %v9225_v44 = vpop.f32.mrb[12].mxu1  ;;  %v3323_v47 = vpop.f32.mrb[31].mxu0  ;;  %5153 = vmatmul.mubr.bf16.vlgmr.msra.gmra.mrb[72].mxu1 %v11779_v2  ;;  %v11791_v9 = vpack.c.bf16 %v3014_v27, %v3013_v1  ;;  %v4190_v51 = vmax.f32 %v3318_v55, 0.0  ;;  %6049 = vmatprep.subr.bf16.mxu0 %v9417_v29 }
 0x2fa   :  { %v2671_v53 = vadd.f32 %v11712_v10, %v9225_v44  ;;  %v3324_v20 = vadd.f32 %v3323_v47, %v11762_v41  ;;  %v2662_v6 = vpop.f32.mrb[13].mxu1  ;;  %v4191_v58 = vmax.f32 %v3320_v35, 0.0  ;;  %6050 = vmatpush1.bf16.msra.mxu0 %v9415_v11 }
 0x2fb   :  { %v4192_v25 = vmax.f32 %v3322_v14, 0.0  ;;  %v2663_v54 = vadd.f32 %v11712_v10, %v2662_v6  ;;  %v9226_v28 = vpop.f32.mrb[14].mxu1  ;;  %3586 = vmatmul.mubr.bf16.gmra.mrb[136].mxu0 %v11598_v0 }
 0x2fc   :  { %v4193_v56 = vmax.f32 %v3324_v20, 0.0  ;;  %v2674_v45 = vadd.f32 %v11712_v10, %v9226_v28  ;;  %v2665_v46 = vpop.f32.mrb[15].mxu1  ;;  %3595 = vmatprep.mubr.bf16.mxu0 %v14202_v32  ;;  %v3019_v0 = vmax.f32 %v2671_v53, 0.0 }
 0x2fd   :  { %v11799_v12 = vpack.c.bf16 %v4192_v25, %v4190_v51  ;;  %v2666_v43 = vadd.f32 %v11712_v10, %v2665_v46  ;;  %v3017_v55 = vmax.f32 %v2663_v54, 0.0 }
 0x2fe   :  { %v3020_v48 = vmax.f32 %v2674_v45, 0.0  ;;  %v3327_v1 = vpop.f32.mrb[32].mxu0  ;;  %v11808_v27 = vpack.c.bf16 %v4193_v56, %v4191_v58 }
 0x2ff   :  { %14433 = vst [vmem:[#allocation8_spill] sm:$0xff] %v11799_v12  ;;  %v3018_v34 = vmax.f32 %v2666_v43, 0.0  ;;  %v3328_v35 = vadd.f32 %v3327_v1, %v11758_v61  ;;  %v3329_v37 = vpop.f32.mrb[33].mxu0 }
 0x300   :  { %14434 = vst [vmem:[#allocation16_spill] sm:$0xff] %v11808_v27  ;;  %v11811_v14 = vpack.c.bf16 %v3020_v48, %v3019_v0  ;;  %v3330_v44 = vadd.f32 %v3329_v37, %v11762_v41  ;;  %v3331_v47 = vpop.f32.mrb[34].mxu0  ;;  %5162 = vmatprep.mubr.bf16.mxu1 %v11808_v27 }
 0x301   :  { %v11815_v20 = vpack.c.bf16 %v3018_v34, %v3017_v55  ;;  %v3332_v53 = vadd.f32 %v3331_v47, %v11758_v61  ;;  %v9229_v6 = vpop.f32.mrb[16].mxu1  ;;  %v3333_v51 = vpop.f32.mrb[35].mxu0  ;;  %5163 = vmatmul.mubr.bf16.gmra.mrb[76].mxu1 %v11799_v12  ;;  %v4194_v58 = vmax.f32 %v3328_v35, 0.0 }
 0x302   :  { %v2687_v25 = vadd.f32 %v11712_v10, %v9229_v6  ;;  %v3334_v54 = vadd.f32 %v3333_v51, %v11762_v41  ;;  %v2678_v28 = vpop.f32.mrb[17].mxu1  ;;  %v4195_v43 = vmax.f32 %v3330_v44, 0.0 }
 0x303   :  { %v4196_v56 = vmax.f32 %v3332_v53, 0.0  ;;  %v2679_v45 = vadd.f32 %v11712_v10, %v2678_v28  ;;  %v9230_v46 = vpop.f32.mrb[18].mxu1  ;;  %3596 = vmatmul.mubr.bf16.gmra.mrb[140].mxu0 %v11596_v63 }
 0x304   :  { %v4197_v11 = vmax.f32 %v3334_v54, 0.0  ;;  %v2690_v29 = vadd.f32 %v11712_v10, %v9230_v46  ;;  %v2681_v0 = vpop.f32.mrb[19].mxu1  ;;  %3605 = vmatprep.mubr.bf16.mxu0 %v14202_v32  ;;  %v3023_v55 = vmax.f32 %v2687_v25, 0.0 }
 0x305   :  { %v11825_v48 = vpack.c.bf16 %v4196_v56, %v4194_v58  ;;  %v2682_v1 = vadd.f32 %v11712_v10, %v2681_v0  ;;  %v3021_v47 = vmax.f32 %v2679_v45, 0.0 }
 0x306   :  { %v3024_v34 = vmax.f32 %v2690_v29, 0.0  ;;  %v3337_v35 = vpop.f32.mrb[36].mxu0  ;;  %v11828_v37 = vpack.c.bf16 %v4197_v11, %v4195_v43 }
 0x307   :  { %14435 = vst [vmem:[#allocation14_spill] sm:$0xff] %v11825_v48  ;;  %v3022_v53 = vmax.f32 %v2682_v1, 0.0  ;;  %v3338_v63 = vadd.f32 %v3337_v35, %v11758_v61  ;;  %v3339_v44 = vpop.f32.mrb[37].mxu0 }
 0x308   :  { %14436 = vst [vmem:[#allocation26_spill] sm:$0xff] %v11828_v37  ;;  %v11831_v6 = vpack.c.bf16 %v3024_v34, %v3023_v55  ;;  %v3340_v51 = vadd.f32 %v3339_v44, %v11762_v41  ;;  %v3341_v54 = vpop.f32.mrb[38].mxu0  ;;  %5172 = vmatprep.mubr.bf16.mxu1 %v11828_v37 }
 0x309   :  { %v11835_v28 = vpack.c.bf16 %v3022_v53, %v3021_v47  ;;  %v3342_v25 = vadd.f32 %v3341_v54, %v11758_v61  ;;  %v9233_v58 = vpop.f32.mrb[20].mxu1  ;;  %v3343_v56 = vpop.f32.mrb[39].mxu0  ;;  %5173 = vmatmul.mubr.bf16.gmra.mrb[80].mxu1 %v11825_v48  ;;  %v4198_v11 = vmax.f32 %v3338_v63, 0.0 }
 0x30a   :  { %v2703_v45 = vadd.f32 %v11712_v10, %v9233_v58  ;;  %v3344_v46 = vadd.f32 %v3343_v56, %v11762_v41  ;;  %v2694_v43 = vpop.f32.mrb[21].mxu1  ;;  %v4199_v55 = vmax.f32 %v3340_v51, 0.0 }
 0x30b   :  { %v4200_v29 = vmax.f32 %v3342_v25, 0.0  ;;  %v2695_v0 = vadd.f32 %v11712_v10, %v2694_v43  ;;  %v9234_v1 = vpop.f32.mrb[22].mxu1  ;;  %3606 = vmatmul.mubr.bf16.gmra.mrb[144].mxu0 %v11612_v60 }
 0x30c   :  { %v4201_v34 = vmax.f32 %v3344_v46, 0.0  ;;  %v2706_v35 = vadd.f32 %v11712_v10, %v9234_v1  ;;  %v2697_v47 = vpop.f32.mrb[23].mxu1  ;;  %3615 = vmatprep.mubr.bf16.mxu0 %v14202_v32  ;;  %v3027_v54 = vmax.f32 %v2703_v45, 0.0 }
 0x30d   :  { %v11845_v53 = vpack.c.bf16 %v4200_v29, %v4198_v11  ;;  %v2698_v44 = vadd.f32 %v11712_v10, %v2697_v47  ;;  %v3025_v56 = vmax.f32 %v2695_v0, 0.0 }
 0x30e   :  { %v3028_v58 = vmax.f32 %v2706_v35, 0.0  ;;  %v3347_v63 = vpop.f32.mrb[40].mxu0  ;;  %v11848_v25 = vpack.c.bf16 %v4201_v34, %v4199_v55 }
 0x30f   :  { %14437 = vst [vmem:[#allocation24_spill] sm:$0xff] %v11845_v53  ;;  %v3026_v43 = vmax.f32 %v2698_v44, 0.0  ;;  %v3348_v60 = vadd.f32 %v3347_v63, %v11758_v61  ;;  %v3349_v51 = vpop.f32.mrb[41].mxu0 }
 0x310   :  { %14438 = vst [vmem:[#allocation34_spill] sm:$0xff] %v11848_v25  ;;  %v11851_v46 = vpack.c.bf16 %v3028_v58, %v3027_v54  ;;  %v3350_v1 = vadd.f32 %v3349_v51, %v11762_v41  ;;  %v3351_v24 = vpop.f32.mrb[42].mxu0  ;;  %5182 = vmatprep.mubr.bf16.mxu1 %v11848_v25 }
 0x311   :  { %v11855_v11 = vpack.c.bf16 %v3026_v43, %v3025_v56  ;;  %v3352_v45 = vadd.f32 %v3351_v24, %v11758_v61  ;;  %v9237_v29 = vpop.f32.mrb[24].mxu1  ;;  %v3353_v35 = vpop.f32.mrb[43].mxu0  ;;  %5183 = vmatmul.mubr.bf16.gmra.mrb[84].mxu1 %v11845_v53  ;;  %v4202_v47 = vmax.f32 %v3348_v60, 0.0 }
 0x312   :  { %v2719_v0 = vadd.f32 %v11712_v10, %v9237_v29  ;;  %v3354_v55 = vadd.f32 %v3353_v35, %v11762_v41  ;;  %v2710_v34 = vpop.f32.mrb[25].mxu1  ;;  %v4203_v63 = vmax.f32 %v3350_v1, 0.0 }
 0x313   :  { %v4204_v44 = vmax.f32 %v3352_v45, 0.0  ;;  %v2711_v54 = vadd.f32 %v11712_v10, %v2710_v34  ;;  %v9238_v58 = vpop.f32.mrb[26].mxu1  ;;  %3616 = vmatmul.mubr.bf16.gmra.mrb[148].mxu0 %v11610_v7 }
 0x314   :  { %v4205_v56 = vmax.f32 %v3354_v55, 0.0  ;;  %v2722_v24 = vadd.f32 %v11712_v10, %v9238_v58  ;;  %v2713_v43 = vpop.f32.mrb[27].mxu1  ;;  %3625 = vmatprep.mubr.bf16.mxu0 %v14202_v32  ;;  %v3031_v35 = vmax.f32 %v2719_v0, 0.0 }
 0x315   :  { %v11865_v51 = vpack.c.bf16 %v4204_v44, %v4202_v47  ;;  %v2714_v29 = vadd.f32 %v11712_v10, %v2713_v43  ;;  %v3029_v34 = vmax.f32 %v2711_v54, 0.0 }
 0x316   :  { %v3032_v53 = vmax.f32 %v2722_v24, 0.0  ;;  %v3357_v60 = vpop.f32.mrb[44].mxu0  ;;  %v11868_v45 = vpack.c.bf16 %v4205_v56, %v4203_v63 }
 0x317   :  { %14439 = vst [vmem:[#allocation9_spill] sm:$0xff] %v11865_v51  ;;  %v3030_v25 = vmax.f32 %v2714_v29, 0.0  ;;  %v3358_v7 = vadd.f32 %v3357_v60, %v11758_v61  ;;  %v3359_v1 = vpop.f32.mrb[45].mxu0 }
 0x318   :  { %14440 = vst [vmem:[#allocation11_spill] sm:$0xff] %v11868_v45  ;;  %v11871_v55 = vpack.c.bf16 %v3032_v53, %v3031_v35  ;;  %v3360_v58 = vadd.f32 %v3359_v1, %v11762_v41  ;;  %v3361_v48 = vpop.f32.mrb[46].mxu0  ;;  %5192 = vmatprep.mubr.bf16.mxu1 %v11868_v45 }
 0x319   :  { %v11875_v47 = vpack.c.bf16 %v3030_v25, %v3029_v34  ;;  %v3362_v0 = vadd.f32 %v3361_v48, %v11758_v61  ;;  %v9241_v44 = vpop.f32.mrb[28].mxu1  ;;  %v3363_v24 = vpop.f32.mrb[47].mxu0  ;;  %5193 = vmatmul.mubr.bf16.gmra.mrb[88].mxu1 %v11865_v51  ;;  %v4206_v53 = vmax.f32 %v3358_v7, 0.0 }
 0x31a   :  { %v2735_v54 = vadd.f32 %v11712_v10, %v9241_v44  ;;  %v3364_v63 = vadd.f32 %v3363_v24, %v11762_v41  ;;  %v2726_v56 = vpop.f32.mrb[29].mxu1  ;;  %v4207_v25 = vmax.f32 %v3360_v58, 0.0 }
 0x31b   :  { %v4208_v43 = vmax.f32 %v3362_v0, 0.0  ;;  %v2727_v29 = vadd.f32 %v11712_v10, %v2726_v56  ;;  %v9242_v35 = vpop.f32.mrb[30].mxu1  ;;  %3626 = vmatmul.mubr.bf16.gmra.mrb[152].mxu0 %v11624_v36 }
 0x31c   :  { %v4209_v60 = vmax.f32 %v3364_v63, 0.0  ;;  %v2738_v48 = vadd.f32 %v11712_v10, %v9242_v35  ;;  %v2729_v34 = vpop.f32.mrb[31].mxu1  ;;  %3635 = vmatprep.mubr.bf16.mxu0 %v14202_v32  ;;  %v3035_v24 = vmax.f32 %v2735_v54, 0.0 }
 0x31d   :  { %v11885_v1 = vpack.c.bf16 %v4208_v43, %v4206_v53  ;;  %v2730_v44 = vadd.f32 %v11712_v10, %v2729_v34  ;;  %v3033_v56 = vmax.f32 %v2727_v29, 0.0 }
 0x31e   :  { %v3036_v51 = vmax.f32 %v2738_v48, 0.0  ;;  %v3367_v7 = vpop.f32.mrb[48].mxu0  ;;  %v11888_v0 = vpack.c.bf16 %v4209_v60, %v4207_v25 }
 0x31f   :  { %14441 = vst [vmem:[#allocation12_spill] sm:$0xff] %v11885_v1  ;;  %v3034_v45 = vmax.f32 %v2730_v44, 0.0  ;;  %v3368_v36 = vadd.f32 %v3367_v7, %v11758_v61  ;;  %v3369_v58 = vpop.f32.mrb[49].mxu0 }
 0x320   :  { %14442 = vst [vmem:[#allocation13_spill] sm:$0xff] %v11888_v0  ;;  %v11891_v63 = vpack.c.bf16 %v3036_v51, %v3035_v24  ;;  %v3370_v35 = vadd.f32 %v3369_v58, %v11762_v41  ;;  %v3371_v37 = vpop.f32.mrb[50].mxu0  ;;  %5202 = vmatprep.mubr.bf16.mxu1 %v11888_v0 }
 0x321   :  { %v11895_v53 = vpack.c.bf16 %v3034_v45, %v3033_v56  ;;  %v3372_v54 = vadd.f32 %v3371_v37, %v11758_v61  ;;  %v9245_v43 = vpop.f32.mrb[32].mxu1  ;;  %v3373_v48 = vpop.f32.mrb[51].mxu0  ;;  %5203 = vmatmul.mubr.bf16.gmra.mrb[92].mxu1 %v11885_v1  ;;  %v4210_v51 = vmax.f32 %v3368_v36, 0.0 }
 0x322   :  { %v2751_v29 = vadd.f32 %v11712_v10, %v9245_v43  ;;  %v3374_v25 = vadd.f32 %v3373_v48, %v11762_v41  ;;  %v2742_v60 = vpop.f32.mrb[33].mxu1  ;;  %v4211_v45 = vmax.f32 %v3370_v35, 0.0 }
 0x323   :  { %v4212_v34 = vmax.f32 %v3372_v54, 0.0  ;;  %v2743_v44 = vadd.f32 %v11712_v10, %v2742_v60  ;;  %v9246_v24 = vpop.f32.mrb[34].mxu1  ;;  %3636 = vmatmul.mubr.bf16.gmra.mrb[156].mxu0 %v11622_v40 }
 0x324   :  { %v4213_v7 = vmax.f32 %v3374_v25, 0.0  ;;  %v2754_v37 = vadd.f32 %v11712_v10, %v9246_v24  ;;  %v2745_v56 = vpop.f32.mrb[35].mxu1  ;;  %3645 = vmatprep.mubr.bf16.mxu0 %v14202_v32  ;;  %v3039_v48 = vmax.f32 %v2751_v29, 0.0 }
 0x325   :  { %v11905_v58 = vpack.c.bf16 %v4212_v34, %v4210_v51  ;;  %v2746_v43 = vadd.f32 %v11712_v10, %v2745_v56  ;;  %v3037_v60 = vmax.f32 %v2743_v44, 0.0 }
 0x326   :  { %v3040_v1 = vmax.f32 %v2754_v37, 0.0  ;;  %v3377_v36 = vpop.f32.mrb[52].mxu0  ;;  %v11908_v54 = vpack.c.bf16 %v4213_v7, %v4211_v45 }
 0x327   :  { %14443 = vst [vmem:[#allocation15_spill] sm:$0xff] %v11905_v58  ;;  %v3038_v0 = vmax.f32 %v2746_v43, 0.0  ;;  %v3378_v40 = vadd.f32 %v3377_v36, %v11758_v61  ;;  %v3379_v35 = vpop.f32.mrb[53].mxu0 }
 0x328   :  { %14444 = vst [vmem:[#allocation17_spill] sm:$0xff] %v11908_v54  ;;  %v11911_v25 = vpack.c.bf16 %v3040_v1, %v3039_v48  ;;  %v3380_v24 = vadd.f32 %v3379_v35, %v11762_v41  ;;  %v3381_v12 = vpop.f32.mrb[54].mxu0  ;;  %5212 = vmatprep.mubr.bf16.mxu1 %v11908_v54  ;;  %v9418_v1 = vld [vmem:[%s14132_s8 + $0x128] ss:$16 sps:$4 sm:$0xff]  }
 0x329   :  { %v11915_v51 = vpack.c.bf16 %v3038_v0, %v3037_v60  ;;  %v3382_v29 = vadd.f32 %v3381_v12, %v11758_v61  ;;  %v9249_v34 = vpop.f32.mrb[36].mxu1  ;;  %v3383_v37 = vpop.f32.mrb[55].mxu0  ;;  %5213 = vmatmul.mubr.bf16.gmra.mrb[96].mxu1 %v11905_v58  ;;  %v9420_v0 = vld [vmem:[%s14132_s8 + $0x12c] ss:$16 sps:$4 sm:$0xff]   ;;  %v4214_v56 = vmax.f32 %v3378_v40, 0.0 }
 0x32a   :  { %v2767_v44 = vadd.f32 %v11712_v10, %v9249_v34  ;;  %v3384_v45 = vadd.f32 %v3383_v37, %v11762_v41  ;;  %v2758_v7 = vpop.f32.mrb[37].mxu1  ;;  %v4215_v36 = vmax.f32 %v3380_v24, 0.0  ;;  %6051 = vmatprep.subr.bf16.mxu0 %v9420_v0 }
 0x32b   :  { %v4216_v43 = vmax.f32 %v3382_v29, 0.0  ;;  %v2759_v12 = vadd.f32 %v11712_v10, %v2758_v7  ;;  %v9250_v48 = vpop.f32.mrb[38].mxu1  ;;  %3646 = vmatmul.mubr.bf16.gmra.mrb[160].mxu0 %v11634_v26 }
 0x32c   :  { %v4217_v60 = vmax.f32 %v3384_v45, 0.0  ;;  %v2770_v35 = vadd.f32 %v11712_v10, %v9250_v48  ;;  %v2761_v34 = vpop.f32.mrb[39].mxu1  ;;  %3655 = vmatprep.mubr.bf16.mxu0 %v14202_v32  ;;  %6052 = vmatpush1.bf16.msra.mxu0 %v9418_v1  ;;  %v3043_v40 = vmax.f32 %v2767_v44, 0.0 }
 0x32d   :  { %v11931_v37 = vpack.c.bf16 %v4216_v43, %v4214_v56  ;;  %v2762_v58 = vadd.f32 %v11712_v10, %v2761_v34  ;;  %v3041_v27 = vmax.f32 %v2759_v12, 0.0 }
 0x32e   :  { %v3044_v29 = vmax.f32 %v2770_v35, 0.0  ;;  %v3387_v54 = vpop.f32.mrb[56].mxu0  ;;  %v11934_v7 = vpack.c.bf16 %v4217_v60, %v4215_v36 }
 0x32f   :  { %14445 = vst [vmem:[#allocation18_spill] sm:$0xff] %v11931_v37  ;;  %v3042_v26 = vmax.f32 %v2762_v58, 0.0  ;;  %v3388_v24 = vadd.f32 %v3387_v54, %v11758_v61  ;;  %v3389_v45 = vpop.f32.mrb[57].mxu0 }
 0x330   :  { %14446 = vst [vmem:[#allocation23_spill] sm:$0xff] %v11934_v7  ;;  %v11937_v48 = vpack.c.bf16 %v3044_v29, %v3043_v40  ;;  %v3390_v32 = vadd.f32 %v3389_v45, %v11762_v41  ;;  %v3391_v0 = vpop.f32.mrb[58].mxu0  ;;  %5222 = vmatprep.mubr.bf16.mxu1 %v11934_v7  ;;  %v14447_v45 = vmov 0  }
 0x331   :  { %v11941_v56 = vpack.c.bf16 %v3042_v26, %v3041_v27  ;;  %v3392_v44 = vadd.f32 %v3391_v0, %v11758_v61  ;;  %v9253_v1 = vpop.f32.mrb[40].mxu1  ;;  %v3393_v43 = vpop.f32.mrb[59].mxu0  ;;  %5223 = vmatmul.mubr.bf16.gmra.mrb[100].mxu1 %v11931_v37  ;;  %v4218_v36 = vmax.f32 %v3388_v24, 0.0 }
 0x332   :  { %v2783_v58 = vadd.f32 %v11712_v10, %v9253_v1  ;;  %v3394_v54 = vadd.f32 %v3393_v43, %v11762_v41  ;;  %v2774_v12 = vpop.f32.mrb[41].mxu1  ;;  %v4219_v27 = vmax.f32 %v3390_v32, 0.0 }
 0x333   :  { %v4220_v60 = vmax.f32 %v3392_v44, 0.0  ;;  %v2775_v35 = vadd.f32 %v11712_v10, %v2774_v12  ;;  %v9254_v34 = vpop.f32.mrb[42].mxu1  ;;  %3656 = vmatmul.mubr.bf16.gmra.mrb[164].mxu0 %v11632_v15 }
 0x334   :  { %v4221_v40 = vmax.f32 %v3394_v54, 0.0  ;;  %v2786_v29 = vadd.f32 %v11712_v10, %v9254_v34  ;;  %v2777_v26 = vpop.f32.mrb[43].mxu1  ;;  %3665 = vmatprep.mubr.bf16.mxu0 %v14447_v45  ;;  %v3047_v43 = vmax.f32 %v2783_v58, 0.0 }
 0x335   :  { %v11951_v0 = vpack.c.bf16 %v4220_v60, %v4218_v36  ;;  %v2778_v1 = vadd.f32 %v11712_v10, %v2777_v26  ;;  %v3045_v12 = vmax.f32 %v2775_v35, 0.0 }
 0x336   :  { %v3048_v37 = vmax.f32 %v2786_v29, 0.0  ;;  %v3397_v24 = vpop.f32.mrb[60].mxu0  ;;  %v11954_v44 = vpack.c.bf16 %v4221_v40, %v4219_v27 }
 0x337   :  { %14448 = vst [vmem:[#allocation25_spill] sm:$0xff] %v11951_v0  ;;  %v3046_v7 = vmax.f32 %v2778_v1, 0.0  ;;  %v3398_v15 = vadd.f32 %v3397_v24, %v11758_v61  ;;  %v3399_v32 = vpop.f32.mrb[61].mxu0 }
 0x338   :  { %14449 = vst [vmem:[#allocation27_spill] sm:$0xff] %v11954_v44  ;;  %v11957_v54 = vpack.c.bf16 %v3048_v37, %v3047_v43  ;;  %v3400_v34 = vadd.f32 %v3399_v32, %v11762_v41  ;;  %v3401_v2 = vpop.f32.mrb[62].mxu0  ;;  %5232 = vmatprep.mubr.bf16.mxu1 %v11954_v44 }
 0x339   :  { %v11961_v36 = vpack.c.bf16 %v3046_v7, %v3045_v12  ;;  %v3402_v58 = vadd.f32 %v3401_v2, %v11758_v61  ;;  %v9257_v60 = vpop.f32.mrb[44].mxu1  ;;  %v3403_v29 = vpop.f32.mrb[63].mxu0  ;;  %5233 = vmatmul.mubr.bf16.gmra.mrb[104].mxu1 %v11951_v0  ;;  %v4222_v37 = vmax.f32 %v3398_v15, 0.0 }
 0x33a   :  { %v2799_v35 = vadd.f32 %v11712_v10, %v9257_v60  ;;  %v3404_v27 = vadd.f32 %v3403_v29, %v11762_v41  ;;  %v2790_v40 = vpop.f32.mrb[45].mxu1  ;;  %v4223_v7 = vmax.f32 %v3400_v34, 0.0 }
 0x33b   :  { %v4224_v26 = vmax.f32 %v3402_v58, 0.0  ;;  %v2791_v1 = vadd.f32 %v11712_v10, %v2790_v40  ;;  %v9258_v43 = vpop.f32.mrb[46].mxu1  ;;  %3666 = vmatmul.mubr.bf16.gmra.mrb[168].mxu0 %v11650_v17 }
 0x33c   :  { %v4225_v24 = vmax.f32 %v3404_v27, 0.0  ;;  %v2802_v2 = vadd.f32 %v11712_v10, %v9258_v43  ;;  %v2793_v12 = vpop.f32.mrb[47].mxu1  ;;  %3675 = vmatprep.mubr.bf16.mxu0 %v14447_v45  ;;  %v3051_v29 = vmax.f32 %v2799_v35, 0.0 }
 0x33d   :  { %v11971_v32 = vpack.c.bf16 %v4224_v26, %v4222_v37  ;;  %v2794_v60 = vadd.f32 %v11712_v10, %v2793_v12  ;;  %v3049_v40 = vmax.f32 %v2791_v1, 0.0 }
 0x33e   :  { %v3052_v0 = vmax.f32 %v2802_v2, 0.0  ;;  %v3407_v15 = vpop.f32.mrb[64].mxu0  ;;  %v11974_v58 = vpack.c.bf16 %v4225_v24, %v4223_v7 }
 0x33f   :  { %14450 = vst [vmem:[#allocation28_spill] sm:$0xff] %v11971_v32  ;;  %v3050_v44 = vmax.f32 %v2794_v60, 0.0  ;;  %v3408_v17 = vadd.f32 %v3407_v15, %v11758_v61  ;;  %v3409_v34 = vpop.f32.mrb[65].mxu0 }
 0x340   :  { %14451 = vst [vmem:[#allocation29_spill] sm:$0xff] %v11974_v58  ;;  %v11977_v27 = vpack.c.bf16 %v3052_v0, %v3051_v29  ;;  %v3410_v43 = vadd.f32 %v3409_v34, %v11762_v41  ;;  %v3411_v13 = vpop.f32.mrb[66].mxu0  ;;  %5242 = vmatprep.mubr.bf16.mxu1 %v11974_v58 }
 0x341   :  { %v11981_v37 = vpack.c.bf16 %v3050_v44, %v3049_v40  ;;  %v3412_v35 = vadd.f32 %v3411_v13, %v11758_v61  ;;  %v9261_v26 = vpop.f32.mrb[48].mxu1  ;;  %v3413_v2 = vpop.f32.mrb[67].mxu0  ;;  %5243 = vmatmul.mubr.bf16.gmra.mrb[108].mxu1 %v11971_v32  ;;  %v4226_v0 = vmax.f32 %v3408_v17, 0.0 }
 0x342   :  { %14452 = vst [vmem:[#allocation30_spill] sm:$0xff] %v11977_v27  ;;  %v2815_v1 = vadd.f32 %v11712_v10, %v9261_v26  ;;  %v3414_v7 = vadd.f32 %v3413_v2, %v11762_v41  ;;  %v2806_v24 = vpop.f32.mrb[49].mxu1  ;;  %v4227_v44 = vmax.f32 %v3410_v43, 0.0 }
 0x343   :  { %v4228_v12 = vmax.f32 %v3412_v35, 0.0  ;;  %v2807_v60 = vadd.f32 %v11712_v10, %v2806_v24  ;;  %v9262_v29 = vpop.f32.mrb[50].mxu1  ;;  %3676 = vmatmul.mubr.bf16.gmra.mrb[172].mxu0 %v11648_v59 }
 0x344   :  { %v4229_v15 = vmax.f32 %v3414_v7, 0.0  ;;  %v2818_v13 = vadd.f32 %v11712_v10, %v9262_v29  ;;  %v2809_v40 = vpop.f32.mrb[51].mxu1  ;;  %3685 = vmatprep.mubr.bf16.mxu0 %v14447_v45  ;;  %v3055_v2 = vmax.f32 %v2815_v1, 0.0 }
 0x345   :  { %v11991_v34 = vpack.c.bf16 %v4228_v12, %v4226_v0  ;;  %v2810_v26 = vadd.f32 %v11712_v10, %v2809_v40  ;;  %v3053_v24 = vmax.f32 %v2807_v60, 0.0 }
 0x346   :  { %v3056_v32 = vmax.f32 %v2818_v13, 0.0  ;;  %v3417_v17 = vpop.f32.mrb[68].mxu0  ;;  %v11994_v35 = vpack.c.bf16 %v4229_v15, %v4227_v44 }
 0x347   :  { %14453 = vst [vmem:[#allocation31_spill] sm:$0xff] %v11991_v34  ;;  %v3054_v58 = vmax.f32 %v2810_v26, 0.0  ;;  %v3418_v59 = vadd.f32 %v3417_v17, %v11758_v61  ;;  %v3419_v43 = vpop.f32.mrb[69].mxu0 }
 0x348   :  { %14454 = vst [vmem:[#allocation32_spill] sm:$0xff] %v11994_v35  ;;  %v11997_v7 = vpack.c.bf16 %v3056_v32, %v3055_v2  ;;  %v3420_v29 = vadd.f32 %v3419_v43, %v11762_v41  ;;  %v3421_v27 = vpop.f32.mrb[70].mxu0  ;;  %5252 = vmatprep.mubr.bf16.mxu1 %v11994_v35 }
 0x349   :  { %v12001_v0 = vpack.c.bf16 %v3054_v58, %v3053_v24  ;;  %v3422_v1 = vadd.f32 %v3421_v27, %v11758_v61  ;;  %v9265_v12 = vpop.f32.mrb[52].mxu1  ;;  %v3423_v13 = vpop.f32.mrb[71].mxu0  ;;  %5253 = vmatmul.mubr.bf16.gmra.mrb[112].mxu1 %v11991_v34  ;;  %v4230_v32 = vmax.f32 %v3418_v59, 0.0 }
 0x34a   :  { %14455 = vst [vmem:[#allocation33_spill] sm:$0xff] %v11997_v7  ;;  %v2831_v60 = vadd.f32 %v11712_v10, %v9265_v12  ;;  %v3424_v44 = vadd.f32 %v3423_v13, %v11762_v41  ;;  %v2822_v15 = vpop.f32.mrb[53].mxu1  ;;  %v4231_v58 = vmax.f32 %v3420_v29, 0.0 }
 0x34b   :  { %v4232_v40 = vmax.f32 %v3422_v1, 0.0  ;;  %v2823_v26 = vadd.f32 %v11712_v10, %v2822_v15  ;;  %v9266_v2 = vpop.f32.mrb[54].mxu1  ;;  %3686 = vmatmul.mubr.bf16.gmra.mrb[176].mxu0 %v11660_v16 }
 0x34c   :  { %v4233_v17 = vmax.f32 %v3424_v44, 0.0  ;;  %v2834_v27 = vadd.f32 %v11712_v10, %v9266_v2  ;;  %v2825_v24 = vpop.f32.mrb[55].mxu1  ;;  %3695 = vmatprep.mubr.bf16.mxu0 %v14447_v45  ;;  %v3059_v13 = vmax.f32 %v2831_v60, 0.0 }
 0x34d   :  { %v12011_v43 = vpack.c.bf16 %v4232_v40, %v4230_v32  ;;  %v2826_v12 = vadd.f32 %v11712_v10, %v2825_v24  ;;  %v3057_v15 = vmax.f32 %v2823_v26, 0.0 }
 0x34e   :  { %v3060_v34 = vmax.f32 %v2834_v27, 0.0  ;;  %v3427_v59 = vpop.f32.mrb[72].mxu0  ;;  %v12014_v1 = vpack.c.bf16 %v4233_v17, %v4231_v58 }
 0x34f   :  { %14456 = vst [vmem:[#allocation35_spill] sm:$0xff] %v12011_v43  ;;  %v3058_v35 = vmax.f32 %v2826_v12, 0.0  ;;  %v3428_v16 = vadd.f32 %v3427_v59, %v11758_v61  ;;  %v3429_v29 = vpop.f32.mrb[73].mxu0 }
 0x350   :  { %14457 = vst [vmem:[#allocation36_spill] sm:$0xff] %v12014_v1  ;;  %v12017_v44 = vpack.c.bf16 %v3060_v34, %v3059_v13  ;;  %v3430_v2 = vadd.f32 %v3429_v29, %v11762_v41  ;;  %v3431_v7 = vpop.f32.mrb[74].mxu0  ;;  %5262 = vmatprep.mubr.bf16.mxu1 %v12014_v1 }
 0x351   :  { %v12021_v32 = vpack.c.bf16 %v3058_v35, %v3057_v15  ;;  %v3432_v60 = vadd.f32 %v3431_v7, %v11758_v61  ;;  %v9269_v40 = vpop.f32.mrb[56].mxu1  ;;  %v3433_v27 = vpop.f32.mrb[75].mxu0  ;;  %5263 = vmatmul.mubr.bf16.gmra.mrb[116].mxu1 %v12011_v43  ;;  %v4234_v34 = vmax.f32 %v3428_v16, 0.0  ;;  %v9421_v16 = vld [vmem:[%s14132_s8 + $0x148] ss:$16 sps:$4 sm:$0xff]  }
 0x352   :  { %14458 = vst [vmem:[#allocation37_spill] sm:$0xff] %v12017_v44  ;;  %v2847_v26 = vadd.f32 %v11712_v10, %v9269_v40  ;;  %v3434_v58 = vadd.f32 %v3433_v27, %v11762_v41  ;;  %v2838_v17 = vpop.f32.mrb[57].mxu1  ;;  %v4235_v35 = vmax.f32 %v3430_v2, 0.0 }
 0x353   :  { %v4236_v24 = vmax.f32 %v3432_v60, 0.0  ;;  %v2839_v12 = vadd.f32 %v11712_v10, %v2838_v17  ;;  %v9270_v13 = vpop.f32.mrb[58].mxu1  ;;  %3696 = vmatmul.mubr.bf16.gmra.mrb[180].mxu0 %v11658_v52  ;;  %v9423_v60 = vld [vmem:[%s14132_s8 + $0x14c] ss:$16 sps:$4 sm:$0xff]  }
 0x354   :  { %v4237_v59 = vmax.f32 %v3434_v58, 0.0  ;;  %v2850_v7 = vadd.f32 %v11712_v10, %v9270_v13  ;;  %v2841_v15 = vpop.f32.mrb[59].mxu1  ;;  %3705 = vmatprep.mubr.bf16.mxu0 %v14447_v45  ;;  %v3063_v52 = vmax.f32 %v2847_v26, 0.0  ;;  %6053 = vmatprep.subr.bf16.mxu0 %v9423_v60 }
 0x355   :  { %v12031_v29 = vpack.c.bf16 %v4236_v24, %v4234_v34  ;;  %v2842_v40 = vadd.f32 %v11712_v10, %v2841_v15  ;;  %v3061_v17 = vmax.f32 %v2839_v12, 0.0  ;;  %6054 = vmatpush1.bf16.msra.mxu0 %v9421_v16 }
 0x356   :  { %v3064_v2 = vmax.f32 %v2850_v7, 0.0  ;;  %v3437_v27 = vpop.f32.mrb[76].mxu0  ;;  %v12040_v58 = vpack.c.bf16 %v4237_v59, %v4235_v35 }
 0x357   :  { %14459 = vst [vmem:[#allocation38_spill] sm:$0xff] %v12031_v29  ;;  %v3062_v13 = vmax.f32 %v2842_v40, 0.0  ;;  %v3438_v34 = vadd.f32 %v3437_v27, %v11758_v61  ;;  %v3439_v24 = vpop.f32.mrb[77].mxu0 }
 0x358   :  { %14460 = vst [vmem:[#allocation39_spill] sm:$0xff] %v12040_v58  ;;  %v12043_v15 = vpack.c.bf16 %v3064_v2, %v3063_v52  ;;  %v3440_v43 = vadd.f32 %v3439_v24, %v11762_v41  ;;  %v3441_v1 = vpop.f32.mrb[78].mxu0  ;;  %5272 = vmatprep.mubr.bf16.mxu1 %v12040_v58 }
 0x359   :  { %v12047_v44 = vpack.c.bf16 %v3062_v13, %v3061_v17  ;;  %v3442_v26 = vadd.f32 %v3441_v1, %v11758_v61  ;;  %v9273_v35 = vpop.f32.mrb[60].mxu1  ;;  %v3443_v59 = vpop.f32.mrb[79].mxu0  ;;  %5273 = vmatmul.mubr.bf16.gmra.mrb[120].mxu1 %v12031_v29  ;;  %v4238_v60 = vmax.f32 %v3438_v34, 0.0  ;;  %v12058_v1 = vld [vmem:[%s14129_s5] ss:$0 sm:$0xff] }
 0x35a   :  { %14461 = vst [vmem:[#allocation40_spill] sm:$0xff] %v12043_v15  ;;  %v2863_v12 = vadd.f32 %v11712_v10, %v9273_v35  ;;  %v3444_v7 = vadd.f32 %v3443_v59, %v11762_v41  ;;  %v2854_v40 = vpop.f32.mrb[61].mxu1  ;;  %v4239_v16 = vmax.f32 %v3440_v43, 0.0 }
 0x35b   :  { %v4240_v52 = vmax.f32 %v3442_v26, 0.0  ;;  %v2855_v2 = vadd.f32 %v11712_v10, %v2854_v40  ;;  %v9274_v27 = vpop.f32.mrb[62].mxu1  ;;  %3706 = vmatmul.mubr.bf16.gmra.mrb[184].mxu0 %v11670_v38 }
 0x35c   :  { %v4241_v17 = vmax.f32 %v3444_v7, 0.0  ;;  %v2866_v13 = vadd.f32 %v12058_v1, %v9274_v27  ;;  %v2857_v24 = vpop.f32.mrb[63].mxu1  ;;  %3715 = vmatprep.mubr.bf16.mxu0 %v14447_v45  ;;  %v3067_v10 = vmax.f32 %v2863_v12, 0.0 }
 0x35d   :  { %v12062_v35 = vpack.c.bf16 %v4240_v52, %v4238_v60  ;;  %v2858_v34 = vadd.f32 %v12058_v1, %v2857_v24  ;;  %v3065_v43 = vmax.f32 %v2855_v2, 0.0 }
 0x35e   :  { %v3068_v26 = vmax.f32 %v2866_v13, 0.0  ;;  %v3447_v59 = vpop.f32.mrb[80].mxu0  ;;  %v12065_v38 = vpack.c.bf16 %v4241_v17, %v4239_v16 }
 0x35f   :  { %14462 = vst [vmem:[#allocation41_spill] sm:$0xff] %v12062_v35  ;;  %v3066_v7 = vmax.f32 %v2858_v34, 0.0  ;;  %v3448_v40 = vadd.f32 %v3447_v59, %v11758_v61  ;;  %v3449_v29 = vpop.f32.mrb[81].mxu0 }
 0x360   :  { %14463 = vst [vmem:[#allocation42_spill] sm:$0xff] %v12065_v38  ;;  %v12068_v58 = vpack.c.bf16 %v3068_v26, %v3067_v10  ;;  %v3450_v27 = vadd.f32 %v3449_v29, %v11762_v41  ;;  %v3451_v15 = vpop.f32.mrb[82].mxu0  ;;  %5282 = vmatprep.mubr.bf16.mxu1 %v12065_v38 }
 0x361   :  { %v12072_v60 = vpack.c.bf16 %v3066_v7, %v3065_v43  ;;  %v3452_v12 = vadd.f32 %v3451_v15, %v11758_v61  ;;  %v9277_v52 = vpop.f32.mrb[64].mxu1  ;;  %v3453_v13 = vpop.f32.mrb[83].mxu0  ;;  %5283 = vmatmul.mubr.bf16.gmra.mrb[124].mxu1 %v12062_v35  ;;  %v4242_v24 = vmax.f32 %v3448_v40, 0.0 }
 0x362   :  { %14464 = vst [vmem:[#allocation43_spill] sm:$0xff] %v12068_v58  ;;  %v2879_v2 = vadd.f32 %v12058_v1, %v9277_v52  ;;  %v3454_v16 = vadd.f32 %v3453_v13, %v11762_v41  ;;  %v2870_v17 = vpop.f32.mrb[65].mxu1  ;;  %v4243_v26 = vmax.f32 %v3450_v27, 0.0 }
 0x363   :  { %v4244_v34 = vmax.f32 %v3452_v12, 0.0  ;;  %v2871_v29 = vadd.f32 %v12058_v1, %v2870_v17  ;;  %v9278_v10 = vpop.f32.mrb[66].mxu1  ;;  %3716 = vmatmul.mubr.bf16.gmra.mrb[188].mxu0 %v11668_v4 }
 0x364   :  { %v4245_v59 = vmax.f32 %v3454_v16, 0.0  ;;  %v2882_v15 = vadd.f32 %v12058_v1, %v9278_v10  ;;  %v2873_v43 = vpop.f32.mrb[67].mxu1  ;;  %3725 = vmatprep.mubr.bf16.mxu0 %v14447_v45  ;;  %v3071_v13 = vmax.f32 %v2879_v2, 0.0 }
 0x365   :  { %v12082_v7 = vpack.c.bf16 %v4244_v34, %v4242_v24  ;;  %v2874_v52 = vadd.f32 %v12058_v1, %v2873_v43  ;;  %v3069_v17 = vmax.f32 %v2871_v29, 0.0 }
 0x366   :  { %v3072_v35 = vmax.f32 %v2882_v15, 0.0  ;;  %v3457_v40 = vpop.f32.mrb[84].mxu0  ;;  %v12085_v12 = vpack.c.bf16 %v4245_v59, %v4243_v26 }
 0x367   :  { %14465 = vst [vmem:[#allocation44_spill] sm:$0xff] %v12082_v7  ;;  %v3070_v38 = vmax.f32 %v2874_v52, 0.0  ;;  %v3458_v4 = vadd.f32 %v3457_v40, %v11758_v61  ;;  %v3459_v27 = vpop.f32.mrb[85].mxu0 }
 0x368   :  { %14466 = vst [vmem:[#allocation45_spill] sm:$0xff] %v12085_v12  ;;  %v12088_v16 = vpack.c.bf16 %v3072_v35, %v3071_v13  ;;  %v3460_v10 = vadd.f32 %v3459_v27, %v11762_v41  ;;  %v3461_v58 = vpop.f32.mrb[86].mxu0  ;;  %5292 = vmatprep.mubr.bf16.mxu1 %v12085_v12 }
 0x369   :  { %v12092_v24 = vpack.c.bf16 %v3070_v38, %v3069_v17  ;;  %v3462_v2 = vadd.f32 %v3461_v58, %v11758_v61  ;;  %v9281_v34 = vpop.f32.mrb[68].mxu1  ;;  %v3463_v15 = vpop.f32.mrb[87].mxu0  ;;  %5293 = vmatmul.mubr.bf16.gmra.mrb[128].mxu1 %v12082_v7  ;;  %v4246_v35 = vmax.f32 %v3458_v4, 0.0 }
 0x36a   :  { %14467 = vst [vmem:[#allocation46_spill] sm:$0xff] %v12088_v16  ;;  %v2895_v29 = vadd.f32 %v12058_v1, %v9281_v34  ;;  %v3464_v26 = vadd.f32 %v3463_v15, %v11762_v41  ;;  %v2886_v59 = vpop.f32.mrb[69].mxu1  ;;  %v4247_v38 = vmax.f32 %v3460_v10, 0.0 }
 0x36b   :  { %v4248_v43 = vmax.f32 %v3462_v2, 0.0  ;;  %v2887_v52 = vadd.f32 %v12058_v1, %v2886_v59  ;;  %v9282_v13 = vpop.f32.mrb[70].mxu1  ;;  %3726 = vmatmul.mubr.bf16.gmra.mrb[192].mxu0 %v11680_v19 }
 0x36c   :  { %v4249_v40 = vmax.f32 %v3464_v26, 0.0  ;;  %v2898_v58 = vadd.f32 %v12058_v1, %v9282_v13  ;;  %v2889_v17 = vpop.f32.mrb[71].mxu1  ;;  %3735 = vmatprep.mubr.bf16.mxu0 %v14447_v45  ;;  %v3075_v15 = vmax.f32 %v2895_v29, 0.0 }
 0x36d   :  { %v12102_v27 = vpack.c.bf16 %v4248_v43, %v4246_v35  ;;  %v2890_v34 = vadd.f32 %v12058_v1, %v2889_v17  ;;  %v3073_v59 = vmax.f32 %v2887_v52, 0.0 }
 0x36e   :  { %v3076_v7 = vmax.f32 %v2898_v58, 0.0  ;;  %v3467_v4 = vpop.f32.mrb[88].mxu0  ;;  %v12105_v2 = vpack.c.bf16 %v4249_v40, %v4247_v38 }
 0x36f   :  { %v3074_v12 = vmax.f32 %v2890_v34, 0.0  ;;  %v3468_v19 = vadd.f32 %v3467_v4, %v11758_v61  ;;  %v3469_v10 = vpop.f32.mrb[89].mxu0 }
 0x370   :  { %v12108_v26 = vpack.c.bf16 %v3076_v7, %v3075_v15  ;;  %v3470_v13 = vadd.f32 %v3469_v10, %v11762_v41  ;;  %v3471_v16 = vpop.f32.mrb[90].mxu0  ;;  %5302 = vmatprep.mubr.bf16.mxu1 %v12105_v2 }
 0x371   :  { %v12112_v35 = vpack.c.bf16 %v3074_v12, %v3073_v59  ;;  %v3472_v1 = vadd.f32 %v3471_v16, %v11758_v61  ;;  %v3473_v29 = vpop.f32.mrb[91].mxu0  ;;  %5303 = vmatmul.mubr.bf16.gmra.mrb[132].mxu1 %v12102_v27  ;;  %v4250_v52 = vmax.f32 %v3468_v19, 0.0 }
 0x372   :  { %v3474_v43 = vadd.f32 %v3473_v29, %v11762_v41  ;;  %v4251_v7 = vmax.f32 %v3470_v13, 0.0 }
 0x373   :  { %v4252_v38 = vmax.f32 %v3472_v1, 0.0  ;;  %3736 = vmatmul.mubr.bf16.gmra.mrb[196].mxu0 %v11678_v21 }
 0x374   :  { %v4253_v40 = vmax.f32 %v3474_v43, 0.0  ;;  %3745 = vmatprep.mubr.bf16.mxu0 %v14447_v45 }
 0x375   :  { %v12119_v58 = vpack.c.bf16 %v4252_v38, %v4250_v52 }
 0x376   :  { %v3477_v17 = vpop.f32.mrb[92].mxu0  ;;  %v12121_v12 = vpack.c.bf16 %v4253_v40, %v4251_v7 }
 0x377   :  { %v3478_v16 = vadd.f32 %v3477_v17, %v11758_v61  ;;  %v3479_v34 = vpop.f32.mrb[93].mxu0 }
 0x378   :  { %v3480_v15 = vadd.f32 %v3479_v34, %v11762_v41  ;;  %v3481_v4 = vpop.f32.mrb[94].mxu0  ;;  %5312 = vmatprep.mubr.bf16.mxu1 %v12121_v12 }
 0x379   :  { %v3482_v59 = vadd.f32 %v3481_v4, %v11758_v61  ;;  %v3483_v21 = vpop.f32.mrb[95].mxu0  ;;  %5313 = vmatmul.mubr.bf16.gmra.mrb[136].mxu1 %v12119_v58  ;;  %v4254_v10 = vmax.f32 %v3478_v16, 0.0  ;;  %v9424_v4 = vld [vmem:[%s14132_s8 + $0x168] ss:$16 sps:$4 sm:$0xff]  }
 0x37a   :  { %v3484_v19 = vadd.f32 %v3483_v21, %v11762_v41  ;;  %v4255_v1 = vmax.f32 %v3480_v15, 0.0 }
 0x37b   :  { %v4256_v13 = vmax.f32 %v3482_v59, 0.0  ;;  %3746 = vmatmul.mubr.bf16.gmra.mrb[200].mxu0 %v11690_v50  ;;  %v9426_v59 = vld [vmem:[%s14132_s8 + $0x16c] ss:$16 sps:$4 sm:$0xff]  }
 0x37c   :  { %v4257_v29 = vmax.f32 %v3484_v19, 0.0  ;;  %3755 = vmatprep.mubr.bf16.mxu0 %v14447_v45  ;;  %6055 = vmatprep.subr.bf16.mxu0 %v9426_v59 }
 0x37d   :  { %v12131_v43 = vpack.c.bf16 %v4256_v13, %v4254_v10  ;;  %6056 = vmatpush1.bf16.msra.mxu0 %v9424_v4 }
 0x37e   :  { %v3487_v52 = vpop.f32.mrb[96].mxu0  ;;  %v12133_v38 = vpack.c.bf16 %v4257_v29, %v4255_v1 }
 0x37f   :  { %v3488_v7 = vadd.f32 %v3487_v52, %v11758_v61  ;;  %v3489_v40 = vpop.f32.mrb[97].mxu0 }
 0x380   :  { %v3490_v17 = vadd.f32 %v3489_v40, %v11762_v41  ;;  %v3491_v34 = vpop.f32.mrb[98].mxu0  ;;  %5322 = vmatprep.mubr.bf16.mxu1 %v12133_v38 }
 0x381   :  { %v3492_v16 = vadd.f32 %v3491_v34, %v11758_v61  ;;  %v3493_v50 = vpop.f32.mrb[99].mxu0  ;;  %5323 = vmatmul.mubr.bf16.gmra.mrb[140].mxu1 %v12131_v43  ;;  %v4258_v21 = vmax.f32 %v3488_v7, 0.0 }
 0x382   :  { %v3494_v15 = vadd.f32 %v3493_v50, %v11762_v41  ;;  %v4259_v10 = vmax.f32 %v3490_v17, 0.0 }
 0x383   :  { %v4260_v19 = vmax.f32 %v3492_v16, 0.0  ;;  %3756 = vmatmul.mubr.bf16.gmra.mrb[204].mxu0 %v11688_v62 }
 0x384   :  { %v4261_v13 = vmax.f32 %v3494_v15, 0.0  ;;  %3765 = vmatprep.mubr.bf16.mxu0 %v14447_v45 }
 0x385   :  { %v12149_v1 = vpack.c.bf16 %v4260_v19, %v4258_v21 }
 0x386   :  { %v3497_v29 = vpop.f32.mrb[100].mxu0  ;;  %v12151_v52 = vpack.c.bf16 %v4261_v13, %v4259_v10 }
 0x387   :  { %14468 = vst [vmem:[#allocation47_spill] sm:$0xff] %v12149_v1  ;;  %v3498_v40 = vadd.f32 %v3497_v29, %v11758_v61  ;;  %v3499_v34 = vpop.f32.mrb[101].mxu0 }
 0x388   :  { %v3500_v50 = vadd.f32 %v3499_v34, %v11762_v41  ;;  %v3501_v7 = vpop.f32.mrb[102].mxu0  ;;  %5332 = vmatprep.mubr.bf16.mxu1 %v12151_v52 }
 0x389   :  { %v3502_v62 = vadd.f32 %v3501_v7, %v11758_v61  ;;  %v3503_v17 = vpop.f32.mrb[103].mxu0  ;;  %5333 = vmatmul.mubr.bf16.gmra.mrb[144].mxu1 %v12149_v1  ;;  %v4262_v15 = vmax.f32 %v3498_v40, 0.0 }
 0x38a   :  { %v3504_v16 = vadd.f32 %v3503_v17, %v11762_v41  ;;  %v4263_v59 = vmax.f32 %v3500_v50, 0.0 }
 0x38b   :  { %v4264_v4 = vmax.f32 %v3502_v62, 0.0  ;;  %3766 = vmatmul.mubr.bf16.gmra.mrb[208].mxu0 %v11700_v33 }
 0x38c   :  { %v4265_v21 = vmax.f32 %v3504_v16, 0.0  ;;  %3775 = vmatprep.mubr.bf16.mxu0 %v14447_v45 }
 0x38d   :  { %v12161_v19 = vpack.c.bf16 %v4264_v4, %v4262_v15 }
 0x38e   :  { %v3507_v10 = vpop.f32.mrb[104].mxu0  ;;  %v12163_v13 = vpack.c.bf16 %v4265_v21, %v4263_v59 }
 0x38f   :  { %14469 = vst [vmem:[#allocation48_spill] sm:$0xff] %v12161_v19  ;;  %v3508_v29 = vadd.f32 %v3507_v10, %v11758_v61  ;;  %v3509_v34 = vpop.f32.mrb[105].mxu0 }
 0x390   :  { %v3510_v7 = vadd.f32 %v3509_v34, %v11762_v41  ;;  %v3511_v1 = vpop.f32.mrb[106].mxu0  ;;  %5342 = vmatprep.mubr.bf16.mxu1 %v12163_v13 }
 0x391   :  { %v3512_v40 = vadd.f32 %v3511_v1, %v11758_v61  ;;  %v3513_v33 = vpop.f32.mrb[107].mxu0  ;;  %5343 = vmatmul.mubr.bf16.gmra.mrb[148].mxu1 %v12161_v19  ;;  %v4266_v62 = vmax.f32 %v3508_v29, 0.0 }
 0x392   :  { %v3514_v50 = vadd.f32 %v3513_v33, %v11762_v41  ;;  %v4267_v16 = vmax.f32 %v3510_v7, 0.0 }
 0x393   :  { %v4268_v17 = vmax.f32 %v3512_v40, 0.0  ;;  %3776 = vmatmul.mubr.bf16.gmra.mrb[212].mxu0 %v11698_v8 }
 0x394   :  { %v4269_v15 = vmax.f32 %v3514_v50, 0.0  ;;  %3785 = vmatprep.mubr.bf16.mxu0 %v14447_v45 }
 0x395   :  { %v12173_v4 = vpack.c.bf16 %v4268_v17, %v4266_v62 }
 0x396   :  { %v3517_v59 = vpop.f32.mrb[108].mxu0  ;;  %v12175_v21 = vpack.c.bf16 %v4269_v15, %v4267_v16 }
 0x397   :  { %14470 = vst [vmem:[#allocation49_spill] sm:$0xff] %v12173_v4  ;;  %v3518_v1 = vadd.f32 %v3517_v59, %v11758_v61  ;;  %v3519_v10 = vpop.f32.mrb[109].mxu0 }
 0x398   :  { %v3520_v34 = vadd.f32 %v3519_v10, %v11762_v41  ;;  %v3521_v19 = vpop.f32.mrb[110].mxu0  ;;  %5352 = vmatprep.mubr.bf16.mxu1 %v12175_v21 }
 0x399   :  { %v3522_v29 = vadd.f32 %v3521_v19, %v11758_v61  ;;  %v3523_v8 = vpop.f32.mrb[111].mxu0  ;;  %5353 = vmatmul.mubr.bf16.gmra.mrb[152].mxu1 %v12173_v4  ;;  %v4270_v40 = vmax.f32 %v3518_v1, 0.0 }
 0x39a   :  { %v3524_v7 = vadd.f32 %v3523_v8, %v11762_v41  ;;  %v4271_v50 = vmax.f32 %v3520_v34, 0.0 }
 0x39b   :  { %v4272_v33 = vmax.f32 %v3522_v29, 0.0  ;;  %3786 = vmatmul.mubr.bf16.gmra.mrb[216].mxu0 %v11721_v22 }
 0x39c   :  { %v4273_v62 = vmax.f32 %v3524_v7, 0.0  ;;  %3795 = vmatprep.mubr.bf16.mxu0 %v14447_v45 }
 0x39d   :  { %v12185_v17 = vpack.c.bf16 %v4272_v33, %v4270_v40 }
 0x39e   :  { %v3527_v16 = vpop.f32.mrb[112].mxu0  ;;  %v12187_v15 = vpack.c.bf16 %v4273_v62, %v4271_v50 }
 0x39f   :  { %14471 = vst [vmem:[#allocation50_spill] sm:$0xff] %v12185_v17  ;;  %v3528_v19 = vadd.f32 %v3527_v16, %v11758_v61  ;;  %v3529_v59 = vpop.f32.mrb[113].mxu0 }
 0x3a0   :  { %v3530_v10 = vadd.f32 %v3529_v59, %v11762_v41  ;;  %v3531_v4 = vpop.f32.mrb[114].mxu0  ;;  %5362 = vmatprep.mubr.bf16.mxu1 %v12187_v15 }
 0x3a1   :  { %v3532_v1 = vadd.f32 %v3531_v4, %v11758_v61  ;;  %v3533_v22 = vpop.f32.mrb[115].mxu0  ;;  %5363 = vmatmul.mubr.bf16.gmra.mrb[156].mxu1 %v12185_v17  ;;  %v4274_v29 = vmax.f32 %v3528_v19, 0.0 }
 0x3a2   :  { %v3534_v34 = vadd.f32 %v3533_v22, %v11762_v41  ;;  %v4275_v7 = vmax.f32 %v3530_v10, 0.0 }
 0x3a3   :  { %v4276_v8 = vmax.f32 %v3532_v1, 0.0  ;;  %3796 = vmatmul.mubr.bf16.gmra.mrb[220].mxu0 %v11719_v30 }
 0x3a4   :  { %v4277_v40 = vmax.f32 %v3534_v34, 0.0  ;;  %3805 = vmatprep.mubr.bf16.mxu0 %v14447_v45 }
 0x3a5   :  { %v12197_v33 = vpack.c.bf16 %v4276_v8, %v4274_v29 }
 0x3a6   :  { %v3537_v50 = vpop.f32.mrb[116].mxu0  ;;  %v12199_v62 = vpack.c.bf16 %v4277_v40, %v4275_v7  ;;  %v9427_v7 = vld [vmem:[%s14132_s8 + $0x188] ss:$16 sps:$4 sm:$0xff]  }
 0x3a7   :  { %v3538_v4 = vadd.f32 %v3537_v50, %v11758_v61  ;;  %v3539_v16 = vpop.f32.mrb[117].mxu0 }
 0x3a8   :  { %v3540_v59 = vadd.f32 %v3539_v16, %v11762_v41  ;;  %v3541_v17 = vpop.f32.mrb[118].mxu0  ;;  %5372 = vmatprep.mubr.bf16.mxu1 %v12199_v62 }
 0x3a9   :  { %v3542_v19 = vadd.f32 %v3541_v17, %v11758_v61  ;;  %v3543_v30 = vpop.f32.mrb[119].mxu0  ;;  %5373 = vmatmul.mubr.bf16.gmra.mrb[160].mxu1 %v12197_v33  ;;  %v4278_v1 = vmax.f32 %v3538_v4, 0.0  ;;  %v9429_v17 = vld [vmem:[%s14132_s8 + $0x18c] ss:$16 sps:$4 sm:$0xff]  }
 0x3aa   :  { %v3544_v10 = vadd.f32 %v3543_v30, %v11762_v41  ;;  %v4279_v34 = vmax.f32 %v3540_v59, 0.0  ;;  %6057 = vmatprep.subr.bf16.mxu0 %v9429_v17 }
 0x3ab   :  { %v4280_v22 = vmax.f32 %v3542_v19, 0.0  ;;  %3806 = vmatmul.mubr.bf16.gmra.mrb[224].mxu0 %v11731_v49 }
 0x3ac   :  { %v4281_v29 = vmax.f32 %v3544_v10, 0.0  ;;  %3815 = vmatprep.mubr.bf16.mxu0 %v14447_v45  ;;  %6058 = vmatpush1.bf16.msra.mxu0 %v9427_v7 }
 0x3ad   :  { %v12209_v8 = vpack.c.bf16 %v4280_v22, %v4278_v1 }
 0x3ae   :  { %v3547_v40 = vpop.f32.mrb[120].mxu0  ;;  %v12217_v50 = vpack.c.bf16 %v4281_v29, %v4279_v34 }
 0x3af   :  { %14472 = vst [vmem:[#allocation51_spill] sm:$0xff] %v12209_v8  ;;  %v3548_v4 = vadd.f32 %v3547_v40, %v11758_v61  ;;  %v3549_v49 = vpop.f32.mrb[121].mxu0 }
 0x3b0   :  { %14473 = vst [vmem:[#allocation52_spill] sm:$0xff] %v12217_v50  ;;  %v3550_v16 = vadd.f32 %v3549_v49, %v11762_v41  ;;  %v3551_v59 = vpop.f32.mrb[122].mxu0  ;;  %5382 = vmatprep.mubr.bf16.mxu1 %v12217_v50 }
 0x3b1   :  { %v3552_v19 = vadd.f32 %v3551_v59, %v11758_v61  ;;  %v3553_v30 = vpop.f32.mrb[123].mxu0  ;;  %5383 = vmatmul.mubr.bf16.gmra.mrb[164].mxu1 %v12209_v8  ;;  %v4282_v1 = vmax.f32 %v3548_v4, 0.0 }
 0x3b2   :  { %v3554_v10 = vadd.f32 %v3553_v30, %v11762_v41  ;;  %v4283_v34 = vmax.f32 %v3550_v16, 0.0 }
 0x3b3   :  { %v4284_v22 = vmax.f32 %v3552_v19, 0.0  ;;  %3816 = vmatmul.mubr.bf16.gmra.mrb[228].mxu0 %v11729_v23 }
 0x3b4   :  { %v4285_v29 = vmax.f32 %v3554_v10, 0.0  ;;  %3825 = vmatprep.mubr.bf16.mxu0 %v14447_v45 }
 0x3b5   :  { %v12227_v17 = vpack.c.bf16 %v4284_v22, %v4282_v1 }
 0x3b6   :  { %v3557_v40 = vpop.f32.mrb[124].mxu0  ;;  %v12229_v49 = vpack.c.bf16 %v4285_v29, %v4283_v34 }
 0x3b7   :  { %14474 = vst [vmem:[#allocation53_spill] sm:$0xff] %v12227_v17  ;;  %v3558_v7 = vadd.f32 %v3557_v40, %v11758_v61  ;;  %v3559_v59 = vpop.f32.mrb[125].mxu0 }
 0x3b8   :  { %14475 = vst [vmem:[#allocation54_spill] sm:$0xff] %v12229_v49  ;;  %v3560_v8 = vadd.f32 %v3559_v59, %v11762_v41  ;;  %v3561_v50 = vpop.f32.mrb[126].mxu0  ;;  %5392 = vmatprep.mubr.bf16.mxu1 %v12229_v49 }
 0x3b9   :  { %v3562_v4 = vadd.f32 %v3561_v50, %v11758_v61  ;;  %v3563_v23 = vpop.f32.mrb[127].mxu0  ;;  %5393 = vmatmul.mubr.bf16.gmra.mrb[168].mxu1 %v12227_v17  ;;  %v4286_v19 = vmax.f32 %v3558_v7, 0.0 }
 0x3ba   :  { %v3564_v16 = vadd.f32 %v3563_v23, %v11762_v41  ;;  %v4287_v10 = vmax.f32 %v3560_v8, 0.0 }
 0x3bb   :  { %v4288_v30 = vmax.f32 %v3562_v4, 0.0  ;;  %3826 = vmatmul.mubr.bf16.gmra.mrb[232].mxu0 %v11752_v31 }
 0x3bc   :  { %v4289_v1 = vmax.f32 %v3564_v16, 0.0  ;;  %3835 = vmatprep.mubr.bf16.mxu0 %v14447_v45 }
 0x3bd   :  { %v12239_v22 = vpack.c.bf16 %v4288_v30, %v4286_v19 }
 0x3be   :  { %v3567_v34 = vpop.f32.mrb[128].mxu0  ;;  %v12241_v29 = vpack.c.bf16 %v4289_v1, %v4287_v10 }
 0x3bf   :  { %14476 = vst [vmem:[#allocation55_spill] sm:$0xff] %v12239_v22  ;;  %v3568_v50 = vadd.f32 %v3567_v34, %v11758_v61  ;;  %v3569_v40 = vpop.f32.mrb[129].mxu0 }
 0x3c0   :  { %14477 = vst [vmem:[#allocation56_spill] sm:$0xff] %v12241_v29  ;;  %v3570_v59 = vadd.f32 %v3569_v40, %v11762_v41  ;;  %v3571_v17 = vpop.f32.mrb[130].mxu0  ;;  %5402 = vmatprep.mubr.bf16.mxu1 %v12241_v29 }
 0x3c1   :  { %v3572_v7 = vadd.f32 %v3571_v17, %v11758_v61  ;;  %v3573_v31 = vpop.f32.mrb[131].mxu0  ;;  %5403 = vmatmul.mubr.bf16.gmra.mrb[172].mxu1 %v12239_v22  ;;  %v4290_v4 = vmax.f32 %v3568_v50, 0.0 }
 0x3c2   :  { %v3574_v8 = vadd.f32 %v3573_v31, %v11762_v41  ;;  %v4291_v16 = vmax.f32 %v3570_v59, 0.0 }
 0x3c3   :  { %v4292_v23 = vmax.f32 %v3572_v7, 0.0  ;;  %3836 = vmatmul.mubr.bf16.gmra.mrb[236].mxu0 %v11750_v5  ;;  %v4778_v5 = vld [vmem:[%s14133_s9] sm:$0xf] }
 0x3c4   :  { %v4293_v19 = vmax.f32 %v3574_v8, 0.0  ;;  %3845 = vmatprep.mubr.bf16.mxu0 %v14447_v45 }
 0x3c5   :  { %v12251_v30 = vpack.c.bf16 %v4292_v23, %v4290_v4  ;;  %v12266_v4 = vrot.slane %v4778_v5, %v11742_v42 }
 0x3c6   :  { %v3577_v10 = vpop.f32.mrb[132].mxu0  ;;  %v12253_v1 = vpack.c.bf16 %v4293_v19, %v4291_v16 }
 0x3c7   :  { %14478 = vst [vmem:[#allocation57_spill] sm:$0xff] %v12251_v30  ;;  %v3578_v17 = vadd.f32 %v3577_v10, %v11758_v61  ;;  %v3579_v34 = vpop.f32.mrb[133].mxu0  ;;  %v12269_v10 = vrot.slane %v4778_v5, %v11748_v39 }
 0x3c8   :  { %14479 = vst [vmem:[#allocation58_spill] sm:$0xff] %v12253_v1  ;;  %v3580_v40 = vadd.f32 %v3579_v34, %v11762_v41  ;;  %v3581_v22 = vpop.f32.mrb[134].mxu0  ;;  %5412 = vmatprep.mubr.bf16.mxu1 %v12253_v1 }
 0x3c9   :  { %v3582_v50 = vadd.f32 %v3581_v22, %v11758_v61  ;;  %v3583_v59 = vpop.f32.mrb[135].mxu0  ;;  %5413 = vmatmul.mubr.bf16.gmra.mrb[176].mxu1 %v12251_v30  ;;  %v4294_v31 = vmax.f32 %v3578_v17, 0.0 }
 0x3ca   :  { %v3584_v7 = vadd.f32 %v3583_v59, %v11762_v41  ;;  %v4295_v23 = vmax.f32 %v3580_v40, 0.0 }
 0x3cb   :  { %v4296_v8 = vmax.f32 %v3582_v50, 0.0  ;;  %3846 = vmatmul.mubr.bf16.gmra.mrb[240].mxu0 %v11771_v57 }
 0x3cc   :  { %v4297_v16 = vmax.f32 %v3584_v7, 0.0  ;;  %v5154_v19 = vpop.f32.mrb[72].mxu1  ;;  %3855 = vmatprep.mubr.bf16.mxu0 %v14447_v45 }
 0x3cd   :  { %v12272_v22 = vpack.c.bf16 %v4296_v8, %v4294_v31  ;;  %v5156_v34 = vpop.f32.mrb[73].mxu1  ;;  %v5155_v57 = vadd.f32 %v5154_v19, %v12266_v4 }
 0x3ce   :  { %v3587_v30 = vpop.f32.mrb[136].mxu0  ;;  %v5158_v59 = vpop.f32.mrb[74].mxu1  ;;  %v12274_v17 = vpack.c.bf16 %v4297_v16, %v4295_v23  ;;  %v5157_v5 = vadd.f32 %v5156_v34, %v12269_v10 }
 0x3cf   :  { %14480 = vst [vmem:[#allocation59_spill] sm:$0xff] %v12272_v22  ;;  %v3588_v50 = vadd.f32 %v3587_v30, %v11758_v61  ;;  %v5159_v40 = vadd.f32 %v5158_v59, %v12266_v4  ;;  %v3589_v7 = vpop.f32.mrb[137].mxu0  ;;  %v5160_v42 = vpop.f32.mrb[75].mxu1 }
 0x3d0   :  { %14481 = vst [vmem:[#allocation60_spill] sm:$0xff] %v12274_v17  ;;  %v3590_v39 = vadd.f32 %v3589_v7, %v11762_v41  ;;  %v5161_v31 = vadd.f32 %v5160_v42, %v12269_v10  ;;  %v3591_v8 = vpop.f32.mrb[138].mxu0  ;;  %5422 = vmatprep.mubr.bf16.mxu1 %v12274_v17 }
 0x3d1   :  { %v6946_v1 = vmax.f32 %v5155_v57, %v5159_v40  ;;  %v3592_v23 = vadd.f32 %v3591_v8, %v11758_v61  ;;  %v3593_v16 = vpop.f32.mrb[139].mxu0  ;;  %5423 = vmatmul.mubr.bf16.gmra.mrb[180].mxu1 %v12272_v22  ;;  %v4298_v59 = vmax.f32 %v3588_v50, 0.0 }
 0x3d2   :  { %v7039_v30 = vmax.f32 %v5157_v5, %v5161_v31  ;;  %v3594_v19 = vadd.f32 %v3593_v16, %v11762_v41  ;;  %v4299_v34 = vmax.f32 %v3590_v39, 0.0 }
 0x3d3   :  { %v4300_v29 = vmax.f32 %v3592_v23, 0.0  ;;  %3856 = vmatmul.mubr.bf16.gmra.mrb[244].mxu0 %v11768_v3 }
 0x3d4   :  { %v4301_v7 = vmax.f32 %v3594_v19, 0.0  ;;  %v5164_v49 = vpop.f32.mrb[76].mxu1  ;;  %3865 = vmatprep.mubr.bf16.mxu0 %v14447_v45 }
 0x3d5   :  { %v12288_v42 = vpack.c.bf16 %v4300_v29, %v4298_v59  ;;  %v5165_v57 = vadd.f32 %v5164_v49, %v12266_v4  ;;  %v5166_v40 = vpop.f32.mrb[77].mxu1 }
 0x3d6   :  { %v5167_v8 = vadd.f32 %v5166_v40, %v12269_v10  ;;  %v3597_v22 = vpop.f32.mrb[140].mxu0  ;;  %v5168_v5 = vpop.f32.mrb[78].mxu1  ;;  %v12292_v31 = vpack.c.bf16 %v4301_v7, %v4299_v34  ;;  %v9432_v7 = vld [vmem:[%s14132_s8 + $0x1ac] ss:$16 sps:$4 sm:$0xff]  }
 0x3d7   :  { %14482 = vst [vmem:[#allocation61_spill] sm:$0xff] %v12288_v42  ;;  %v6947_v50 = vmax.f32 %v6946_v1, %v5165_v57  ;;  %v3598_v23 = vadd.f32 %v3597_v22, %v11758_v61  ;;  %v5169_v39 = vadd.f32 %v5168_v5, %v12266_v4  ;;  %v3599_v3 = vpop.f32.mrb[141].mxu0  ;;  %v5170_v16 = vpop.f32.mrb[79].mxu1  ;;  %6059 = vmatprep.subr.bf16.mxu0 %v9432_v7 }
 0x3d8   :  { %v7040_v19 = vmax.f32 %v7039_v30, %v5167_v8  ;;  %v3600_v29 = vadd.f32 %v3599_v3, %v11762_v41  ;;  %v5171_v59 = vadd.f32 %v5170_v16, %v12269_v10  ;;  %v3601_v49 = vpop.f32.mrb[142].mxu0  ;;  %5432 = vmatprep.mubr.bf16.mxu1 %v12292_v31  ;;  %v9430_v30 = vld [vmem:[%s14132_s8 + $0x1a8] ss:$16 sps:$4 sm:$0xff]  }
 0x3d9   :  { %v6948_v40 = vmax.f32 %v6947_v50, %v5169_v39  ;;  %v3602_v17 = vadd.f32 %v3601_v49, %v11758_v61  ;;  %v3603_v34 = vpop.f32.mrb[143].mxu0  ;;  %5433 = vmatmul.mubr.bf16.gmra.mrb[184].mxu1 %v12288_v42  ;;  %v4302_v57 = vmax.f32 %v3598_v23, 0.0  ;;  %6060 = vmatpush1.bf16.msra.mxu0 %v9430_v30 }
 0x3da   :  { %v7041_v1 = vmax.f32 %v7040_v19, %v5171_v59  ;;  %v3604_v22 = vadd.f32 %v3603_v34, %v11762_v41  ;;  %v4303_v5 = vmax.f32 %v3600_v29, 0.0 }
 0x3db   :  { %v4304_v8 = vmax.f32 %v3602_v17, 0.0  ;;  %3866 = vmatmul.mubr.bf16.gmra.mrb[248].mxu0 %v11791_v9 }
 0x3dc   :  { %v4305_v50 = vmax.f32 %v3604_v22, 0.0  ;;  %v5174_v39 = vpop.f32.mrb[80].mxu1  ;;  %3875 = vmatprep.mubr.bf16.mxu0 %v14447_v45 }
 0x3dd   :  { %v12310_v3 = vpack.c.bf16 %v4304_v8, %v4302_v57  ;;  %v5175_v16 = vadd.f32 %v5174_v39, %v12266_v4  ;;  %v5176_v19 = vpop.f32.mrb[81].mxu1 }
 0x3de   :  { %v5177_v59 = vadd.f32 %v5176_v19, %v12269_v10  ;;  %v3607_v49 = vpop.f32.mrb[144].mxu0  ;;  %v5178_v34 = vpop.f32.mrb[82].mxu1  ;;  %v12314_v23 = vpack.c.bf16 %v4305_v50, %v4303_v5 }
 0x3df   :  { %14483 = vst [vmem:[#allocation62_spill] sm:$0xff] %v12310_v3  ;;  %v6949_v17 = vmax.f32 %v6948_v40, %v5175_v16  ;;  %v3608_v9 = vadd.f32 %v3607_v49, %v11758_v61  ;;  %v5179_v29 = vadd.f32 %v5178_v34, %v12266_v4  ;;  %v3609_v22 = vpop.f32.mrb[145].mxu0  ;;  %v5180_v42 = vpop.f32.mrb[83].mxu1 }
 0x3e0   :  { %v7042_v7 = vmax.f32 %v7041_v1, %v5177_v59  ;;  %v3610_v57 = vadd.f32 %v3609_v22, %v11762_v41  ;;  %v5181_v8 = vadd.f32 %v5180_v42, %v12269_v10  ;;  %v3611_v39 = vpop.f32.mrb[146].mxu0  ;;  %5442 = vmatprep.mubr.bf16.mxu1 %v12314_v23 }
 0x3e1   :  { %v6950_v30 = vmax.f32 %v6949_v17, %v5179_v29  ;;  %v3612_v19 = vadd.f32 %v3611_v39, %v11758_v61  ;;  %v3613_v5 = vpop.f32.mrb[147].mxu0  ;;  %5443 = vmatmul.mubr.bf16.gmra.mrb[188].mxu1 %v12310_v3  ;;  %v4306_v16 = vmax.f32 %v3608_v9, 0.0 }
 0x3e2   :  { %v7043_v40 = vmax.f32 %v7042_v7, %v5181_v8  ;;  %v3614_v50 = vadd.f32 %v3613_v5, %v11762_v41  ;;  %v4307_v1 = vmax.f32 %v3610_v57, 0.0 }
 0x3e3   :  { %v4308_v49 = vmax.f32 %v3612_v19, 0.0  ;;  %3876 = vmatmul.mubr.bf16.gmra.mrb[252].mxu0 %v11787_v18 }
 0x3e4   :  { %v4309_v59 = vmax.f32 %v3614_v50, 0.0  ;;  %v5184_v34 = vpop.f32.mrb[84].mxu1  ;;  %3885 = vmatprep.mubr.bf16.mxu0 %v14447_v45 }
 0x3e5   :  { %v12326_v42 = vpack.c.bf16 %v4308_v49, %v4306_v16  ;;  %v5185_v17 = vadd.f32 %v5184_v34, %v12266_v4  ;;  %v5186_v29 = vpop.f32.mrb[85].mxu1 }
 0x3e6   :  { %v5187_v22 = vadd.f32 %v5186_v29, %v12269_v10  ;;  %v3617_v39 = vpop.f32.mrb[148].mxu0  ;;  %v5188_v7 = vpop.f32.mrb[86].mxu1  ;;  %v12330_v8 = vpack.c.bf16 %v4309_v59, %v4307_v1 }
 0x3e7   :  { %14484 = vst [vmem:[#allocation63_spill] sm:$0xff] %v12326_v42  ;;  %v6951_v9 = vmax.f32 %v6950_v30, %v5185_v17  ;;  %v3618_v19 = vadd.f32 %v3617_v39, %v11758_v61  ;;  %v5189_v18 = vadd.f32 %v5188_v7, %v12266_v4  ;;  %v3619_v57 = vpop.f32.mrb[149].mxu0  ;;  %v5190_v5 = vpop.f32.mrb[87].mxu1 }
 0x3e8   :  { %v7044_v50 = vmax.f32 %v7043_v40, %v5187_v22  ;;  %v3620_v16 = vadd.f32 %v3619_v57, %v11762_v41  ;;  %v5191_v49 = vadd.f32 %v5190_v5, %v12269_v10  ;;  %v3621_v34 = vpop.f32.mrb[150].mxu0  ;;  %5452 = vmatprep.mubr.bf16.mxu1 %v12330_v8 }
 0x3e9   :  { %v6952_v29 = vmax.f32 %v6951_v9, %v5189_v18  ;;  %v3622_v3 = vadd.f32 %v3621_v34, %v11758_v61  ;;  %v3623_v1 = vpop.f32.mrb[151].mxu0  ;;  %5453 = vmatmul.mubr.bf16.gmra.mrb[192].mxu1 %v12326_v42  ;;  %v4310_v17 = vmax.f32 %v3618_v19, 0.0 }
 0x3ea   :  { %v7045_v30 = vmax.f32 %v7044_v50, %v5191_v49  ;;  %v3624_v59 = vadd.f32 %v3623_v1, %v11762_v41  ;;  %v4311_v40 = vmax.f32 %v3620_v16, 0.0 }
 0x3eb   :  { %v4312_v39 = vmax.f32 %v3622_v3, 0.0  ;;  %3886 = vmatmul.mubr.bf16.gmra.mrb[0].mxu0 %v11815_v20 }
 0x3ec   :  { %v4313_v22 = vmax.f32 %v3624_v59, 0.0  ;;  %v5194_v7 = vpop.f32.mrb[88].mxu1  ;;  %3895 = vmatprep.mubr.bf16.mxu0 %v14447_v45 }
 0x3ed   :  { %v12342_v57 = vpack.c.bf16 %v4312_v39, %v4310_v17  ;;  %v5195_v9 = vadd.f32 %v5194_v7, %v12266_v4  ;;  %v5196_v18 = vpop.f32.mrb[89].mxu1 }
 0x3ee   :  { %v5197_v5 = vadd.f32 %v5196_v18, %v12269_v10  ;;  %v3627_v34 = vpop.f32.mrb[152].mxu0  ;;  %v5198_v50 = vpop.f32.mrb[90].mxu1  ;;  %v12346_v49 = vpack.c.bf16 %v4313_v22, %v4311_v40 }
 0x3ef   :  { %14485 = vst [vmem:[#allocation64_spill] sm:$0xff] %v12342_v57  ;;  %v6953_v19 = vmax.f32 %v6952_v29, %v5195_v9  ;;  %v3628_v3 = vadd.f32 %v3627_v34, %v11758_v61  ;;  %v5199_v20 = vadd.f32 %v5198_v50, %v12266_v4  ;;  %v3629_v16 = vpop.f32.mrb[153].mxu0  ;;  %v5200_v1 = vpop.f32.mrb[91].mxu1 }
 0x3f0   :  { %v7046_v59 = vmax.f32 %v7045_v30, %v5197_v5  ;;  %v3630_v17 = vadd.f32 %v3629_v16, %v11762_v41  ;;  %v5201_v39 = vadd.f32 %v5200_v1, %v12269_v10  ;;  %v3631_v7 = vpop.f32.mrb[154].mxu0  ;;  %5462 = vmatprep.mubr.bf16.mxu1 %v12346_v49 }
 0x3f1   :  { %v6954_v18 = vmax.f32 %v6953_v19, %v5199_v20  ;;  %v3632_v42 = vadd.f32 %v3631_v7, %v11758_v61  ;;  %v3633_v40 = vpop.f32.mrb[155].mxu0  ;;  %5463 = vmatmul.mubr.bf16.gmra.mrb[196].mxu1 %v12342_v57  ;;  %v4314_v9 = vmax.f32 %v3628_v3, 0.0 }
 0x3f2   :  { %v7047_v29 = vmax.f32 %v7046_v59, %v5201_v39  ;;  %v3634_v22 = vadd.f32 %v3633_v40, %v11762_v41  ;;  %v4315_v30 = vmax.f32 %v3630_v17, 0.0 }
 0x3f3   :  { %v4316_v34 = vmax.f32 %v3632_v42, 0.0  ;;  %3896 = vmatmul.mubr.bf16.gmra.mrb[4].mxu0 %v11811_v14 }
 0x3f4   :  { %v4317_v5 = vmax.f32 %v3634_v22, 0.0  ;;  %v5204_v50 = vpop.f32.mrb[92].mxu1  ;;  %3905 = vmatprep.mubr.bf16.mxu0 %v14447_v45 }
 0x3f5   :  { %v12358_v16 = vpack.c.bf16 %v4316_v34, %v4314_v9  ;;  %v5205_v19 = vadd.f32 %v5204_v50, %v12266_v4  ;;  %v5206_v20 = vpop.f32.mrb[93].mxu1 }
 0x3f6   :  { %v5207_v1 = vadd.f32 %v5206_v20, %v12269_v10  ;;  %v3637_v7 = vpop.f32.mrb[156].mxu0  ;;  %v5208_v59 = vpop.f32.mrb[94].mxu1  ;;  %v12362_v39 = vpack.c.bf16 %v4317_v5, %v4315_v30 }
 0x3f7   :  { %14486 = vst [vmem:[#allocation65_spill] sm:$0xff] %v12358_v16  ;;  %v6955_v3 = vmax.f32 %v6954_v18, %v5205_v19  ;;  %v3638_v42 = vadd.f32 %v3637_v7, %v11758_v61  ;;  %v5209_v14 = vadd.f32 %v5208_v59, %v12266_v4  ;;  %v3639_v17 = vpop.f32.mrb[157].mxu0  ;;  %v5210_v40 = vpop.f32.mrb[95].mxu1 }
 0x3f8   :  { %v7048_v22 = vmax.f32 %v7047_v29, %v5207_v1  ;;  %v3640_v9 = vadd.f32 %v3639_v17, %v11762_v41  ;;  %v5211_v34 = vadd.f32 %v5210_v40, %v12269_v10  ;;  %v3641_v50 = vpop.f32.mrb[158].mxu0  ;;  %5472 = vmatprep.mubr.bf16.mxu1 %v12362_v39 }
 0x3f9   :  { %v6956_v20 = vmax.f32 %v6955_v3, %v5209_v14  ;;  %v3642_v57 = vadd.f32 %v3641_v50, %v11758_v61  ;;  %v3643_v30 = vpop.f32.mrb[159].mxu0  ;;  %5473 = vmatmul.mubr.bf16.gmra.mrb[200].mxu1 %v12358_v16  ;;  %v4318_v19 = vmax.f32 %v3638_v42, 0.0 }
 0x3fa   :  { %v7049_v18 = vmax.f32 %v7048_v22, %v5211_v34  ;;  %v3644_v5 = vadd.f32 %v3643_v30, %v11762_v41  ;;  %v4319_v29 = vmax.f32 %v3640_v9, 0.0 }
 0x3fb   :  { %v4320_v7 = vmax.f32 %v3642_v57, 0.0  ;;  %3906 = vmatmul.mubr.bf16.gmra.mrb[8].mxu0 %v11835_v28 }
 0x3fc   :  { %v4321_v1 = vmax.f32 %v3644_v5, 0.0  ;;  %v5214_v59 = vpop.f32.mrb[96].mxu1  ;;  %3915 = vmatprep.mubr.bf16.mxu0 %v14447_v45 }
 0x3fd   :  { %v12374_v17 = vpack.c.bf16 %v4320_v7, %v4318_v19  ;;  %v5215_v3 = vadd.f32 %v5214_v59, %v12266_v4  ;;  %v5216_v14 = vpop.f32.mrb[97].mxu1 }
 0x3fe   :  { %v5217_v40 = vadd.f32 %v5216_v14, %v12269_v10  ;;  %v3647_v50 = vpop.f32.mrb[160].mxu0  ;;  %v5218_v22 = vpop.f32.mrb[98].mxu1  ;;  %v12378_v34 = vpack.c.bf16 %v4321_v1, %v4319_v29 }
 0x3ff   :  { %14487 = vst [vmem:[#allocation66_spill] sm:$0xff] %v12374_v17  ;;  %v6957_v42 = vmax.f32 %v6956_v20, %v5215_v3  ;;  %v3648_v57 = vadd.f32 %v3647_v50, %v11758_v61  ;;  %v5219_v28 = vadd.f32 %v5218_v22, %v12266_v4  ;;  %v3649_v9 = vpop.f32.mrb[161].mxu0  ;;  %v5220_v30 = vpop.f32.mrb[99].mxu1 }
 0x400   :  { %14488 = vst [vmem:[#allocation67_spill] sm:$0xff] %v12378_v34  ;;  %v7050_v5 = vmax.f32 %v7049_v18, %v5217_v40  ;;  %v3650_v19 = vadd.f32 %v3649_v9, %v11762_v41  ;;  %v5221_v7 = vadd.f32 %v5220_v30, %v12269_v10  ;;  %v3651_v59 = vpop.f32.mrb[162].mxu0  ;;  %5482 = vmatprep.mubr.bf16.mxu1 %v12378_v34  ;;  %v9433_v30 = vld [vmem:[%s14132_s8 + $0x1c8] ss:$16 sps:$4 sm:$0xff]  }
 0x401   :  { %v6958_v14 = vmax.f32 %v6957_v42, %v5219_v28  ;;  %v3652_v16 = vadd.f32 %v3651_v59, %v11758_v61  ;;  %v3653_v29 = vpop.f32.mrb[163].mxu0  ;;  %5483 = vmatmul.mubr.bf16.gmra.mrb[204].mxu1 %v12374_v17  ;;  %v4322_v3 = vmax.f32 %v3648_v57, 0.0 }
 0x402   :  { %v7051_v20 = vmax.f32 %v7050_v5, %v5221_v7  ;;  %v3654_v1 = vadd.f32 %v3653_v29, %v11762_v41  ;;  %v4323_v18 = vmax.f32 %v3650_v19, 0.0 }
 0x403   :  { %v4324_v50 = vmax.f32 %v3652_v16, 0.0  ;;  %3916 = vmatmul.mubr.bf16.gmra.mrb[12].mxu0 %v11831_v6  ;;  %v9435_v16 = vld [vmem:[%s14132_s8 + $0x1cc] ss:$16 sps:$4 sm:$0xff]  }
 0x404   :  { %v4325_v40 = vmax.f32 %v3654_v1, 0.0  ;;  %v5224_v22 = vpop.f32.mrb[100].mxu1  ;;  %3925 = vmatprep.mubr.bf16.mxu0 %v14447_v45  ;;  %6061 = vmatprep.subr.bf16.mxu0 %v9435_v16 }
 0x405   :  { %v12390_v9 = vpack.c.bf16 %v4324_v50, %v4322_v3  ;;  %v5225_v42 = vadd.f32 %v5224_v22, %v12266_v4  ;;  %v5226_v28 = vpop.f32.mrb[101].mxu1  ;;  %6062 = vmatpush1.bf16.msra.mxu0 %v9433_v30 }
 0x406   :  { %v5227_v6 = vadd.f32 %v5226_v28, %v12269_v10  ;;  %v3657_v57 = vpop.f32.mrb[164].mxu0  ;;  %v5228_v5 = vpop.f32.mrb[102].mxu1  ;;  %v12400_v19 = vpack.c.bf16 %v4325_v40, %v4323_v18 }
 0x407   :  { %v6959_v7 = vmax.f32 %v6958_v14, %v5225_v42  ;;  %v3658_v59 = vadd.f32 %v3657_v57, %v11758_v61  ;;  %v5229_v29 = vadd.f32 %v5228_v5, %v12266_v4  ;;  %v3659_v1 = vpop.f32.mrb[165].mxu0  ;;  %v5230_v3 = vpop.f32.mrb[103].mxu1 }
 0x408   :  { %v7052_v50 = vmax.f32 %v7051_v20, %v5227_v6  ;;  %v3660_v22 = vadd.f32 %v3659_v1, %v11762_v41  ;;  %v5231_v17 = vadd.f32 %v5230_v3, %v12269_v10  ;;  %v3661_v34 = vpop.f32.mrb[166].mxu0  ;;  %5492 = vmatprep.mubr.bf16.mxu1 %v12400_v19 }
 0x409   :  { %v6960_v28 = vmax.f32 %v6959_v7, %v5229_v29  ;;  %v3662_v18 = vadd.f32 %v3661_v34, %v11758_v61  ;;  %v3663_v14 = vpop.f32.mrb[167].mxu0  ;;  %5493 = vmatmul.mubr.bf16.gmra.mrb[208].mxu1 %v12390_v9  ;;  %v4326_v57 = vmax.f32 %v3658_v59, 0.0 }
 0x40a   :  { %v7053_v40 = vmax.f32 %v7052_v50, %v5231_v17  ;;  %v3664_v42 = vadd.f32 %v3663_v14, %v11762_v41  ;;  %v4327_v20 = vmax.f32 %v3660_v22, 0.0 }
 0x40b   :  { %v4328_v16 = vmax.f32 %v3662_v18, 0.0  ;;  %3926 = vmatmul.mubr.bf16.gmra.mrb[16].mxu0 %v11855_v11 }
 0x40c   :  { %v4329_v6 = vmax.f32 %v3664_v42, 0.0  ;;  %v5234_v5 = vpop.f32.mrb[104].mxu1  ;;  %3935 = vmatprep.mubr.bf16.mxu0 %v14447_v45 }
 0x40d   :  { %v12412_v1 = vpack.c.bf16 %v4328_v16, %v4326_v57  ;;  %v5235_v30 = vadd.f32 %v5234_v5, %v12266_v4  ;;  %v5236_v34 = vpop.f32.mrb[105].mxu1 }
 0x40e   :  { %v5237_v7 = vadd.f32 %v5236_v34, %v12269_v10  ;;  %v3667_v29 = vpop.f32.mrb[168].mxu0  ;;  %v5238_v17 = vpop.f32.mrb[106].mxu1  ;;  %v12416_v3 = vpack.c.bf16 %v4329_v6, %v4327_v20 }
 0x40f   :  { %14489 = vst [vmem:[#allocation68_spill] sm:$0xff] %v12412_v1  ;;  %v6961_v59 = vmax.f32 %v6960_v28, %v5235_v30  ;;  %v3668_v50 = vadd.f32 %v3667_v29, %v11758_v61  ;;  %v5239_v11 = vadd.f32 %v5238_v17, %v12266_v4  ;;  %v3669_v22 = vpop.f32.mrb[169].mxu0  ;;  %v5240_v18 = vpop.f32.mrb[107].mxu1 }
 0x410   :  { %v7054_v14 = vmax.f32 %v7053_v40, %v5237_v7  ;;  %v3670_v42 = vadd.f32 %v3669_v22, %v11762_v41  ;;  %v5241_v57 = vadd.f32 %v5240_v18, %v12269_v10  ;;  %v3671_v16 = vpop.f32.mrb[170].mxu0  ;;  %5502 = vmatprep.mubr.bf16.mxu1 %v12416_v3 }
 0x411   :  { %v6962_v5 = vmax.f32 %v6961_v59, %v5239_v11  ;;  %v3672_v34 = vadd.f32 %v3671_v16, %v11758_v61  ;;  %v3673_v20 = vpop.f32.mrb[171].mxu0  ;;  %5503 = vmatmul.mubr.bf16.gmra.mrb[212].mxu1 %v12412_v1  ;;  %v4330_v30 = vmax.f32 %v3668_v50, 0.0 }
 0x412   :  { %v7055_v28 = vmax.f32 %v7054_v14, %v5241_v57  ;;  %v3674_v6 = vadd.f32 %v3673_v20, %v11762_v41  ;;  %v4331_v40 = vmax.f32 %v3670_v42, 0.0 }
 0x413   :  { %v4332_v29 = vmax.f32 %v3672_v34, 0.0  ;;  %3936 = vmatmul.mubr.bf16.gmra.mrb[20].mxu0 %v11851_v46 }
 0x414   :  { %v4333_v7 = vmax.f32 %v3674_v6, 0.0  ;;  %v5244_v17 = vpop.f32.mrb[108].mxu1  ;;  %3945 = vmatprep.mubr.bf16.mxu0 %v14447_v45 }
 0x415   :  { %v12428_v22 = vpack.c.bf16 %v4332_v29, %v4330_v30  ;;  %v5245_v59 = vadd.f32 %v5244_v17, %v12266_v4  ;;  %v5246_v11 = vpop.f32.mrb[109].mxu1 }
 0x416   :  { %v5247_v18 = vadd.f32 %v5246_v11, %v12269_v10  ;;  %v3677_v16 = vpop.f32.mrb[172].mxu0  ;;  %v5248_v14 = vpop.f32.mrb[110].mxu1  ;;  %v12432_v57 = vpack.c.bf16 %v4333_v7, %v4331_v40 }
 0x417   :  { %14490 = vst [vmem:[#allocation69_spill] sm:$0xff] %v12428_v22  ;;  %v6963_v50 = vmax.f32 %v6962_v5, %v5245_v59  ;;  %v3678_v34 = vadd.f32 %v3677_v16, %v11758_v61  ;;  %v5249_v46 = vadd.f32 %v5248_v14, %v12266_v4  ;;  %v3679_v42 = vpop.f32.mrb[173].mxu0  ;;  %v5250_v20 = vpop.f32.mrb[111].mxu1 }
 0x418   :  { %v7056_v6 = vmax.f32 %v7055_v28, %v5247_v18  ;;  %v3680_v30 = vadd.f32 %v3679_v42, %v11762_v41  ;;  %v5251_v29 = vadd.f32 %v5250_v20, %v12269_v10  ;;  %v3681_v17 = vpop.f32.mrb[174].mxu0  ;;  %5512 = vmatprep.mubr.bf16.mxu1 %v12432_v57 }
 0x419   :  { %v6964_v11 = vmax.f32 %v6963_v50, %v5249_v46  ;;  %v3682_v1 = vadd.f32 %v3681_v17, %v11758_v61  ;;  %v3683_v40 = vpop.f32.mrb[175].mxu0  ;;  %5513 = vmatmul.mubr.bf16.gmra.mrb[216].mxu1 %v12428_v22  ;;  %v4334_v59 = vmax.f32 %v3678_v34, 0.0 }
 0x41a   :  { %v7057_v5 = vmax.f32 %v7056_v6, %v5251_v29  ;;  %v3684_v7 = vadd.f32 %v3683_v40, %v11762_v41  ;;  %v4335_v28 = vmax.f32 %v3680_v30, 0.0 }
 0x41b   :  { %v4336_v16 = vmax.f32 %v3682_v1, 0.0  ;;  %3946 = vmatmul.mubr.bf16.gmra.mrb[24].mxu0 %v11875_v47 }
 0x41c   :  { %v4337_v18 = vmax.f32 %v3684_v7, 0.0  ;;  %v5254_v14 = vpop.f32.mrb[112].mxu1  ;;  %3955 = vmatprep.mubr.bf16.mxu0 %v14447_v45 }
 0x41d   :  { %v12444_v42 = vpack.c.bf16 %v4336_v16, %v4334_v59  ;;  %v5255_v50 = vadd.f32 %v5254_v14, %v12266_v4  ;;  %v5256_v46 = vpop.f32.mrb[113].mxu1 }
 0x41e   :  { %v5257_v20 = vadd.f32 %v5256_v46, %v12269_v10  ;;  %v3687_v17 = vpop.f32.mrb[176].mxu0  ;;  %v5258_v6 = vpop.f32.mrb[114].mxu1  ;;  %v12448_v29 = vpack.c.bf16 %v4337_v18, %v4335_v28 }
 0x41f   :  { %14491 = vst [vmem:[#allocation70_spill] sm:$0xff] %v12444_v42  ;;  %v6965_v34 = vmax.f32 %v6964_v11, %v5255_v50  ;;  %v3688_v1 = vadd.f32 %v3687_v17, %v11758_v61  ;;  %v5259_v47 = vadd.f32 %v5258_v6, %v12266_v4  ;;  %v3689_v30 = vpop.f32.mrb[177].mxu0  ;;  %v5260_v40 = vpop.f32.mrb[115].mxu1 }
 0x420   :  { %v7058_v7 = vmax.f32 %v7057_v5, %v5257_v20  ;;  %v3690_v59 = vadd.f32 %v3689_v30, %v11762_v41  ;;  %v5261_v16 = vadd.f32 %v5260_v40, %v12269_v10  ;;  %v3691_v14 = vpop.f32.mrb[178].mxu0  ;;  %5522 = vmatprep.mubr.bf16.mxu1 %v12448_v29 }
 0x421   :  { %v6966_v46 = vmax.f32 %v6965_v34, %v5259_v47  ;;  %v3692_v22 = vadd.f32 %v3691_v14, %v11758_v61  ;;  %v3693_v28 = vpop.f32.mrb[179].mxu0  ;;  %5523 = vmatmul.mubr.bf16.gmra.mrb[220].mxu1 %v12444_v42  ;;  %v4338_v50 = vmax.f32 %v3688_v1, 0.0 }
 0x422   :  { %v7059_v11 = vmax.f32 %v7058_v7, %v5261_v16  ;;  %v3694_v18 = vadd.f32 %v3693_v28, %v11762_v41  ;;  %v4339_v5 = vmax.f32 %v3690_v59, 0.0 }
 0x423   :  { %v4340_v17 = vmax.f32 %v3692_v22, 0.0  ;;  %3956 = vmatmul.mubr.bf16.gmra.mrb[28].mxu0 %v11871_v55 }
 0x424   :  { %v4341_v20 = vmax.f32 %v3694_v18, 0.0  ;;  %v5264_v6 = vpop.f32.mrb[116].mxu1  ;;  %3965 = vmatprep.mubr.bf16.mxu0 %v14447_v45 }
 0x425   :  { %v12460_v30 = vpack.c.bf16 %v4340_v17, %v4338_v50  ;;  %v5265_v34 = vadd.f32 %v5264_v6, %v12266_v4  ;;  %v5266_v47 = vpop.f32.mrb[117].mxu1 }
 0x426   :  { %v5267_v40 = vadd.f32 %v5266_v47, %v12269_v10  ;;  %v3697_v14 = vpop.f32.mrb[180].mxu0  ;;  %v5268_v7 = vpop.f32.mrb[118].mxu1  ;;  %v12464_v16 = vpack.c.bf16 %v4341_v20, %v4339_v5 }
 0x427   :  { %14492 = vst [vmem:[#allocation71_spill] sm:$0xff] %v12460_v30  ;;  %v6967_v1 = vmax.f32 %v6966_v46, %v5265_v34  ;;  %v3698_v22 = vadd.f32 %v3697_v14, %v11758_v61  ;;  %v5269_v55 = vadd.f32 %v5268_v7, %v12266_v4  ;;  %v3699_v59 = vpop.f32.mrb[181].mxu0  ;;  %v5270_v28 = vpop.f32.mrb[119].mxu1 }
 0x428   :  { %v7060_v18 = vmax.f32 %v7059_v11, %v5267_v40  ;;  %v3700_v50 = vadd.f32 %v3699_v59, %v11762_v41  ;;  %v5271_v17 = vadd.f32 %v5270_v28, %v12269_v10  ;;  %v3701_v6 = vpop.f32.mrb[182].mxu0  ;;  %5532 = vmatprep.mubr.bf16.mxu1 %v12464_v16 }
 0x429   :  { %v6968_v47 = vmax.f32 %v6967_v1, %v5269_v55  ;;  %v3702_v42 = vadd.f32 %v3701_v6, %v11758_v61  ;;  %v3703_v5 = vpop.f32.mrb[183].mxu0  ;;  %5533 = vmatmul.mubr.bf16.gmra.mrb[224].mxu1 %v12460_v30  ;;  %v4342_v34 = vmax.f32 %v3698_v22, 0.0 }
 0x42a   :  { %v7061_v46 = vmax.f32 %v7060_v18, %v5271_v17  ;;  %v3704_v20 = vadd.f32 %v3703_v5, %v11762_v41  ;;  %v4343_v11 = vmax.f32 %v3700_v50, 0.0 }
 0x42b   :  { %v4344_v14 = vmax.f32 %v3702_v42, 0.0  ;;  %3966 = vmatmul.mubr.bf16.gmra.mrb[32].mxu0 %v11895_v53 }
 0x42c   :  { %v4345_v40 = vmax.f32 %v3704_v20, 0.0  ;;  %v5274_v7 = vpop.f32.mrb[120].mxu1  ;;  %3975 = vmatprep.mubr.bf16.mxu0 %v14447_v45 }
 0x42d   :  { %v12476_v59 = vpack.c.bf16 %v4344_v14, %v4342_v34  ;;  %v5275_v1 = vadd.f32 %v5274_v7, %v12266_v4  ;;  %v5276_v55 = vpop.f32.mrb[121].mxu1 }
 0x42e   :  { %v5277_v28 = vadd.f32 %v5276_v55, %v12269_v10  ;;  %v3707_v6 = vpop.f32.mrb[184].mxu0  ;;  %v5278_v18 = vpop.f32.mrb[122].mxu1  ;;  %v12480_v17 = vpack.c.bf16 %v4345_v40, %v4343_v11 }
 0x42f   :  { %14493 = vst [vmem:[#allocation72_spill] sm:$0xff] %v12476_v59  ;;  %v6969_v22 = vmax.f32 %v6968_v47, %v5275_v1  ;;  %v3708_v42 = vadd.f32 %v3707_v6, %v11758_v61  ;;  %v5279_v53 = vadd.f32 %v5278_v18, %v12266_v4  ;;  %v3709_v50 = vpop.f32.mrb[185].mxu0  ;;  %v5280_v5 = vpop.f32.mrb[123].mxu1  ;;  %v9438_v1 = vld [vmem:[%s14132_s8 + $0x1ec] ss:$16 sps:$4 sm:$0xff]  }
 0x430   :  { %v7062_v20 = vmax.f32 %v7061_v46, %v5277_v28  ;;  %v3710_v34 = vadd.f32 %v3709_v50, %v11762_v41  ;;  %v5281_v14 = vadd.f32 %v5280_v5, %v12269_v10  ;;  %v3711_v7 = vpop.f32.mrb[186].mxu0  ;;  %5542 = vmatprep.mubr.bf16.mxu1 %v12480_v17  ;;  %v9436_v46 = vld [vmem:[%s14132_s8 + $0x1e8] ss:$16 sps:$4 sm:$0xff]   ;;  %6063 = vmatprep.subr.bf16.mxu0 %v9438_v1 }
 0x431   :  { %v6970_v55 = vmax.f32 %v6969_v22, %v5279_v53  ;;  %v3712_v30 = vadd.f32 %v3711_v7, %v11758_v61  ;;  %v3713_v11 = vpop.f32.mrb[187].mxu0  ;;  %5543 = vmatmul.mubr.bf16.gmra.mrb[228].mxu1 %v12476_v59  ;;  %v4346_v28 = vmax.f32 %v3708_v42, 0.0  ;;  %6064 = vmatpush1.bf16.msra.mxu0 %v9436_v46 }
 0x432   :  { %v7063_v47 = vmax.f32 %v7062_v20, %v5281_v14  ;;  %v3714_v40 = vadd.f32 %v3713_v11, %v11762_v41  ;;  %v4347_v18 = vmax.f32 %v3710_v34, 0.0 }
 0x433   :  { %v4348_v6 = vmax.f32 %v3712_v30, 0.0  ;;  %3976 = vmatmul.mubr.bf16.gmra.mrb[36].mxu0 %v11891_v63 }
 0x434   :  { %v4349_v22 = vmax.f32 %v3714_v40, 0.0  ;;  %v5284_v53 = vpop.f32.mrb[124].mxu1  ;;  %3985 = vmatprep.mubr.bf16.mxu0 %v14447_v45 }
 0x435   :  { %v12498_v50 = vpack.c.bf16 %v4348_v6, %v4346_v28  ;;  %v5285_v5 = vadd.f32 %v5284_v53, %v12266_v4  ;;  %v5286_v20 = vpop.f32.mrb[125].mxu1 }
 0x436   :  { %v5287_v14 = vadd.f32 %v5286_v20, %v12269_v10  ;;  %v3717_v7 = vpop.f32.mrb[188].mxu0  ;;  %v5288_v11 = vpop.f32.mrb[126].mxu1  ;;  %v12502_v42 = vpack.c.bf16 %v4349_v22, %v4347_v18 }
 0x437   :  { %14494 = vst [vmem:[#allocation73_spill] sm:$0xff] %v12498_v50  ;;  %v6971_v30 = vmax.f32 %v6970_v55, %v5285_v5  ;;  %v3718_v63 = vadd.f32 %v3717_v7, %v11758_v61  ;;  %v5289_v34 = vadd.f32 %v5288_v11, %v12266_v4  ;;  %v3719_v40 = vpop.f32.mrb[189].mxu0  ;;  %v5290_v59 = vpop.f32.mrb[127].mxu1 }
 0x438   :  { %v7064_v1 = vmax.f32 %v7063_v47, %v5287_v14  ;;  %v3720_v28 = vadd.f32 %v3719_v40, %v11762_v41  ;;  %v5291_v6 = vadd.f32 %v5290_v59, %v12269_v10  ;;  %v3721_v53 = vpop.f32.mrb[190].mxu0  ;;  %5552 = vmatprep.mubr.bf16.mxu1 %v12502_v42 }
 0x439   :  { %v6972_v46 = vmax.f32 %v6971_v30, %v5289_v34  ;;  %v3722_v20 = vadd.f32 %v3721_v53, %v11758_v61  ;;  %v3723_v18 = vpop.f32.mrb[191].mxu0  ;;  %5553 = vmatmul.mubr.bf16.gmra.mrb[232].mxu1 %v12498_v50  ;;  %v4350_v5 = vmax.f32 %v3718_v63, 0.0 }
 0x43a   :  { %v7065_v55 = vmax.f32 %v7064_v1, %v5291_v6  ;;  %v3724_v22 = vadd.f32 %v3723_v18, %v11762_v41  ;;  %v4351_v47 = vmax.f32 %v3720_v28, 0.0 }
 0x43b   :  { %v4352_v7 = vmax.f32 %v3722_v20, 0.0  ;;  %3986 = vmatmul.mubr.bf16.gmra.mrb[40].mxu0 %v11915_v51 }
 0x43c   :  { %v4353_v14 = vmax.f32 %v3724_v22, 0.0  ;;  %v5294_v11 = vpop.f32.mrb[128].mxu1  ;;  %3995 = vmatprep.mubr.bf16.mxu0 %v14447_v45 }
 0x43d   :  { %v12514_v59 = vpack.c.bf16 %v4352_v7, %v4350_v5  ;;  %v5295_v30 = vadd.f32 %v5294_v11, %v12266_v4  ;;  %v5296_v34 = vpop.f32.mrb[129].mxu1 }
 0x43e   :  { %v5297_v40 = vadd.f32 %v5296_v34, %v12269_v10  ;;  %v3727_v53 = vpop.f32.mrb[192].mxu0  ;;  %v5298_v1 = vpop.f32.mrb[130].mxu1  ;;  %v12518_v6 = vpack.c.bf16 %v4353_v14, %v4351_v47 }
 0x43f   :  { %14495 = vst [vmem:[#allocation74_spill] sm:$0xff] %v12514_v59  ;;  %v6973_v63 = vmax.f32 %v6972_v46, %v5295_v30  ;;  %v3728_v20 = vadd.f32 %v3727_v53, %v11758_v61  ;;  %v5299_v51 = vadd.f32 %v5298_v1, %v12266_v4  ;;  %v3729_v28 = vpop.f32.mrb[193].mxu0  ;;  %v5300_v18 = vpop.f32.mrb[131].mxu1 }
 0x440   :  { %v7066_v22 = vmax.f32 %v7065_v55, %v5297_v40  ;;  %v3730_v5 = vadd.f32 %v3729_v28, %v11762_v41  ;;  %v5301_v7 = vadd.f32 %v5300_v18, %v12269_v10  ;;  %v3731_v11 = vpop.f32.mrb[194].mxu0  ;;  %5562 = vmatprep.mubr.bf16.mxu1 %v12518_v6 }
 0x441   :  { %v6974_v34 = vmax.f32 %v6973_v63, %v5299_v51  ;;  %v3732_v50 = vadd.f32 %v3731_v11, %v11758_v61  ;;  %v3733_v47 = vpop.f32.mrb[195].mxu0  ;;  %5563 = vmatmul.mubr.bf16.gmra.mrb[236].mxu1 %v12514_v59  ;;  %v4354_v30 = vmax.f32 %v3728_v20, 0.0 }
 0x442   :  { %v7067_v46 = vmax.f32 %v7066_v22, %v5301_v7  ;;  %v3734_v14 = vadd.f32 %v3733_v47, %v11762_v41  ;;  %v4355_v55 = vmax.f32 %v3730_v5, 0.0 }
 0x443   :  { %v4356_v53 = vmax.f32 %v3732_v50, 0.0  ;;  %3996 = vmatmul.mubr.bf16.gmra.mrb[44].mxu0 %v11911_v25 }
 0x444   :  { %v4357_v40 = vmax.f32 %v3734_v14, 0.0  ;;  %v5304_v1 = vpop.f32.mrb[132].mxu1  ;;  %4005 = vmatprep.mubr.bf16.mxu0 %v14447_v45 }
 0x445   :  { %v12530_v28 = vpack.c.bf16 %v4356_v53, %v4354_v30  ;;  %v5305_v63 = vadd.f32 %v5304_v1, %v12266_v4  ;;  %v5306_v51 = vpop.f32.mrb[133].mxu1 }
 0x446   :  { %v5307_v18 = vadd.f32 %v5306_v51, %v12269_v10  ;;  %v3737_v11 = vpop.f32.mrb[196].mxu0  ;;  %v5308_v22 = vpop.f32.mrb[134].mxu1  ;;  %v12534_v7 = vpack.c.bf16 %v4357_v40, %v4355_v55 }
 0x447   :  { %14496 = vst [vmem:[#allocation75_spill] sm:$0xff] %v12530_v28  ;;  %v6975_v20 = vmax.f32 %v6974_v34, %v5305_v63  ;;  %v3738_v50 = vadd.f32 %v3737_v11, %v11758_v61  ;;  %v5309_v25 = vadd.f32 %v5308_v22, %v12266_v4  ;;  %v3739_v5 = vpop.f32.mrb[197].mxu0  ;;  %v5310_v47 = vpop.f32.mrb[135].mxu1 }
 0x448   :  { %v7068_v14 = vmax.f32 %v7067_v46, %v5307_v18  ;;  %v3740_v30 = vadd.f32 %v3739_v5, %v11762_v41  ;;  %v5311_v53 = vadd.f32 %v5310_v47, %v12269_v10  ;;  %v3741_v1 = vpop.f32.mrb[198].mxu0  ;;  %5572 = vmatprep.mubr.bf16.mxu1 %v12534_v7 }
 0x449   :  { %v6976_v51 = vmax.f32 %v6975_v20, %v5309_v25  ;;  %v3742_v59 = vadd.f32 %v3741_v1, %v11758_v61  ;;  %v3743_v55 = vpop.f32.mrb[199].mxu0  ;;  %5573 = vmatmul.mubr.bf16.gmra.mrb[240].mxu1 %v12530_v28  ;;  %v4358_v63 = vmax.f32 %v3738_v50, 0.0 }
 0x44a   :  { %v7069_v34 = vmax.f32 %v7068_v14, %v5311_v53  ;;  %v3744_v40 = vadd.f32 %v3743_v55, %v11762_v41  ;;  %v4359_v46 = vmax.f32 %v3740_v30, 0.0 }
 0x44b   :  { %v4360_v11 = vmax.f32 %v3742_v59, 0.0  ;;  %4006 = vmatmul.mubr.bf16.gmra.mrb[48].mxu0 %v11941_v56 }
 0x44c   :  { %v4361_v18 = vmax.f32 %v3744_v40, 0.0  ;;  %v5314_v22 = vpop.f32.mrb[136].mxu1  ;;  %4015 = vmatprep.mubr.bf16.mxu0 %v14447_v45 }
 0x44d   :  { %v12546_v5 = vpack.c.bf16 %v4360_v11, %v4358_v63  ;;  %v5315_v20 = vadd.f32 %v5314_v22, %v12266_v4  ;;  %v5316_v25 = vpop.f32.mrb[137].mxu1 }
 0x44e   :  { %v5317_v47 = vadd.f32 %v5316_v25, %v12269_v10  ;;  %v3747_v1 = vpop.f32.mrb[200].mxu0  ;;  %v5318_v14 = vpop.f32.mrb[138].mxu1  ;;  %v12550_v53 = vpack.c.bf16 %v4361_v18, %v4359_v46 }
 0x44f   :  { %14497 = vst [vmem:[#allocation76_spill] sm:$0xff] %v12546_v5  ;;  %v6977_v50 = vmax.f32 %v6976_v51, %v5315_v20  ;;  %v3748_v59 = vadd.f32 %v3747_v1, %v11758_v61  ;;  %v5319_v56 = vadd.f32 %v5318_v14, %v12266_v4  ;;  %v3749_v30 = vpop.f32.mrb[201].mxu0  ;;  %v5320_v55 = vpop.f32.mrb[139].mxu1 }
 0x450   :  { %v7070_v40 = vmax.f32 %v7069_v34, %v5317_v47  ;;  %v3750_v63 = vadd.f32 %v3749_v30, %v11762_v41  ;;  %v5321_v11 = vadd.f32 %v5320_v55, %v12269_v10  ;;  %v3751_v22 = vpop.f32.mrb[202].mxu0  ;;  %5582 = vmatprep.mubr.bf16.mxu1 %v12550_v53 }
 0x451   :  { %v6978_v25 = vmax.f32 %v6977_v50, %v5319_v56  ;;  %v3752_v28 = vadd.f32 %v3751_v22, %v11758_v61  ;;  %v3753_v46 = vpop.f32.mrb[203].mxu0  ;;  %5583 = vmatmul.mubr.bf16.gmra.mrb[244].mxu1 %v12546_v5  ;;  %v4362_v20 = vmax.f32 %v3748_v59, 0.0 }
 0x452   :  { %v7071_v51 = vmax.f32 %v7070_v40, %v5321_v11  ;;  %v3754_v18 = vadd.f32 %v3753_v46, %v11762_v41  ;;  %v4363_v34 = vmax.f32 %v3750_v63, 0.0 }
 0x453   :  { %v4364_v1 = vmax.f32 %v3752_v28, 0.0  ;;  %4016 = vmatmul.mubr.bf16.gmra.mrb[52].mxu0 %v11937_v48 }
 0x454   :  { %v4365_v47 = vmax.f32 %v3754_v18, 0.0  ;;  %v5324_v14 = vpop.f32.mrb[140].mxu1  ;;  %4025 = vmatprep.mubr.bf16.mxu0 %v14447_v45 }
 0x455   :  { %v12562_v30 = vpack.c.bf16 %v4364_v1, %v4362_v20  ;;  %v5325_v50 = vadd.f32 %v5324_v14, %v12266_v4  ;;  %v5326_v56 = vpop.f32.mrb[141].mxu1 }
 0x456   :  { %v5327_v55 = vadd.f32 %v5326_v56, %v12269_v10  ;;  %v3757_v22 = vpop.f32.mrb[204].mxu0  ;;  %v5328_v40 = vpop.f32.mrb[142].mxu1  ;;  %v12566_v11 = vpack.c.bf16 %v4365_v47, %v4363_v34 }
 0x457   :  { %14498 = vst [vmem:[#allocation77_spill] sm:$0xff] %v12562_v30  ;;  %v6979_v59 = vmax.f32 %v6978_v25, %v5325_v50  ;;  %v3758_v28 = vadd.f32 %v3757_v22, %v11758_v61  ;;  %v5329_v48 = vadd.f32 %v5328_v40, %v12266_v4  ;;  %v3759_v63 = vpop.f32.mrb[205].mxu0  ;;  %v5330_v46 = vpop.f32.mrb[143].mxu1 }
 0x458   :  { %v7072_v18 = vmax.f32 %v7071_v51, %v5327_v55  ;;  %v3760_v20 = vadd.f32 %v3759_v63, %v11762_v41  ;;  %v5331_v1 = vadd.f32 %v5330_v46, %v12269_v10  ;;  %v3761_v14 = vpop.f32.mrb[206].mxu0  ;;  %5592 = vmatprep.mubr.bf16.mxu1 %v12566_v11 }
 0x459   :  { %v6980_v56 = vmax.f32 %v6979_v59, %v5329_v48  ;;  %v3762_v5 = vadd.f32 %v3761_v14, %v11758_v61  ;;  %v3763_v34 = vpop.f32.mrb[207].mxu0  ;;  %5593 = vmatmul.mubr.bf16.gmra.mrb[248].mxu1 %v12562_v30  ;;  %v4366_v50 = vmax.f32 %v3758_v28, 0.0 }
 0x45a   :  { %v7073_v25 = vmax.f32 %v7072_v18, %v5331_v1  ;;  %v3764_v47 = vadd.f32 %v3763_v34, %v11762_v41  ;;  %v4367_v51 = vmax.f32 %v3760_v20, 0.0 }
 0x45b   :  { %v4368_v22 = vmax.f32 %v3762_v5, 0.0  ;;  %4026 = vmatmul.mubr.bf16.gmra.mrb[56].mxu0 %v11961_v36 }
 0x45c   :  { %v4369_v55 = vmax.f32 %v3764_v47, 0.0  ;;  %v5334_v40 = vpop.f32.mrb[144].mxu1  ;;  %4035 = vmatprep.mubr.bf16.mxu0 %v14447_v45 }
 0x45d   :  { %v12578_v63 = vpack.c.bf16 %v4368_v22, %v4366_v50  ;;  %v5335_v59 = vadd.f32 %v5334_v40, %v12266_v4  ;;  %v5336_v48 = vpop.f32.mrb[145].mxu1 }
 0x45e   :  { %v5337_v46 = vadd.f32 %v5336_v48, %v12269_v10  ;;  %v3767_v14 = vpop.f32.mrb[208].mxu0  ;;  %v5338_v18 = vpop.f32.mrb[146].mxu1  ;;  %v12582_v1 = vpack.c.bf16 %v4369_v55, %v4367_v51 }
 0x45f   :  { %14499 = vst [vmem:[#allocation78_spill] sm:$0xff] %v12578_v63  ;;  %v6981_v28 = vmax.f32 %v6980_v56, %v5335_v59  ;;  %v3768_v5 = vadd.f32 %v3767_v14, %v11758_v61  ;;  %v5339_v36 = vadd.f32 %v5338_v18, %v12266_v4  ;;  %v3769_v20 = vpop.f32.mrb[209].mxu0  ;;  %v5340_v34 = vpop.f32.mrb[147].mxu1 }
 0x460   :  { %v7074_v47 = vmax.f32 %v7073_v25, %v5337_v46  ;;  %v3770_v50 = vadd.f32 %v3769_v20, %v11762_v41  ;;  %v5341_v22 = vadd.f32 %v5340_v34, %v12269_v10  ;;  %v3771_v40 = vpop.f32.mrb[210].mxu0  ;;  %5602 = vmatprep.mubr.bf16.mxu1 %v12582_v1 }
 0x461   :  { %v6982_v48 = vmax.f32 %v6981_v28, %v5339_v36  ;;  %v3772_v30 = vadd.f32 %v3771_v40, %v11758_v61  ;;  %v3773_v51 = vpop.f32.mrb[211].mxu0  ;;  %5603 = vmatmul.mubr.bf16.gmra.mrb[252].mxu1 %v12578_v63  ;;  %v4370_v59 = vmax.f32 %v3768_v5, 0.0 }
 0x462   :  { %v7075_v56 = vmax.f32 %v7074_v47, %v5341_v22  ;;  %v3774_v55 = vadd.f32 %v3773_v51, %v11762_v41  ;;  %v4371_v25 = vmax.f32 %v3770_v50, 0.0 }
 0x463   :  { %v4372_v14 = vmax.f32 %v3772_v30, 0.0  ;;  %4036 = vmatmul.mubr.bf16.gmra.mrb[60].mxu0 %v11957_v54 }
 0x464   :  { %v4373_v46 = vmax.f32 %v3774_v55, 0.0  ;;  %v5344_v18 = vpop.f32.mrb[148].mxu1  ;;  %4045 = vmatprep.mubr.bf16.mxu0 %v14447_v45 }
 0x465   :  { %v12594_v20 = vpack.c.bf16 %v4372_v14, %v4370_v59  ;;  %v5345_v28 = vadd.f32 %v5344_v18, %v12266_v4  ;;  %v5346_v36 = vpop.f32.mrb[149].mxu1 }
 0x466   :  { %v5347_v34 = vadd.f32 %v5346_v36, %v12269_v10  ;;  %v3777_v40 = vpop.f32.mrb[212].mxu0  ;;  %v5348_v47 = vpop.f32.mrb[150].mxu1  ;;  %v12598_v22 = vpack.c.bf16 %v4373_v46, %v4371_v25 }
 0x467   :  { %14500 = vst [vmem:[#allocation79_spill] sm:$0xff] %v12594_v20  ;;  %v6983_v5 = vmax.f32 %v6982_v48, %v5345_v28  ;;  %v3778_v30 = vadd.f32 %v3777_v40, %v11758_v61  ;;  %v5349_v54 = vadd.f32 %v5348_v47, %v12266_v4  ;;  %v3779_v50 = vpop.f32.mrb[213].mxu0  ;;  %v5350_v51 = vpop.f32.mrb[151].mxu1 }
 0x468   :  { %v7076_v55 = vmax.f32 %v7075_v56, %v5347_v34  ;;  %v3780_v59 = vadd.f32 %v3779_v50, %v11762_v41  ;;  %v5351_v14 = vadd.f32 %v5350_v51, %v12269_v10  ;;  %v3781_v18 = vpop.f32.mrb[214].mxu0  ;;  %5612 = vmatprep.mubr.bf16.mxu1 %v12598_v22 }
 0x469   :  { %v6984_v36 = vmax.f32 %v6983_v5, %v5349_v54  ;;  %v3782_v63 = vadd.f32 %v3781_v18, %v11758_v61  ;;  %v3783_v25 = vpop.f32.mrb[215].mxu0  ;;  %5613 = vmatmul.mubr.bf16.gmra.mrb[0].mxu1 %v12594_v20  ;;  %v4374_v28 = vmax.f32 %v3778_v30, 0.0 }
 0x46a   :  { %v7077_v48 = vmax.f32 %v7076_v55, %v5351_v14  ;;  %v3784_v46 = vadd.f32 %v3783_v25, %v11762_v41  ;;  %v4375_v56 = vmax.f32 %v3780_v59, 0.0 }
 0x46b   :  { %v4376_v40 = vmax.f32 %v3782_v63, 0.0  ;;  %4046 = vmatmul.mubr.bf16.gmra.mrb[64].mxu0 %v11981_v37 }
 0x46c   :  { %v4377_v34 = vmax.f32 %v3784_v46, 0.0  ;;  %v5354_v47 = vpop.f32.mrb[152].mxu1  ;;  %4055 = vmatprep.mubr.bf16.mxu0 %v14447_v45 }
 0x46d   :  { %v12610_v50 = vpack.c.bf16 %v4376_v40, %v4374_v28  ;;  %v5355_v5 = vadd.f32 %v5354_v47, %v12266_v4  ;;  %v5356_v54 = vpop.f32.mrb[153].mxu1 }
 0x46e   :  { %v5357_v51 = vadd.f32 %v5356_v54, %v12269_v10  ;;  %v3787_v18 = vpop.f32.mrb[216].mxu0  ;;  %v5358_v55 = vpop.f32.mrb[154].mxu1  ;;  %v12614_v14 = vpack.c.bf16 %v4377_v34, %v4375_v56 }
 0x46f   :  { %14501 = vst [vmem:[#allocation80_spill] sm:$0xff] %v12610_v50  ;;  %v6985_v30 = vmax.f32 %v6984_v36, %v5355_v5  ;;  %v3788_v63 = vadd.f32 %v3787_v18, %v11758_v61  ;;  %v5359_v37 = vadd.f32 %v5358_v55, %v12266_v4  ;;  %v3789_v59 = vpop.f32.mrb[217].mxu0  ;;  %v5360_v25 = vpop.f32.mrb[155].mxu1  ;;  %v14503_v55 = vld [vmem:[#allocation30_spill] sm:$0xff] }
 0x470   :  { %14502 = vst [vmem:[#allocation81_spill] sm:$0xff] %v12614_v14  ;;  %v7078_v46 = vmax.f32 %v7077_v48, %v5357_v51  ;;  %v3790_v28 = vadd.f32 %v3789_v59, %v11762_v41  ;;  %v5361_v40 = vadd.f32 %v5360_v25, %v12269_v10  ;;  %v3791_v47 = vpop.f32.mrb[218].mxu0  ;;  %5622 = vmatprep.mubr.bf16.mxu1 %v12614_v14 }
 0x471   :  { %v6986_v54 = vmax.f32 %v6985_v30, %v5359_v37  ;;  %v3792_v20 = vadd.f32 %v3791_v47, %v11758_v61  ;;  %v3793_v56 = vpop.f32.mrb[219].mxu0  ;;  %5623 = vmatmul.mubr.bf16.gmra.mrb[4].mxu1 %v12610_v50  ;;  %v4378_v5 = vmax.f32 %v3788_v63, 0.0 }
 0x472   :  { %v7079_v36 = vmax.f32 %v7078_v46, %v5361_v40  ;;  %v3794_v34 = vadd.f32 %v3793_v56, %v11762_v41  ;;  %v4379_v48 = vmax.f32 %v3790_v28, 0.0 }
 0x473   :  { %v4380_v18 = vmax.f32 %v3792_v20, 0.0  ;;  %4056 = vmatmul.mubr.bf16.gmra.mrb[68].mxu0 %v14503_v55 }
 0x474   :  { %v4381_v51 = vmax.f32 %v3794_v34, 0.0  ;;  %v5364_v59 = vpop.f32.mrb[156].mxu1  ;;  %4065 = vmatprep.mubr.bf16.mxu0 %v14447_v45 }
 0x475   :  { %v12626_v25 = vpack.c.bf16 %v4380_v18, %v4378_v5  ;;  %v5365_v30 = vadd.f32 %v5364_v59, %v12266_v4  ;;  %v5366_v37 = vpop.f32.mrb[157].mxu1 }
 0x476   :  { %v5367_v47 = vadd.f32 %v5366_v37, %v12269_v10  ;;  %v3797_v50 = vpop.f32.mrb[220].mxu0  ;;  %v5368_v46 = vpop.f32.mrb[158].mxu1  ;;  %v12630_v40 = vpack.c.bf16 %v4381_v51, %v4379_v48 }
 0x477   :  { %14504 = vst [vmem:[#allocation30_spill] sm:$0xff] %v12626_v25  ;;  %v6987_v63 = vmax.f32 %v6986_v54, %v5365_v30  ;;  %v3798_v20 = vadd.f32 %v3797_v50, %v11758_v61  ;;  %v5369_v28 = vadd.f32 %v5368_v46, %v12266_v4  ;;  %v3799_v56 = vpop.f32.mrb[221].mxu0  ;;  %v5370_v34 = vpop.f32.mrb[159].mxu1 }
 0x478   :  { %v7080_v55 = vmax.f32 %v7079_v36, %v5367_v47  ;;  %v3800_v5 = vadd.f32 %v3799_v56, %v11762_v41  ;;  %v5371_v18 = vadd.f32 %v5370_v34, %v12269_v10  ;;  %v3801_v59 = vpop.f32.mrb[222].mxu0  ;;  %5632 = vmatprep.mubr.bf16.mxu1 %v12630_v40 }
 0x479   :  { %v6988_v37 = vmax.f32 %v6987_v63, %v5369_v28  ;;  %v3802_v14 = vadd.f32 %v3801_v59, %v11758_v61  ;;  %v3803_v48 = vpop.f32.mrb[223].mxu0  ;;  %5633 = vmatmul.mubr.bf16.gmra.mrb[8].mxu1 %v12626_v25  ;;  %v4382_v51 = vmax.f32 %v3798_v20, 0.0 }
 0x47a   :  { %v7081_v54 = vmax.f32 %v7080_v55, %v5371_v18  ;;  %v3804_v50 = vadd.f32 %v3803_v48, %v11762_v41  ;;  %v4383_v36 = vmax.f32 %v3800_v5, 0.0 }
 0x47b   :  { %v4384_v30 = vmax.f32 %v3802_v14, 0.0  ;;  %4066 = vmatmul.mubr.bf16.gmra.mrb[72].mxu0 %v12001_v0 }
 0x47c   :  { %v4385_v47 = vmax.f32 %v3804_v50, 0.0  ;;  %v5374_v46 = vpop.f32.mrb[160].mxu1  ;;  %4075 = vmatprep.mubr.bf16.mxu0 %v14447_v45 }
 0x47d   :  { %v12642_v56 = vpack.c.bf16 %v4384_v30, %v4382_v51  ;;  %v5375_v63 = vadd.f32 %v5374_v46, %v12266_v4  ;;  %v5376_v28 = vpop.f32.mrb[161].mxu1 }
 0x47e   :  { %v5377_v34 = vadd.f32 %v5376_v28, %v12269_v10  ;;  %v3807_v59 = vpop.f32.mrb[224].mxu0  ;;  %v5378_v55 = vpop.f32.mrb[162].mxu1  ;;  %v12646_v18 = vpack.c.bf16 %v4385_v47, %v4383_v36 }
 0x47f   :  { %14505 = vst [vmem:[#allocation82_spill] sm:$0xff] %v12642_v56  ;;  %v6989_v20 = vmax.f32 %v6988_v37, %v5375_v63  ;;  %v3808_v14 = vadd.f32 %v3807_v59, %v11758_v61  ;;  %v5379_v0 = vadd.f32 %v5378_v55, %v12266_v4  ;;  %v3809_v5 = vpop.f32.mrb[225].mxu0  ;;  %v5380_v48 = vpop.f32.mrb[163].mxu1  ;;  %v14507_v55 = vld [vmem:[#allocation33_spill] sm:$0xff] }
 0x480   :  { %14506 = vst [vmem:[#allocation83_spill] sm:$0xff] %v12646_v18  ;;  %v7082_v50 = vmax.f32 %v7081_v54, %v5377_v34  ;;  %v3810_v51 = vadd.f32 %v3809_v5, %v11762_v41  ;;  %v5381_v30 = vadd.f32 %v5380_v48, %v12269_v10  ;;  %v3811_v46 = vpop.f32.mrb[226].mxu0  ;;  %5642 = vmatprep.mubr.bf16.mxu1 %v12646_v18 }
 0x481   :  { %v6990_v28 = vmax.f32 %v6989_v20, %v5379_v0  ;;  %v3812_v25 = vadd.f32 %v3811_v46, %v11758_v61  ;;  %v3813_v36 = vpop.f32.mrb[227].mxu0  ;;  %5643 = vmatmul.mubr.bf16.gmra.mrb[12].mxu1 %v12642_v56  ;;  %v4386_v63 = vmax.f32 %v3808_v14, 0.0 }
 0x482   :  { %v7083_v37 = vmax.f32 %v7082_v50, %v5381_v30  ;;  %v3814_v47 = vadd.f32 %v3813_v36, %v11762_v41  ;;  %v4387_v54 = vmax.f32 %v3810_v51, 0.0 }
 0x483   :  { %v4388_v59 = vmax.f32 %v3812_v25, 0.0  ;;  %4076 = vmatmul.mubr.bf16.gmra.mrb[76].mxu0 %v14507_v55 }
 0x484   :  { %v4389_v34 = vmax.f32 %v3814_v47, 0.0  ;;  %v5384_v5 = vpop.f32.mrb[164].mxu1  ;;  %4085 = vmatprep.mubr.bf16.mxu0 %v14447_v45 }
 0x485   :  { %v12658_v48 = vpack.c.bf16 %v4388_v59, %v4386_v63  ;;  %v5385_v20 = vadd.f32 %v5384_v5, %v12266_v4  ;;  %v5386_v0 = vpop.f32.mrb[165].mxu1 }
 0x486   :  { %v5387_v46 = vadd.f32 %v5386_v0, %v12269_v10  ;;  %v3817_v56 = vpop.f32.mrb[228].mxu0  ;;  %v5388_v50 = vpop.f32.mrb[166].mxu1  ;;  %v12662_v30 = vpack.c.bf16 %v4389_v34, %v4387_v54 }
 0x487   :  { %14508 = vst [vmem:[#allocation33_spill] sm:$0xff] %v12658_v48  ;;  %v6991_v14 = vmax.f32 %v6990_v28, %v5385_v20  ;;  %v3818_v25 = vadd.f32 %v3817_v56, %v11758_v61  ;;  %v5389_v51 = vadd.f32 %v5388_v50, %v12266_v4  ;;  %v3819_v36 = vpop.f32.mrb[229].mxu0  ;;  %v5390_v47 = vpop.f32.mrb[167].mxu1 }
 0x488   :  { %v7084_v55 = vmax.f32 %v7083_v37, %v5387_v46  ;;  %v3820_v63 = vadd.f32 %v3819_v36, %v11762_v41  ;;  %v5391_v59 = vadd.f32 %v5390_v47, %v12269_v10  ;;  %v3821_v5 = vpop.f32.mrb[230].mxu0  ;;  %5652 = vmatprep.mubr.bf16.mxu1 %v12662_v30 }
 0x489   :  { %v6992_v0 = vmax.f32 %v6991_v14, %v5389_v51  ;;  %v3822_v18 = vadd.f32 %v3821_v5, %v11758_v61  ;;  %v3823_v54 = vpop.f32.mrb[231].mxu0  ;;  %5653 = vmatmul.mubr.bf16.gmra.mrb[16].mxu1 %v12658_v48  ;;  %v4390_v34 = vmax.f32 %v3818_v25, 0.0 }
 0x48a   :  { %v7085_v28 = vmax.f32 %v7084_v55, %v5391_v59  ;;  %v3824_v56 = vadd.f32 %v3823_v54, %v11762_v41  ;;  %v4391_v37 = vmax.f32 %v3820_v63, 0.0 }
 0x48b   :  { %v4392_v20 = vmax.f32 %v3822_v18, 0.0  ;;  %4086 = vmatmul.mubr.bf16.gmra.mrb[80].mxu0 %v12021_v32 }
 0x48c   :  { %v4393_v46 = vmax.f32 %v3824_v56, 0.0  ;;  %v5394_v50 = vpop.f32.mrb[168].mxu1  ;;  %4095 = vmatprep.mubr.bf16.mxu0 %v14447_v45 }
 0x48d   :  { %v12674_v36 = vpack.c.bf16 %v4392_v20, %v4390_v34  ;;  %v5395_v14 = vadd.f32 %v5394_v50, %v12266_v4  ;;  %v5396_v51 = vpop.f32.mrb[169].mxu1 }
 0x48e   :  { %v5397_v47 = vadd.f32 %v5396_v51, %v12269_v10  ;;  %v3827_v5 = vpop.f32.mrb[232].mxu0  ;;  %v5398_v55 = vpop.f32.mrb[170].mxu1  ;;  %v12678_v59 = vpack.c.bf16 %v4393_v46, %v4391_v37 }
 0x48f   :  { %14509 = vst [vmem:[#allocation84_spill] sm:$0xff] %v12674_v36  ;;  %v6993_v25 = vmax.f32 %v6992_v0, %v5395_v14  ;;  %v3828_v18 = vadd.f32 %v3827_v5, %v11758_v61  ;;  %v5399_v32 = vadd.f32 %v5398_v55, %v12266_v4  ;;  %v3829_v63 = vpop.f32.mrb[233].mxu0  ;;  %v5400_v54 = vpop.f32.mrb[171].mxu1  ;;  %v14511_v55 = vld [vmem:[#allocation37_spill] sm:$0xff] }
 0x490   :  { %14510 = vst [vmem:[#allocation85_spill] sm:$0xff] %v12678_v59  ;;  %v7086_v56 = vmax.f32 %v7085_v28, %v5397_v47  ;;  %v3830_v34 = vadd.f32 %v3829_v63, %v11762_v41  ;;  %v5401_v20 = vadd.f32 %v5400_v54, %v12269_v10  ;;  %v3831_v50 = vpop.f32.mrb[234].mxu0  ;;  %5662 = vmatprep.mubr.bf16.mxu1 %v12678_v59 }
 0x491   :  { %v6994_v51 = vmax.f32 %v6993_v25, %v5399_v32  ;;  %v3832_v48 = vadd.f32 %v3831_v50, %v11758_v61  ;;  %v3833_v37 = vpop.f32.mrb[235].mxu0  ;;  %5663 = vmatmul.mubr.bf16.gmra.mrb[20].mxu1 %v12674_v36  ;;  %v4394_v14 = vmax.f32 %v3828_v18, 0.0 }
 0x492   :  { %v7087_v0 = vmax.f32 %v7086_v56, %v5401_v20  ;;  %v3834_v46 = vadd.f32 %v3833_v37, %v11762_v41  ;;  %v4395_v28 = vmax.f32 %v3830_v34, 0.0 }
 0x493   :  { %v4396_v5 = vmax.f32 %v3832_v48, 0.0  ;;  %4096 = vmatmul.mubr.bf16.gmra.mrb[84].mxu0 %v14511_v55 }
 0x494   :  { %v4397_v47 = vmax.f32 %v3834_v46, 0.0  ;;  %v5404_v63 = vpop.f32.mrb[172].mxu1  ;;  %4105 = vmatprep.mubr.bf16.mxu0 %v14447_v45 }
 0x495   :  { %v12690_v54 = vpack.c.bf16 %v4396_v5, %v4394_v14  ;;  %v5405_v25 = vadd.f32 %v5404_v63, %v12266_v4  ;;  %v5406_v32 = vpop.f32.mrb[173].mxu1 }
 0x496   :  { %v5407_v50 = vadd.f32 %v5406_v32, %v12269_v10  ;;  %v3837_v36 = vpop.f32.mrb[236].mxu0  ;;  %v5408_v56 = vpop.f32.mrb[174].mxu1  ;;  %v12694_v20 = vpack.c.bf16 %v4397_v47, %v4395_v28 }
 0x497   :  { %14512 = vst [vmem:[#allocation37_spill] sm:$0xff] %v12690_v54  ;;  %v6995_v18 = vmax.f32 %v6994_v51, %v5405_v25  ;;  %v3838_v48 = vadd.f32 %v3837_v36, %v11758_v61  ;;  %v5409_v34 = vadd.f32 %v5408_v56, %v12266_v4  ;;  %v3839_v37 = vpop.f32.mrb[237].mxu0  ;;  %v5410_v46 = vpop.f32.mrb[175].mxu1 }
 0x498   :  { %v7088_v55 = vmax.f32 %v7087_v0, %v5407_v50  ;;  %v3840_v14 = vadd.f32 %v3839_v37, %v11762_v41  ;;  %v5411_v5 = vadd.f32 %v5410_v46, %v12269_v10  ;;  %v3841_v63 = vpop.f32.mrb[238].mxu0  ;;  %5672 = vmatprep.mubr.bf16.mxu1 %v12694_v20 }
 0x499   :  { %v6996_v32 = vmax.f32 %v6995_v18, %v5409_v34  ;;  %v3842_v59 = vadd.f32 %v3841_v63, %v11758_v61  ;;  %v3843_v28 = vpop.f32.mrb[239].mxu0  ;;  %5673 = vmatmul.mubr.bf16.gmra.mrb[24].mxu1 %v12690_v54  ;;  %v4398_v47 = vmax.f32 %v3838_v48, 0.0 }
 0x49a   :  { %v7089_v51 = vmax.f32 %v7088_v55, %v5411_v5  ;;  %v3844_v36 = vadd.f32 %v3843_v28, %v11762_v41  ;;  %v4399_v0 = vmax.f32 %v3840_v14, 0.0 }
 0x49b   :  { %v4400_v25 = vmax.f32 %v3842_v59, 0.0  ;;  %4106 = vmatmul.mubr.bf16.gmra.mrb[88].mxu0 %v12047_v44 }
 0x49c   :  { %v4401_v50 = vmax.f32 %v3844_v36, 0.0  ;;  %v5414_v56 = vpop.f32.mrb[176].mxu1  ;;  %4115 = vmatprep.mubr.bf16.mxu0 %v14447_v45 }
 0x49d   :  { %v12706_v37 = vpack.c.bf16 %v4400_v25, %v4398_v47  ;;  %v5415_v18 = vadd.f32 %v5414_v56, %v12266_v4  ;;  %v5416_v34 = vpop.f32.mrb[177].mxu1 }
 0x49e   :  { %v5417_v46 = vadd.f32 %v5416_v34, %v12269_v10  ;;  %v3847_v63 = vpop.f32.mrb[240].mxu0  ;;  %v5418_v55 = vpop.f32.mrb[178].mxu1  ;;  %v12710_v5 = vpack.c.bf16 %v4401_v50, %v4399_v0 }
 0x49f   :  { %14513 = vst [vmem:[#allocation86_spill] sm:$0xff] %v12706_v37  ;;  %v6997_v48 = vmax.f32 %v6996_v32, %v5415_v18  ;;  %v3848_v59 = vadd.f32 %v3847_v63, %v11758_v61  ;;  %v5419_v44 = vadd.f32 %v5418_v55, %v12266_v4  ;;  %v3849_v14 = vpop.f32.mrb[241].mxu0  ;;  %v5420_v28 = vpop.f32.mrb[179].mxu1  ;;  %v14515_v55 = vld [vmem:[#allocation40_spill] sm:$0xff] }
 0x4a0   :  { %14514 = vst [vmem:[#allocation87_spill] sm:$0xff] %v12710_v5  ;;  %v7090_v36 = vmax.f32 %v7089_v51, %v5417_v46  ;;  %v3850_v47 = vadd.f32 %v3849_v14, %v11762_v41  ;;  %v5421_v25 = vadd.f32 %v5420_v28, %v12269_v10  ;;  %v3851_v56 = vpop.f32.mrb[242].mxu0  ;;  %5682 = vmatprep.mubr.bf16.mxu1 %v12710_v5 }
 0x4a1   :  { %v6998_v34 = vmax.f32 %v6997_v48, %v5419_v44  ;;  %v3852_v54 = vadd.f32 %v3851_v56, %v11758_v61  ;;  %v3853_v0 = vpop.f32.mrb[243].mxu0  ;;  %5683 = vmatmul.mubr.bf16.gmra.mrb[28].mxu1 %v12706_v37  ;;  %v4402_v18 = vmax.f32 %v3848_v59, 0.0 }
 0x4a2   :  { %v7091_v32 = vmax.f32 %v7090_v36, %v5421_v25  ;;  %v3854_v50 = vadd.f32 %v3853_v0, %v11762_v41  ;;  %v4403_v51 = vmax.f32 %v3850_v47, 0.0 }
 0x4a3   :  { %v4404_v63 = vmax.f32 %v3852_v54, 0.0  ;;  %4116 = vmatmul.mubr.bf16.gmra.mrb[92].mxu0 %v14515_v55 }
 0x4a4   :  { %v4405_v46 = vmax.f32 %v3854_v50, 0.0  ;;  %v5424_v14 = vpop.f32.mrb[180].mxu1  ;;  %4125 = vmatprep.mubr.bf16.mxu0 %v14447_v45 }
 0x4a5   :  { %v12722_v28 = vpack.c.bf16 %v4404_v63, %v4402_v18  ;;  %v5425_v48 = vadd.f32 %v5424_v14, %v12266_v4  ;;  %v5426_v44 = vpop.f32.mrb[181].mxu1 }
 0x4a6   :  { %v5427_v56 = vadd.f32 %v5426_v44, %v12269_v10  ;;  %v3857_v37 = vpop.f32.mrb[244].mxu0  ;;  %v5428_v36 = vpop.f32.mrb[182].mxu1  ;;  %v12726_v25 = vpack.c.bf16 %v4405_v46, %v4403_v51 }
 0x4a7   :  { %14516 = vst [vmem:[#allocation40_spill] sm:$0xff] %v12722_v28  ;;  %v6999_v59 = vmax.f32 %v6998_v34, %v5425_v48  ;;  %v3858_v54 = vadd.f32 %v3857_v37, %v11758_v61  ;;  %v5429_v47 = vadd.f32 %v5428_v36, %v12266_v4  ;;  %v3859_v0 = vpop.f32.mrb[245].mxu0  ;;  %v5430_v50 = vpop.f32.mrb[183].mxu1 }
 0x4a8   :  { %v7092_v55 = vmax.f32 %v7091_v32, %v5427_v56  ;;  %v3860_v18 = vadd.f32 %v3859_v0, %v11762_v41  ;;  %v5431_v63 = vadd.f32 %v5430_v50, %v12269_v10  ;;  %v3861_v14 = vpop.f32.mrb[246].mxu0  ;;  %5692 = vmatprep.mubr.bf16.mxu1 %v12726_v25 }
 0x4a9   :  { %v7000_v44 = vmax.f32 %v6999_v59, %v5429_v47  ;;  %v3862_v5 = vadd.f32 %v3861_v14, %v11758_v61  ;;  %v3863_v51 = vpop.f32.mrb[247].mxu0  ;;  %5693 = vmatmul.mubr.bf16.gmra.mrb[32].mxu1 %v12722_v28  ;;  %v4406_v46 = vmax.f32 %v3858_v54, 0.0 }
 0x4aa   :  { %v7093_v34 = vmax.f32 %v7092_v55, %v5431_v63  ;;  %v3864_v37 = vadd.f32 %v3863_v51, %v11762_v41  ;;  %v4407_v32 = vmax.f32 %v3860_v18, 0.0 }
 0x4ab   :  { %v4408_v48 = vmax.f32 %v3862_v5, 0.0  ;;  %4126 = vmatmul.mubr.bf16.gmra.mrb[96].mxu0 %v12072_v60 }
 0x4ac   :  { %v4409_v56 = vmax.f32 %v3864_v37, 0.0  ;;  %v5434_v36 = vpop.f32.mrb[184].mxu1  ;;  %4135 = vmatprep.mubr.bf16.mxu0 %v14447_v45 }
 0x4ad   :  { %v12738_v0 = vpack.c.bf16 %v4408_v48, %v4406_v46  ;;  %v5435_v59 = vadd.f32 %v5434_v36, %v12266_v4  ;;  %v5436_v47 = vpop.f32.mrb[185].mxu1 }
 0x4ae   :  { %v5437_v50 = vadd.f32 %v5436_v47, %v12269_v10  ;;  %v3867_v14 = vpop.f32.mrb[248].mxu0  ;;  %v5438_v55 = vpop.f32.mrb[186].mxu1  ;;  %v12742_v63 = vpack.c.bf16 %v4409_v56, %v4407_v32 }
 0x4af   :  { %14517 = vst [vmem:[#allocation88_spill] sm:$0xff] %v12738_v0  ;;  %v7001_v54 = vmax.f32 %v7000_v44, %v5435_v59  ;;  %v3868_v5 = vadd.f32 %v3867_v14, %v11758_v61  ;;  %v5439_v60 = vadd.f32 %v5438_v55, %v12266_v4  ;;  %v3869_v18 = vpop.f32.mrb[249].mxu0  ;;  %v5440_v51 = vpop.f32.mrb[187].mxu1  ;;  %v14519_v55 = vld [vmem:[#allocation43_spill] sm:$0xff] }
 0x4b0   :  { %14518 = vst [vmem:[#allocation89_spill] sm:$0xff] %v12742_v63  ;;  %v7094_v37 = vmax.f32 %v7093_v34, %v5437_v50  ;;  %v3870_v46 = vadd.f32 %v3869_v18, %v11762_v41  ;;  %v5441_v48 = vadd.f32 %v5440_v51, %v12269_v10  ;;  %v3871_v36 = vpop.f32.mrb[250].mxu0  ;;  %5702 = vmatprep.mubr.bf16.mxu1 %v12742_v63 }
 0x4b1   :  { %v7002_v47 = vmax.f32 %v7001_v54, %v5439_v60  ;;  %v3872_v28 = vadd.f32 %v3871_v36, %v11758_v61  ;;  %v3873_v32 = vpop.f32.mrb[251].mxu0  ;;  %5703 = vmatmul.mubr.bf16.gmra.mrb[36].mxu1 %v12738_v0  ;;  %v4410_v59 = vmax.f32 %v3868_v5, 0.0 }
 0x4b2   :  { %v7095_v44 = vmax.f32 %v7094_v37, %v5441_v48  ;;  %v3874_v56 = vadd.f32 %v3873_v32, %v11762_v41  ;;  %v4411_v34 = vmax.f32 %v3870_v46, 0.0 }
 0x4b3   :  { %v4412_v14 = vmax.f32 %v3872_v28, 0.0  ;;  %4136 = vmatmul.mubr.bf16.gmra.mrb[100].mxu0 %v14519_v55 }
 0x4b4   :  { %v4413_v50 = vmax.f32 %v3874_v56, 0.0  ;;  %v5444_v18 = vpop.f32.mrb[188].mxu1  ;;  %4145 = vmatprep.mubr.bf16.mxu0 %v14447_v45 }
 0x4b5   :  { %v12754_v51 = vpack.c.bf16 %v4412_v14, %v4410_v59  ;;  %v5445_v54 = vadd.f32 %v5444_v18, %v12266_v4  ;;  %v5446_v60 = vpop.f32.mrb[189].mxu1 }
 0x4b6   :  { %v5447_v36 = vadd.f32 %v5446_v60, %v12269_v10  ;;  %v3877_v0 = vpop.f32.mrb[252].mxu0  ;;  %v5448_v37 = vpop.f32.mrb[190].mxu1  ;;  %v12758_v48 = vpack.c.bf16 %v4413_v50, %v4411_v34 }
 0x4b7   :  { %14520 = vst [vmem:[#allocation43_spill] sm:$0xff] %v12754_v51  ;;  %v7003_v5 = vmax.f32 %v7002_v47, %v5445_v54  ;;  %v3878_v28 = vadd.f32 %v3877_v0, %v11758_v61  ;;  %v5449_v46 = vadd.f32 %v5448_v37, %v12266_v4  ;;  %v3879_v32 = vpop.f32.mrb[253].mxu0  ;;  %v5450_v56 = vpop.f32.mrb[191].mxu1 }
 0x4b8   :  { %v7096_v55 = vmax.f32 %v7095_v44, %v5447_v36  ;;  %v3880_v59 = vadd.f32 %v3879_v32, %v11762_v41  ;;  %v5451_v14 = vadd.f32 %v5450_v56, %v12269_v10  ;;  %v3881_v18 = vpop.f32.mrb[254].mxu0  ;;  %5712 = vmatprep.mubr.bf16.mxu1 %v12758_v48 }
 0x4b9   :  { %v7004_v60 = vmax.f32 %v7003_v5, %v5449_v46  ;;  %v3882_v63 = vadd.f32 %v3881_v18, %v11758_v61  ;;  %v3883_v34 = vpop.f32.mrb[255].mxu0  ;;  %5713 = vmatmul.mubr.bf16.gmra.mrb[40].mxu1 %v12754_v51  ;;  %v4414_v50 = vmax.f32 %v3878_v28, 0.0 }
 0x4ba   :  { %v7097_v47 = vmax.f32 %v7096_v55, %v5451_v14  ;;  %v3884_v0 = vadd.f32 %v3883_v34, %v11762_v41  ;;  %v4415_v44 = vmax.f32 %v3880_v59, 0.0 }
 0x4bb   :  { %v4416_v54 = vmax.f32 %v3882_v63, 0.0  ;;  %4146 = vmatmul.mubr.bf16.gmra.mrb[104].mxu0 %v12092_v24 }
 0x4bc   :  { %v4417_v36 = vmax.f32 %v3884_v0, 0.0  ;;  %v5454_v37 = vpop.f32.mrb[192].mxu1  ;;  %4155 = vmatprep.mubr.bf16.mxu0 %v14447_v45 }
 0x4bd   :  { %v12770_v32 = vpack.c.bf16 %v4416_v54, %v4414_v50  ;;  %v5455_v5 = vadd.f32 %v5454_v37, %v12266_v4  ;;  %v5456_v46 = vpop.f32.mrb[193].mxu1 }
 0x4be   :  { %v5457_v56 = vadd.f32 %v5456_v46, %v12269_v10  ;;  %v3887_v18 = vpop.f32.mrb[0].mxu0  ;;  %v5458_v55 = vpop.f32.mrb[194].mxu1  ;;  %v12774_v14 = vpack.c.bf16 %v4417_v36, %v4415_v44 }
 0x4bf   :  { %14521 = vst [vmem:[#allocation90_spill] sm:$0xff] %v12770_v32  ;;  %v7005_v28 = vmax.f32 %v7004_v60, %v5455_v5  ;;  %v3888_v63 = vadd.f32 %v3887_v18, %v11758_v61  ;;  %v5459_v24 = vadd.f32 %v5458_v55, %v12266_v4  ;;  %v3889_v59 = vpop.f32.mrb[1].mxu0  ;;  %v5460_v34 = vpop.f32.mrb[195].mxu1  ;;  %v14523_v55 = vld [vmem:[#allocation46_spill] sm:$0xff] }
 0x4c0   :  { %14522 = vst [vmem:[#allocation91_spill] sm:$0xff] %v12774_v14  ;;  %v7098_v0 = vmax.f32 %v7097_v47, %v5457_v56  ;;  %v3890_v50 = vadd.f32 %v3889_v59, %v11762_v41  ;;  %v5461_v54 = vadd.f32 %v5460_v34, %v12269_v10  ;;  %v3891_v37 = vpop.f32.mrb[2].mxu0  ;;  %5722 = vmatprep.mubr.bf16.mxu1 %v12774_v14 }
 0x4c1   :  { %v7006_v46 = vmax.f32 %v7005_v28, %v5459_v24  ;;  %v3892_v51 = vadd.f32 %v3891_v37, %v11758_v61  ;;  %v3893_v44 = vpop.f32.mrb[3].mxu0  ;;  %5723 = vmatmul.mubr.bf16.gmra.mrb[44].mxu1 %v12770_v32  ;;  %v4418_v5 = vmax.f32 %v3888_v63, 0.0 }
 0x4c2   :  { %v7099_v60 = vmax.f32 %v7098_v0, %v5461_v54  ;;  %v3894_v36 = vadd.f32 %v3893_v44, %v11762_v41  ;;  %v4419_v47 = vmax.f32 %v3890_v50, 0.0 }
 0x4c3   :  { %v4420_v18 = vmax.f32 %v3892_v51, 0.0  ;;  %4156 = vmatmul.mubr.bf16.gmra.mrb[108].mxu0 %v14523_v55 }
 0x4c4   :  { %v4421_v56 = vmax.f32 %v3894_v36, 0.0  ;;  %v5464_v59 = vpop.f32.mrb[196].mxu1  ;;  %4165 = vmatprep.mubr.bf16.mxu0 %v14447_v45 }
 0x4c5   :  { %v12786_v34 = vpack.c.bf16 %v4420_v18, %v4418_v5  ;;  %v5465_v28 = vadd.f32 %v5464_v59, %v12266_v4  ;;  %v5466_v24 = vpop.f32.mrb[197].mxu1 }
 0x4c6   :  { %v5467_v37 = vadd.f32 %v5466_v24, %v12269_v10  ;;  %v3897_v32 = vpop.f32.mrb[4].mxu0  ;;  %v5468_v0 = vpop.f32.mrb[198].mxu1  ;;  %v12790_v54 = vpack.c.bf16 %v4421_v56, %v4419_v47 }
 0x4c7   :  { %14524 = vst [vmem:[#allocation46_spill] sm:$0xff] %v12786_v34  ;;  %v7007_v63 = vmax.f32 %v7006_v46, %v5465_v28  ;;  %v3898_v51 = vadd.f32 %v3897_v32, %v11758_v61  ;;  %v5469_v50 = vadd.f32 %v5468_v0, %v12266_v4  ;;  %v3899_v44 = vpop.f32.mrb[5].mxu0  ;;  %v5470_v36 = vpop.f32.mrb[199].mxu1 }
 0x4c8   :  { %14525 = vst [vmem:[#allocation92_spill] sm:$0xff] %v12790_v54  ;;  %v7100_v55 = vmax.f32 %v7099_v60, %v5467_v37  ;;  %v3900_v5 = vadd.f32 %v3899_v44, %v11762_v41  ;;  %v5471_v18 = vadd.f32 %v5470_v36, %v12269_v10  ;;  %v3901_v59 = vpop.f32.mrb[6].mxu0  ;;  %5732 = vmatprep.mubr.bf16.mxu1 %v12790_v54 }
 0x4c9   :  { %v7008_v24 = vmax.f32 %v7007_v63, %v5469_v50  ;;  %v3902_v14 = vadd.f32 %v3901_v59, %v11758_v61  ;;  %v3903_v47 = vpop.f32.mrb[7].mxu0  ;;  %5733 = vmatmul.mubr.bf16.gmra.mrb[48].mxu1 %v12786_v34  ;;  %v4422_v56 = vmax.f32 %v3898_v51, 0.0 }
 0x4ca   :  { %v7101_v46 = vmax.f32 %v7100_v55, %v5471_v18  ;;  %v3904_v32 = vadd.f32 %v3903_v47, %v11762_v41  ;;  %v4423_v60 = vmax.f32 %v3900_v5, 0.0 }
 0x4cb   :  { %v4424_v28 = vmax.f32 %v3902_v14, 0.0  ;;  %4166 = vmatmul.mubr.bf16.gmra.mrb[112].mxu0 %v12112_v35 }
 0x4cc   :  { %v4425_v37 = vmax.f32 %v3904_v32, 0.0  ;;  %v5474_v0 = vpop.f32.mrb[200].mxu1  ;;  %4175 = vmatprep.mubr.bf16.mxu0 %v14447_v45 }
 0x4cd   :  { %v12802_v44 = vpack.c.bf16 %v4424_v28, %v4422_v56  ;;  %v5475_v63 = vadd.f32 %v5474_v0, %v12266_v4  ;;  %v5476_v50 = vpop.f32.mrb[201].mxu1 }
 0x4ce   :  { %v5477_v36 = vadd.f32 %v5476_v50, %v12269_v10  ;;  %v3907_v59 = vpop.f32.mrb[8].mxu0  ;;  %v5478_v55 = vpop.f32.mrb[202].mxu1  ;;  %v12806_v18 = vpack.c.bf16 %v4425_v37, %v4423_v60 }
 0x4cf   :  { %14526 = vst [vmem:[#allocation93_spill] sm:$0xff] %v12802_v44  ;;  %v7009_v51 = vmax.f32 %v7008_v24, %v5475_v63  ;;  %v3908_v14 = vadd.f32 %v3907_v59, %v11758_v61  ;;  %v5479_v35 = vadd.f32 %v5478_v55, %v12266_v4  ;;  %v3909_v5 = vpop.f32.mrb[9].mxu0  ;;  %v5480_v47 = vpop.f32.mrb[203].mxu1 }
 0x4d0   :  { %14527 = vst [vmem:[#allocation94_spill] sm:$0xff] %v12806_v18  ;;  %v7102_v32 = vmax.f32 %v7101_v46, %v5477_v36  ;;  %v3910_v45 = vadd.f32 %v3909_v5, %v11762_v41  ;;  %v5481_v56 = vadd.f32 %v5480_v47, %v12269_v10  ;;  %v3911_v28 = vpop.f32.mrb[10].mxu0  ;;  %5742 = vmatprep.mubr.bf16.mxu1 %v12806_v18  ;;  %v14528_v5 = vld [vmem:[#allocation22_spill] sm:$0xff] }
 0x4d1   :  { %v7010_v0 = vmax.f32 %v7009_v51, %v5479_v35  ;;  %v3912_v50 = vadd.f32 %v3911_v28, %v11758_v61  ;;  %v3913_v60 = vpop.f32.mrb[11].mxu0  ;;  %5743 = vmatmul.mubr.bf16.gmra.mrb[52].mxu1 %v12802_v44  ;;  %v4426_v63 = vmax.f32 %v3908_v14, 0.0 }
 0x4d2   :  { %v7103_v24 = vmax.f32 %v7102_v32, %v5481_v56  ;;  %v3914_v37 = vadd.f32 %v3913_v60, %v11762_v41  ;;  %v4427_v46 = vmax.f32 %v3910_v45, 0.0 }
 0x4d3   :  { %v4428_v59 = vmax.f32 %v3912_v50, 0.0  ;;  %4176 = vmatmul.mubr.bf16.gmra.mrb[116].mxu0 %v12108_v26 }
 0x4d4   :  { %v4429_v36 = vmax.f32 %v3914_v37, 0.0  ;;  %v5484_v55 = vpop.f32.mrb[204].mxu1  ;;  %6065 = vmatprep.mubr.bf16.mxu0 %v14528_v5 }
 0x4d5   :  { %v12818_v47 = vpack.c.bf16 %v4428_v59, %v4426_v63  ;;  %v5485_v51 = vadd.f32 %v5484_v55, %v12266_v4  ;;  %v5486_v35 = vpop.f32.mrb[205].mxu1 }
 0x4d6   :  { %v5487_v28 = vadd.f32 %v5486_v35, %v12269_v10  ;;  %v3917_v44 = vpop.f32.mrb[12].mxu0  ;;  %v5488_v32 = vpop.f32.mrb[206].mxu1  ;;  %v12822_v56 = vpack.c.bf16 %v4429_v36, %v4427_v46 }
 0x4d7   :  { %14529 = vst [vmem:[#allocation22_spill] sm:$0xff] %v12818_v47  ;;  %v7011_v14 = vmax.f32 %v7010_v0, %v5485_v51  ;;  %v3918_v50 = vadd.f32 %v3917_v44, %v11758_v61  ;;  %v5489_v26 = vadd.f32 %v5488_v32, %v12266_v4  ;;  %v3919_v45 = vpop.f32.mrb[13].mxu0  ;;  %v5490_v60 = vpop.f32.mrb[207].mxu1  ;;  %v14531_v32 = vld [vmem:[#allocation21_spill] sm:$0xff] }
 0x4d8   :  { %14530 = vst [vmem:[#allocation95_spill] sm:$0xff] %v12822_v56  ;;  %v7104_v37 = vmax.f32 %v7103_v24, %v5487_v28  ;;  %v3920_v63 = vadd.f32 %v3919_v45, %v11762_v41  ;;  %v5491_v59 = vadd.f32 %v5490_v60, %v12269_v10  ;;  %v3921_v55 = vpop.f32.mrb[14].mxu0  ;;  %5752 = vmatprep.mubr.bf16.mxu1 %v12822_v56  ;;  %v14532_v60 = vld [vmem:[#allocation16_spill] sm:$0xff] }
 0x4d9   :  { %v7012_v5 = vmax.f32 %v7011_v14, %v5489_v26  ;;  %v3922_v35 = vadd.f32 %v3921_v55, %v11758_v61  ;;  %v3923_v46 = vpop.f32.mrb[15].mxu0  ;;  %5753 = vmatmul.mubr.bf16.gmra.mrb[56].mxu1 %v12818_v47  ;;  %v4430_v36 = vmax.f32 %v3918_v50, 0.0 }
 0x4da   :  { %v7105_v0 = vmax.f32 %v7104_v37, %v5491_v59  ;;  %v3924_v44 = vadd.f32 %v3923_v46, %v11762_v41  ;;  %v4431_v24 = vmax.f32 %v3920_v63, 0.0 }
 0x4db   :  { %v4432_v51 = vmax.f32 %v3922_v35, 0.0  ;;  %6066 = vmatmul.mubr.bf16.vlgmr.msra.gmra.mrb[120].mxu0 %v14531_v32 }
 0x4dc   :  { %v4433_v28 = vmax.f32 %v3924_v44, 0.0  ;;  %v5494_v45 = vpop.f32.mrb[208].mxu1  ;;  %6075 = vmatprep.mubr.bf16.mxu0 %v14532_v60 }
 0x4dd   :  { %v12834_v18 = vpack.c.bf16 %v4432_v51, %v4430_v36  ;;  %v5495_v14 = vadd.f32 %v5494_v45, %v12266_v4  ;;  %v5496_v26 = vpop.f32.mrb[209].mxu1 }
 0x4de   :  { %v5497_v55 = vadd.f32 %v5496_v26, %v12269_v10  ;;  %v3927_v47 = vpop.f32.mrb[16].mxu0  ;;  %v5498_v37 = vpop.f32.mrb[210].mxu1  ;;  %v12838_v59 = vpack.c.bf16 %v4433_v28, %v4431_v24 }
 0x4df   :  { %14533 = vst [vmem:[#allocation21_spill] sm:$0xff] %v12834_v18  ;;  %v7013_v50 = vmax.f32 %v7012_v5, %v5495_v14  ;;  %v3928_v35 = vadd.f32 %v3927_v47, %v11758_v61  ;;  %v5499_v63 = vadd.f32 %v5498_v37, %v12266_v4  ;;  %v3929_v46 = vpop.f32.mrb[17].mxu0  ;;  %v5500_v44 = vpop.f32.mrb[211].mxu1  ;;  %v14535_v37 = vld [vmem:[#allocation8_spill] sm:$0xff] }
 0x4e0   :  { %14534 = vst [vmem:[#allocation16_spill] sm:$0xff] %v12838_v59  ;;  %v7106_v32 = vmax.f32 %v7105_v0, %v5497_v55  ;;  %v3930_v36 = vadd.f32 %v3929_v46, %v11762_v41  ;;  %v5501_v51 = vadd.f32 %v5500_v44, %v12269_v10  ;;  %v3931_v45 = vpop.f32.mrb[18].mxu0  ;;  %5762 = vmatprep.mubr.bf16.mxu1 %v12838_v59  ;;  %v14536_v44 = vld [vmem:[#allocation26_spill] sm:$0xff] }
 0x4e1   :  { %v7014_v60 = vmax.f32 %v7013_v50, %v5499_v63  ;;  %v3932_v26 = vadd.f32 %v3931_v45, %v11758_v61  ;;  %v3933_v24 = vpop.f32.mrb[19].mxu0  ;;  %5763 = vmatmul.mubr.bf16.gmra.mrb[60].mxu1 %v12834_v18  ;;  %v4434_v28 = vmax.f32 %v3928_v35, 0.0 }
 0x4e2   :  { %v7107_v5 = vmax.f32 %v7106_v32, %v5501_v51  ;;  %v3934_v47 = vadd.f32 %v3933_v24, %v11762_v41  ;;  %v4435_v0 = vmax.f32 %v3930_v36, 0.0 }
 0x4e3   :  { %v4436_v14 = vmax.f32 %v3932_v26, 0.0  ;;  %6076 = vmatmul.mubr.bf16.gmra.mrb[124].mxu0 %v14535_v37 }
 0x4e4   :  { %v4437_v55 = vmax.f32 %v3934_v47, 0.0  ;;  %v5504_v46 = vpop.f32.mrb[212].mxu1  ;;  %6085 = vmatprep.mubr.bf16.mxu0 %v14536_v44 }
 0x4e5   :  { %v12850_v56 = vpack.c.bf16 %v4436_v14, %v4434_v28  ;;  %v5505_v50 = vadd.f32 %v5504_v46, %v12266_v4  ;;  %v5506_v63 = vpop.f32.mrb[213].mxu1 }
 0x4e6   :  { %v5507_v45 = vadd.f32 %v5506_v63, %v12269_v10  ;;  %v3937_v18 = vpop.f32.mrb[20].mxu0  ;;  %v5508_v32 = vpop.f32.mrb[214].mxu1  ;;  %v12854_v51 = vpack.c.bf16 %v4437_v55, %v4435_v0 }
 0x4e7   :  { %14537 = vst [vmem:[#allocation8_spill] sm:$0xff] %v12850_v56  ;;  %v7015_v35 = vmax.f32 %v7014_v60, %v5505_v50  ;;  %v3938_v26 = vadd.f32 %v3937_v18, %v11758_v61  ;;  %v5509_v36 = vadd.f32 %v5508_v32, %v12266_v4  ;;  %v3939_v24 = vpop.f32.mrb[21].mxu0  ;;  %v5510_v47 = vpop.f32.mrb[215].mxu1  ;;  %v14539_v32 = vld [vmem:[#allocation14_spill] sm:$0xff] }
 0x4e8   :  { %14538 = vst [vmem:[#allocation26_spill] sm:$0xff] %v12854_v51  ;;  %v7108_v37 = vmax.f32 %v7107_v5, %v5507_v45  ;;  %v3940_v28 = vadd.f32 %v3939_v24, %v11762_v41  ;;  %v5511_v14 = vadd.f32 %v5510_v47, %v12269_v10  ;;  %v3941_v46 = vpop.f32.mrb[22].mxu0  ;;  %5772 = vmatprep.mubr.bf16.mxu1 %v12854_v51  ;;  %v14540_v47 = vld [vmem:[#allocation34_spill] sm:$0xff] }
 0x4e9   :  { %v7016_v44 = vmax.f32 %v7015_v35, %v5509_v36  ;;  %v3942_v63 = vadd.f32 %v3941_v46, %v11758_v61  ;;  %v3943_v0 = vpop.f32.mrb[23].mxu0  ;;  %5773 = vmatmul.mubr.bf16.gmra.mrb[64].mxu1 %v12850_v56  ;;  %v4438_v55 = vmax.f32 %v3938_v26, 0.0 }
 0x4ea   :  { %v7109_v60 = vmax.f32 %v7108_v37, %v5511_v14  ;;  %v3944_v18 = vadd.f32 %v3943_v0, %v11762_v41  ;;  %v4439_v5 = vmax.f32 %v3940_v28, 0.0 }
 0x4eb   :  { %v4440_v50 = vmax.f32 %v3942_v63, 0.0  ;;  %6086 = vmatmul.mubr.bf16.gmra.mrb[128].mxu0 %v14539_v32 }
 0x4ec   :  { %v4441_v45 = vmax.f32 %v3944_v18, 0.0  ;;  %v5514_v24 = vpop.f32.mrb[216].mxu1  ;;  %6095 = vmatprep.mubr.bf16.mxu0 %v14540_v47 }
 0x4ed   :  { %v12866_v59 = vpack.c.bf16 %v4440_v50, %v4438_v55  ;;  %v5515_v35 = vadd.f32 %v5514_v24, %v12266_v4  ;;  %v5516_v36 = vpop.f32.mrb[217].mxu1 }
 0x4ee   :  { %v5517_v46 = vadd.f32 %v5516_v36, %v12269_v10  ;;  %v3947_v56 = vpop.f32.mrb[24].mxu0  ;;  %v5518_v37 = vpop.f32.mrb[218].mxu1  ;;  %v12870_v14 = vpack.c.bf16 %v4441_v45, %v4439_v5 }
 0x4ef   :  { %14541 = vst [vmem:[#allocation14_spill] sm:$0xff] %v12866_v59  ;;  %v7017_v26 = vmax.f32 %v7016_v44, %v5515_v35  ;;  %v3948_v63 = vadd.f32 %v3947_v56, %v11758_v61  ;;  %v5519_v28 = vadd.f32 %v5518_v37, %v12266_v4  ;;  %v3949_v0 = vpop.f32.mrb[25].mxu0  ;;  %v5520_v18 = vpop.f32.mrb[219].mxu1  ;;  %v14543_v37 = vld [vmem:[#allocation24_spill] sm:$0xff] }
 0x4f0   :  { %14542 = vst [vmem:[#allocation34_spill] sm:$0xff] %v12870_v14  ;;  %v7110_v32 = vmax.f32 %v7109_v60, %v5517_v46  ;;  %v3950_v55 = vadd.f32 %v3949_v0, %v11762_v41  ;;  %v5521_v50 = vadd.f32 %v5520_v18, %v12269_v10  ;;  %v3951_v24 = vpop.f32.mrb[26].mxu0  ;;  %5782 = vmatprep.mubr.bf16.mxu1 %v12870_v14  ;;  %v14544_v18 = vld [vmem:[#allocation11_spill] sm:$0xff] }
 0x4f1   :  { %v7018_v47 = vmax.f32 %v7017_v26, %v5519_v28  ;;  %v3952_v36 = vadd.f32 %v3951_v24, %v11758_v61  ;;  %v3953_v5 = vpop.f32.mrb[27].mxu0  ;;  %5783 = vmatmul.mubr.bf16.gmra.mrb[68].mxu1 %v12866_v59  ;;  %v4442_v45 = vmax.f32 %v3948_v63, 0.0 }
 0x4f2   :  { %v7111_v44 = vmax.f32 %v7110_v32, %v5521_v50  ;;  %v3954_v56 = vadd.f32 %v3953_v5, %v11762_v41  ;;  %v4443_v60 = vmax.f32 %v3950_v55, 0.0 }
 0x4f3   :  { %v4444_v35 = vmax.f32 %v3952_v36, 0.0  ;;  %6096 = vmatmul.mubr.bf16.gmra.mrb[132].mxu0 %v14543_v37 }
 0x4f4   :  { %v4445_v46 = vmax.f32 %v3954_v56, 0.0  ;;  %v5524_v0 = vpop.f32.mrb[220].mxu1  ;;  %6105 = vmatprep.mubr.bf16.mxu0 %v14544_v18 }
 0x4f5   :  { %v12882_v51 = vpack.c.bf16 %v4444_v35, %v4442_v45  ;;  %v5525_v26 = vadd.f32 %v5524_v0, %v12266_v4  ;;  %v5526_v28 = vpop.f32.mrb[221].mxu1 }
 0x4f6   :  { %v5527_v24 = vadd.f32 %v5526_v28, %v12269_v10  ;;  %v3957_v59 = vpop.f32.mrb[28].mxu0  ;;  %v5528_v32 = vpop.f32.mrb[222].mxu1  ;;  %v12886_v50 = vpack.c.bf16 %v4445_v46, %v4443_v60 }
 0x4f7   :  { %14545 = vst [vmem:[#allocation24_spill] sm:$0xff] %v12882_v51  ;;  %v7019_v63 = vmax.f32 %v7018_v47, %v5525_v26  ;;  %v3958_v36 = vadd.f32 %v3957_v59, %v11758_v61  ;;  %v5529_v55 = vadd.f32 %v5528_v32, %v12266_v4  ;;  %v3959_v5 = vpop.f32.mrb[29].mxu0  ;;  %v5530_v56 = vpop.f32.mrb[223].mxu1  ;;  %v14547_v32 = vld [vmem:[#allocation9_spill] sm:$0xff] }
 0x4f8   :  { %14546 = vst [vmem:[#allocation11_spill] sm:$0xff] %v12886_v50  ;;  %v7112_v37 = vmax.f32 %v7111_v44, %v5527_v24  ;;  %v3960_v45 = vadd.f32 %v3959_v5, %v11762_v41  ;;  %v5531_v35 = vadd.f32 %v5530_v56, %v12269_v10  ;;  %v3961_v0 = vpop.f32.mrb[30].mxu0  ;;  %5792 = vmatprep.mubr.bf16.mxu1 %v12886_v50  ;;  %v14548_v56 = vld [vmem:[#allocation13_spill] sm:$0xff] }
 0x4f9   :  { %v7020_v18 = vmax.f32 %v7019_v63, %v5529_v55  ;;  %v3962_v28 = vadd.f32 %v3961_v0, %v11758_v61  ;;  %v3963_v60 = vpop.f32.mrb[31].mxu0  ;;  %5793 = vmatmul.mubr.bf16.gmra.mrb[72].mxu1 %v12882_v51  ;;  %v4446_v46 = vmax.f32 %v3958_v36, 0.0 }
 0x4fa   :  { %v7113_v47 = vmax.f32 %v7112_v37, %v5531_v35  ;;  %v3964_v59 = vadd.f32 %v3963_v60, %v11762_v41  ;;  %v4447_v44 = vmax.f32 %v3960_v45, 0.0 }
 0x4fb   :  { %v4448_v26 = vmax.f32 %v3962_v28, 0.0  ;;  %6106 = vmatmul.mubr.bf16.gmra.mrb[136].mxu0 %v14547_v32 }
 0x4fc   :  { %v4449_v24 = vmax.f32 %v3964_v59, 0.0  ;;  %v5534_v5 = vpop.f32.mrb[224].mxu1  ;;  %6115 = vmatprep.mubr.bf16.mxu0 %v14548_v56 }
 0x4fd   :  { %v12898_v14 = vpack.c.bf16 %v4448_v26, %v4446_v46  ;;  %v5535_v63 = vadd.f32 %v5534_v5, %v12266_v4  ;;  %v5536_v55 = vpop.f32.mrb[225].mxu1 }
 0x4fe   :  { %v5537_v0 = vadd.f32 %v5536_v55, %v12269_v10  ;;  %v3967_v51 = vpop.f32.mrb[32].mxu0  ;;  %v5538_v37 = vpop.f32.mrb[226].mxu1  ;;  %v12902_v35 = vpack.c.bf16 %v4449_v24, %v4447_v44 }
 0x4ff   :  { %14549 = vst [vmem:[#allocation9_spill] sm:$0xff] %v12898_v14  ;;  %v7021_v36 = vmax.f32 %v7020_v18, %v5535_v63  ;;  %v3968_v28 = vadd.f32 %v3967_v51, %v11758_v61  ;;  %v5539_v45 = vadd.f32 %v5538_v37, %v12266_v4  ;;  %v3969_v60 = vpop.f32.mrb[33].mxu0  ;;  %v5540_v59 = vpop.f32.mrb[227].mxu1  ;;  %v14551_v37 = vld [vmem:[#allocation12_spill] sm:$0xff] }
 0x500   :  { %14550 = vst [vmem:[#allocation13_spill] sm:$0xff] %v12902_v35  ;;  %v7114_v32 = vmax.f32 %v7113_v47, %v5537_v0  ;;  %v3970_v46 = vadd.f32 %v3969_v60, %v11762_v41  ;;  %v5541_v26 = vadd.f32 %v5540_v59, %v12269_v10  ;;  %v3971_v5 = vpop.f32.mrb[34].mxu0  ;;  %5802 = vmatprep.mubr.bf16.mxu1 %v12902_v35  ;;  %v14552_v59 = vld [vmem:[#allocation17_spill] sm:$0xff] }
 0x501   :  { %v7022_v56 = vmax.f32 %v7021_v36, %v5539_v45  ;;  %v3972_v55 = vadd.f32 %v3971_v5, %v11758_v61  ;;  %v3973_v44 = vpop.f32.mrb[35].mxu0  ;;  %5803 = vmatmul.mubr.bf16.gmra.mrb[76].mxu1 %v12898_v14  ;;  %v4450_v24 = vmax.f32 %v3968_v28, 0.0  ;;  %v9441_v28 = vld [vmem:[%s14134_s10 + $0x4] ss:$8 sps:$4 sm:$0xff]  }
 0x502   :  { %v7115_v18 = vmax.f32 %v7114_v32, %v5541_v26  ;;  %v3974_v51 = vadd.f32 %v3973_v44, %v11762_v41  ;;  %v4451_v47 = vmax.f32 %v3970_v46, 0.0  ;;  %v9439_v32 = vld [vmem:[%s14134_s10] ss:$8 sps:$4 sm:$0xff]   ;;  %8123 = vmatprep.subr.bf16.mxu1 %v9441_v28 }
 0x503   :  { %v4452_v63 = vmax.f32 %v3972_v55, 0.0  ;;  %6116 = vmatmul.mubr.bf16.gmra.mrb[140].mxu0 %v14551_v37  ;;  %8124 = vmatpush1.bf16.msra.mxu1 %v9439_v32 }
 0x504   :  { %v4453_v0 = vmax.f32 %v3974_v51, 0.0  ;;  %v5544_v60 = vpop.f32.mrb[228].mxu1  ;;  %6125 = vmatprep.mubr.bf16.mxu0 %v14552_v59 }
 0x505   :  { %v12914_v50 = vpack.c.bf16 %v4452_v63, %v4450_v24  ;;  %v5545_v36 = vadd.f32 %v5544_v60, %v12266_v4  ;;  %v5546_v45 = vpop.f32.mrb[229].mxu1 }
 0x506   :  { %v5547_v26 = vadd.f32 %v5546_v45, %v12269_v10  ;;  %v3977_v46 = vpop.f32.mrb[36].mxu0  ;;  %v5548_v5 = vpop.f32.mrb[230].mxu1  ;;  %v12924_v55 = vpack.c.bf16 %v4453_v0, %v4451_v47 }
 0x507   :  { %14553 = vst [vmem:[#allocation12_spill] sm:$0xff] %v12914_v50  ;;  %v7023_v44 = vmax.f32 %v7022_v56, %v5545_v36  ;;  %v3978_v51 = vadd.f32 %v3977_v46, %v11758_v61  ;;  %v5549_v24 = vadd.f32 %v5548_v5, %v12266_v4  ;;  %v3979_v63 = vpop.f32.mrb[37].mxu0  ;;  %v5550_v37 = vpop.f32.mrb[231].mxu1 }
 0x508   :  { %14554 = vst [vmem:[#allocation17_spill] sm:$0xff] %v12924_v55  ;;  %v7116_v60 = vmax.f32 %v7115_v18, %v5547_v26  ;;  %v3980_v59 = vadd.f32 %v3979_v63, %v11762_v41  ;;  %v5551_v14 = vadd.f32 %v5550_v37, %v12269_v10  ;;  %v3981_v35 = vpop.f32.mrb[38].mxu0  ;;  %5812 = vmatprep.mubr.bf16.mxu1 %v12924_v55  ;;  %v14555_v18 = vld [vmem:[#allocation15_spill] sm:$0xff] }
 0x509   :  { %v7024_v45 = vmax.f32 %v7023_v44, %v5549_v24  ;;  %v3982_v47 = vadd.f32 %v3981_v35, %v11758_v61  ;;  %v3983_v56 = vpop.f32.mrb[39].mxu0  ;;  %5813 = vmatmul.mubr.bf16.gmra.mrb[80].mxu1 %v12914_v50  ;;  %v4454_v46 = vmax.f32 %v3978_v51, 0.0  ;;  %v14556_v37 = vld [vmem:[#allocation23_spill] sm:$0xff] }
 0x50a   :  { %v7117_v0 = vmax.f32 %v7116_v60, %v5551_v14  ;;  %v3984_v36 = vadd.f32 %v3983_v56, %v11762_v41  ;;  %v4455_v26 = vmax.f32 %v3980_v59, 0.0 }
 0x50b   :  { %v4456_v28 = vmax.f32 %v3982_v47, 0.0  ;;  %6126 = vmatmul.mubr.bf16.gmra.mrb[144].mxu0 %v14555_v18 }
 0x50c   :  { %v4457_v5 = vmax.f32 %v3984_v36, 0.0  ;;  %v5554_v63 = vpop.f32.mrb[232].mxu1  ;;  %6135 = vmatprep.mubr.bf16.mxu0 %v14556_v37 }
 0x50d   :  { %v12936_v55 = vpack.c.bf16 %v4456_v28, %v4454_v46  ;;  %v5555_v32 = vadd.f32 %v5554_v63, %v12266_v4  ;;  %v5556_v35 = vpop.f32.mrb[233].mxu1 }
 0x50e   :  { %v5557_v44 = vadd.f32 %v5556_v35, %v12269_v10  ;;  %v3987_v24 = vpop.f32.mrb[40].mxu0  ;;  %v5558_v14 = vpop.f32.mrb[234].mxu1  ;;  %v12940_v60 = vpack.c.bf16 %v4457_v5, %v4455_v26 }
 0x50f   :  { %14557 = vst [vmem:[#allocation15_spill] sm:$0xff] %v12936_v55  ;;  %v7025_v51 = vmax.f32 %v7024_v45, %v5555_v32  ;;  %v3988_v47 = vadd.f32 %v3987_v24, %v11758_v61  ;;  %v5559_v59 = vadd.f32 %v5558_v14, %v12266_v4  ;;  %v3989_v56 = vpop.f32.mrb[41].mxu0  ;;  %v5560_v36 = vpop.f32.mrb[235].mxu1  ;;  %v14559_v14 = vld [vmem:[#allocation18_spill] sm:$0xff] }
 0x510   :  { %14558 = vst [vmem:[#allocation23_spill] sm:$0xff] %v12940_v60  ;;  %v7118_v18 = vmax.f32 %v7117_v0, %v5557_v44  ;;  %v3990_v46 = vadd.f32 %v3989_v56, %v11762_v41  ;;  %v5561_v28 = vadd.f32 %v5560_v36, %v12269_v10  ;;  %v3991_v63 = vpop.f32.mrb[42].mxu0  ;;  %5822 = vmatprep.mubr.bf16.mxu1 %v12940_v60  ;;  %v14560_v36 = vld [vmem:[#allocation27_spill] sm:$0xff] }
 0x511   :  { %v7026_v37 = vmax.f32 %v7025_v51, %v5559_v59  ;;  %v3992_v35 = vadd.f32 %v3991_v63, %v11758_v61  ;;  %v3993_v26 = vpop.f32.mrb[43].mxu0  ;;  %5823 = vmatmul.mubr.bf16.gmra.mrb[84].mxu1 %v12936_v55  ;;  %v4458_v32 = vmax.f32 %v3988_v47, 0.0 }
 0x512   :  { %v7119_v45 = vmax.f32 %v7118_v18, %v5561_v28  ;;  %v3994_v5 = vadd.f32 %v3993_v26, %v11762_v41  ;;  %v4459_v0 = vmax.f32 %v3990_v46, 0.0 }
 0x513   :  { %v4460_v24 = vmax.f32 %v3992_v35, 0.0  ;;  %6136 = vmatmul.mubr.bf16.gmra.mrb[148].mxu0 %v14559_v14 }
 0x514   :  { %v4461_v44 = vmax.f32 %v3994_v5, 0.0  ;;  %v5564_v56 = vpop.f32.mrb[236].mxu1  ;;  %6145 = vmatprep.mubr.bf16.mxu0 %v14560_v36 }
 0x515   :  { %v12952_v50 = vpack.c.bf16 %v4460_v24, %v4458_v32  ;;  %v5565_v51 = vadd.f32 %v5564_v56, %v12266_v4  ;;  %v5566_v59 = vpop.f32.mrb[237].mxu1 }
 0x516   :  { %v5567_v63 = vadd.f32 %v5566_v59, %v12269_v10  ;;  %v3997_v55 = vpop.f32.mrb[44].mxu0  ;;  %v5568_v18 = vpop.f32.mrb[238].mxu1  ;;  %v12956_v28 = vpack.c.bf16 %v4461_v44, %v4459_v0 }
 0x517   :  { %14561 = vst [vmem:[#allocation18_spill] sm:$0xff] %v12952_v50  ;;  %v7027_v47 = vmax.f32 %v7026_v37, %v5565_v51  ;;  %v3998_v35 = vadd.f32 %v3997_v55, %v11758_v61  ;;  %v5569_v46 = vadd.f32 %v5568_v18, %v12266_v4  ;;  %v3999_v26 = vpop.f32.mrb[45].mxu0  ;;  %v5570_v5 = vpop.f32.mrb[239].mxu1  ;;  %v14563_v18 = vld [vmem:[#allocation25_spill] sm:$0xff] }
 0x518   :  { %14562 = vst [vmem:[#allocation27_spill] sm:$0xff] %v12956_v28  ;;  %v7120_v14 = vmax.f32 %v7119_v45, %v5567_v63  ;;  %v4000_v32 = vadd.f32 %v3999_v26, %v11762_v41  ;;  %v5571_v24 = vadd.f32 %v5570_v5, %v12269_v10  ;;  %v4001_v56 = vpop.f32.mrb[46].mxu0  ;;  %5832 = vmatprep.mubr.bf16.mxu1 %v12956_v28  ;;  %v14564_v5 = vld [vmem:[#allocation29_spill] sm:$0xff] }
 0x519   :  { %v7028_v36 = vmax.f32 %v7027_v47, %v5569_v46  ;;  %v4002_v59 = vadd.f32 %v4001_v56, %v11758_v61  ;;  %v4003_v0 = vpop.f32.mrb[47].mxu0  ;;  %5833 = vmatmul.mubr.bf16.gmra.mrb[88].mxu1 %v12952_v50  ;;  %v4462_v44 = vmax.f32 %v3998_v35, 0.0 }
 0x51a   :  { %v7121_v37 = vmax.f32 %v7120_v14, %v5571_v24  ;;  %v4004_v55 = vadd.f32 %v4003_v0, %v11762_v41  ;;  %v4463_v45 = vmax.f32 %v4000_v32, 0.0 }
 0x51b   :  { %v4464_v51 = vmax.f32 %v4002_v59, 0.0  ;;  %6146 = vmatmul.mubr.bf16.gmra.mrb[152].mxu0 %v14563_v18 }
 0x51c   :  { %v4465_v63 = vmax.f32 %v4004_v55, 0.0  ;;  %v5574_v26 = vpop.f32.mrb[240].mxu1  ;;  %6155 = vmatprep.mubr.bf16.mxu0 %v14564_v5 }
 0x51d   :  { %v12968_v60 = vpack.c.bf16 %v4464_v51, %v4462_v44  ;;  %v5575_v47 = vadd.f32 %v5574_v26, %v12266_v4  ;;  %v5576_v46 = vpop.f32.mrb[241].mxu1 }
 0x51e   :  { %v5577_v56 = vadd.f32 %v5576_v46, %v12269_v10  ;;  %v4007_v50 = vpop.f32.mrb[48].mxu0  ;;  %v5578_v14 = vpop.f32.mrb[242].mxu1  ;;  %v12972_v24 = vpack.c.bf16 %v4465_v63, %v4463_v45 }
 0x51f   :  { %14565 = vst [vmem:[#allocation25_spill] sm:$0xff] %v12968_v60  ;;  %v7029_v35 = vmax.f32 %v7028_v36, %v5575_v47  ;;  %v4008_v59 = vadd.f32 %v4007_v50, %v11758_v61  ;;  %v5579_v32 = vadd.f32 %v5578_v14, %v12266_v4  ;;  %v4009_v0 = vpop.f32.mrb[49].mxu0  ;;  %v5580_v55 = vpop.f32.mrb[243].mxu1  ;;  %v14567_v14 = vld [vmem:[#allocation28_spill] sm:$0xff] }
 0x520   :  { %14566 = vst [vmem:[#allocation29_spill] sm:$0xff] %v12972_v24  ;;  %v7122_v18 = vmax.f32 %v7121_v37, %v5577_v56  ;;  %v4010_v44 = vadd.f32 %v4009_v0, %v11762_v41  ;;  %v5581_v51 = vadd.f32 %v5580_v55, %v12269_v10  ;;  %v4011_v26 = vpop.f32.mrb[50].mxu0  ;;  %5842 = vmatprep.mubr.bf16.mxu1 %v12972_v24  ;;  %v14568_v55 = vld [vmem:[#allocation32_spill] sm:$0xff] }
 0x521   :  { %v7030_v5 = vmax.f32 %v7029_v35, %v5579_v32  ;;  %v4012_v46 = vadd.f32 %v4011_v26, %v11758_v61  ;;  %v4013_v45 = vpop.f32.mrb[51].mxu0  ;;  %5843 = vmatmul.mubr.bf16.gmra.mrb[92].mxu1 %v12968_v60  ;;  %v4466_v63 = vmax.f32 %v4008_v59, 0.0 }
 0x522   :  { %v7123_v36 = vmax.f32 %v7122_v18, %v5581_v51  ;;  %v4014_v50 = vadd.f32 %v4013_v45, %v11762_v41  ;;  %v4467_v37 = vmax.f32 %v4010_v44, 0.0 }
 0x523   :  { %v4468_v47 = vmax.f32 %v4012_v46, 0.0  ;;  %6156 = vmatmul.mubr.bf16.gmra.mrb[156].mxu0 %v14567_v14 }
 0x524   :  { %v4469_v56 = vmax.f32 %v4014_v50, 0.0  ;;  %v5584_v0 = vpop.f32.mrb[244].mxu1  ;;  %6165 = vmatprep.mubr.bf16.mxu0 %v14568_v55 }
 0x525   :  { %v12984_v28 = vpack.c.bf16 %v4468_v47, %v4466_v63  ;;  %v5585_v35 = vadd.f32 %v5584_v0, %v12266_v4  ;;  %v5586_v32 = vpop.f32.mrb[245].mxu1 }
 0x526   :  { %v5587_v26 = vadd.f32 %v5586_v32, %v12269_v10  ;;  %v4017_v60 = vpop.f32.mrb[52].mxu0  ;;  %v5588_v18 = vpop.f32.mrb[246].mxu1  ;;  %v12988_v51 = vpack.c.bf16 %v4469_v56, %v4467_v37  ;;  %v14571_v32 = vld [vmem:[#allocation31_spill] sm:$0xff] }
 0x527   :  { %14569 = vst [vmem:[#allocation28_spill] sm:$0xff] %v12984_v28  ;;  %v7031_v59 = vmax.f32 %v7030_v5, %v5585_v35  ;;  %v4018_v46 = vadd.f32 %v4017_v60, %v11758_v61  ;;  %v5589_v44 = vadd.f32 %v5588_v18, %v12266_v4  ;;  %v4019_v45 = vpop.f32.mrb[53].mxu0  ;;  %v5590_v50 = vpop.f32.mrb[247].mxu1 }
 0x528   :  { %14570 = vst [vmem:[#allocation32_spill] sm:$0xff] %v12988_v51  ;;  %v7124_v14 = vmax.f32 %v7123_v36, %v5587_v26  ;;  %v4020_v63 = vadd.f32 %v4019_v45, %v11762_v41  ;;  %v5591_v47 = vadd.f32 %v5590_v50, %v12269_v10  ;;  %v4021_v0 = vpop.f32.mrb[54].mxu0  ;;  %5852 = vmatprep.mubr.bf16.mxu1 %v12988_v51  ;;  %v14572_v50 = vld [vmem:[#allocation36_spill] sm:$0xff] }
 0x529   :  { %v12995_v55 = vmax.f32 %v7031_v59, %v5589_v44  ;;  %v4022_v37 = vadd.f32 %v4021_v0, %v11758_v61  ;;  %v4023_v56 = vpop.f32.mrb[55].mxu0  ;;  %5853 = vmatmul.mubr.bf16.gmra.mrb[96].mxu1 %v12984_v28  ;;  %v4470_v35 = vmax.f32 %v4018_v46, 0.0 }
 0x52a   :  { %v12999_v60 = vmax.f32 %v7124_v14, %v5591_v47  ;;  %v4024_v5 = vadd.f32 %v4023_v56, %v11762_v41  ;;  %v4471_v26 = vmax.f32 %v4020_v63, 0.0 }
 0x52b   :  { %v4472_v36 = vmax.f32 %v4022_v37, 0.0  ;;  %6166 = vmatmul.mubr.bf16.gmra.mrb[160].mxu0 %v14571_v32 }
 0x52c   :  { %v4473_v18 = vmax.f32 %v4024_v5, 0.0  ;;  %v5594_v45 = vpop.f32.mrb[248].mxu1  ;;  %6175 = vmatprep.mubr.bf16.mxu0 %v14572_v50  ;;  %v9442_v50 = vld [vmem:[%s14134_s10 + $0x10] ss:$8 sps:$4 sm:$0xff]  }
 0x52d   :  { %v13004_v59 = vpack.c.bf16 %v4472_v36, %v4470_v35  ;;  %v5596_v44 = vpop.f32.mrb[249].mxu1  ;;  %v5595_v14 = vadd.f32 %v5594_v45, %v12266_v4 }
 0x52e   :  { %v4027_v0 = vpop.f32.mrb[56].mxu0  ;;  %v5598_v51 = vpop.f32.mrb[250].mxu1  ;;  %v13006_v24 = vpack.c.bf16 %v4473_v18, %v4471_v26  ;;  %v5597_v63 = vadd.f32 %v5596_v44, %v12269_v10  ;;  %v9444_v44 = vld [vmem:[%s14134_s10 + $0x14] ss:$8 sps:$4 sm:$0xff]  }
 0x52f   :  { %14573 = vst [vmem:[#allocation31_spill] sm:$0xff] %v13004_v59  ;;  %v4028_v47 = vadd.f32 %v4027_v0, %v11758_v61  ;;  %v5599_v46 = vadd.f32 %v5598_v51, %v12266_v4  ;;  %v4029_v37 = vpop.f32.mrb[57].mxu0  ;;  %v5600_v56 = vpop.f32.mrb[251].mxu1  ;;  %8125 = vmatprep.subr.bf16.mxu1 %v9444_v44 }
 0x530   :  { %14574 = vst [vmem:[#allocation36_spill] sm:$0xff] %v13006_v24  ;;  %v4030_v5 = vadd.f32 %v4029_v37, %v11762_v41  ;;  %v5601_v35 = vadd.f32 %v5600_v56, %v12269_v10  ;;  %v4031_v36 = vpop.f32.mrb[58].mxu0  ;;  %5862 = vmatprep.mubr.bf16.mxu1 %v13006_v24  ;;  %v14575_v56 = vld [vmem:[#allocation35_spill] sm:$0xff]  ;;  %8126 = vmatpush1.bf16.msra.mxu1 %v9442_v50 }
 0x531   :  { %v7318_v32 = vmax.f32 %v5595_v14, %v5599_v46  ;;  %v4032_v26 = vadd.f32 %v4031_v36, %v11758_v61  ;;  %v4033_v18 = vpop.f32.mrb[59].mxu0  ;;  %5863 = vmatmul.mubr.bf16.gmra.mrb[100].mxu1 %v13004_v59  ;;  %v4474_v0 = vmax.f32 %v4028_v47, 0.0  ;;  %v14576_v24 = vld [vmem:[#allocation39_spill] sm:$0xff] }
 0x532   :  { %v7411_v45 = vmax.f32 %v5597_v63, %v5601_v35  ;;  %v4034_v51 = vadd.f32 %v4033_v18, %v11762_v41  ;;  %v4475_v14 = vmax.f32 %v4030_v5, 0.0 }
 0x533   :  { %v4476_v37 = vmax.f32 %v4032_v26, 0.0  ;;  %6176 = vmatmul.mubr.bf16.gmra.mrb[164].mxu0 %v14575_v56 }
 0x534   :  { %v4477_v46 = vmax.f32 %v4034_v51, 0.0  ;;  %v5604_v36 = vpop.f32.mrb[252].mxu1  ;;  %6185 = vmatprep.mubr.bf16.mxu0 %v14576_v24 }
 0x535   :  { %v13026_v63 = vpack.c.bf16 %v4476_v37, %v4474_v0  ;;  %v5605_v35 = vadd.f32 %v5604_v36, %v12266_v4  ;;  %v5606_v18 = vpop.f32.mrb[253].mxu1 }
 0x536   :  { %v5607_v59 = vadd.f32 %v5606_v18, %v12269_v10  ;;  %v4037_v28 = vpop.f32.mrb[60].mxu0  ;;  %v5608_v34 = vpop.f32.mrb[254].mxu1  ;;  %v13030_v47 = vpack.c.bf16 %v4477_v46, %v4475_v14 }
 0x537   :  { %14577 = vst [vmem:[#allocation35_spill] sm:$0xff] %v13026_v63  ;;  %v7319_v26 = vmax.f32 %v7318_v32, %v5605_v35  ;;  %v4038_v5 = vadd.f32 %v4037_v28, %v11758_v61  ;;  %v5609_v51 = vadd.f32 %v5608_v34, %v12266_v4  ;;  %v4039_v56 = vpop.f32.mrb[61].mxu0  ;;  %v5610_v24 = vpop.f32.mrb[255].mxu1  ;;  %v14579_v35 = vld [vmem:[#allocation38_spill] sm:$0xff] }
 0x538   :  { %14578 = vst [vmem:[#allocation39_spill] sm:$0xff] %v13030_v47  ;;  %v7412_v44 = vmax.f32 %v7411_v45, %v5607_v59  ;;  %v4040_v0 = vadd.f32 %v4039_v56, %v11762_v41  ;;  %v5611_v37 = vadd.f32 %v5610_v24, %v12269_v10  ;;  %v4041_v36 = vpop.f32.mrb[62].mxu0  ;;  %5872 = vmatprep.mubr.bf16.mxu1 %v13030_v47  ;;  %v14580_v24 = vld [vmem:[#allocation42_spill] sm:$0xff] }
 0x539   :  { %v7320_v50 = vmax.f32 %v7319_v26, %v5609_v51  ;;  %v4042_v18 = vadd.f32 %v4041_v36, %v11758_v61  ;;  %v4043_v14 = vpop.f32.mrb[63].mxu0  ;;  %5873 = vmatmul.mubr.bf16.gmra.mrb[104].mxu1 %v13026_v63  ;;  %v4478_v34 = vmax.f32 %v4038_v5, 0.0 }
 0x53a   :  { %v7413_v32 = vmax.f32 %v7412_v44, %v5611_v37  ;;  %v4044_v28 = vadd.f32 %v4043_v14, %v11762_v41  ;;  %v4479_v59 = vmax.f32 %v4040_v0, 0.0 }
 0x53b   :  { %v4480_v46 = vmax.f32 %v4042_v18, 0.0  ;;  %6186 = vmatmul.mubr.bf16.gmra.mrb[168].mxu0 %v14579_v35 }
 0x53c   :  { %v4481_v45 = vmax.f32 %v4044_v28, 0.0  ;;  %v5614_v56 = vpop.f32.mrb[0].mxu1  ;;  %6195 = vmatprep.mubr.bf16.mxu0 %v14580_v24 }
 0x53d   :  { %v13042_v54 = vpack.c.bf16 %v4480_v46, %v4478_v34  ;;  %v5615_v26 = vadd.f32 %v5614_v56, %v12266_v4  ;;  %v5616_v51 = vpop.f32.mrb[1].mxu1 }
 0x53e   :  { %v5617_v36 = vadd.f32 %v5616_v51, %v12269_v10  ;;  %v4047_v63 = vpop.f32.mrb[64].mxu0  ;;  %v5618_v44 = vpop.f32.mrb[2].mxu1  ;;  %v13046_v37 = vpack.c.bf16 %v4481_v45, %v4479_v59 }
 0x53f   :  { %14581 = vst [vmem:[#allocation38_spill] sm:$0xff] %v13042_v54  ;;  %v7321_v5 = vmax.f32 %v7320_v50, %v5615_v26  ;;  %v4048_v18 = vadd.f32 %v4047_v63, %v11758_v61  ;;  %v5619_v0 = vadd.f32 %v5618_v44, %v12266_v4  ;;  %v4049_v14 = vpop.f32.mrb[65].mxu0  ;;  %v5620_v28 = vpop.f32.mrb[3].mxu1  ;;  %v14582_v44 = vld [vmem:[#allocation41_spill] sm:$0xff] }
 0x540   :  { %v7414_v35 = vmax.f32 %v7413_v32, %v5617_v36  ;;  %v4050_v34 = vadd.f32 %v4049_v14, %v11762_v41  ;;  %v5621_v46 = vadd.f32 %v5620_v28, %v12269_v10  ;;  %v4051_v56 = vpop.f32.mrb[66].mxu0  ;;  %5882 = vmatprep.mubr.bf16.mxu1 %v13046_v37  ;;  %v14583_v28 = vld [vmem:[#allocation45_spill] sm:$0xff] }
 0x541   :  { %v7322_v24 = vmax.f32 %v7321_v5, %v5619_v0  ;;  %v4052_v51 = vadd.f32 %v4051_v56, %v11758_v61  ;;  %v4053_v59 = vpop.f32.mrb[67].mxu0  ;;  %5883 = vmatmul.mubr.bf16.gmra.mrb[108].mxu1 %v13042_v54  ;;  %v4482_v45 = vmax.f32 %v4048_v18, 0.0 }
 0x542   :  { %v7415_v50 = vmax.f32 %v7414_v35, %v5621_v46  ;;  %v4054_v63 = vadd.f32 %v4053_v59, %v11762_v41  ;;  %v4483_v32 = vmax.f32 %v4050_v34, 0.0 }
 0x543   :  { %v4484_v26 = vmax.f32 %v4052_v51, 0.0  ;;  %6196 = vmatmul.mubr.bf16.gmra.mrb[172].mxu0 %v14582_v44 }
 0x544   :  { %v4485_v36 = vmax.f32 %v4054_v63, 0.0  ;;  %v5624_v14 = vpop.f32.mrb[4].mxu1  ;;  %6205 = vmatprep.mubr.bf16.mxu0 %v14583_v28 }
 0x545   :  { %v13058_v47 = vpack.c.bf16 %v4484_v26, %v4482_v45  ;;  %v5625_v5 = vadd.f32 %v5624_v14, %v12266_v4  ;;  %v5626_v0 = vpop.f32.mrb[5].mxu1 }
 0x546   :  { %v5627_v56 = vadd.f32 %v5626_v0, %v12269_v10  ;;  %v4057_v54 = vpop.f32.mrb[68].mxu0  ;;  %v5628_v35 = vpop.f32.mrb[6].mxu1  ;;  %v13062_v46 = vpack.c.bf16 %v4485_v36, %v4483_v32 }
 0x547   :  { %14584 = vst [vmem:[#allocation42_spill] sm:$0xff] %v13058_v47  ;;  %v7323_v18 = vmax.f32 %v7322_v24, %v5625_v5  ;;  %v4058_v51 = vadd.f32 %v4057_v54, %v11758_v61  ;;  %v5629_v34 = vadd.f32 %v5628_v35, %v12266_v4  ;;  %v4059_v59 = vpop.f32.mrb[69].mxu0  ;;  %v5630_v63 = vpop.f32.mrb[7].mxu1  ;;  %v14585_v35 = vld [vmem:[#allocation44_spill] sm:$0xff] }
 0x548   :  { %v7416_v44 = vmax.f32 %v7415_v50, %v5627_v56  ;;  %v4060_v45 = vadd.f32 %v4059_v59, %v11762_v41  ;;  %v5631_v26 = vadd.f32 %v5630_v63, %v12269_v10  ;;  %v4061_v14 = vpop.f32.mrb[70].mxu0  ;;  %5892 = vmatprep.mubr.bf16.mxu1 %v13062_v46 }
 0x549   :  { %v7324_v28 = vmax.f32 %v7323_v18, %v5629_v34  ;;  %v4062_v0 = vadd.f32 %v4061_v14, %v11758_v61  ;;  %v4063_v32 = vpop.f32.mrb[71].mxu0  ;;  %5893 = vmatmul.mubr.bf16.gmra.mrb[112].mxu1 %v13058_v47  ;;  %v4486_v36 = vmax.f32 %v4058_v51, 0.0 }
 0x54a   :  { %v7417_v24 = vmax.f32 %v7416_v44, %v5631_v26  ;;  %v4064_v54 = vadd.f32 %v4063_v32, %v11762_v41  ;;  %v4487_v50 = vmax.f32 %v4060_v45, 0.0 }
 0x54b   :  { %v4488_v5 = vmax.f32 %v4062_v0, 0.0  ;;  %6206 = vmatmul.mubr.bf16.gmra.mrb[176].mxu0 %v14585_v35 }
 0x54c   :  { %v4489_v56 = vmax.f32 %v4064_v54, 0.0  ;;  %v5634_v59 = vpop.f32.mrb[8].mxu1  ;;  %6215 = vmatprep.mubr.bf16.mxu0 %v12105_v2 }
 0x54d   :  { %v13074_v63 = vpack.c.bf16 %v4488_v5, %v4486_v36  ;;  %v5635_v18 = vadd.f32 %v5634_v59, %v12266_v4  ;;  %v5636_v34 = vpop.f32.mrb[9].mxu1 }
 0x54e   :  { %v5637_v14 = vadd.f32 %v5636_v34, %v12269_v10  ;;  %v4067_v47 = vpop.f32.mrb[72].mxu0  ;;  %v5638_v44 = vpop.f32.mrb[10].mxu1  ;;  %v13078_v26 = vpack.c.bf16 %v4489_v56, %v4487_v50 }
 0x54f   :  { %v7325_v51 = vmax.f32 %v7324_v28, %v5635_v18  ;;  %v4068_v0 = vadd.f32 %v4067_v47, %v11758_v61  ;;  %v5639_v45 = vadd.f32 %v5638_v44, %v12266_v4  ;;  %v4069_v32 = vpop.f32.mrb[73].mxu0  ;;  %v5640_v54 = vpop.f32.mrb[11].mxu1 }
 0x550   :  { %v7418_v35 = vmax.f32 %v7417_v24, %v5637_v14  ;;  %v4070_v2 = vadd.f32 %v4069_v32, %v11762_v41  ;;  %v5641_v36 = vadd.f32 %v5640_v54, %v12269_v10  ;;  %v4071_v5 = vpop.f32.mrb[74].mxu0  ;;  %5902 = vmatprep.mubr.bf16.mxu1 %v13078_v26 }
 0x551   :  { %v7326_v59 = vmax.f32 %v7325_v51, %v5639_v45  ;;  %v4072_v34 = vadd.f32 %v4071_v5, %v11758_v61  ;;  %v4073_v50 = vpop.f32.mrb[75].mxu0  ;;  %5903 = vmatmul.mubr.bf16.gmra.mrb[116].mxu1 %v13074_v63  ;;  %v4490_v56 = vmax.f32 %v4068_v0, 0.0 }
 0x552   :  { %v7419_v28 = vmax.f32 %v7418_v35, %v5641_v36  ;;  %v4074_v47 = vadd.f32 %v4073_v50, %v11762_v41  ;;  %v4491_v24 = vmax.f32 %v4070_v2, 0.0 }
 0x553   :  { %v4492_v18 = vmax.f32 %v4072_v34, 0.0  ;;  %6216 = vmatmul.mubr.bf16.gmra.mrb[180].mxu0 %v12102_v27 }
 0x554   :  { %v4493_v14 = vmax.f32 %v4074_v47, 0.0  ;;  %v5644_v44 = vpop.f32.mrb[12].mxu1  ;;  %6225 = vmatprep.mubr.bf16.mxu0 %v12121_v12 }
 0x555   :  { %v13090_v32 = vpack.c.bf16 %v4492_v18, %v4490_v56  ;;  %v5645_v51 = vadd.f32 %v5644_v44, %v12266_v4  ;;  %v5646_v45 = vpop.f32.mrb[13].mxu1 }
 0x556   :  { %v5647_v54 = vadd.f32 %v5646_v45, %v12269_v10  ;;  %v4077_v5 = vpop.f32.mrb[76].mxu0  ;;  %v5648_v35 = vpop.f32.mrb[14].mxu1  ;;  %v13094_v36 = vpack.c.bf16 %v4493_v14, %v4491_v24 }
 0x557   :  { %14586 = vst [vmem:[#allocation41_spill] sm:$0xff] %v13090_v32  ;;  %v7327_v0 = vmax.f32 %v7326_v59, %v5645_v51  ;;  %v4078_v34 = vadd.f32 %v4077_v5, %v11758_v61  ;;  %v5649_v27 = vadd.f32 %v5648_v35, %v12266_v4  ;;  %v4079_v2 = vpop.f32.mrb[77].mxu0  ;;  %v5650_v50 = vpop.f32.mrb[15].mxu1 }
 0x558   :  { %v7420_v47 = vmax.f32 %v7419_v28, %v5647_v54  ;;  %v4080_v12 = vadd.f32 %v4079_v2, %v11762_v41  ;;  %v5651_v56 = vadd.f32 %v5650_v50, %v12269_v10  ;;  %v4081_v18 = vpop.f32.mrb[78].mxu0  ;;  %5912 = vmatprep.mubr.bf16.mxu1 %v13094_v36 }
 0x559   :  { %v7328_v44 = vmax.f32 %v7327_v0, %v5649_v27  ;;  %v4082_v45 = vadd.f32 %v4081_v18, %v11758_v61  ;;  %v4083_v24 = vpop.f32.mrb[79].mxu0  ;;  %5913 = vmatmul.mubr.bf16.gmra.mrb[120].mxu1 %v13090_v32  ;;  %v4494_v51 = vmax.f32 %v4078_v34, 0.0  ;;  %v9445_v0 = vld [vmem:[%s14134_s10 + $0x20] ss:$8 sps:$4 sm:$0xff]   ;;  %v9447_v27 = vld [vmem:[%s14134_s10 + $0x24] ss:$8 sps:$4 sm:$0xff]  }
 0x55a   :  { %v7421_v59 = vmax.f32 %v7420_v47, %v5651_v56  ;;  %v4084_v14 = vadd.f32 %v4083_v24, %v11762_v41  ;;  %v4495_v5 = vmax.f32 %v4080_v12, 0.0  ;;  %8127 = vmatprep.subr.bf16.mxu1 %v9447_v27 }
 0x55b   :  { %v4496_v35 = vmax.f32 %v4082_v45, 0.0  ;;  %6226 = vmatmul.mubr.bf16.gmra.mrb[184].mxu0 %v12119_v58  ;;  %8128 = vmatpush1.bf16.msra.mxu1 %v9445_v0 }
 0x55c   :  { %v4497_v28 = vmax.f32 %v4084_v14, 0.0  ;;  %v5654_v54 = vpop.f32.mrb[16].mxu1  ;;  %6235 = vmatprep.mubr.bf16.mxu0 %v12133_v38 }
 0x55d   :  { %v13112_v2 = vpack.c.bf16 %v4496_v35, %v4494_v51  ;;  %v5655_v34 = vadd.f32 %v5654_v54, %v12266_v4  ;;  %v5656_v50 = vpop.f32.mrb[17].mxu1 }
 0x55e   :  { %v5657_v47 = vadd.f32 %v5656_v50, %v12269_v10  ;;  %v4087_v58 = vpop.f32.mrb[80].mxu0  ;;  %v5658_v12 = vpop.f32.mrb[18].mxu1  ;;  %v13116_v56 = vpack.c.bf16 %v4497_v28, %v4495_v5 }
 0x55f   :  { %v7329_v38 = vmax.f32 %v7328_v44, %v5655_v34  ;;  %v4088_v18 = vadd.f32 %v4087_v58, %v11758_v61  ;;  %v5659_v45 = vadd.f32 %v5658_v12, %v12266_v4  ;;  %v4089_v24 = vpop.f32.mrb[81].mxu0  ;;  %v5660_v14 = vpop.f32.mrb[19].mxu1 }
 0x560   :  { %v7422_v51 = vmax.f32 %v7421_v59, %v5657_v47  ;;  %v4090_v35 = vadd.f32 %v4089_v24, %v11762_v41  ;;  %v5661_v54 = vadd.f32 %v5660_v14, %v12269_v10  ;;  %v4091_v32 = vpop.f32.mrb[82].mxu0  ;;  %5922 = vmatprep.mubr.bf16.mxu1 %v13116_v56 }
 0x561   :  { %v7330_v50 = vmax.f32 %v7329_v38, %v5659_v45  ;;  %v4092_v5 = vadd.f32 %v4091_v32, %v11758_v61  ;;  %v4093_v28 = vpop.f32.mrb[83].mxu0  ;;  %5923 = vmatmul.mubr.bf16.gmra.mrb[124].mxu1 %v13112_v2  ;;  %v4498_v34 = vmax.f32 %v4088_v18, 0.0 }
 0x562   :  { %v7423_v44 = vmax.f32 %v7422_v51, %v5661_v54  ;;  %v4094_v27 = vadd.f32 %v4093_v28, %v11762_v41  ;;  %v4499_v59 = vmax.f32 %v4090_v35, 0.0 }
 0x563   :  { %v4500_v58 = vmax.f32 %v4092_v5, 0.0  ;;  %6236 = vmatmul.mubr.bf16.gmra.mrb[188].mxu0 %v12131_v43 }
 0x564   :  { %v4501_v0 = vmax.f32 %v4094_v27, 0.0  ;;  %v5664_v47 = vpop.f32.mrb[20].mxu1  ;;  %6245 = vmatprep.mubr.bf16.mxu0 %v12151_v52 }
 0x565   :  { %v13128_v12 = vpack.c.bf16 %v4500_v58, %v4498_v34  ;;  %v5665_v38 = vadd.f32 %v5664_v47, %v12266_v4  ;;  %v5666_v32 = vpop.f32.mrb[21].mxu1 }
 0x566   :  { %v5667_v45 = vadd.f32 %v5666_v32, %v12269_v10  ;;  %v4097_v24 = vpop.f32.mrb[84].mxu0  ;;  %v5668_v14 = vpop.f32.mrb[22].mxu1  ;;  %v13132_v51 = vpack.c.bf16 %v4501_v0, %v4499_v59 }
 0x567   :  { %v7331_v18 = vmax.f32 %v7330_v50, %v5665_v38  ;;  %v4098_v54 = vadd.f32 %v4097_v24, %v11758_v61  ;;  %v5669_v43 = vadd.f32 %v5668_v14, %v12266_v4  ;;  %v4099_v35 = vpop.f32.mrb[85].mxu0  ;;  %v5670_v5 = vpop.f32.mrb[23].mxu1  ;;  %v14587_v24 = vld [vmem:[#allocation47_spill] sm:$0xff] }
 0x568   :  { %v7424_v28 = vmax.f32 %v7423_v44, %v5667_v45  ;;  %v4100_v52 = vadd.f32 %v4099_v35, %v11762_v41  ;;  %v5671_v27 = vadd.f32 %v5670_v5, %v12269_v10  ;;  %v4101_v34 = vpop.f32.mrb[86].mxu0  ;;  %5932 = vmatprep.mubr.bf16.mxu1 %v13132_v51 }
 0x569   :  { %v7332_v58 = vmax.f32 %v7331_v18, %v5669_v43  ;;  %v4102_v47 = vadd.f32 %v4101_v34, %v11758_v61  ;;  %v4103_v59 = vpop.f32.mrb[87].mxu0  ;;  %5933 = vmatmul.mubr.bf16.gmra.mrb[128].mxu1 %v13128_v12  ;;  %v4502_v38 = vmax.f32 %v4098_v54, 0.0 }
 0x56a   :  { %v7425_v50 = vmax.f32 %v7424_v28, %v5671_v27  ;;  %v4104_v0 = vadd.f32 %v4103_v59, %v11762_v41  ;;  %v4503_v44 = vmax.f32 %v4100_v52, 0.0 }
 0x56b   :  { %v4504_v32 = vmax.f32 %v4102_v47, 0.0  ;;  %6246 = vmatmul.mubr.bf16.gmra.mrb[192].mxu0 %v14587_v24 }
 0x56c   :  { %v4505_v45 = vmax.f32 %v4104_v0, 0.0  ;;  %v5674_v14 = vpop.f32.mrb[24].mxu1  ;;  %6255 = vmatprep.mubr.bf16.mxu0 %v12163_v13 }
 0x56d   :  { %v13144_v35 = vpack.c.bf16 %v4504_v32, %v4502_v38  ;;  %v5675_v18 = vadd.f32 %v5674_v14, %v12266_v4  ;;  %v5676_v43 = vpop.f32.mrb[25].mxu1 }
 0x56e   :  { %v5677_v5 = vadd.f32 %v5676_v43, %v12269_v10  ;;  %v4107_v34 = vpop.f32.mrb[88].mxu0  ;;  %v5678_v28 = vpop.f32.mrb[26].mxu1  ;;  %v13148_v27 = vpack.c.bf16 %v4505_v45, %v4503_v44 }
 0x56f   :  { %14588 = vst [vmem:[#allocation45_spill] sm:$0xff] %v13144_v35  ;;  %v7333_v54 = vmax.f32 %v7332_v58, %v5675_v18  ;;  %v4108_v47 = vadd.f32 %v4107_v34, %v11758_v61  ;;  %v5679_v52 = vadd.f32 %v5678_v28, %v12266_v4  ;;  %v4109_v59 = vpop.f32.mrb[89].mxu0  ;;  %v5680_v0 = vpop.f32.mrb[27].mxu1  ;;  %v14589_v28 = vld [vmem:[#allocation48_spill] sm:$0xff] }
 0x570   :  { %v7426_v24 = vmax.f32 %v7425_v50, %v5677_v5  ;;  %v4110_v13 = vadd.f32 %v4109_v59, %v11762_v41  ;;  %v5681_v38 = vadd.f32 %v5680_v0, %v12269_v10  ;;  %v4111_v32 = vpop.f32.mrb[90].mxu0  ;;  %5942 = vmatprep.mubr.bf16.mxu1 %v13148_v27 }
 0x571   :  { %v7334_v14 = vmax.f32 %v7333_v54, %v5679_v52  ;;  %v4112_v43 = vadd.f32 %v4111_v32, %v11758_v61  ;;  %v4113_v44 = vpop.f32.mrb[91].mxu0  ;;  %5943 = vmatmul.mubr.bf16.gmra.mrb[132].mxu1 %v13144_v35  ;;  %v4506_v18 = vmax.f32 %v4108_v47, 0.0 }
 0x572   :  { %v7427_v58 = vmax.f32 %v7426_v24, %v5681_v38  ;;  %v4114_v45 = vadd.f32 %v4113_v44, %v11762_v41  ;;  %v4507_v50 = vmax.f32 %v4110_v13, 0.0 }
 0x573   :  { %v4508_v34 = vmax.f32 %v4112_v43, 0.0  ;;  %6256 = vmatmul.mubr.bf16.gmra.mrb[196].mxu0 %v14589_v28 }
 0x574   :  { %v4509_v5 = vmax.f32 %v4114_v45, 0.0  ;;  %v5684_v59 = vpop.f32.mrb[28].mxu1  ;;  %6265 = vmatprep.mubr.bf16.mxu0 %v12175_v21 }
 0x575   :  { %v13160_v0 = vpack.c.bf16 %v4508_v34, %v4506_v18  ;;  %v5685_v54 = vadd.f32 %v5684_v59, %v12266_v4  ;;  %v5686_v52 = vpop.f32.mrb[29].mxu1 }
 0x576   :  { %v5687_v32 = vadd.f32 %v5686_v52, %v12269_v10  ;;  %v4117_v35 = vpop.f32.mrb[92].mxu0  ;;  %v5688_v24 = vpop.f32.mrb[30].mxu1  ;;  %v13164_v38 = vpack.c.bf16 %v4509_v5, %v4507_v50 }
 0x577   :  { %14590 = vst [vmem:[#allocation44_spill] sm:$0xff] %v13160_v0  ;;  %v7335_v47 = vmax.f32 %v7334_v14, %v5685_v54  ;;  %v4118_v43 = vadd.f32 %v4117_v35, %v11758_v61  ;;  %v5689_v13 = vadd.f32 %v5688_v24, %v12266_v4  ;;  %v4119_v44 = vpop.f32.mrb[93].mxu0  ;;  %v5690_v45 = vpop.f32.mrb[31].mxu1  ;;  %v14591_v24 = vld [vmem:[#allocation49_spill] sm:$0xff] }
 0x578   :  { %v7428_v28 = vmax.f32 %v7427_v58, %v5687_v32  ;;  %v4120_v21 = vadd.f32 %v4119_v44, %v11762_v41  ;;  %v5691_v18 = vadd.f32 %v5690_v45, %v12269_v10  ;;  %v4121_v34 = vpop.f32.mrb[94].mxu0  ;;  %5952 = vmatprep.mubr.bf16.mxu1 %v13164_v38 }
 0x579   :  { %v7336_v59 = vmax.f32 %v7335_v47, %v5689_v13  ;;  %v4122_v52 = vadd.f32 %v4121_v34, %v11758_v61  ;;  %v4123_v50 = vpop.f32.mrb[95].mxu0  ;;  %5953 = vmatmul.mubr.bf16.gmra.mrb[136].mxu1 %v13160_v0  ;;  %v4510_v5 = vmax.f32 %v4118_v43, 0.0 }
 0x57a   :  { %v7429_v14 = vmax.f32 %v7428_v28, %v5691_v18  ;;  %v4124_v35 = vadd.f32 %v4123_v50, %v11762_v41  ;;  %v4511_v58 = vmax.f32 %v4120_v21, 0.0 }
 0x57b   :  { %v4512_v54 = vmax.f32 %v4122_v52, 0.0  ;;  %6266 = vmatmul.mubr.bf16.gmra.mrb[200].mxu0 %v14591_v24 }
 0x57c   :  { %v4513_v32 = vmax.f32 %v4124_v35, 0.0  ;;  %v5694_v44 = vpop.f32.mrb[32].mxu1  ;;  %6275 = vmatprep.mubr.bf16.mxu0 %v12187_v15 }
 0x57d   :  { %v13176_v45 = vpack.c.bf16 %v4512_v54, %v4510_v5  ;;  %v5695_v47 = vadd.f32 %v5694_v44, %v12266_v4  ;;  %v5696_v13 = vpop.f32.mrb[33].mxu1 }
 0x57e   :  { %v5697_v34 = vadd.f32 %v5696_v13, %v12269_v10  ;;  %v4127_v0 = vpop.f32.mrb[96].mxu0  ;;  %v5698_v28 = vpop.f32.mrb[34].mxu1  ;;  %v13180_v18 = vpack.c.bf16 %v4513_v32, %v4511_v58 }
 0x57f   :  { %14592 = vst [vmem:[#allocation47_spill] sm:$0xff] %v13176_v45  ;;  %v7337_v43 = vmax.f32 %v7336_v59, %v5695_v47  ;;  %v4128_v52 = vadd.f32 %v4127_v0, %v11758_v61  ;;  %v5699_v21 = vadd.f32 %v5698_v28, %v12266_v4  ;;  %v4129_v50 = vpop.f32.mrb[97].mxu0  ;;  %v5700_v35 = vpop.f32.mrb[35].mxu1  ;;  %v14594_v28 = vld [vmem:[#allocation50_spill] sm:$0xff] }
 0x580   :  { %14593 = vst [vmem:[#allocation48_spill] sm:$0xff] %v13180_v18  ;;  %v7430_v24 = vmax.f32 %v7429_v14, %v5697_v34  ;;  %v4130_v15 = vadd.f32 %v4129_v50, %v11762_v41  ;;  %v5701_v5 = vadd.f32 %v5700_v35, %v12269_v10  ;;  %v4131_v54 = vpop.f32.mrb[98].mxu0  ;;  %5962 = vmatprep.mubr.bf16.mxu1 %v13180_v18  ;;  %v14614_v18 = vld [vmem:[#allocation60_spill] sm:$0xff] }
 0x581   :  { %v7338_v44 = vmax.f32 %v7337_v43, %v5699_v21  ;;  %v4132_v13 = vadd.f32 %v4131_v54, %v11758_v61  ;;  %v4133_v58 = vpop.f32.mrb[99].mxu0  ;;  %5963 = vmatmul.mubr.bf16.gmra.mrb[140].mxu1 %v13176_v45  ;;  %v4514_v32 = vmax.f32 %v4128_v52, 0.0 }
 0x582   :  { %v7431_v59 = vmax.f32 %v7430_v24, %v5701_v5  ;;  %v4134_v0 = vadd.f32 %v4133_v58, %v11762_v41  ;;  %v4515_v14 = vmax.f32 %v4130_v15, 0.0 }
 0x583   :  { %v4516_v47 = vmax.f32 %v4132_v13, 0.0  ;;  %6276 = vmatmul.mubr.bf16.gmra.mrb[204].mxu0 %v14594_v28 }
 0x584   :  { %v4517_v34 = vmax.f32 %v4134_v0, 0.0  ;;  %v5704_v50 = vpop.f32.mrb[36].mxu1  ;;  %6285 = vmatprep.mubr.bf16.mxu0 %v12199_v62 }
 0x585   :  { %v13192_v35 = vpack.c.bf16 %v4516_v47, %v4514_v32  ;;  %v5705_v43 = vadd.f32 %v5704_v50, %v12266_v4  ;;  %v5706_v21 = vpop.f32.mrb[37].mxu1 }
 0x586   :  { %v5707_v54 = vadd.f32 %v5706_v21, %v12269_v10  ;;  %v4137_v45 = vpop.f32.mrb[100].mxu0  ;;  %v5708_v24 = vpop.f32.mrb[38].mxu1  ;;  %v13196_v5 = vpack.c.bf16 %v4517_v34, %v4515_v14  ;;  %v9450_v34 = vld [vmem:[%s14134_s10 + $0x34] ss:$8 sps:$4 sm:$0xff]  }
 0x587   :  { %14595 = vst [vmem:[#allocation49_spill] sm:$0xff] %v13192_v35  ;;  %v7339_v52 = vmax.f32 %v7338_v44, %v5705_v43  ;;  %v4138_v13 = vadd.f32 %v4137_v45, %v11758_v61  ;;  %v5709_v15 = vadd.f32 %v5708_v24, %v12266_v4  ;;  %v4139_v58 = vpop.f32.mrb[101].mxu0  ;;  %v5710_v0 = vpop.f32.mrb[39].mxu1  ;;  %8129 = vmatprep.subr.bf16.mxu1 %v9450_v34 }
 0x588   :  { %14596 = vst [vmem:[#allocation50_spill] sm:$0xff] %v13196_v5  ;;  %v7432_v28 = vmax.f32 %v7431_v59, %v5707_v54  ;;  %v4140_v62 = vadd.f32 %v4139_v58, %v11762_v41  ;;  %v5711_v32 = vadd.f32 %v5710_v0, %v12269_v10  ;;  %v4141_v47 = vpop.f32.mrb[102].mxu0  ;;  %5972 = vmatprep.mubr.bf16.mxu1 %v13196_v5  ;;  %v9448_v59 = vld [vmem:[%s14134_s10 + $0x30] ss:$8 sps:$4 sm:$0xff]   ;;  %v14597_v58 = vld [vmem:[#allocation52_spill] sm:$0xff] }
 0x589   :  { %v7340_v50 = vmax.f32 %v7339_v52, %v5709_v15  ;;  %v4142_v21 = vadd.f32 %v4141_v47, %v11758_v61  ;;  %v4143_v14 = vpop.f32.mrb[103].mxu0  ;;  %5973 = vmatmul.mubr.bf16.gmra.mrb[144].mxu1 %v13192_v35  ;;  %v4518_v43 = vmax.f32 %v4138_v13, 0.0 }
 0x58a   :  { %v7433_v44 = vmax.f32 %v7432_v28, %v5711_v32  ;;  %v4144_v45 = vadd.f32 %v4143_v14, %v11762_v41  ;;  %v4519_v24 = vmax.f32 %v4140_v62, 0.0  ;;  %8130 = vmatpush1.bf16.msra.mxu1 %v9448_v59 }
 0x58b   :  { %v4520_v54 = vmax.f32 %v4142_v21, 0.0  ;;  %6286 = vmatmul.mubr.bf16.gmra.mrb[208].mxu0 %v12197_v33 }
 0x58c   :  { %v4521_v52 = vmax.f32 %v4144_v45, 0.0  ;;  %v5714_v15 = vpop.f32.mrb[40].mxu1  ;;  %6295 = vmatprep.mubr.bf16.mxu0 %v14597_v58 }
 0x58d   :  { %v13214_v0 = vpack.c.bf16 %v4520_v54, %v4518_v43  ;;  %v5715_v28 = vadd.f32 %v5714_v15, %v12266_v4  ;;  %v5716_v32 = vpop.f32.mrb[41].mxu1 }
 0x58e   :  { %v5717_v47 = vadd.f32 %v5716_v32, %v12269_v10  ;;  %v4147_v14 = vpop.f32.mrb[104].mxu0  ;;  %v5718_v35 = vpop.f32.mrb[42].mxu1  ;;  %v13218_v13 = vpack.c.bf16 %v4521_v52, %v4519_v24 }
 0x58f   :  { %14598 = vst [vmem:[#allocation52_spill] sm:$0xff] %v13214_v0  ;;  %v7341_v21 = vmax.f32 %v7340_v50, %v5715_v28  ;;  %v4148_v33 = vadd.f32 %v4147_v14, %v11758_v61  ;;  %v5719_v62 = vadd.f32 %v5718_v35, %v12266_v4  ;;  %v4149_v45 = vpop.f32.mrb[105].mxu0  ;;  %v5720_v58 = vpop.f32.mrb[43].mxu1  ;;  %v14600_v14 = vld [vmem:[#allocation51_spill] sm:$0xff] }
 0x590   :  { %14599 = vst [vmem:[#allocation96_spill] sm:$0xff] %v13218_v13  ;;  %v7434_v34 = vmax.f32 %v7433_v44, %v5717_v47  ;;  %v4150_v43 = vadd.f32 %v4149_v45, %v11762_v41  ;;  %v5721_v54 = vadd.f32 %v5720_v58, %v12269_v10  ;;  %v4151_v15 = vpop.f32.mrb[106].mxu0  ;;  %5982 = vmatprep.mubr.bf16.mxu1 %v13218_v13  ;;  %v14601_v58 = vld [vmem:[#allocation54_spill] sm:$0xff] }
 0x591   :  { %v7342_v59 = vmax.f32 %v7341_v21, %v5719_v62  ;;  %v4152_v32 = vadd.f32 %v4151_v15, %v11758_v61  ;;  %v4153_v24 = vpop.f32.mrb[107].mxu0  ;;  %5983 = vmatmul.mubr.bf16.gmra.mrb[148].mxu1 %v13214_v0  ;;  %v4522_v35 = vmax.f32 %v4148_v33, 0.0 }
 0x592   :  { %v7435_v50 = vmax.f32 %v7434_v34, %v5721_v54  ;;  %v4154_v52 = vadd.f32 %v4153_v24, %v11762_v41  ;;  %v4523_v44 = vmax.f32 %v4150_v43, 0.0 }
 0x593   :  { %v4524_v28 = vmax.f32 %v4152_v32, 0.0  ;;  %6296 = vmatmul.mubr.bf16.gmra.mrb[212].mxu0 %v14600_v14 }
 0x594   :  { %v4525_v47 = vmax.f32 %v4154_v52, 0.0  ;;  %v5724_v45 = vpop.f32.mrb[44].mxu1  ;;  %6305 = vmatprep.mubr.bf16.mxu0 %v14601_v58 }
 0x595   :  { %v13230_v5 = vpack.c.bf16 %v4524_v28, %v4522_v35  ;;  %v5725_v21 = vadd.f32 %v5724_v45, %v12266_v4  ;;  %v5726_v62 = vpop.f32.mrb[45].mxu1 }
 0x596   :  { %v5727_v15 = vadd.f32 %v5726_v62, %v12269_v10  ;;  %v4157_v0 = vpop.f32.mrb[108].mxu0  ;;  %v5728_v34 = vpop.f32.mrb[46].mxu1  ;;  %v13234_v54 = vpack.c.bf16 %v4525_v47, %v4523_v44 }
 0x597   :  { %14602 = vst [vmem:[#allocation51_spill] sm:$0xff] %v13230_v5  ;;  %v7343_v33 = vmax.f32 %v7342_v59, %v5725_v21  ;;  %v4158_v32 = vadd.f32 %v4157_v0, %v11758_v61  ;;  %v5729_v43 = vadd.f32 %v5728_v34, %v12266_v4  ;;  %v4159_v24 = vpop.f32.mrb[109].mxu0  ;;  %v5730_v52 = vpop.f32.mrb[47].mxu1  ;;  %v14604_v34 = vld [vmem:[#allocation53_spill] sm:$0xff] }
 0x598   :  { %14603 = vst [vmem:[#allocation54_spill] sm:$0xff] %v13234_v54  ;;  %v7436_v14 = vmax.f32 %v7435_v50, %v5727_v15  ;;  %v4160_v35 = vadd.f32 %v4159_v24, %v11762_v41  ;;  %v5731_v28 = vadd.f32 %v5730_v52, %v12269_v10  ;;  %v4161_v45 = vpop.f32.mrb[110].mxu0  ;;  %5992 = vmatprep.mubr.bf16.mxu1 %v13234_v54  ;;  %v14605_v52 = vld [vmem:[#allocation56_spill] sm:$0xff] }
 0x599   :  { %v7344_v58 = vmax.f32 %v7343_v33, %v5729_v43  ;;  %v4162_v62 = vadd.f32 %v4161_v45, %v11758_v61  ;;  %v4163_v44 = vpop.f32.mrb[111].mxu0  ;;  %5993 = vmatmul.mubr.bf16.gmra.mrb[152].mxu1 %v13230_v5  ;;  %v4526_v47 = vmax.f32 %v4158_v32, 0.0 }
 0x59a   :  { %v7437_v59 = vmax.f32 %v7436_v14, %v5731_v28  ;;  %v4164_v0 = vadd.f32 %v4163_v44, %v11762_v41  ;;  %v4527_v50 = vmax.f32 %v4160_v35, 0.0 }
 0x59b   :  { %v4528_v21 = vmax.f32 %v4162_v62, 0.0  ;;  %6306 = vmatmul.mubr.bf16.gmra.mrb[216].mxu0 %v14604_v34 }
 0x59c   :  { %v4529_v15 = vmax.f32 %v4164_v0, 0.0  ;;  %v5734_v24 = vpop.f32.mrb[48].mxu1  ;;  %6315 = vmatprep.mubr.bf16.mxu0 %v14605_v52 }
 0x59d   :  { %v13246_v13 = vpack.c.bf16 %v4528_v21, %v4526_v47  ;;  %v5735_v33 = vadd.f32 %v5734_v24, %v12266_v4  ;;  %v5736_v43 = vpop.f32.mrb[49].mxu1 }
 0x59e   :  { %v5737_v45 = vadd.f32 %v5736_v43, %v12269_v10  ;;  %v4167_v5 = vpop.f32.mrb[112].mxu0  ;;  %v5738_v14 = vpop.f32.mrb[50].mxu1  ;;  %v13250_v28 = vpack.c.bf16 %v4529_v15, %v4527_v50 }
 0x59f   :  { %14606 = vst [vmem:[#allocation53_spill] sm:$0xff] %v13246_v13  ;;  %v7345_v32 = vmax.f32 %v7344_v58, %v5735_v33  ;;  %v4168_v62 = vadd.f32 %v4167_v5, %v11758_v61  ;;  %v5739_v35 = vadd.f32 %v5738_v14, %v12266_v4  ;;  %v4169_v44 = vpop.f32.mrb[113].mxu0  ;;  %v5740_v0 = vpop.f32.mrb[51].mxu1  ;;  %v14608_v14 = vld [vmem:[#allocation55_spill] sm:$0xff] }
 0x5a0   :  { %14607 = vst [vmem:[#allocation56_spill] sm:$0xff] %v13250_v28  ;;  %v7438_v34 = vmax.f32 %v7437_v59, %v5737_v45  ;;  %v4170_v47 = vadd.f32 %v4169_v44, %v11762_v41  ;;  %v5741_v21 = vadd.f32 %v5740_v0, %v12269_v10  ;;  %v4171_v24 = vpop.f32.mrb[114].mxu0  ;;  %6002 = vmatprep.mubr.bf16.mxu1 %v13250_v28  ;;  %v14609_v0 = vld [vmem:[#allocation58_spill] sm:$0xff] }
 0x5a1   :  { %v7346_v52 = vmax.f32 %v7345_v32, %v5739_v35  ;;  %v4172_v43 = vadd.f32 %v4171_v24, %v11758_v61  ;;  %v4173_v50 = vpop.f32.mrb[115].mxu0  ;;  %6003 = vmatmul.mubr.bf16.gmra.mrb[156].mxu1 %v13246_v13  ;;  %v4530_v15 = vmax.f32 %v4168_v62, 0.0 }
 0x5a2   :  { %v7439_v58 = vmax.f32 %v7438_v34, %v5741_v21  ;;  %v4174_v5 = vadd.f32 %v4173_v50, %v11762_v41  ;;  %v4531_v59 = vmax.f32 %v4170_v47, 0.0 }
 0x5a3   :  { %v4532_v33 = vmax.f32 %v4172_v43, 0.0  ;;  %6316 = vmatmul.mubr.bf16.gmra.mrb[220].mxu0 %v14608_v14 }
 0x5a4   :  { %v4533_v45 = vmax.f32 %v4174_v5, 0.0  ;;  %v5744_v44 = vpop.f32.mrb[52].mxu1  ;;  %6325 = vmatprep.mubr.bf16.mxu0 %v14609_v0  ;;  %v14612_v0 = vld [vmem:[#allocation10_spill] sm:$0xff] }
 0x5a5   :  { %v13262_v54 = vpack.c.bf16 %v4532_v33, %v4530_v15  ;;  %v5745_v32 = vadd.f32 %v5744_v44, %v12266_v4  ;;  %v5746_v35 = vpop.f32.mrb[53].mxu1 }
 0x5a6   :  { %v5747_v24 = vadd.f32 %v5746_v35, %v12269_v10  ;;  %v4177_v13 = vpop.f32.mrb[116].mxu0  ;;  %v5748_v34 = vpop.f32.mrb[54].mxu1  ;;  %v13266_v21 = vpack.c.bf16 %v4533_v45, %v4531_v59  ;;  %v4790_v35 = vsub.s32 2, %v14612_v0 }
 0x5a7   :  { %14610 = vst [vmem:[#allocation55_spill] sm:$0xff] %v13262_v54  ;;  %v7347_v62 = vmax.f32 %v7346_v52, %v5745_v32  ;;  %v4178_v43 = vadd.f32 %v4177_v13, %v11758_v61  ;;  %v5749_v47 = vadd.f32 %v5748_v34, %v12266_v4  ;;  %v4179_v50 = vpop.f32.mrb[117].mxu0  ;;  %v5750_v5 = vpop.f32.mrb[55].mxu1  ;;  %v14613_v34 = vld [vmem:[#allocation57_spill] sm:$0xff] }
 0x5a8   :  { %14611 = vst [vmem:[#allocation58_spill] sm:$0xff] %v13266_v21  ;;  %v7440_v14 = vmax.f32 %v7439_v58, %v5747_v24  ;;  %v4180_v15 = vadd.f32 %v4179_v50, %v11762_v41  ;;  %v5751_v33 = vadd.f32 %v5750_v5, %v12269_v10  ;;  %v4181_v44 = vpop.f32.mrb[118].mxu0  ;;  %6012 = vmatprep.mubr.bf16.mxu1 %v13266_v21  ;;  %v4794_v58 = vsub.s32 3, %v14612_v0 }
 0x5a9   :  { %v7348_v28 = vmax.f32 %v7347_v62, %v5749_v47  ;;  %v4182_v59 = vadd.f32 %v4181_v44, %v11758_v61  ;;  %v4183_v52 = vpop.f32.mrb[119].mxu0  ;;  %6013 = vmatmul.mubr.bf16.gmra.mrb[160].mxu1 %v13262_v54  ;;  %v4534_v32 = vmax.f32 %v4178_v43, 0.0 }
 0x5aa   :  { %v7441_v13 = vmax.f32 %v7440_v14, %v5751_v33  ;;  %v4184_v45 = vadd.f32 %v4183_v52, %v11762_v41  ;;  %v4535_v50 = vmax.f32 %v4180_v15, 0.0  ;;  %v9563_v41 = vld [vmem:[%s14133_s9] sm:$0xf]  ;;  %s14704_s9 = sld [smem:[#allocation98_spill]] }
 0x5ab   :  { %v4536_v24 = vmax.f32 %v4182_v59, 0.0  ;;  %6326 = vmatmul.mubr.bf16.gmra.mrb[224].mxu0 %v14613_v34  ;;  %v13286_v14 = vrot.slane %v9563_v41, %v4790_v35  ;;  %v13289_v15 = vrot.slane %v9563_v41, %v4794_v58 }
 0x5ac   :  { %v4537_v5 = vmax.f32 %v4184_v45, 0.0  ;;  %v5754_v21 = vpop.f32.mrb[56].mxu1  ;;  %6335 = vmatprep.mubr.bf16.mxu0 %v14614_v18 }
 0x5ad   :  { %v13280_v62 = vpack.c.bf16 %v4536_v24, %v4534_v32  ;;  %v5755_v61 = vadd.f32 %v5754_v21, %v12266_v4  ;;  %v5756_v47 = vpop.f32.mrb[57].mxu1 }
 0x5ae   :  { %v5757_v43 = vadd.f32 %v5756_v47, %v12269_v10  ;;  %v5758_v33 = vpop.f32.mrb[58].mxu1  ;;  %v6067_v44 = vpop.f32.mrb[120].mxu0  ;;  %v13291_v0 = vpack.c.bf16 %v4537_v5, %v4535_v50 }
 0x5af   :  { %14615 = vst [vmem:[#allocation10_spill] sm:$0xff] %v13280_v62  ;;  %v7349_v18 = vmax.f32 %v7348_v28, %v5755_v61  ;;  %v5759_v59 = vadd.f32 %v5758_v33, %v12266_v4  ;;  %v5760_v52 = vpop.f32.mrb[59].mxu1  ;;  %v6069_v21 = vpop.f32.mrb[121].mxu0  ;;  %v6068_v34 = vadd.f32 %v6067_v44, %v13286_v14  ;;  %v9451_v33 = vld [vmem:[%s14134_s10 + $0x40] ss:$8 sps:$4 sm:$0xff]  }
 0x5b0   :  { %14616 = vst [vmem:[#allocation57_spill] sm:$0xff] %v13291_v0  ;;  %v7442_v45 = vmax.f32 %v7441_v13, %v5757_v43  ;;  %v5761_v32 = vadd.f32 %v5760_v52, %v12269_v10  ;;  %6022 = vmatprep.mubr.bf16.mxu1 %v13291_v0  ;;  %v6071_v35 = vpop.f32.mrb[122].mxu0  ;;  %v6070_v28 = vadd.f32 %v6069_v21, %v13289_v15  ;;  %v14617_v13 = vld [vmem:[#allocation59_spill] sm:$0xff] }
 0x5b1   :  { %v7350_v24 = vmax.f32 %v7349_v18, %v5759_v59  ;;  %v6072_v47 = vadd.f32 %v6071_v35, %v13286_v14  ;;  %6023 = vmatmul.mubr.bf16.gmra.mrb[164].mxu1 %v13280_v62  ;;  %v6073_v58 = vpop.f32.mrb[123].mxu0  ;;  %v9453_v44 = vld [vmem:[%s14134_s10 + $0x44] ss:$8 sps:$4 sm:$0xff]  }
 0x5b2   :  { %v7443_v50 = vmax.f32 %v7442_v45, %v5761_v32  ;;  %v6074_v5 = vadd.f32 %v6073_v58, %v13289_v15  ;;  %8131 = vmatprep.subr.bf16.mxu1 %v9453_v44 }
 0x5b3   :  { %v7132_v61 = vmax.f32 %v6068_v34, %v6072_v47  ;;  %6336 = vmatmul.mubr.bf16.gmra.mrb[228].mxu0 %v14617_v13  ;;  %8132 = vmatpush1.bf16.msra.mxu1 %v9451_v33 }
 0x5b4   :  { %v7225_v41 = vmax.f32 %v6070_v28, %v6074_v5  ;;  %v5764_v43 = vpop.f32.mrb[60].mxu1  ;;  %6345 = vmatprep.mubr.bf16.mxu0 %v12292_v31 }
 0x5b5   :  { %v5765_v18 = vadd.f32 %v5764_v43, %v12266_v4  ;;  %v5766_v59 = vpop.f32.mrb[61].mxu1 }
 0x5b6   :  { %v5767_v52 = vadd.f32 %v5766_v59, %v12269_v10  ;;  %v5768_v21 = vpop.f32.mrb[62].mxu1  ;;  %v6077_v45 = vpop.f32.mrb[124].mxu0 }
 0x5b7   :  { %v7351_v32 = vmax.f32 %v7350_v24, %v5765_v18  ;;  %v5769_v35 = vadd.f32 %v5768_v21, %v12266_v4  ;;  %v6078_v31 = vadd.f32 %v6077_v45, %v13286_v14  ;;  %v5770_v34 = vpop.f32.mrb[63].mxu1  ;;  %v6079_v47 = vpop.f32.mrb[125].mxu0  ;;  %v14618_v45 = vld [vmem:[#allocation61_spill] sm:$0xff] }
 0x5b8   :  { %v7444_v58 = vmax.f32 %v7443_v50, %v5767_v52  ;;  %v5771_v28 = vadd.f32 %v5770_v34, %v12269_v10  ;;  %v6080_v5 = vadd.f32 %v6079_v47, %v13289_v15  ;;  %v6081_v13 = vpop.f32.mrb[126].mxu0 }
 0x5b9   :  { %v7352_v43 = vmax.f32 %v7351_v32, %v5769_v35  ;;  %v7133_v62 = vmax.f32 %v7132_v61, %v6078_v31  ;;  %v6082_v59 = vadd.f32 %v6081_v13, %v13286_v14  ;;  %v6083_v0 = vpop.f32.mrb[127].mxu0 }
 0x5ba   :  { %v7445_v44 = vmax.f32 %v7444_v58, %v5771_v28  ;;  %v7226_v24 = vmax.f32 %v7225_v41, %v6080_v5  ;;  %v6084_v18 = vadd.f32 %v6083_v0, %v13289_v15 }
 0x5bb   :  { %v7134_v21 = vmax.f32 %v7133_v62, %v6082_v59  ;;  %6346 = vmatmul.mubr.bf16.gmra.mrb[232].mxu0 %v14618_v45 }
 0x5bc   :  { %v7227_v54 = vmax.f32 %v7226_v24, %v6084_v18  ;;  %v5774_v33 = vpop.f32.mrb[64].mxu1  ;;  %6355 = vmatprep.mubr.bf16.mxu0 %v12314_v23 }
 0x5bd   :  { %v5775_v50 = vadd.f32 %v5774_v33, %v12266_v4  ;;  %v5776_v52 = vpop.f32.mrb[65].mxu1 }
 0x5be   :  { %v5777_v32 = vadd.f32 %v5776_v52, %v12269_v10  ;;  %v5778_v61 = vpop.f32.mrb[66].mxu1  ;;  %v6087_v35 = vpop.f32.mrb[128].mxu0 }
 0x5bf   :  { %v7353_v31 = vmax.f32 %v7352_v43, %v5775_v50  ;;  %v5779_v34 = vadd.f32 %v5778_v61, %v12266_v4  ;;  %v6088_v41 = vadd.f32 %v6087_v35, %v13286_v14  ;;  %v5780_v0 = vpop.f32.mrb[67].mxu1  ;;  %v6089_v62 = vpop.f32.mrb[129].mxu0  ;;  %v14619_v50 = vld [vmem:[#allocation62_spill] sm:$0xff] }
 0x5c0   :  { %v7446_v47 = vmax.f32 %v7445_v44, %v5777_v32  ;;  %v5781_v58 = vadd.f32 %v5780_v0, %v12269_v10  ;;  %v6090_v28 = vadd.f32 %v6089_v62, %v13289_v15  ;;  %v6091_v23 = vpop.f32.mrb[130].mxu0 }
 0x5c1   :  { %v7354_v5 = vmax.f32 %v7353_v31, %v5779_v34  ;;  %v7135_v13 = vmax.f32 %v7134_v21, %v6088_v41  ;;  %v6092_v59 = vadd.f32 %v6091_v23, %v13286_v14  ;;  %v6093_v24 = vpop.f32.mrb[131].mxu0 }
 0x5c2   :  { %v7447_v18 = vmax.f32 %v7446_v47, %v5781_v58  ;;  %v7228_v45 = vmax.f32 %v7227_v54, %v6090_v28  ;;  %v6094_v43 = vadd.f32 %v6093_v24, %v13289_v15 }
 0x5c3   :  { %v7136_v33 = vmax.f32 %v7135_v13, %v6092_v59  ;;  %6356 = vmatmul.mubr.bf16.gmra.mrb[236].mxu0 %v14619_v50 }
 0x5c4   :  { %v7229_v52 = vmax.f32 %v7228_v45, %v6094_v43  ;;  %v5784_v61 = vpop.f32.mrb[68].mxu1  ;;  %6365 = vmatprep.mubr.bf16.mxu0 %v12330_v8 }
 0x5c5   :  { %v5785_v44 = vadd.f32 %v5784_v61, %v12266_v4  ;;  %v5786_v32 = vpop.f32.mrb[69].mxu1  ;;  %v14620_v61 = vld [vmem:[#allocation63_spill] sm:$0xff] }
 0x5c6   :  { %v5787_v35 = vadd.f32 %v5786_v32, %v12269_v10  ;;  %v5788_v21 = vpop.f32.mrb[70].mxu1  ;;  %v6097_v31 = vpop.f32.mrb[132].mxu0 }
 0x5c7   :  { %v7355_v34 = vmax.f32 %v7354_v5, %v5785_v44  ;;  %v5789_v41 = vadd.f32 %v5788_v21, %v12266_v4  ;;  %v6098_v54 = vadd.f32 %v6097_v31, %v13286_v14  ;;  %v5790_v0 = vpop.f32.mrb[71].mxu1  ;;  %v6099_v62 = vpop.f32.mrb[133].mxu0 }
 0x5c8   :  { %v7448_v47 = vmax.f32 %v7447_v18, %v5787_v35  ;;  %v5791_v58 = vadd.f32 %v5790_v0, %v12269_v10  ;;  %v6100_v28 = vadd.f32 %v6099_v62, %v13289_v15  ;;  %v6101_v8 = vpop.f32.mrb[134].mxu0 }
 0x5c9   :  { %v7356_v23 = vmax.f32 %v7355_v34, %v5789_v41  ;;  %v7137_v13 = vmax.f32 %v7136_v33, %v6098_v54  ;;  %v6102_v59 = vadd.f32 %v6101_v8, %v13286_v14  ;;  %v6103_v24 = vpop.f32.mrb[135].mxu0 }
 0x5ca   :  { %v7449_v45 = vmax.f32 %v7448_v47, %v5791_v58  ;;  %v7230_v43 = vmax.f32 %v7229_v52, %v6100_v28  ;;  %v6104_v5 = vadd.f32 %v6103_v24, %v13289_v15 }
 0x5cb   :  { %v7138_v50 = vmax.f32 %v7137_v13, %v6102_v59  ;;  %6366 = vmatmul.mubr.bf16.gmra.mrb[240].mxu0 %v14620_v61  ;;  %v14621_v61 = vld [vmem:[#allocation64_spill] sm:$0xff] }
 0x5cc   :  { %v7231_v44 = vmax.f32 %v7230_v43, %v6104_v5  ;;  %v5794_v32 = vpop.f32.mrb[72].mxu1  ;;  %6375 = vmatprep.mubr.bf16.mxu0 %v12346_v49 }
 0x5cd   :  { %v5795_v18 = vadd.f32 %v5794_v32, %v12266_v4  ;;  %v5796_v35 = vpop.f32.mrb[73].mxu1 }
 0x5ce   :  { %v5797_v21 = vadd.f32 %v5796_v35, %v12269_v10  ;;  %v5798_v33 = vpop.f32.mrb[74].mxu1  ;;  %v6107_v31 = vpop.f32.mrb[136].mxu0 }
 0x5cf   :  { %v7357_v34 = vmax.f32 %v7356_v23, %v5795_v18  ;;  %v5799_v41 = vadd.f32 %v5798_v33, %v12266_v4  ;;  %v6108_v52 = vadd.f32 %v6107_v31, %v13286_v14  ;;  %v5800_v54 = vpop.f32.mrb[75].mxu1  ;;  %v6109_v0 = vpop.f32.mrb[137].mxu0 }
 0x5d0   :  { %v7450_v62 = vmax.f32 %v7449_v45, %v5797_v21  ;;  %v5801_v47 = vadd.f32 %v5800_v54, %v12269_v10  ;;  %v6110_v58 = vadd.f32 %v6109_v0, %v13289_v15  ;;  %v6111_v49 = vpop.f32.mrb[138].mxu0 }
 0x5d1   :  { %v7358_v28 = vmax.f32 %v7357_v34, %v5799_v41  ;;  %v7139_v8 = vmax.f32 %v7138_v50, %v6108_v52  ;;  %v6112_v13 = vadd.f32 %v6111_v49, %v13286_v14  ;;  %v6113_v59 = vpop.f32.mrb[139].mxu0 }
 0x5d2   :  { %v7451_v24 = vmax.f32 %v7450_v62, %v5801_v47  ;;  %v7232_v43 = vmax.f32 %v7231_v44, %v6110_v58  ;;  %v6114_v23 = vadd.f32 %v6113_v59, %v13289_v15 }
 0x5d3   :  { %v7140_v5 = vmax.f32 %v7139_v8, %v6112_v13  ;;  %6376 = vmatmul.mubr.bf16.gmra.mrb[244].mxu0 %v14621_v61 }
 0x5d4   :  { %v7233_v32 = vmax.f32 %v7232_v43, %v6114_v23  ;;  %v5804_v18 = vpop.f32.mrb[76].mxu1  ;;  %6385 = vmatprep.mubr.bf16.mxu0 %v12362_v39  ;;  %v14622_v23 = vld [vmem:[#allocation65_spill] sm:$0xff] }
 0x5d5   :  { %v5805_v45 = vadd.f32 %v5804_v18, %v12266_v4  ;;  %v5806_v35 = vpop.f32.mrb[77].mxu1 }
 0x5d6   :  { %v5807_v21 = vadd.f32 %v5806_v35, %v12269_v10  ;;  %v5808_v50 = vpop.f32.mrb[78].mxu1  ;;  %v6117_v33 = vpop.f32.mrb[140].mxu0 }
 0x5d7   :  { %v7359_v31 = vmax.f32 %v7358_v28, %v5805_v45  ;;  %v5809_v34 = vadd.f32 %v5808_v50, %v12266_v4  ;;  %v6118_v44 = vadd.f32 %v6117_v33, %v13286_v14  ;;  %v5810_v41 = vpop.f32.mrb[79].mxu1  ;;  %v6119_v52 = vpop.f32.mrb[141].mxu0 }
 0x5d8   :  { %v7452_v54 = vmax.f32 %v7451_v24, %v5807_v21  ;;  %v5811_v0 = vadd.f32 %v5810_v41, %v12269_v10  ;;  %v6120_v62 = vadd.f32 %v6119_v52, %v13289_v15  ;;  %v6121_v39 = vpop.f32.mrb[142].mxu0  ;;  %v14623_v24 = vld [vmem:[#allocation67_spill] sm:$0xff] }
 0x5d9   :  { %v7360_v47 = vmax.f32 %v7359_v31, %v5809_v34  ;;  %v7141_v58 = vmax.f32 %v7140_v5, %v6118_v44  ;;  %v6122_v49 = vadd.f32 %v6121_v39, %v13286_v14  ;;  %v6123_v8 = vpop.f32.mrb[143].mxu0 }
 0x5da   :  { %v7453_v13 = vmax.f32 %v7452_v54, %v5811_v0  ;;  %v7234_v59 = vmax.f32 %v7233_v32, %v6120_v62  ;;  %v6124_v28 = vadd.f32 %v6123_v8, %v13289_v15 }
 0x5db   :  { %v7142_v43 = vmax.f32 %v7141_v58, %v6122_v49  ;;  %6386 = vmatmul.mubr.bf16.gmra.mrb[248].mxu0 %v14622_v23 }
 0x5dc   :  { %v7235_v61 = vmax.f32 %v7234_v59, %v6124_v28  ;;  %v5814_v18 = vpop.f32.mrb[80].mxu1  ;;  %6395 = vmatprep.mubr.bf16.mxu0 %v14623_v24  ;;  %v9454_v28 = vld [vmem:[%s14134_s10 + $0x50] ss:$8 sps:$4 sm:$0xff]  }
 0x5dd   :  { %v5815_v45 = vadd.f32 %v5814_v18, %v12266_v4  ;;  %v5816_v35 = vpop.f32.mrb[81].mxu1  ;;  %v14624_v18 = vld [vmem:[#allocation66_spill] sm:$0xff] }
 0x5de   :  { %v5817_v21 = vadd.f32 %v5816_v35, %v12269_v10  ;;  %v5818_v5 = vpop.f32.mrb[82].mxu1  ;;  %v6127_v50 = vpop.f32.mrb[144].mxu0 }
 0x5df   :  { %v7361_v33 = vmax.f32 %v7360_v47, %v5815_v45  ;;  %v5819_v31 = vadd.f32 %v5818_v5, %v12266_v4  ;;  %v6128_v32 = vadd.f32 %v6127_v50, %v13286_v14  ;;  %v5820_v34 = vpop.f32.mrb[83].mxu1  ;;  %v6129_v44 = vpop.f32.mrb[145].mxu0 }
 0x5e0   :  { %v7454_v41 = vmax.f32 %v7453_v13, %v5817_v21  ;;  %v5821_v52 = vadd.f32 %v5820_v34, %v12269_v10  ;;  %v6130_v54 = vadd.f32 %v6129_v44, %v13289_v15  ;;  %v6131_v0 = vpop.f32.mrb[146].mxu0  ;;  %v9456_v13 = vld [vmem:[%s14134_s10 + $0x54] ss:$8 sps:$4 sm:$0xff]  }
 0x5e1   :  { %v7362_v62 = vmax.f32 %v7361_v33, %v5819_v31  ;;  %v7143_v39 = vmax.f32 %v7142_v43, %v6128_v32  ;;  %v6132_v58 = vadd.f32 %v6131_v0, %v13286_v14  ;;  %v6133_v49 = vpop.f32.mrb[147].mxu0  ;;  %8133 = vmatprep.subr.bf16.mxu1 %v9456_v13 }
 0x5e2   :  { %v7455_v8 = vmax.f32 %v7454_v41, %v5821_v52  ;;  %v7236_v59 = vmax.f32 %v7235_v61, %v6130_v54  ;;  %v6134_v47 = vadd.f32 %v6133_v49, %v13289_v15  ;;  %8134 = vmatpush1.bf16.msra.mxu1 %v9454_v28 }
 0x5e3   :  { %v7144_v23 = vmax.f32 %v7143_v39, %v6132_v58  ;;  %6396 = vmatmul.mubr.bf16.gmra.mrb[252].mxu0 %v14624_v18 }
 0x5e4   :  { %v7237_v24 = vmax.f32 %v7236_v59, %v6134_v47  ;;  %v5824_v43 = vpop.f32.mrb[84].mxu1  ;;  %6405 = vmatprep.mubr.bf16.mxu0 %v12400_v19 }
 0x5e5   :  { %v5825_v61 = vadd.f32 %v5824_v43, %v12266_v4  ;;  %v5826_v45 = vpop.f32.mrb[85].mxu1 }
 0x5e6   :  { %v5827_v35 = vadd.f32 %v5826_v45, %v12269_v10  ;;  %v5828_v21 = vpop.f32.mrb[86].mxu1  ;;  %v6137_v5 = vpop.f32.mrb[148].mxu0 }
 0x5e7   :  { %v7363_v50 = vmax.f32 %v7362_v62, %v5825_v61  ;;  %v5829_v33 = vadd.f32 %v5828_v21, %v12266_v4  ;;  %v6138_v31 = vadd.f32 %v6137_v5, %v13286_v14  ;;  %v5830_v32 = vpop.f32.mrb[87].mxu1  ;;  %v6139_v34 = vpop.f32.mrb[149].mxu0 }
 0x5e8   :  { %v7456_v44 = vmax.f32 %v7455_v8, %v5827_v35  ;;  %v5831_v41 = vadd.f32 %v5830_v32, %v12269_v10  ;;  %v6140_v19 = vadd.f32 %v6139_v34, %v13289_v15  ;;  %v6141_v52 = vpop.f32.mrb[150].mxu0 }
 0x5e9   :  { %v7364_v54 = vmax.f32 %v7363_v50, %v5829_v33  ;;  %v7145_v0 = vmax.f32 %v7144_v23, %v6138_v31  ;;  %v6142_v39 = vadd.f32 %v6141_v52, %v13286_v14  ;;  %v6143_v58 = vpop.f32.mrb[151].mxu0 }
 0x5ea   :  { %v7457_v49 = vmax.f32 %v7456_v44, %v5831_v41  ;;  %v7238_v59 = vmax.f32 %v7237_v24, %v6140_v19  ;;  %v6144_v62 = vadd.f32 %v6143_v58, %v13289_v15 }
 0x5eb   :  { %v7146_v47 = vmax.f32 %v7145_v0, %v6142_v39  ;;  %6406 = vmatmul.mubr.bf16.gmra.mrb[0].mxu0 %v12390_v9  ;;  %v14625_v0 = vld [vmem:[#allocation68_spill] sm:$0xff] }
 0x5ec   :  { %v7239_v28 = vmax.f32 %v7238_v59, %v6144_v62  ;;  %v5834_v13 = vpop.f32.mrb[88].mxu1  ;;  %6415 = vmatprep.mubr.bf16.mxu0 %v12416_v3 }
 0x5ed   :  { %v5835_v8 = vadd.f32 %v5834_v13, %v12266_v4  ;;  %v5836_v18 = vpop.f32.mrb[89].mxu1 }
 0x5ee   :  { %v5837_v43 = vadd.f32 %v5836_v18, %v12269_v10  ;;  %v5838_v23 = vpop.f32.mrb[90].mxu1  ;;  %v6147_v61 = vpop.f32.mrb[152].mxu0 }
 0x5ef   :  { %v7365_v45 = vmax.f32 %v7364_v54, %v5835_v8  ;;  %v5839_v35 = vadd.f32 %v5838_v23, %v12266_v4  ;;  %v6148_v24 = vadd.f32 %v6147_v61, %v13286_v14  ;;  %v5840_v21 = vpop.f32.mrb[91].mxu1  ;;  %v6149_v5 = vpop.f32.mrb[153].mxu0 }
 0x5f0   :  { %v7458_v50 = vmax.f32 %v7457_v49, %v5837_v43  ;;  %v5841_v9 = vadd.f32 %v5840_v21, %v12269_v10  ;;  %v6150_v33 = vadd.f32 %v6149_v5, %v13289_v15  ;;  %v6151_v3 = vpop.f32.mrb[154].mxu0 }
 0x5f1   :  { %v7366_v31 = vmax.f32 %v7365_v45, %v5839_v35  ;;  %v7147_v32 = vmax.f32 %v7146_v47, %v6148_v24  ;;  %v6152_v34 = vadd.f32 %v6151_v3, %v13286_v14  ;;  %v6153_v44 = vpop.f32.mrb[155].mxu0 }
 0x5f2   :  { %v7459_v41 = vmax.f32 %v7458_v50, %v5841_v9  ;;  %v7240_v19 = vmax.f32 %v7239_v28, %v6150_v33  ;;  %v6154_v52 = vadd.f32 %v6153_v44, %v13289_v15  ;;  %v9459_v28 = vld [vmem:[%s14134_s10 + $0x64] ss:$8 sps:$4 sm:$0xff]  }
 0x5f3   :  { %v7148_v54 = vmax.f32 %v7147_v32, %v6152_v34  ;;  %6416 = vmatmul.mubr.bf16.gmra.mrb[4].mxu0 %v14625_v0  ;;  %8135 = vmatprep.subr.bf16.mxu1 %v9459_v28  ;;  %v9462_v34 = vld [vmem:[%s14134_s10 + $0x74] ss:$8 sps:$4 sm:$0xff]  }
 0x5f4   :  { %v7241_v39 = vmax.f32 %v7240_v19, %v6154_v52  ;;  %v5844_v58 = vpop.f32.mrb[92].mxu1  ;;  %6425 = vmatprep.mubr.bf16.mxu0 %v12432_v57  ;;  %v9457_v57 = vld [vmem:[%s14134_s10 + $0x60] ss:$8 sps:$4 sm:$0xff]   ;;  %v9460_v19 = vld [vmem:[%s14134_s10 + $0x70] ss:$8 sps:$4 sm:$0xff]  }
 0x5f5   :  { %v5845_v49 = vadd.f32 %v5844_v58, %v12266_v4  ;;  %v5846_v59 = vpop.f32.mrb[93].mxu1  ;;  %8136 = vmatpush1.bf16.msra.mxu1 %v9457_v57 }
 0x5f6   :  { %v5847_v62 = vadd.f32 %v5846_v59, %v12269_v10  ;;  %v5848_v47 = vpop.f32.mrb[94].mxu1  ;;  %v6157_v13 = vpop.f32.mrb[156].mxu0  ;;  %8137 = vmatprep.subr.bf16.mxu1 %v9462_v34 }
 0x5f7   :  { %v7367_v8 = vmax.f32 %v7366_v31, %v5845_v49  ;;  %v5849_v18 = vadd.f32 %v5848_v47, %v12266_v4  ;;  %v6158_v43 = vadd.f32 %v6157_v13, %v13286_v14  ;;  %v5850_v23 = vpop.f32.mrb[95].mxu1  ;;  %v6159_v61 = vpop.f32.mrb[157].mxu0 }
 0x5f8   :  { %v7460_v45 = vmax.f32 %v7459_v41, %v5847_v62  ;;  %v5851_v35 = vadd.f32 %v5850_v23, %v12269_v10  ;;  %v6160_v24 = vadd.f32 %v6159_v61, %v13289_v15  ;;  %v6161_v21 = vpop.f32.mrb[158].mxu0  ;;  %v14626_v41 = vld [vmem:[#allocation69_spill] sm:$0xff] }
 0x5f9   :  { %v7368_v5 = vmax.f32 %v7367_v8, %v5849_v18  ;;  %v7149_v50 = vmax.f32 %v7148_v54, %v6158_v43  ;;  %v6162_v9 = vadd.f32 %v6161_v21, %v13286_v14  ;;  %v6163_v33 = vpop.f32.mrb[159].mxu0  ;;  %8138 = vmatpush1.bf16.msra.mxu1 %v9460_v19  ;;  %v9465_v62 = vld [vmem:[%s14134_s10 + $0x84] ss:$8 sps:$4 sm:$0xff]   ;;  %v9463_v18 = vld [vmem:[%s14134_s10 + $0x80] ss:$8 sps:$4 sm:$0xff]  }
 0x5fa   :  { %v7461_v3 = vmax.f32 %v7460_v45, %v5851_v35  ;;  %v7242_v31 = vmax.f32 %v7241_v39, %v6160_v24  ;;  %v6164_v32 = vadd.f32 %v6163_v33, %v13289_v15  ;;  %8139 = vmatprep.subr.bf16.mxu1 %v9465_v62  ;;  %v9468_v33 = vld [vmem:[%s14134_s10 + $0x94] ss:$8 sps:$4 sm:$0xff]  }
 0x5fb   :  { %v7150_v44 = vmax.f32 %v7149_v50, %v6162_v9  ;;  %6426 = vmatmul.mubr.bf16.gmra.mrb[8].mxu0 %v14626_v41 }
 0x5fc   :  { %v7243_v52 = vmax.f32 %v7242_v31, %v6164_v32  ;;  %v5854_v54 = vpop.f32.mrb[96].mxu1  ;;  %6435 = vmatprep.mubr.bf16.mxu0 %v12448_v29  ;;  %v14627_v31 = vld [vmem:[#allocation70_spill] sm:$0xff] }
 0x5fd   :  { %v5855_v0 = vadd.f32 %v5854_v54, %v12266_v4  ;;  %v5856_v39 = vpop.f32.mrb[97].mxu1  ;;  %8140 = vmatpush1.bf16.msra.mxu1 %v9463_v18  ;;  %v9466_v32 = vld [vmem:[%s14134_s10 + $0x90] ss:$8 sps:$4 sm:$0xff]  }
 0x5fe   :  { %v5857_v58 = vadd.f32 %v5856_v39, %v12269_v10  ;;  %v5858_v49 = vpop.f32.mrb[98].mxu1  ;;  %v6167_v59 = vpop.f32.mrb[160].mxu0  ;;  %8141 = vmatprep.subr.bf16.mxu1 %v9468_v33  ;;  %v9471_v39 = vld [vmem:[%s14134_s10 + $0xa4] ss:$8 sps:$4 sm:$0xff]  }
 0x5ff   :  { %v7369_v47 = vmax.f32 %v7368_v5, %v5855_v0  ;;  %v5859_v13 = vadd.f32 %v5858_v49, %v12266_v4  ;;  %v6168_v28 = vadd.f32 %v6167_v59, %v13286_v14  ;;  %v5860_v8 = vpop.f32.mrb[99].mxu1  ;;  %v6169_v29 = vpop.f32.mrb[161].mxu0 }
 0x600   :  { %v7462_v43 = vmax.f32 %v7461_v3, %v5857_v58  ;;  %v5861_v23 = vadd.f32 %v5860_v8, %v12269_v10  ;;  %v6170_v61 = vadd.f32 %v6169_v29, %v13289_v15  ;;  %v6171_v57 = vpop.f32.mrb[162].mxu0 }
 0x601   :  { %v7370_v45 = vmax.f32 %v7369_v47, %v5859_v13  ;;  %v7151_v35 = vmax.f32 %v7150_v44, %v6168_v28  ;;  %v6172_v24 = vadd.f32 %v6171_v57, %v13286_v14  ;;  %v6173_v21 = vpop.f32.mrb[163].mxu0  ;;  %8142 = vmatpush1.bf16.msra.mxu1 %v9466_v32  ;;  %v9469_v47 = vld [vmem:[%s14134_s10 + $0xa0] ss:$8 sps:$4 sm:$0xff]  }
 0x602   :  { %v7463_v5 = vmax.f32 %v7462_v43, %v5861_v23  ;;  %v7244_v50 = vmax.f32 %v7243_v52, %v6170_v61  ;;  %v6174_v9 = vadd.f32 %v6173_v21, %v13289_v15  ;;  %8143 = vmatprep.subr.bf16.mxu1 %v9471_v39  ;;  %v9475_v39 = vld [vmem:[%s14134_s10 + $0xc0] ss:$8 sps:$4 sm:$0xff]  }
 0x603   :  { %v7152_v3 = vmax.f32 %v7151_v35, %v6172_v24  ;;  %6436 = vmatmul.mubr.bf16.gmra.mrb[12].mxu0 %v14627_v31  ;;  %v9474_v24 = vld [vmem:[%s14134_s10 + $0xb4] ss:$8 sps:$4 sm:$0xff]  }
 0x604   :  { %v7245_v34 = vmax.f32 %v7244_v50, %v6174_v9  ;;  %v5864_v44 = vpop.f32.mrb[100].mxu1  ;;  %6445 = vmatprep.mubr.bf16.mxu0 %v12464_v16  ;;  %v9472_v50 = vld [vmem:[%s14134_s10 + $0xb0] ss:$8 sps:$4 sm:$0xff]  }
 0x605   :  { %v5865_v41 = vadd.f32 %v5864_v44, %v12266_v4  ;;  %v5866_v19 = vpop.f32.mrb[101].mxu1  ;;  %8144 = vmatpush1.bf16.msra.mxu1 %v9469_v47 }
 0x606   :  { %v5867_v52 = vadd.f32 %v5866_v19, %v12269_v10  ;;  %v5868_v54 = vpop.f32.mrb[102].mxu1  ;;  %v6177_v0 = vpop.f32.mrb[164].mxu0  ;;  %8145 = vmatprep.subr.bf16.mxu1 %v9474_v24 }
 0x607   :  { %v7371_v58 = vmax.f32 %v7370_v45, %v5865_v41  ;;  %v5869_v49 = vadd.f32 %v5868_v54, %v12266_v4  ;;  %v6178_v59 = vadd.f32 %v6177_v0, %v13286_v14  ;;  %v5870_v62 = vpop.f32.mrb[103].mxu1  ;;  %v6179_v16 = vpop.f32.mrb[165].mxu0  ;;  %v9477_v41 = vld [vmem:[%s14134_s10 + $0xc4] ss:$8 sps:$4 sm:$0xff]  }
 0x608   :  { %v7464_v13 = vmax.f32 %v7463_v5, %v5867_v52  ;;  %v5871_v28 = vadd.f32 %v5870_v62, %v12269_v10  ;;  %v6180_v8 = vadd.f32 %v6179_v16, %v13289_v15  ;;  %v6181_v29 = vpop.f32.mrb[166].mxu0  ;;  %v14628_v5 = vld [vmem:[#allocation71_spill] sm:$0xff] }
 0x609   :  { %v7372_v18 = vmax.f32 %v7371_v58, %v5869_v49  ;;  %v7153_v43 = vmax.f32 %v7152_v3, %v6178_v59  ;;  %v6182_v23 = vadd.f32 %v6181_v29, %v13286_v14  ;;  %v6183_v61 = vpop.f32.mrb[167].mxu0  ;;  %8146 = vmatpush1.bf16.msra.mxu1 %v9472_v50 }
 0x60a   :  { %v7465_v57 = vmax.f32 %v7464_v13, %v5871_v28  ;;  %v7246_v45 = vmax.f32 %v7245_v34, %v6180_v8  ;;  %v6184_v35 = vadd.f32 %v6183_v61, %v13289_v15  ;;  %8147 = vmatprep.subr.bf16.mxu1 %v9477_v41  ;;  %v14629_v61 = vld [vmem:[#allocation72_spill] sm:$0xff] }
 0x60b   :  { %v7154_v21 = vmax.f32 %v7153_v43, %v6182_v23  ;;  %6446 = vmatmul.mubr.bf16.gmra.mrb[16].mxu0 %v14628_v5  ;;  %v9480_v43 = vld [vmem:[%s14134_s10 + $0xd4] ss:$8 sps:$4 sm:$0xff]  }
 0x60c   :  { %v7247_v9 = vmax.f32 %v7246_v45, %v6184_v35  ;;  %v5874_v33 = vpop.f32.mrb[104].mxu1  ;;  %6455 = vmatprep.mubr.bf16.mxu0 %v12480_v17 }
 0x60d   :  { %v5875_v3 = vadd.f32 %v5874_v33, %v12266_v4  ;;  %v5876_v31 = vpop.f32.mrb[105].mxu1  ;;  %8148 = vmatpush1.bf16.msra.mxu1 %v9475_v39  ;;  %v9483_v33 = vld [vmem:[%s14134_s10 + $0xe4] ss:$8 sps:$4 sm:$0xff]  }
 0x60e   :  { %v5877_v32 = vadd.f32 %v5876_v31, %v12269_v10  ;;  %v5878_v34 = vpop.f32.mrb[106].mxu1  ;;  %v6187_v44 = vpop.f32.mrb[168].mxu0  ;;  %8149 = vmatprep.subr.bf16.mxu1 %v9480_v43 }
 0x60f   :  { %v7373_v19 = vmax.f32 %v7372_v18, %v5875_v3  ;;  %v5879_v52 = vadd.f32 %v5878_v34, %v12266_v4  ;;  %v6188_v54 = vadd.f32 %v6187_v44, %v13286_v14  ;;  %v5880_v0 = vpop.f32.mrb[107].mxu1  ;;  %v6189_v17 = vpop.f32.mrb[169].mxu0  ;;  %v9481_v44 = vld [vmem:[%s14134_s10 + $0xe0] ss:$8 sps:$4 sm:$0xff]  }
 0x610   :  { %v7466_v58 = vmax.f32 %v7465_v57, %v5877_v32  ;;  %v5881_v49 = vadd.f32 %v5880_v0, %v12269_v10  ;;  %v6190_v59 = vadd.f32 %v6189_v17, %v13289_v15  ;;  %v6191_v62 = vpop.f32.mrb[170].mxu0  ;;  %v9478_v57 = vld [vmem:[%s14134_s10 + $0xd0] ss:$8 sps:$4 sm:$0xff]  }
 0x611   :  { %v7374_v16 = vmax.f32 %v7373_v19, %v5879_v52  ;;  %v7155_v47 = vmax.f32 %v7154_v21, %v6188_v54  ;;  %v6192_v13 = vadd.f32 %v6191_v62, %v13286_v14  ;;  %v6193_v28 = vpop.f32.mrb[171].mxu0  ;;  %8150 = vmatpush1.bf16.msra.mxu1 %v9478_v57 }
 0x612   :  { %v7467_v8 = vmax.f32 %v7466_v58, %v5881_v49  ;;  %v7248_v29 = vmax.f32 %v7247_v9, %v6190_v59  ;;  %v6194_v18 = vadd.f32 %v6193_v28, %v13289_v15  ;;  %8151 = vmatprep.subr.bf16.mxu1 %v9483_v33  ;;  %v9484_v28 = vld [vmem:[%s14134_s10 + $0xf0] ss:$8 sps:$4 sm:$0xff]  }
 0x613   :  { %v7156_v23 = vmax.f32 %v7155_v47, %v6192_v13  ;;  %6456 = vmatmul.mubr.bf16.gmra.mrb[20].mxu0 %v14629_v61  ;;  %v14630_v13 = vld [vmem:[#allocation73_spill] sm:$0xff] }
 0x614   :  { %v7249_v45 = vmax.f32 %v7248_v29, %v6194_v18  ;;  %v5884_v35 = vpop.f32.mrb[108].mxu1  ;;  %6465 = vmatprep.mubr.bf16.mxu0 %v12502_v42 }
 0x615   :  { %v5885_v24 = vadd.f32 %v5884_v35, %v12266_v4  ;;  %v5886_v21 = vpop.f32.mrb[109].mxu1  ;;  %8152 = vmatpush1.bf16.msra.mxu1 %v9481_v44 }
 0x616   :  { %v5887_v5 = vadd.f32 %v5886_v21, %v12269_v10  ;;  %v5888_v50 = vpop.f32.mrb[110].mxu1  ;;  %v6197_v9 = vpop.f32.mrb[172].mxu0 }
 0x617   :  { %v7375_v3 = vmax.f32 %v7374_v16, %v5885_v24  ;;  %v5889_v31 = vadd.f32 %v5888_v50, %v12266_v4  ;;  %v6198_v32 = vadd.f32 %v6197_v9, %v13286_v14  ;;  %v5890_v34 = vpop.f32.mrb[111].mxu1  ;;  %v6199_v42 = vpop.f32.mrb[173].mxu0  ;;  %v9486_v16 = vld [vmem:[%s14134_s10 + $0xf4] ss:$8 sps:$4 sm:$0xff]  }
 0x618   :  { %v7468_v41 = vmax.f32 %v7467_v8, %v5887_v5  ;;  %v5891_v19 = vadd.f32 %v5890_v34, %v12269_v10  ;;  %v6200_v52 = vadd.f32 %v6199_v42, %v13289_v15  ;;  %v6201_v54 = vpop.f32.mrb[174].mxu0  ;;  %8153 = vmatprep.subr.bf16.mxu1 %v9486_v16 }
 0x619   :  { %v7376_v0 = vmax.f32 %v7375_v3, %v5889_v31  ;;  %v7157_v17 = vmax.f32 %v7156_v23, %v6198_v32  ;;  %v6202_v39 = vadd.f32 %v6201_v54, %v13286_v14  ;;  %v6203_v58 = vpop.f32.mrb[175].mxu0  ;;  %8154 = vmatpush1.bf16.msra.mxu1 %v9484_v28 }
 0x61a   :  { %v7469_v49 = vmax.f32 %v7468_v41, %v5891_v19  ;;  %v7250_v59 = vmax.f32 %v7249_v45, %v6200_v52  ;;  %v6204_v62 = vadd.f32 %v6203_v58, %v13289_v15  ;;  %v14631_v52 = vld [vmem:[#allocation74_spill] sm:$0xff] }
 0x61b   :  { %v7158_v47 = vmax.f32 %v7157_v17, %v6202_v39  ;;  %6466 = vmatmul.mubr.bf16.gmra.mrb[24].mxu0 %v14630_v13 }
 0x61c   :  { %v7251_v8 = vmax.f32 %v7250_v59, %v6204_v62  ;;  %v5894_v29 = vpop.f32.mrb[112].mxu1  ;;  %6475 = vmatprep.mubr.bf16.mxu0 %v12518_v6 }
 0x61d   :  { %v5895_v18 = vadd.f32 %v5894_v29, %v12266_v4  ;;  %v5896_v43 = vpop.f32.mrb[113].mxu1 }
 0x61e   :  { %v5897_v23 = vadd.f32 %v5896_v43, %v12269_v10  ;;  %v5898_v61 = vpop.f32.mrb[114].mxu1  ;;  %v6207_v57 = vpop.f32.mrb[176].mxu0 }
 0x61f   :  { %v7377_v45 = vmax.f32 %v7376_v0, %v5895_v18  ;;  %v5899_v35 = vadd.f32 %v5898_v61, %v12266_v4  ;;  %v6208_v24 = vadd.f32 %v6207_v57, %v13286_v14  ;;  %v5900_v21 = vpop.f32.mrb[115].mxu1  ;;  %v6209_v5 = vpop.f32.mrb[177].mxu0 }
 0x620   :  { %v7470_v50 = vmax.f32 %v7469_v49, %v5897_v23  ;;  %v5901_v9 = vadd.f32 %v5900_v21, %v12269_v10  ;;  %v6210_v6 = vadd.f32 %v6209_v5, %v13289_v15  ;;  %v6211_v33 = vpop.f32.mrb[178].mxu0  ;;  %v14632_v5 = vld [vmem:[#allocation75_spill] sm:$0xff] }
 0x621   :  { %v7378_v3 = vmax.f32 %v7377_v45, %v5899_v35  ;;  %v7159_v31 = vmax.f32 %v7158_v47, %v6208_v24  ;;  %v6212_v32 = vadd.f32 %v6211_v33, %v13286_v14  ;;  %v6213_v34 = vpop.f32.mrb[179].mxu0 }
 0x622   :  { %v7471_v42 = vmax.f32 %v7470_v50, %v5901_v9  ;;  %v7252_v44 = vmax.f32 %v7251_v8, %v6210_v6  ;;  %v6214_v41 = vadd.f32 %v6213_v34, %v13289_v15 }
 0x623   :  { %v7160_v19 = vmax.f32 %v7159_v31, %v6212_v32  ;;  %6476 = vmatmul.mubr.bf16.gmra.mrb[28].mxu0 %v14631_v52 }
 0x624   :  { %v7253_v54 = vmax.f32 %v7252_v44, %v6214_v41  ;;  %v5904_v0 = vpop.f32.mrb[116].mxu1  ;;  %6485 = vmatprep.mubr.bf16.mxu0 %v12534_v7 }
 0x625   :  { %v5905_v17 = vadd.f32 %v5904_v0, %v12266_v4  ;;  %v5906_v39 = vpop.f32.mrb[117].mxu1 }
 0x626   :  { %v5907_v58 = vadd.f32 %v5906_v39, %v12269_v10  ;;  %v5908_v49 = vpop.f32.mrb[118].mxu1  ;;  %v6217_v59 = vpop.f32.mrb[180].mxu0 }
 0x627   :  { %v7379_v62 = vmax.f32 %v7378_v3, %v5905_v17  ;;  %v5909_v16 = vadd.f32 %v5908_v49, %v12266_v4  ;;  %v6218_v47 = vadd.f32 %v6217_v59, %v13286_v14  ;;  %v5910_v13 = vpop.f32.mrb[119].mxu1  ;;  %v6219_v28 = vpop.f32.mrb[181].mxu0 }
 0x628   :  { %v7472_v8 = vmax.f32 %v7471_v42, %v5907_v58  ;;  %v5911_v29 = vadd.f32 %v5910_v13, %v12269_v10  ;;  %v6220_v18 = vadd.f32 %v6219_v28, %v13289_v15  ;;  %v6221_v7 = vpop.f32.mrb[182].mxu0  ;;  %v14633_v13 = vld [vmem:[#allocation76_spill] sm:$0xff] }
 0x629   :  { %v7380_v43 = vmax.f32 %v7379_v62, %v5909_v16  ;;  %v7161_v23 = vmax.f32 %v7160_v19, %v6218_v47  ;;  %v6222_v61 = vadd.f32 %v6221_v7, %v13286_v14  ;;  %v6223_v57 = vpop.f32.mrb[183].mxu0 }
 0x62a   :  { %v7473_v45 = vmax.f32 %v7472_v8, %v5911_v29  ;;  %v7254_v35 = vmax.f32 %v7253_v54, %v6220_v18  ;;  %v6224_v24 = vadd.f32 %v6223_v57, %v13289_v15 }
 0x62b   :  { %v7162_v21 = vmax.f32 %v7161_v23, %v6222_v61  ;;  %6486 = vmatmul.mubr.bf16.gmra.mrb[32].mxu0 %v14632_v5 }
 0x62c   :  { %v7255_v50 = vmax.f32 %v7254_v35, %v6224_v24  ;;  %v5914_v9 = vpop.f32.mrb[120].mxu1  ;;  %6495 = vmatprep.mubr.bf16.mxu0 %v12550_v53 }
 0x62d   :  { %v5915_v6 = vadd.f32 %v5914_v9, %v12266_v4  ;;  %v5916_v33 = vpop.f32.mrb[121].mxu1 }
 0x62e   :  { %v5917_v3 = vadd.f32 %v5916_v33, %v12269_v10  ;;  %v5918_v31 = vpop.f32.mrb[122].mxu1  ;;  %v6227_v32 = vpop.f32.mrb[184].mxu0 }
 0x62f   :  { %v7381_v34 = vmax.f32 %v7380_v43, %v5915_v6  ;;  %v5919_v42 = vadd.f32 %v5918_v31, %v12266_v4  ;;  %v6228_v44 = vadd.f32 %v6227_v32, %v13286_v14  ;;  %v5920_v41 = vpop.f32.mrb[123].mxu1  ;;  %v6229_v19 = vpop.f32.mrb[185].mxu0 }
 0x630   :  { %v7474_v52 = vmax.f32 %v7473_v45, %v5917_v3  ;;  %v5921_v54 = vadd.f32 %v5920_v41, %v12269_v10  ;;  %v6230_v0 = vadd.f32 %v6229_v19, %v13289_v15  ;;  %v6231_v53 = vpop.f32.mrb[186].mxu0 }
 0x631   :  { %v7382_v17 = vmax.f32 %v7381_v34, %v5919_v42  ;;  %v7163_v39 = vmax.f32 %v7162_v21, %v6228_v44  ;;  %v6232_v58 = vadd.f32 %v6231_v53, %v13286_v14  ;;  %v6233_v49 = vpop.f32.mrb[187].mxu0  ;;  %v14634_v44 = vld [vmem:[#allocation77_spill] sm:$0xff] }
 0x632   :  { %v7475_v59 = vmax.f32 %v7474_v52, %v5921_v54  ;;  %v7256_v62 = vmax.f32 %v7255_v50, %v6230_v0  ;;  %v6234_v16 = vadd.f32 %v6233_v49, %v13289_v15 }
 0x633   :  { %v7164_v47 = vmax.f32 %v7163_v39, %v6232_v58  ;;  %6496 = vmatmul.mubr.bf16.gmra.mrb[36].mxu0 %v14633_v13 }
 0x634   :  { %v7257_v28 = vmax.f32 %v7256_v62, %v6234_v16  ;;  %v5924_v8 = vpop.f32.mrb[124].mxu1  ;;  %6505 = vmatprep.mubr.bf16.mxu0 %v12566_v11 }
 0x635   :  { %v5925_v29 = vadd.f32 %v5924_v8, %v12266_v4  ;;  %v5926_v18 = vpop.f32.mrb[125].mxu1 }
 0x636   :  { %v5927_v7 = vadd.f32 %v5926_v18, %v12269_v10  ;;  %v5928_v43 = vpop.f32.mrb[126].mxu1  ;;  %v6237_v23 = vpop.f32.mrb[188].mxu0 }
 0x637   :  { %v7383_v61 = vmax.f32 %v7382_v17, %v5925_v29  ;;  %v5929_v57 = vadd.f32 %v5928_v43, %v12266_v4  ;;  %v6238_v45 = vadd.f32 %v6237_v23, %v13286_v14  ;;  %v5930_v35 = vpop.f32.mrb[127].mxu1  ;;  %v6239_v24 = vpop.f32.mrb[189].mxu0 }
 0x638   :  { %v7476_v21 = vmax.f32 %v7475_v59, %v5927_v7  ;;  %v5931_v5 = vadd.f32 %v5930_v35, %v12269_v10  ;;  %v6240_v50 = vadd.f32 %v6239_v24, %v13289_v15  ;;  %v6241_v11 = vpop.f32.mrb[190].mxu0 }
 0x639   :  { %v7384_v9 = vmax.f32 %v7383_v61, %v5929_v57  ;;  %v7165_v6 = vmax.f32 %v7164_v47, %v6238_v45  ;;  %v6242_v33 = vadd.f32 %v6241_v11, %v13286_v14  ;;  %v6243_v3 = vpop.f32.mrb[191].mxu0  ;;  %v14635_v57 = vld [vmem:[#allocation78_spill] sm:$0xff] }
 0x63a   :  { %v7477_v31 = vmax.f32 %v7476_v21, %v5931_v5  ;;  %v7258_v32 = vmax.f32 %v7257_v28, %v6240_v50  ;;  %v6244_v34 = vadd.f32 %v6243_v3, %v13289_v15 }
 0x63b   :  { %v7166_v42 = vmax.f32 %v7165_v6, %v6242_v33  ;;  %6506 = vmatmul.mubr.bf16.gmra.mrb[40].mxu0 %v14634_v44 }
 0x63c   :  { %v7259_v41 = vmax.f32 %v7258_v32, %v6244_v34  ;;  %v5934_v19 = vpop.f32.mrb[128].mxu1  ;;  %6515 = vmatprep.mubr.bf16.mxu0 %v12582_v1 }
 0x63d   :  { %v5935_v52 = vadd.f32 %v5934_v19, %v12266_v4  ;;  %v5936_v54 = vpop.f32.mrb[129].mxu1 }
 0x63e   :  { %v5937_v0 = vadd.f32 %v5936_v54, %v12269_v10  ;;  %v5938_v53 = vpop.f32.mrb[130].mxu1  ;;  %v6247_v17 = vpop.f32.mrb[192].mxu0 }
 0x63f   :  { %v7385_v39 = vmax.f32 %v7384_v9, %v5935_v52  ;;  %v5939_v58 = vadd.f32 %v5938_v53, %v12266_v4  ;;  %v6248_v49 = vadd.f32 %v6247_v17, %v13286_v14  ;;  %v5940_v59 = vpop.f32.mrb[131].mxu1  ;;  %v6249_v62 = vpop.f32.mrb[193].mxu0 }
 0x640   :  { %v7478_v16 = vmax.f32 %v7477_v31, %v5937_v0  ;;  %v5941_v47 = vadd.f32 %v5940_v59, %v12269_v10  ;;  %v6250_v13 = vadd.f32 %v6249_v62, %v13289_v15  ;;  %v6251_v1 = vpop.f32.mrb[194].mxu0  ;;  %v14637_v59 = vld [vmem:[#allocation81_spill] sm:$0xff] }
 0x641   :  { %v7386_v28 = vmax.f32 %v7385_v39, %v5939_v58  ;;  %v7167_v8 = vmax.f32 %v7166_v42, %v6248_v49  ;;  %v6252_v29 = vadd.f32 %v6251_v1, %v13286_v14  ;;  %v6253_v18 = vpop.f32.mrb[195].mxu0  ;;  %v14636_v39 = vld [vmem:[#allocation79_spill] sm:$0xff] }
 0x642   :  { %v7479_v7 = vmax.f32 %v7478_v16, %v5941_v47  ;;  %v7260_v43 = vmax.f32 %v7259_v41, %v6250_v13  ;;  %v6254_v23 = vadd.f32 %v6253_v18, %v13289_v15 }
 0x643   :  { %v7168_v61 = vmax.f32 %v7167_v8, %v6252_v29  ;;  %6516 = vmatmul.mubr.bf16.gmra.mrb[44].mxu0 %v14635_v57 }
 0x644   :  { %v7261_v45 = vmax.f32 %v7260_v43, %v6254_v23  ;;  %v5944_v35 = vpop.f32.mrb[132].mxu1  ;;  %6525 = vmatprep.mubr.bf16.mxu0 %v12598_v22 }
 0x645   :  { %v5945_v24 = vadd.f32 %v5944_v35, %v12266_v4  ;;  %v5946_v21 = vpop.f32.mrb[133].mxu1 }
 0x646   :  { %v5947_v5 = vadd.f32 %v5946_v21, %v12269_v10  ;;  %v5948_v50 = vpop.f32.mrb[134].mxu1  ;;  %v6257_v11 = vpop.f32.mrb[196].mxu0 }
 0x647   :  { %v7387_v9 = vmax.f32 %v7386_v28, %v5945_v24  ;;  %v5949_v6 = vadd.f32 %v5948_v50, %v12266_v4  ;;  %v6258_v33 = vadd.f32 %v6257_v11, %v13286_v14  ;;  %v5950_v3 = vpop.f32.mrb[135].mxu1  ;;  %v6259_v31 = vpop.f32.mrb[197].mxu0 }
 0x648   :  { %v7480_v32 = vmax.f32 %v7479_v7, %v5947_v5  ;;  %v5951_v34 = vadd.f32 %v5950_v3, %v12269_v10  ;;  %v6260_v42 = vadd.f32 %v6259_v31, %v13289_v15  ;;  %v6261_v22 = vpop.f32.mrb[198].mxu0 }
 0x649   :  { %v7388_v44 = vmax.f32 %v7387_v9, %v5949_v6  ;;  %v7169_v41 = vmax.f32 %v7168_v61, %v6258_v33  ;;  %v6262_v19 = vadd.f32 %v6261_v22, %v13286_v14  ;;  %v6263_v52 = vpop.f32.mrb[199].mxu0  ;;  %v14638_v6 = vld [vmem:[#allocation80_spill] sm:$0xff] }
 0x64a   :  { %v7481_v54 = vmax.f32 %v7480_v32, %v5951_v34  ;;  %v7262_v0 = vmax.f32 %v7261_v45, %v6260_v42  ;;  %v6264_v53 = vadd.f32 %v6263_v52, %v13289_v15 }
 0x64b   :  { %v7170_v17 = vmax.f32 %v7169_v41, %v6262_v19  ;;  %6526 = vmatmul.mubr.bf16.gmra.mrb[48].mxu0 %v14636_v39 }
 0x64c   :  { %v7263_v58 = vmax.f32 %v7262_v0, %v6264_v53  ;;  %v5954_v49 = vpop.f32.mrb[136].mxu1  ;;  %6535 = vmatprep.mubr.bf16.mxu0 %v14637_v59 }
 0x64d   :  { %v5955_v62 = vadd.f32 %v5954_v49, %v12266_v4  ;;  %v5956_v16 = vpop.f32.mrb[137].mxu1 }
 0x64e   :  { %v5957_v47 = vadd.f32 %v5956_v16, %v12269_v10  ;;  %v5958_v13 = vpop.f32.mrb[138].mxu1  ;;  %v6267_v1 = vpop.f32.mrb[200].mxu0 }
 0x64f   :  { %v7389_v28 = vmax.f32 %v7388_v44, %v5955_v62  ;;  %v5959_v8 = vadd.f32 %v5958_v13, %v12266_v4  ;;  %v6268_v29 = vadd.f32 %v6267_v1, %v13286_v14  ;;  %v5960_v18 = vpop.f32.mrb[139].mxu1  ;;  %v6269_v7 = vpop.f32.mrb[201].mxu0  ;;  %v14639_v1 = vld [vmem:[#allocation30_spill] sm:$0xff] }
 0x650   :  { %v7482_v43 = vmax.f32 %v7481_v54, %v5957_v47  ;;  %v5961_v23 = vadd.f32 %v5960_v18, %v12269_v10  ;;  %v6270_v61 = vadd.f32 %v6269_v7, %v13289_v15  ;;  %v6271_v57 = vpop.f32.mrb[202].mxu0 }
 0x651   :  { %v7390_v45 = vmax.f32 %v7389_v28, %v5959_v8  ;;  %v7171_v35 = vmax.f32 %v7170_v17, %v6268_v29  ;;  %v6272_v24 = vadd.f32 %v6271_v57, %v13286_v14  ;;  %v6273_v21 = vpop.f32.mrb[203].mxu0  ;;  %v14640_v29 = vld [vmem:[#allocation83_spill] sm:$0xff] }
 0x652   :  { %v7483_v5 = vmax.f32 %v7482_v43, %v5961_v23  ;;  %v7264_v50 = vmax.f32 %v7263_v58, %v6270_v61  ;;  %v6274_v11 = vadd.f32 %v6273_v21, %v13289_v15 }
 0x653   :  { %v7172_v9 = vmax.f32 %v7171_v35, %v6272_v24  ;;  %6536 = vmatmul.mubr.bf16.gmra.mrb[52].mxu0 %v14638_v6 }
 0x654   :  { %v7265_v33 = vmax.f32 %v7264_v50, %v6274_v11  ;;  %v5964_v3 = vpop.f32.mrb[140].mxu1  ;;  %6545 = vmatprep.mubr.bf16.mxu0 %v12630_v40 }
 0x655   :  { %v5965_v31 = vadd.f32 %v5964_v3, %v12266_v4  ;;  %v5966_v32 = vpop.f32.mrb[141].mxu1 }
 0x656   :  { %v5967_v34 = vadd.f32 %v5966_v32, %v12269_v10  ;;  %v5968_v42 = vpop.f32.mrb[142].mxu1  ;;  %v6277_v22 = vpop.f32.mrb[204].mxu0 }
 0x657   :  { %v7391_v44 = vmax.f32 %v7390_v45, %v5965_v31  ;;  %v5969_v41 = vadd.f32 %v5968_v42, %v12266_v4  ;;  %v6278_v19 = vadd.f32 %v6277_v22, %v13286_v14  ;;  %v5970_v52 = vpop.f32.mrb[143].mxu1  ;;  %v6279_v54 = vpop.f32.mrb[205].mxu0 }
 0x658   :  { %v7484_v0 = vmax.f32 %v7483_v5, %v5967_v34  ;;  %v5971_v53 = vadd.f32 %v5970_v52, %v12269_v10  ;;  %v6280_v17 = vadd.f32 %v6279_v54, %v13289_v15  ;;  %v6281_v40 = vpop.f32.mrb[206].mxu0 }
 0x659   :  { %v7392_v39 = vmax.f32 %v7391_v44, %v5969_v41  ;;  %v7173_v58 = vmax.f32 %v7172_v9, %v6278_v19  ;;  %v6282_v49 = vadd.f32 %v6281_v40, %v13286_v14  ;;  %v6283_v59 = vpop.f32.mrb[207].mxu0  ;;  %v14641_v44 = vld [vmem:[#allocation82_spill] sm:$0xff] }
 0x65a   :  { %v7485_v62 = vmax.f32 %v7484_v0, %v5971_v53  ;;  %v7266_v16 = vmax.f32 %v7265_v33, %v6280_v17  ;;  %v6284_v47 = vadd.f32 %v6283_v59, %v13289_v15 }
 0x65b   :  { %v7174_v13 = vmax.f32 %v7173_v58, %v6282_v49  ;;  %6546 = vmatmul.mubr.bf16.gmra.mrb[56].mxu0 %v14639_v1 }
 0x65c   :  { %v7267_v28 = vmax.f32 %v7266_v16, %v6284_v47  ;;  %v5974_v8 = vpop.f32.mrb[144].mxu1  ;;  %6555 = vmatprep.mubr.bf16.mxu0 %v14640_v29 }
 0x65d   :  { %v5975_v18 = vadd.f32 %v5974_v8, %v12266_v4  ;;  %v5976_v7 = vpop.f32.mrb[145].mxu1 }
 0x65e   :  { %v5977_v43 = vadd.f32 %v5976_v7, %v12269_v10  ;;  %v5978_v23 = vpop.f32.mrb[146].mxu1  ;;  %v6287_v61 = vpop.f32.mrb[208].mxu0 }
 0x65f   :  { %v7393_v57 = vmax.f32 %v7392_v39, %v5975_v18  ;;  %v5979_v45 = vadd.f32 %v5978_v23, %v12266_v4  ;;  %v6288_v35 = vadd.f32 %v6287_v61, %v13286_v14  ;;  %v5980_v24 = vpop.f32.mrb[147].mxu1  ;;  %v6289_v21 = vpop.f32.mrb[209].mxu0  ;;  %v14642_v23 = vld [vmem:[#allocation33_spill] sm:$0xff] }
 0x660   :  { %v7486_v5 = vmax.f32 %v7485_v62, %v5977_v43  ;;  %v5981_v50 = vadd.f32 %v5980_v24, %v12269_v10  ;;  %v6290_v11 = vadd.f32 %v6289_v21, %v13289_v15  ;;  %v6291_v9 = vpop.f32.mrb[210].mxu0 }
 0x661   :  { %v7394_v6 = vmax.f32 %v7393_v57, %v5979_v45  ;;  %v7175_v33 = vmax.f32 %v7174_v13, %v6288_v35  ;;  %v6292_v3 = vadd.f32 %v6291_v9, %v13286_v14  ;;  %v6293_v31 = vpop.f32.mrb[211].mxu0  ;;  %v14643_v45 = vld [vmem:[#allocation85_spill] sm:$0xff] }
 0x662   :  { %v7487_v32 = vmax.f32 %v7486_v5, %v5981_v50  ;;  %v7268_v34 = vmax.f32 %v7267_v28, %v6290_v11  ;;  %v6294_v42 = vadd.f32 %v6293_v31, %v13289_v15 }
 0x663   :  { %v7176_v22 = vmax.f32 %v7175_v33, %v6292_v3  ;;  %6556 = vmatmul.mubr.bf16.gmra.mrb[60].mxu0 %v14641_v44 }
 0x664   :  { %v7269_v41 = vmax.f32 %v7268_v34, %v6294_v42  ;;  %v5984_v19 = vpop.f32.mrb[148].mxu1  ;;  %6565 = vmatprep.mubr.bf16.mxu0 %v12662_v30 }
 0x665   :  { %v5985_v52 = vadd.f32 %v5984_v19, %v12266_v4  ;;  %v5986_v54 = vpop.f32.mrb[149].mxu1 }
 0x666   :  { %v5987_v0 = vadd.f32 %v5986_v54, %v12269_v10  ;;  %v5988_v53 = vpop.f32.mrb[150].mxu1  ;;  %v6297_v17 = vpop.f32.mrb[212].mxu0 }
 0x667   :  { %v7395_v40 = vmax.f32 %v7394_v6, %v5985_v52  ;;  %v5989_v39 = vadd.f32 %v5988_v53, %v12266_v4  ;;  %v6298_v58 = vadd.f32 %v6297_v17, %v13286_v14  ;;  %v5990_v49 = vpop.f32.mrb[151].mxu1  ;;  %v6299_v59 = vpop.f32.mrb[213].mxu0  ;;  %v14644_v17 = vld [vmem:[#allocation84_spill] sm:$0xff] }
 0x668   :  { %v7488_v62 = vmax.f32 %v7487_v32, %v5987_v0  ;;  %v5991_v16 = vadd.f32 %v5990_v49, %v12269_v10  ;;  %v6300_v47 = vadd.f32 %v6299_v59, %v13289_v15  ;;  %v6301_v30 = vpop.f32.mrb[214].mxu0 }
 0x669   :  { %v7396_v13 = vmax.f32 %v7395_v40, %v5989_v39  ;;  %v7177_v1 = vmax.f32 %v7176_v22, %v6298_v58  ;;  %v6302_v28 = vadd.f32 %v6301_v30, %v13286_v14  ;;  %v6303_v8 = vpop.f32.mrb[215].mxu0 }
 0x66a   :  { %v7489_v29 = vmax.f32 %v7488_v62, %v5991_v16  ;;  %v7270_v18 = vmax.f32 %v7269_v41, %v6300_v47  ;;  %v6304_v7 = vadd.f32 %v6303_v8, %v13289_v15 }
 0x66b   :  { %v7178_v43 = vmax.f32 %v7177_v1, %v6302_v28  ;;  %6566 = vmatmul.mubr.bf16.gmra.mrb[64].mxu0 %v14642_v23 }
 0x66c   :  { %v7271_v61 = vmax.f32 %v7270_v18, %v6304_v7  ;;  %v5994_v57 = vpop.f32.mrb[152].mxu1  ;;  %6575 = vmatprep.mubr.bf16.mxu0 %v14643_v45 }
 0x66d   :  { %v5995_v35 = vadd.f32 %v5994_v57, %v12266_v4  ;;  %v5996_v24 = vpop.f32.mrb[153].mxu1 }
 0x66e   :  { %v5997_v21 = vadd.f32 %v5996_v24, %v12269_v10  ;;  %v5998_v5 = vpop.f32.mrb[154].mxu1  ;;  %v6307_v50 = vpop.f32.mrb[216].mxu0 }
 0x66f   :  { %v7397_v11 = vmax.f32 %v7396_v13, %v5995_v35  ;;  %v5999_v9 = vadd.f32 %v5998_v5, %v12266_v4  ;;  %v6308_v6 = vadd.f32 %v6307_v50, %v13286_v14  ;;  %v6000_v33 = vpop.f32.mrb[155].mxu1  ;;  %v6309_v3 = vpop.f32.mrb[217].mxu0 }
 0x670   :  { %v7490_v31 = vmax.f32 %v7489_v29, %v5997_v21  ;;  %v6001_v32 = vadd.f32 %v6000_v33, %v12269_v10  ;;  %v6310_v34 = vadd.f32 %v6309_v3, %v13289_v15  ;;  %v6311_v42 = vpop.f32.mrb[218].mxu0  ;;  %v14645_v21 = vld [vmem:[#allocation37_spill] sm:$0xff]  ;;  %v7126_v3 = vrot.slane %v12999_v60, 4 }
 0x671   :  { %v7398_v22 = vmax.f32 %v7397_v11, %v5999_v9  ;;  %v7179_v44 = vmax.f32 %v7178_v43, %v6308_v6  ;;  %v6312_v41 = vadd.f32 %v6311_v42, %v13286_v14  ;;  %v6313_v19 = vpop.f32.mrb[219].mxu0  ;;  %v14646_v11 = vld [vmem:[#allocation87_spill] sm:$0xff]  ;;  %v7033_v9 = vrot.slane %v12995_v55, 4 }
 0x672   :  { %v7491_v52 = vmax.f32 %v7490_v31, %v6001_v32  ;;  %v7272_v54 = vmax.f32 %v7271_v61, %v6310_v34  ;;  %v6314_v0 = vadd.f32 %v6313_v19, %v13289_v15 }
 0x673   :  { %v7180_v53 = vmax.f32 %v7179_v44, %v6312_v41  ;;  %6576 = vmatmul.mubr.bf16.gmra.mrb[68].mxu0 %v14644_v17  ;;  %v7034_v17 = vmax.f32 %v12995_v55, %v7033_v9 }
 0x674   :  { %v7273_v40 = vmax.f32 %v7272_v54, %v6314_v0  ;;  %v6004_v39 = vpop.f32.mrb[156].mxu1  ;;  %6585 = vmatprep.mubr.bf16.mxu0 %v12694_v20 }
 0x675   :  { %v6005_v58 = vadd.f32 %v6004_v39, %v12266_v4  ;;  %v6006_v49 = vpop.f32.mrb[157].mxu1 }
 0x676   :  { %v6007_v59 = vadd.f32 %v6006_v49, %v12269_v10  ;;  %v6008_v62 = vpop.f32.mrb[158].mxu1  ;;  %v6317_v16 = vpop.f32.mrb[220].mxu0 }
 0x677   :  { %v7399_v47 = vmax.f32 %v7398_v22, %v6005_v58  ;;  %v6009_v30 = vadd.f32 %v6008_v62, %v12266_v4  ;;  %v6318_v13 = vadd.f32 %v6317_v16, %v13286_v14  ;;  %v6010_v1 = vpop.f32.mrb[159].mxu1  ;;  %v6319_v28 = vpop.f32.mrb[221].mxu0 }
 0x678   :  { %v7492_v8 = vmax.f32 %v7491_v52, %v6007_v59  ;;  %v6011_v29 = vadd.f32 %v6010_v1, %v12269_v10  ;;  %v6320_v18 = vadd.f32 %v6319_v28, %v13289_v15  ;;  %v6321_v20 = vpop.f32.mrb[222].mxu0  ;;  %v7127_v59 = vmax.f32 %v12999_v60, %v7126_v3 }
 0x679   :  { %v7400_v7 = vmax.f32 %v7399_v47, %v6009_v30  ;;  %v7181_v43 = vmax.f32 %v7180_v53, %v6318_v13  ;;  %v6322_v23 = vadd.f32 %v6321_v20, %v13286_v14  ;;  %v6323_v61 = vpop.f32.mrb[223].mxu0  ;;  %v14647_v13 = vld [vmem:[#allocation86_spill] sm:$0xff] }
 0x67a   :  { %v7493_v57 = vmax.f32 %v7492_v8, %v6011_v29  ;;  %v7274_v45 = vmax.f32 %v7273_v40, %v6320_v18  ;;  %v6324_v35 = vadd.f32 %v6323_v61, %v13289_v15  ;;  %v7035_v8 = vrot.slane %v7034_v17, 2 }
 0x67b   :  { %v7182_v24 = vmax.f32 %v7181_v43, %v6322_v23  ;;  %6586 = vmatmul.mubr.bf16.gmra.mrb[72].mxu0 %v14645_v21  ;;  %v7128_v18 = vrot.slane %v7127_v59, 2 }
 0x67c   :  { %v7275_v5 = vmax.f32 %v7274_v45, %v6324_v35  ;;  %v6014_v50 = vpop.f32.mrb[160].mxu1  ;;  %6595 = vmatprep.mubr.bf16.mxu0 %v14646_v11 }
 0x67d   :  { %v6015_v6 = vadd.f32 %v6014_v50, %v12266_v4  ;;  %v6016_v33 = vpop.f32.mrb[161].mxu1 }
 0x67e   :  { %v6017_v31 = vadd.f32 %v6016_v33, %v12269_v10  ;;  %v6018_v32 = vpop.f32.mrb[162].mxu1  ;;  %v6327_v34 = vpop.f32.mrb[224].mxu0  ;;  %v7129_v33 = vmax.f32 %v7127_v59, %v7128_v18  ;;  %v14650_v18 = vld [vmem:[#allocation88_spill] sm:$0xff] }
 0x67f   :  { %v7401_v42 = vmax.f32 %v7400_v7, %v6015_v6  ;;  %v6019_v22 = vadd.f32 %v6018_v32, %v12266_v4  ;;  %v6328_v44 = vadd.f32 %v6327_v34, %v13286_v14  ;;  %v6020_v41 = vpop.f32.mrb[163].mxu1  ;;  %v6329_v19 = vpop.f32.mrb[225].mxu0 }
 0x680   :  { %v7494_v52 = vmax.f32 %v7493_v57, %v6017_v31  ;;  %v6021_v54 = vadd.f32 %v6020_v41, %v12269_v10  ;;  %v6330_v0 = vadd.f32 %v6329_v19, %v13289_v15  ;;  %v6331_v53 = vpop.f32.mrb[226].mxu0 }
 0x681   :  { %v7402_v40 = vmax.f32 %v7401_v42, %v6019_v22  ;;  %v7183_v39 = vmax.f32 %v7182_v24, %v6328_v44  ;;  %v6332_v58 = vadd.f32 %v6331_v53, %v13286_v14  ;;  %v6333_v49 = vpop.f32.mrb[227].mxu0  ;;  %v14648_v42 = vld [vmem:[#allocation40_spill] sm:$0xff]  ;;  %v14649_v44 = vld [vmem:[#allocation89_spill] sm:$0xff] }
 0x682   :  { %v7495_v62 = vmax.f32 %v7494_v52, %v6021_v54  ;;  %v7276_v16 = vmax.f32 %v7275_v5, %v6330_v0  ;;  %v6334_v47 = vadd.f32 %v6333_v49, %v13289_v15  ;;  %v7036_v5 = vmax.f32 %v7034_v17, %v7035_v8 }
 0x683   :  { %v7184_v30 = vmax.f32 %v7183_v39, %v6332_v58  ;;  %6596 = vmatmul.mubr.bf16.gmra.mrb[76].mxu0 %v14647_v13  ;;  %v7130_v52 = vrot.slane %v7129_v33, 1 }
 0x684   :  { %v7277_v1 = vmax.f32 %v7276_v16, %v6334_v47  ;;  %v6024_v28 = vpop.f32.mrb[164].mxu1  ;;  %6605 = vmatprep.mubr.bf16.mxu0 %v12726_v25  ;;  %v7037_v41 = vrot.slane %v7036_v5, 1 }
 0x685   :  { %v6025_v55 = vadd.f32 %v6024_v28, %v12266_v4  ;;  %v6026_v29 = vpop.f32.mrb[165].mxu1  ;;  %v7131_v13 = vmax.f32 %v7129_v33, %v7130_v52 }
 0x686   :  { %v6027_v20 = vadd.f32 %v6026_v29, %v12269_v10  ;;  %v6028_v7 = vpop.f32.mrb[166].mxu1  ;;  %v6337_v60 = vpop.f32.mrb[228].mxu0  ;;  %v7038_v59 = vmax.f32 %v7036_v5, %v7037_v41 }
 0x687   :  { %v7403_v43 = vmax.f32 %v7402_v40, %v6025_v55  ;;  %v6029_v23 = vadd.f32 %v6028_v7, %v12266_v4  ;;  %v6338_v61 = vadd.f32 %v6337_v60, %v13286_v14  ;;  %v6030_v57 = vpop.f32.mrb[167].mxu1  ;;  %v6339_v45 = vpop.f32.mrb[229].mxu0 }
 0x688   :  { %v7496_v35 = vmax.f32 %v7495_v62, %v6027_v20  ;;  %v6031_v24 = vadd.f32 %v6030_v57, %v12269_v10  ;;  %v6340_v25 = vadd.f32 %v6339_v45, %v13289_v15  ;;  %v6341_v21 = vpop.f32.mrb[230].mxu0  ;;  %v7690_v60 = vpack.c.bf16 %v7038_v59, %v7038_v59 }
 0x689   :  { %v7404_v50 = vmax.f32 %v7403_v43, %v6029_v23  ;;  %v7185_v11 = vmax.f32 %v7184_v30, %v6338_v61  ;;  %v6342_v9 = vadd.f32 %v6341_v21, %v13286_v14  ;;  %v6343_v6 = vpop.f32.mrb[231].mxu0  ;;  %v7691_v23 = vpack.c.bf16 %v7131_v13, %v7131_v13 }
 0x68a   :  { %v7497_v3 = vmax.f32 %v7496_v35, %v6031_v24  ;;  %v7278_v31 = vmax.f32 %v7277_v1, %v6340_v25  ;;  %v6344_v4 = vadd.f32 %v6343_v6, %v13289_v15 }
 0x68b   :  { %v7405_v32 = vrot.slane %v7404_v50, 4  ;;  %v7186_v34 = vmax.f32 %v7185_v11, %v6342_v9  ;;  %6606 = vmatmul.mubr.bf16.gmra.mrb[80].mxu0 %v14648_v42 }
 0x68c   :  { %v7498_v22 = vrot.slane %v7497_v3, 4  ;;  %v7279_v10 = vmax.f32 %v7278_v31, %v6344_v4  ;;  %6615 = vmatprep.mubr.bf16.mxu0 %v14649_v44  ;;  %v7783_v31 = vunpack.c.l.b16 %v7691_v23  ;;  %v14655_v23 = vld [vmem:[#allocation46_spill] sm:$0xff] }
 0x68d   :  { %v7406_v19 = vmax.f32 %v7404_v50, %v7405_v32  ;;  %v7782_v50 = vunpack.c.l.b16 %v7690_v60 }
 0x68e   :  { %v7499_v54 = vmax.f32 %v7497_v3, %v7498_v22  ;;  %v6347_v0 = vpop.f32.mrb[232].mxu0 }
 0x68f   :  { %v7407_v53 = vrot.slane %v7406_v19, 2  ;;  %v6348_v17 = vadd.f32 %v6347_v0, %v13286_v14  ;;  %v6349_v40 = vpop.f32.mrb[233].mxu0 }
 0x690   :  { %v7500_v39 = vrot.slane %v7499_v54, 2  ;;  %v6350_v58 = vadd.f32 %v6349_v40, %v13289_v15  ;;  %v6351_v49 = vpop.f32.mrb[234].mxu0 }
 0x691   :  { %v7408_v62 = vmax.f32 %v7406_v19, %v7407_v53  ;;  %v7187_v16 = vmax.f32 %v7186_v34, %v6348_v17  ;;  %v6352_v47 = vadd.f32 %v6351_v49, %v13286_v14  ;;  %v6353_v30 = vpop.f32.mrb[235].mxu0  ;;  %v14651_v34 = vld [vmem:[#allocation43_spill] sm:$0xff] }
 0x692   :  { %v7501_v1 = vmax.f32 %v7499_v54, %v7500_v39  ;;  %v7280_v28 = vmax.f32 %v7279_v10, %v6350_v58  ;;  %v6354_v8 = vadd.f32 %v6353_v30, %v13289_v15  ;;  %v14652_v10 = vld [vmem:[#allocation91_spill] sm:$0xff]  ;;  %v14654_v30 = vld [vmem:[#allocation92_spill] sm:$0xff] }
 0x693   :  { %v7409_v55 = vrot.slane %v7408_v62, 1  ;;  %v7188_v29 = vmax.f32 %v7187_v16, %v6352_v47  ;;  %6616 = vmatmul.mubr.bf16.gmra.mrb[84].mxu0 %v14650_v18  ;;  %v14653_v16 = vld [vmem:[#allocation90_spill] sm:$0xff] }
 0x694   :  { %v7502_v20 = vrot.slane %v7501_v1, 1  ;;  %v7281_v7 = vmax.f32 %v7280_v28, %v6354_v8  ;;  %6625 = vmatprep.mubr.bf16.mxu0 %v12758_v48 }
 0x695   :  { %v7410_v43 = vmax.f32 %v7408_v62, %v7409_v55 }
 0x696   :  { %v7503_v61 = vmax.f32 %v7501_v1, %v7502_v20  ;;  %v6357_v57 = vpop.f32.mrb[236].mxu0 }
 0x697   :  { %v7694_v45 = vpack.c.bf16 %v7410_v43, %v7410_v43  ;;  %v6358_v35 = vadd.f32 %v6357_v57, %v13286_v14  ;;  %v6359_v24 = vpop.f32.mrb[237].mxu0  ;;  %v14656_v57 = vld [vmem:[#allocation94_spill] sm:$0xff] }
 0x698   :  { %v7695_v25 = vpack.c.bf16 %v7503_v61, %v7503_v61  ;;  %v6360_v21 = vadd.f32 %v6359_v24, %v13289_v15  ;;  %v6361_v5 = vpop.f32.mrb[238].mxu0 }
 0x699   :  { %v7786_v11 = vunpack.c.l.b16 %v7694_v45  ;;  %v7189_v9 = vmax.f32 %v7188_v29, %v6358_v35  ;;  %v6362_v6 = vadd.f32 %v6361_v5, %v13286_v14  ;;  %v6363_v48 = vpop.f32.mrb[239].mxu0 }
 0x69a   :  { %v7282_v33 = vmax.f32 %v7281_v7, %v6360_v21  ;;  %v6364_v3 = vadd.f32 %v6363_v48, %v13289_v15  ;;  %v7787_v4 = vunpack.c.l.b16 %v7695_v25 }
 0x69b   :  { %v7190_v32 = vmax.f32 %v7189_v9, %v6362_v6  ;;  %6626 = vmatmul.mubr.bf16.gmra.mrb[88].mxu0 %v14651_v34  ;;  %v7791_v42 = vsel %vm7790_vm4, %v7786_v11, %v7782_v50 }
 0x69c   :  { %v7283_v22 = vmax.f32 %v7282_v33, %v6364_v3  ;;  %6635 = vmatprep.mubr.bf16.mxu0 %v14652_v10  ;;  %v7792_v44 = vsel %vm7790_vm4, %v7787_v4, %v7783_v31  ;;  %v7795_v52 = vpack.c.b16 %v7791_v42, %v7791_v42  ;;  %v14657_v33 = vld [vmem:[#allocation93_spill] sm:$0xff]  ;;  %v14658_v31 = vld [vmem:[#allocation95_spill] sm:$0xff] }
 0x69d   :  { %v7796_v41 = vpack.c.b16 %v7792_v44, %v7792_v44 }
 0x69e   :  { %v6367_v19 = vpop.f32.mrb[240].mxu0 }
 0x69f   :  { %v6368_v54 = vadd.f32 %v6367_v19, %v13286_v14  ;;  %v6369_v0 = vpop.f32.mrb[241].mxu0  ;;  %8155 = vmatprep.mubr.bf16.mxu1 %v7796_v41 }
 0x6a0   :  { %v6370_v53 = vadd.f32 %v6369_v0, %v13289_v15  ;;  %v6371_v17 = vpop.f32.mrb[242].mxu0  ;;  %8156 = vmatmul.mubr.bf16.vlgmr.msra.gmra.mrb[168].mxu1 %v7795_v52  ;;  %v14659_v0 = vld [vmem:[#allocation22_spill] sm:$0xff] }
 0x6a1   :  { %v7191_v40 = vmax.f32 %v7190_v32, %v6368_v54  ;;  %v6372_v39 = vadd.f32 %v6371_v17, %v13286_v14  ;;  %v6373_v58 = vpop.f32.mrb[243].mxu0  ;;  %v14660_v17 = vld [vmem:[#allocation16_spill] sm:$0xff] }
 0x6a2   :  { %v7284_v49 = vmax.f32 %v7283_v22, %v6370_v53  ;;  %v6374_v59 = vadd.f32 %v6373_v58, %v13289_v15 }
 0x6a3   :  { %v7192_v62 = vmax.f32 %v7191_v40, %v6372_v39  ;;  %6636 = vmatmul.mubr.bf16.gmra.mrb[92].mxu0 %v14653_v16 }
 0x6a4   :  { %v7285_v47 = vmax.f32 %v7284_v49, %v6374_v59  ;;  %6645 = vmatprep.mubr.bf16.mxu0 %v14654_v30 }
 0x6a6   :  { %v6377_v13 = vpop.f32.mrb[244].mxu0 }
 0x6a7   :  { %v6378_v1 = vadd.f32 %v6377_v13, %v13286_v14  ;;  %v6379_v28 = vpop.f32.mrb[245].mxu0 }
 0x6a8   :  { %v6380_v8 = vadd.f32 %v6379_v28, %v13289_v15  ;;  %v6381_v55 = vpop.f32.mrb[246].mxu0  ;;  %v14661_v28 = vld [vmem:[#allocation21_spill] sm:$0xff] }
 0x6a9   :  { %v7193_v29 = vmax.f32 %v7192_v62, %v6378_v1  ;;  %v6382_v18 = vadd.f32 %v6381_v55, %v13286_v14  ;;  %v6383_v20 = vpop.f32.mrb[247].mxu0  ;;  %v14662_v55 = vld [vmem:[#allocation26_spill] sm:$0xff] }
 0x6aa   :  { %v7286_v7 = vmax.f32 %v7285_v47, %v6380_v8  ;;  %v6384_v60 = vadd.f32 %v6383_v20, %v13289_v15 }
 0x6ab   :  { %v7194_v43 = vmax.f32 %v7193_v29, %v6382_v18  ;;  %6646 = vmatmul.mubr.bf16.gmra.mrb[96].mxu0 %v14655_v23 }
 0x6ac   :  { %v7287_v61 = vmax.f32 %v7286_v7, %v6384_v60  ;;  %6655 = vmatprep.mubr.bf16.mxu0 %v14656_v57 }
 0x6ae   :  { %v6387_v45 = vpop.f32.mrb[248].mxu0 }
 0x6af   :  { %v6388_v35 = vadd.f32 %v6387_v45, %v13286_v14  ;;  %v6389_v24 = vpop.f32.mrb[249].mxu0 }
 0x6b0   :  { %v6390_v25 = vadd.f32 %v6389_v24, %v13289_v15  ;;  %v6391_v21 = vpop.f32.mrb[250].mxu0  ;;  %v14663_v24 = vld [vmem:[#allocation8_spill] sm:$0xff] }
 0x6b1   :  { %v7195_v5 = vmax.f32 %v7194_v43, %v6388_v35  ;;  %v6392_v50 = vadd.f32 %v6391_v21, %v13286_v14  ;;  %v6393_v11 = vpop.f32.mrb[251].mxu0  ;;  %v14664_v21 = vld [vmem:[#allocation34_spill] sm:$0xff] }
 0x6b2   :  { %v7288_v9 = vmax.f32 %v7287_v61, %v6390_v25  ;;  %v6394_v6 = vadd.f32 %v6393_v11, %v13289_v15 }
 0x6b3   :  { %v7196_v48 = vmax.f32 %v7195_v5, %v6392_v50  ;;  %6656 = vmatmul.mubr.bf16.gmra.mrb[100].mxu0 %v14657_v33 }
 0x6b4   :  { %v7289_v3 = vmax.f32 %v7288_v9, %v6394_v6  ;;  %6665 = vmatprep.mubr.bf16.mxu0 %v14658_v31 }
 0x6b6   :  { %v6397_v4 = vpop.f32.mrb[252].mxu0 }
 0x6b7   :  { %v6398_v32 = vadd.f32 %v6397_v4, %v13286_v14  ;;  %v6399_v34 = vpop.f32.mrb[253].mxu0 }
 0x6b8   :  { %v6400_v42 = vadd.f32 %v6399_v34, %v13289_v15  ;;  %v6401_v22 = vpop.f32.mrb[254].mxu0  ;;  %v14665_v34 = vld [vmem:[#allocation14_spill] sm:$0xff] }
 0x6b9   :  { %v7197_v10 = vmax.f32 %v7196_v48, %v6398_v32  ;;  %v6402_v44 = vadd.f32 %v6401_v22, %v13286_v14  ;;  %v6403_v41 = vpop.f32.mrb[255].mxu0  ;;  %v14666_v22 = vld [vmem:[#allocation11_spill] sm:$0xff] }
 0x6ba   :  { %v7290_v19 = vmax.f32 %v7289_v3, %v6400_v42  ;;  %v6404_v52 = vadd.f32 %v6403_v41, %v13289_v15 }
 0x6bb   :  { %v7198_v54 = vmax.f32 %v7197_v10, %v6402_v44  ;;  %6666 = vmatmul.mubr.bf16.gmra.mrb[104].mxu0 %v14659_v0 }
 0x6bc   :  { %v7291_v53 = vmax.f32 %v7290_v19, %v6404_v52  ;;  %6675 = vmatprep.mubr.bf16.mxu0 %v14660_v17 }
 0x6be   :  { %v6407_v40 = vpop.f32.mrb[0].mxu0 }
 0x6bf   :  { %v6408_v39 = vadd.f32 %v6407_v40, %v13286_v14  ;;  %v6409_v58 = vpop.f32.mrb[1].mxu0 }
 0x6c0   :  { %v6410_v49 = vadd.f32 %v6409_v58, %v13289_v15  ;;  %v6411_v59 = vpop.f32.mrb[2].mxu0  ;;  %v14667_v58 = vld [vmem:[#allocation24_spill] sm:$0xff] }
 0x6c1   :  { %v7199_v62 = vmax.f32 %v7198_v54, %v6408_v39  ;;  %v6412_v16 = vadd.f32 %v6411_v59, %v13286_v14  ;;  %v6413_v47 = vpop.f32.mrb[3].mxu0  ;;  %v14668_v59 = vld [vmem:[#allocation13_spill] sm:$0xff] }
 0x6c2   :  { %v7292_v30 = vmax.f32 %v7291_v53, %v6410_v49  ;;  %v6414_v13 = vadd.f32 %v6413_v47, %v13289_v15 }
 0x6c3   :  { %v7200_v1 = vmax.f32 %v7199_v62, %v6412_v16  ;;  %6676 = vmatmul.mubr.bf16.gmra.mrb[108].mxu0 %v14661_v28 }
 0x6c4   :  { %v7293_v8 = vmax.f32 %v7292_v30, %v6414_v13  ;;  %6685 = vmatprep.mubr.bf16.mxu0 %v14662_v55 }
 0x6c6   :  { %v6417_v29 = vpop.f32.mrb[4].mxu0 }
 0x6c7   :  { %v6418_v18 = vadd.f32 %v6417_v29, %v13286_v14  ;;  %v6419_v20 = vpop.f32.mrb[5].mxu0 }
 0x6c8   :  { %v6420_v7 = vadd.f32 %v6419_v20, %v13289_v15  ;;  %v6421_v60 = vpop.f32.mrb[6].mxu0  ;;  %v14669_v20 = vld [vmem:[#allocation9_spill] sm:$0xff] }
 0x6c9   :  { %v7201_v43 = vmax.f32 %v7200_v1, %v6418_v18  ;;  %v6422_v23 = vadd.f32 %v6421_v60, %v13286_v14  ;;  %v6423_v61 = vpop.f32.mrb[7].mxu0  ;;  %v14670_v60 = vld [vmem:[#allocation17_spill] sm:$0xff] }
 0x6ca   :  { %v7294_v57 = vmax.f32 %v7293_v8, %v6420_v7  ;;  %v6424_v45 = vadd.f32 %v6423_v61, %v13289_v15 }
 0x6cb   :  { %v7202_v35 = vmax.f32 %v7201_v43, %v6422_v23  ;;  %6686 = vmatmul.mubr.bf16.gmra.mrb[112].mxu0 %v14663_v24 }
 0x6cc   :  { %v7295_v25 = vmax.f32 %v7294_v57, %v6424_v45  ;;  %6695 = vmatprep.mubr.bf16.mxu0 %v14664_v21 }
 0x6ce   :  { %v6427_v5 = vpop.f32.mrb[8].mxu0 }
 0x6cf   :  { %v6428_v50 = vadd.f32 %v6427_v5, %v13286_v14  ;;  %v6429_v11 = vpop.f32.mrb[9].mxu0 }
 0x6d0   :  { %v6430_v9 = vadd.f32 %v6429_v11, %v13289_v15  ;;  %v6431_v6 = vpop.f32.mrb[10].mxu0  ;;  %v14671_v11 = vld [vmem:[#allocation12_spill] sm:$0xff] }
 0x6d1   :  { %v7203_v48 = vmax.f32 %v7202_v35, %v6428_v50  ;;  %v6432_v33 = vadd.f32 %v6431_v6, %v13286_v14  ;;  %v6433_v3 = vpop.f32.mrb[11].mxu0  ;;  %v14672_v6 = vld [vmem:[#allocation23_spill] sm:$0xff] }
 0x6d2   :  { %v7296_v31 = vmax.f32 %v7295_v25, %v6430_v9  ;;  %v6434_v4 = vadd.f32 %v6433_v3, %v13289_v15 }
 0x6d3   :  { %v7204_v32 = vmax.f32 %v7203_v48, %v6432_v33  ;;  %6696 = vmatmul.mubr.bf16.gmra.mrb[116].mxu0 %v14665_v34 }
 0x6d4   :  { %v7297_v42 = vmax.f32 %v7296_v31, %v6434_v4  ;;  %6705 = vmatprep.mubr.bf16.mxu0 %v14666_v22 }
 0x6d6   :  { %v6437_v10 = vpop.f32.mrb[12].mxu0 }
 0x6d7   :  { %v6438_v44 = vadd.f32 %v6437_v10, %v13286_v14  ;;  %v6439_v41 = vpop.f32.mrb[13].mxu0 }
 0x6d8   :  { %v6440_v19 = vadd.f32 %v6439_v41, %v13289_v15  ;;  %v6441_v52 = vpop.f32.mrb[14].mxu0  ;;  %v14673_v41 = vld [vmem:[#allocation15_spill] sm:$0xff] }
 0x6d9   :  { %v7205_v54 = vmax.f32 %v7204_v32, %v6438_v44  ;;  %v6442_v0 = vadd.f32 %v6441_v52, %v13286_v14  ;;  %v6443_v53 = vpop.f32.mrb[15].mxu0  ;;  %v14674_v52 = vld [vmem:[#allocation27_spill] sm:$0xff] }
 0x6da   :  { %v7298_v17 = vmax.f32 %v7297_v42, %v6440_v19  ;;  %v6444_v40 = vadd.f32 %v6443_v53, %v13289_v15 }
 0x6db   :  { %v7206_v39 = vmax.f32 %v7205_v54, %v6442_v0  ;;  %6706 = vmatmul.mubr.bf16.gmra.mrb[120].mxu0 %v14667_v58 }
 0x6dc   :  { %v7299_v49 = vmax.f32 %v7298_v17, %v6444_v40  ;;  %6715 = vmatprep.mubr.bf16.mxu0 %v14668_v59 }
 0x6de   :  { %v6447_v62 = vpop.f32.mrb[16].mxu0 }
 0x6df   :  { %v6448_v16 = vadd.f32 %v6447_v62, %v13286_v14  ;;  %v6449_v47 = vpop.f32.mrb[17].mxu0 }
 0x6e0   :  { %v6450_v30 = vadd.f32 %v6449_v47, %v13289_v15  ;;  %v6451_v13 = vpop.f32.mrb[18].mxu0  ;;  %v14675_v47 = vld [vmem:[#allocation18_spill] sm:$0xff] }
 0x6e1   :  { %v7207_v1 = vmax.f32 %v7206_v39, %v6448_v16  ;;  %v6452_v28 = vadd.f32 %v6451_v13, %v13286_v14  ;;  %v6453_v8 = vpop.f32.mrb[19].mxu0  ;;  %v14676_v13 = vld [vmem:[#allocation29_spill] sm:$0xff] }
 0x6e2   :  { %v7300_v55 = vmax.f32 %v7299_v49, %v6450_v30  ;;  %v6454_v29 = vadd.f32 %v6453_v8, %v13289_v15 }
 0x6e3   :  { %v7208_v18 = vmax.f32 %v7207_v1, %v6452_v28  ;;  %6716 = vmatmul.mubr.bf16.gmra.mrb[124].mxu0 %v14669_v20 }
 0x6e4   :  { %v7301_v7 = vmax.f32 %v7300_v55, %v6454_v29  ;;  %6725 = vmatprep.mubr.bf16.mxu0 %v14670_v60 }
 0x6e6   :  { %v6457_v43 = vpop.f32.mrb[20].mxu0 }
 0x6e7   :  { %v6458_v23 = vadd.f32 %v6457_v43, %v13286_v14  ;;  %v6459_v61 = vpop.f32.mrb[21].mxu0 }
 0x6e8   :  { %v6460_v57 = vadd.f32 %v6459_v61, %v13289_v15  ;;  %v6461_v45 = vpop.f32.mrb[22].mxu0  ;;  %v14677_v61 = vld [vmem:[#allocation25_spill] sm:$0xff] }
 0x6e9   :  { %v7209_v35 = vmax.f32 %v7208_v18, %v6458_v23  ;;  %v6462_v24 = vadd.f32 %v6461_v45, %v13286_v14  ;;  %v6463_v25 = vpop.f32.mrb[23].mxu0  ;;  %v14678_v45 = vld [vmem:[#allocation32_spill] sm:$0xff] }
 0x6ea   :  { %v7302_v21 = vmax.f32 %v7301_v7, %v6460_v57  ;;  %v6464_v5 = vadd.f32 %v6463_v25, %v13289_v15 }
 0x6eb   :  { %v7210_v50 = vmax.f32 %v7209_v35, %v6462_v24  ;;  %6726 = vmatmul.mubr.bf16.gmra.mrb[128].mxu0 %v14671_v11 }
 0x6ec   :  { %v7303_v9 = vmax.f32 %v7302_v21, %v6464_v5  ;;  %6735 = vmatprep.mubr.bf16.mxu0 %v14672_v6 }
 0x6ee   :  { %v6467_v48 = vpop.f32.mrb[24].mxu0 }
 0x6ef   :  { %v6468_v33 = vadd.f32 %v6467_v48, %v13286_v14  ;;  %v6469_v3 = vpop.f32.mrb[25].mxu0 }
 0x6f0   :  { %v6470_v31 = vadd.f32 %v6469_v3, %v13289_v15  ;;  %v6471_v4 = vpop.f32.mrb[26].mxu0  ;;  %v14679_v3 = vld [vmem:[#allocation28_spill] sm:$0xff] }
 0x6f1   :  { %v7211_v32 = vmax.f32 %v7210_v50, %v6468_v33  ;;  %v6472_v34 = vadd.f32 %v6471_v4, %v13286_v14  ;;  %v6473_v42 = vpop.f32.mrb[27].mxu0  ;;  %v14680_v4 = vld [vmem:[#allocation36_spill] sm:$0xff] }
 0x6f2   :  { %v7304_v22 = vmax.f32 %v7303_v9, %v6470_v31  ;;  %v6474_v10 = vadd.f32 %v6473_v42, %v13289_v15 }
 0x6f3   :  { %v7212_v44 = vmax.f32 %v7211_v32, %v6472_v34  ;;  %6736 = vmatmul.mubr.bf16.gmra.mrb[132].mxu0 %v14673_v41 }
 0x6f4   :  { %v7305_v19 = vmax.f32 %v7304_v22, %v6474_v10  ;;  %6745 = vmatprep.mubr.bf16.mxu0 %v14674_v52 }
 0x6f6   :  { %v6477_v54 = vpop.f32.mrb[28].mxu0 }
 0x6f7   :  { %v6478_v0 = vadd.f32 %v6477_v54, %v13286_v14  ;;  %v6479_v53 = vpop.f32.mrb[29].mxu0  ;;  %v14681_v54 = vld [vmem:[#allocation31_spill] sm:$0xff] }
 0x6f8   :  { %v6480_v17 = vadd.f32 %v6479_v53, %v13289_v15  ;;  %v6481_v40 = vpop.f32.mrb[30].mxu0  ;;  %v14682_v53 = vld [vmem:[#allocation39_spill] sm:$0xff] }
 0x6f9   :  { %v7213_v39 = vmax.f32 %v7212_v44, %v6478_v0  ;;  %v6482_v58 = vadd.f32 %v6481_v40, %v13286_v14  ;;  %v6483_v49 = vpop.f32.mrb[31].mxu0 }
 0x6fa   :  { %v7306_v59 = vmax.f32 %v7305_v19, %v6480_v17  ;;  %v6484_v62 = vadd.f32 %v6483_v49, %v13289_v15 }
 0x6fb   :  { %v7214_v16 = vmax.f32 %v7213_v39, %v6482_v58  ;;  %6746 = vmatmul.mubr.bf16.gmra.mrb[136].mxu0 %v14675_v47 }
 0x6fc   :  { %v7307_v30 = vmax.f32 %v7306_v59, %v6484_v62  ;;  %6755 = vmatprep.mubr.bf16.mxu0 %v14676_v13 }
 0x6fe   :  { %v6487_v1 = vpop.f32.mrb[32].mxu0 }
 0x6ff   :  { %v6488_v28 = vadd.f32 %v6487_v1, %v13286_v14  ;;  %v6489_v8 = vpop.f32.mrb[33].mxu0  ;;  %v14683_v1 = vld [vmem:[#allocation35_spill] sm:$0xff] }
 0x700   :  { %v6490_v55 = vadd.f32 %v6489_v8, %v13289_v15  ;;  %v6491_v29 = vpop.f32.mrb[34].mxu0 }
 0x701   :  { %v7215_v18 = vmax.f32 %v7214_v16, %v6488_v28  ;;  %v6492_v20 = vadd.f32 %v6491_v29, %v13286_v14  ;;  %v6493_v7 = vpop.f32.mrb[35].mxu0 }
 0x702   :  { %v7308_v60 = vmax.f32 %v7307_v30, %v6490_v55  ;;  %v6494_v43 = vadd.f32 %v6493_v7, %v13289_v15 }
 0x703   :  { %v7216_v23 = vmax.f32 %v7215_v18, %v6492_v20  ;;  %6756 = vmatmul.mubr.bf16.gmra.mrb[140].mxu0 %v14677_v61 }
 0x704   :  { %v7309_v57 = vmax.f32 %v7308_v60, %v6494_v43  ;;  %6765 = vmatprep.mubr.bf16.mxu0 %v14678_v45  ;;  %v14684_v45 = vld [vmem:[#allocation38_spill] sm:$0xff] }
 0x706   :  { %v6497_v35 = vpop.f32.mrb[36].mxu0 }
 0x707   :  { %v6498_v24 = vadd.f32 %v6497_v35, %v13286_v14  ;;  %v6499_v25 = vpop.f32.mrb[37].mxu0 }
 0x708   :  { %v6500_v21 = vadd.f32 %v6499_v25, %v13289_v15  ;;  %v6501_v5 = vpop.f32.mrb[38].mxu0 }
 0x709   :  { %v7217_v50 = vmax.f32 %v7216_v23, %v6498_v24  ;;  %v6502_v11 = vadd.f32 %v6501_v5, %v13286_v14  ;;  %v6503_v9 = vpop.f32.mrb[39].mxu0 }
 0x70a   :  { %v7310_v6 = vmax.f32 %v7309_v57, %v6500_v21  ;;  %v6504_v48 = vadd.f32 %v6503_v9, %v13289_v15 }
 0x70b   :  { %v13745_v33 = vmax.f32 %v7217_v50, %v6502_v11  ;;  %6766 = vmatmul.mubr.bf16.gmra.mrb[144].mxu0 %v14679_v3 }
 0x70c   :  { %v13748_v31 = vmax.f32 %v7310_v6, %v6504_v48  ;;  %6775 = vmatprep.mubr.bf16.mxu0 %v14680_v4  ;;  %v14685_v4 = vld [vmem:[#allocation42_spill] sm:$0xff] }
 0x70e   :  { %v6507_v32 = vpop.f32.mrb[40].mxu0 }
 0x70f   :  { %v6509_v34 = vpop.f32.mrb[41].mxu0  ;;  %v6508_v22 = vadd.f32 %v6507_v32, %v13286_v14 }
 0x710   :  { %v6511_v42 = vpop.f32.mrb[42].mxu0  ;;  %v6510_v41 = vadd.f32 %v6509_v34, %v13289_v15 }
 0x711   :  { %v6512_v10 = vadd.f32 %v6511_v42, %v13286_v14  ;;  %v6513_v44 = vpop.f32.mrb[43].mxu0 }
 0x712   :  { %v6514_v19 = vadd.f32 %v6513_v44, %v13289_v15 }
 0x713   :  { %v7504_v52 = vmax.f32 %v6508_v22, %v6512_v10  ;;  %6776 = vmatmul.mubr.bf16.gmra.mrb[148].mxu0 %v14681_v54 }
 0x714   :  { %v7597_v0 = vmax.f32 %v6510_v41, %v6514_v19  ;;  %6785 = vmatprep.mubr.bf16.mxu0 %v14682_v53 }
 0x716   :  { %v6517_v17 = vpop.f32.mrb[44].mxu0 }
 0x717   :  { %v6518_v40 = vadd.f32 %v6517_v17, %v13286_v14  ;;  %v6519_v39 = vpop.f32.mrb[45].mxu0 }
 0x718   :  { %v6520_v58 = vadd.f32 %v6519_v39, %v13289_v15  ;;  %v6521_v49 = vpop.f32.mrb[46].mxu0 }
 0x719   :  { %v7505_v59 = vmax.f32 %v7504_v52, %v6518_v40  ;;  %v6522_v62 = vadd.f32 %v6521_v49, %v13286_v14  ;;  %v6523_v16 = vpop.f32.mrb[47].mxu0 }
 0x71a   :  { %v7598_v47 = vmax.f32 %v7597_v0, %v6520_v58  ;;  %v6524_v30 = vadd.f32 %v6523_v16, %v13289_v15 }
 0x71b   :  { %v7506_v13 = vmax.f32 %v7505_v59, %v6522_v62  ;;  %6786 = vmatmul.mubr.bf16.gmra.mrb[152].mxu0 %v14683_v1 }
 0x71c   :  { %v7599_v28 = vmax.f32 %v7598_v47, %v6524_v30  ;;  %6795 = vmatprep.mubr.bf16.mxu0 %v13046_v37 }
 0x71e   :  { %v6527_v8 = vpop.f32.mrb[48].mxu0 }
 0x71f   :  { %v6528_v55 = vadd.f32 %v6527_v8, %v13286_v14  ;;  %v6529_v29 = vpop.f32.mrb[49].mxu0 }
 0x720   :  { %v6530_v18 = vadd.f32 %v6529_v29, %v13289_v15  ;;  %v6531_v20 = vpop.f32.mrb[50].mxu0 }
 0x721   :  { %v7507_v7 = vmax.f32 %v7506_v13, %v6528_v55  ;;  %v6532_v60 = vadd.f32 %v6531_v20, %v13286_v14  ;;  %v6533_v43 = vpop.f32.mrb[51].mxu0  ;;  %v14686_v13 = vld [vmem:[#allocation41_spill] sm:$0xff] }
 0x722   :  { %v7600_v23 = vmax.f32 %v7599_v28, %v6530_v18  ;;  %v6534_v61 = vadd.f32 %v6533_v43, %v13289_v15 }
 0x723   :  { %v7508_v57 = vmax.f32 %v7507_v7, %v6532_v60  ;;  %6796 = vmatmul.mubr.bf16.gmra.mrb[156].mxu0 %v14684_v45 }
 0x724   :  { %v7601_v35 = vmax.f32 %v7600_v23, %v6534_v61  ;;  %6805 = vmatprep.mubr.bf16.mxu0 %v13062_v46 }
 0x726   :  { %v6537_v37 = vpop.f32.mrb[52].mxu0 }
 0x727   :  { %v6538_v24 = vadd.f32 %v6537_v37, %v13286_v14  ;;  %v6539_v25 = vpop.f32.mrb[53].mxu0 }
 0x728   :  { %v6540_v21 = vadd.f32 %v6539_v25, %v13289_v15  ;;  %v6541_v5 = vpop.f32.mrb[54].mxu0 }
 0x729   :  { %v7509_v50 = vmax.f32 %v7508_v57, %v6538_v24  ;;  %v6542_v11 = vadd.f32 %v6541_v5, %v13286_v14  ;;  %v6543_v9 = vpop.f32.mrb[55].mxu0 }
 0x72a   :  { %v7602_v6 = vmax.f32 %v7601_v35, %v6540_v21  ;;  %v6544_v48 = vadd.f32 %v6543_v9, %v13289_v15 }
 0x72b   :  { %v7510_v3 = vmax.f32 %v7509_v50, %v6542_v11  ;;  %6806 = vmatmul.mubr.bf16.gmra.mrb[160].mxu0 %v14685_v4 }
 0x72c   :  { %v7603_v32 = vmax.f32 %v7602_v6, %v6544_v48  ;;  %6815 = vmatprep.mubr.bf16.mxu0 %v13078_v26 }
 0x72e   :  { %v6547_v46 = vpop.f32.mrb[56].mxu0 }
 0x72f   :  { %v6548_v34 = vadd.f32 %v6547_v46, %v13286_v14  ;;  %v6549_v42 = vpop.f32.mrb[57].mxu0 }
 0x730   :  { %v6550_v22 = vadd.f32 %v6549_v42, %v13289_v15  ;;  %v6551_v10 = vpop.f32.mrb[58].mxu0 }
 0x731   :  { %v7511_v44 = vmax.f32 %v7510_v3, %v6548_v34  ;;  %v6552_v41 = vadd.f32 %v6551_v10, %v13286_v14  ;;  %v6553_v19 = vpop.f32.mrb[59].mxu0 }
 0x732   :  { %v7604_v52 = vmax.f32 %v7603_v32, %v6550_v22  ;;  %v6554_v54 = vadd.f32 %v6553_v19, %v13289_v15  ;;  %v14687_v22 = vld [vmem:[#allocation45_spill] sm:$0xff] }
 0x733   :  { %v7512_v0 = vmax.f32 %v7511_v44, %v6552_v41  ;;  %6816 = vmatmul.mubr.bf16.gmra.mrb[164].mxu0 %v13074_v63 }
 0x734   :  { %v7605_v53 = vmax.f32 %v7604_v52, %v6554_v54  ;;  %6825 = vmatprep.mubr.bf16.mxu0 %v13094_v36 }
 0x736   :  { %v6557_v26 = vpop.f32.mrb[60].mxu0 }
 0x737   :  { %v6558_v17 = vadd.f32 %v6557_v26, %v13286_v14  ;;  %v6559_v40 = vpop.f32.mrb[61].mxu0 }
 0x738   :  { %v6560_v39 = vadd.f32 %v6559_v40, %v13289_v15  ;;  %v6561_v58 = vpop.f32.mrb[62].mxu0  ;;  %v14688_v40 = vld [vmem:[#allocation44_spill] sm:$0xff] }
 0x739   :  { %v7513_v49 = vmax.f32 %v7512_v0, %v6558_v17  ;;  %v6562_v59 = vadd.f32 %v6561_v58, %v13286_v14  ;;  %v6563_v62 = vpop.f32.mrb[63].mxu0  ;;  %v14689_v58 = vld [vmem:[#allocation48_spill] sm:$0xff] }
 0x73a   :  { %v7606_v16 = vmax.f32 %v7605_v53, %v6560_v39  ;;  %v6564_v47 = vadd.f32 %v6563_v62, %v13289_v15 }
 0x73b   :  { %v7514_v30 = vmax.f32 %v7513_v49, %v6562_v59  ;;  %6826 = vmatmul.mubr.bf16.gmra.mrb[168].mxu0 %v14686_v13 }
 0x73c   :  { %v7607_v63 = vmax.f32 %v7606_v16, %v6564_v47  ;;  %6835 = vmatprep.mubr.bf16.mxu0 %v13116_v56 }
 0x73e   :  { %v6567_v36 = vpop.f32.mrb[64].mxu0 }
 0x73f   :  { %v6568_v1 = vadd.f32 %v6567_v36, %v13286_v14  ;;  %v6569_v28 = vpop.f32.mrb[65].mxu0 }
 0x740   :  { %v6570_v8 = vadd.f32 %v6569_v28, %v13289_v15  ;;  %v6571_v55 = vpop.f32.mrb[66].mxu0  ;;  %v14690_v28 = vld [vmem:[#allocation47_spill] sm:$0xff] }
 0x741   :  { %v7515_v29 = vmax.f32 %v7514_v30, %v6568_v1  ;;  %v6572_v18 = vadd.f32 %v6571_v55, %v13286_v14  ;;  %v6573_v20 = vpop.f32.mrb[67].mxu0  ;;  %v14691_v55 = vld [vmem:[#allocation50_spill] sm:$0xff] }
 0x742   :  { %v7608_v7 = vmax.f32 %v7607_v63, %v6570_v8  ;;  %v6574_v60 = vadd.f32 %v6573_v20, %v13289_v15 }
 0x743   :  { %v7516_v43 = vmax.f32 %v7515_v29, %v6572_v18  ;;  %6836 = vmatmul.mubr.bf16.gmra.mrb[172].mxu0 %v13112_v2 }
 0x744   :  { %v7609_v23 = vmax.f32 %v7608_v7, %v6574_v60  ;;  %6845 = vmatprep.mubr.bf16.mxu0 %v13132_v51 }
 0x746   :  { %v6577_v56 = vpop.f32.mrb[68].mxu0 }
 0x747   :  { %v6578_v61 = vadd.f32 %v6577_v56, %v13286_v14  ;;  %v6579_v57 = vpop.f32.mrb[69].mxu0 }
 0x748   :  { %v6580_v45 = vadd.f32 %v6579_v57, %v13289_v15  ;;  %v6581_v35 = vpop.f32.mrb[70].mxu0 }
 0x749   :  { %v7517_v37 = vmax.f32 %v7516_v43, %v6578_v61  ;;  %v6582_v24 = vadd.f32 %v6581_v35, %v13286_v14  ;;  %v6583_v25 = vpop.f32.mrb[71].mxu0  ;;  %v14692_v35 = vld [vmem:[#allocation49_spill] sm:$0xff] }
 0x74a   :  { %v7610_v21 = vmax.f32 %v7609_v23, %v6580_v45  ;;  %v6584_v5 = vadd.f32 %v6583_v25, %v13289_v15 }
 0x74b   :  { %v7518_v50 = vmax.f32 %v7517_v37, %v6582_v24  ;;  %6846 = vmatmul.mubr.bf16.gmra.mrb[176].mxu0 %v13128_v12  ;;  %v14693_v24 = vld [vmem:[#allocation96_spill] sm:$0xff] }
 0x74c   :  { %v7611_v2 = vmax.f32 %v7610_v21, %v6584_v5  ;;  %6855 = vmatprep.mubr.bf16.mxu0 %v13148_v27 }
 0x74e   :  { %v6587_v51 = vpop.f32.mrb[72].mxu0 }
 0x74f   :  { %v6588_v11 = vadd.f32 %v6587_v51, %v13286_v14  ;;  %v6589_v9 = vpop.f32.mrb[73].mxu0 }
 0x750   :  { %v6590_v6 = vadd.f32 %v6589_v9, %v13289_v15  ;;  %v6591_v48 = vpop.f32.mrb[74].mxu0 }
 0x751   :  { %v7519_v3 = vmax.f32 %v7518_v50, %v6588_v11  ;;  %v6592_v4 = vadd.f32 %v6591_v48, %v13286_v14  ;;  %v6593_v32 = vpop.f32.mrb[75].mxu0 }
 0x752   :  { %v7612_v46 = vmax.f32 %v7611_v2, %v6590_v6  ;;  %v6594_v34 = vadd.f32 %v6593_v32, %v13289_v15 }
 0x753   :  { %v7520_v42 = vmax.f32 %v7519_v3, %v6592_v4  ;;  %6856 = vmatmul.mubr.bf16.gmra.mrb[180].mxu0 %v14687_v22  ;;  %v14694_v4 = vld [vmem:[#allocation52_spill] sm:$0xff] }
 0x754   :  { %v7613_v12 = vmax.f32 %v7612_v46, %v6594_v34  ;;  %6865 = vmatprep.mubr.bf16.mxu0 %v13164_v38  ;;  %v14695_v46 = vld [vmem:[#allocation54_spill] sm:$0xff] }
 0x756   :  { %v6597_v27 = vpop.f32.mrb[76].mxu0 }
 0x757   :  { %v6598_v10 = vadd.f32 %v6597_v27, %v13286_v14  ;;  %v6599_v44 = vpop.f32.mrb[77].mxu0 }
 0x758   :  { %v6600_v41 = vadd.f32 %v6599_v44, %v13289_v15  ;;  %v6601_v19 = vpop.f32.mrb[78].mxu0 }
 0x759   :  { %v7521_v52 = vmax.f32 %v7520_v42, %v6598_v10  ;;  %v6602_v54 = vadd.f32 %v6601_v19, %v13286_v14  ;;  %v6603_v0 = vpop.f32.mrb[79].mxu0 }
 0x75a   :  { %v7614_v53 = vmax.f32 %v7613_v12, %v6600_v41  ;;  %v6604_v26 = vadd.f32 %v6603_v0, %v13289_v15  ;;  %v14696_v0 = vld [vmem:[#allocation51_spill] sm:$0xff] }
 0x75b   :  { %v7522_v17 = vmax.f32 %v7521_v52, %v6602_v54  ;;  %6866 = vmatmul.mubr.bf16.gmra.mrb[184].mxu0 %v14688_v40 }
 0x75c   :  { %v7615_v39 = vmax.f32 %v7614_v53, %v6604_v26  ;;  %6875 = vmatprep.mubr.bf16.mxu0 %v14689_v58  ;;  %v14697_v26 = vld [vmem:[#allocation56_spill] sm:$0xff] }
 0x75e   :  { %v6607_v38 = vpop.f32.mrb[80].mxu0 }
 0x75f   :  { %v6608_v49 = vadd.f32 %v6607_v38, %v13286_v14  ;;  %v6609_v59 = vpop.f32.mrb[81].mxu0 }
 0x760   :  { %v6610_v62 = vadd.f32 %v6609_v59, %v13289_v15  ;;  %v6611_v16 = vpop.f32.mrb[82].mxu0 }
 0x761   :  { %v7523_v47 = vmax.f32 %v7522_v17, %v6608_v49  ;;  %v6612_v30 = vadd.f32 %v6611_v16, %v13286_v14  ;;  %v6613_v13 = vpop.f32.mrb[83].mxu0 }
 0x762   :  { %v7616_v63 = vmax.f32 %v7615_v39, %v6610_v62  ;;  %v6614_v36 = vadd.f32 %v6613_v13, %v13289_v15  ;;  %v14698_v13 = vld [vmem:[#allocation53_spill] sm:$0xff] }
 0x763   :  { %v7524_v1 = vmax.f32 %v7523_v47, %v6612_v30  ;;  %6876 = vmatmul.mubr.bf16.gmra.mrb[188].mxu0 %v14690_v28 }
 0x764   :  { %v7617_v8 = vmax.f32 %v7616_v63, %v6614_v36  ;;  %6885 = vmatprep.mubr.bf16.mxu0 %v14691_v55  ;;  %v14699_v36 = vld [vmem:[#allocation58_spill] sm:$0xff] }
 0x766   :  { %v6617_v29 = vpop.f32.mrb[84].mxu0 }
 0x767   :  { %v6618_v18 = vadd.f32 %v6617_v29, %v13286_v14  ;;  %v6619_v20 = vpop.f32.mrb[85].mxu0 }
 0x768   :  { %v6620_v7 = vadd.f32 %v6619_v20, %v13289_v15  ;;  %v6621_v60 = vpop.f32.mrb[86].mxu0 }
 0x769   :  { %v7525_v43 = vmax.f32 %v7524_v1, %v6618_v18  ;;  %v6622_v23 = vadd.f32 %v6621_v60, %v13286_v14  ;;  %v6623_v56 = vpop.f32.mrb[87].mxu0 }
 0x76a   :  { %v7618_v61 = vmax.f32 %v7617_v8, %v6620_v7  ;;  %v6624_v57 = vadd.f32 %v6623_v56, %v13289_v15  ;;  %v14700_v56 = vld [vmem:[#allocation55_spill] sm:$0xff] }
 0x76b   :  { %v7526_v45 = vmax.f32 %v7525_v43, %v6622_v23  ;;  %6886 = vmatmul.mubr.bf16.gmra.mrb[192].mxu0 %v14692_v35 }
 0x76c   :  { %v7619_v37 = vmax.f32 %v7618_v61, %v6624_v57  ;;  %6895 = vmatprep.mubr.bf16.mxu0 %v14693_v24  ;;  %v14701_v57 = vld [vmem:[#allocation57_spill] sm:$0xff] }
 0x76e   :  { %v6627_v25 = vpop.f32.mrb[88].mxu0 }
 0x76f   :  { %v6628_v21 = vadd.f32 %v6627_v25, %v13286_v14  ;;  %v6629_v5 = vpop.f32.mrb[89].mxu0 }
 0x770   :  { %v6630_v50 = vadd.f32 %v6629_v5, %v13289_v15  ;;  %v6631_v2 = vpop.f32.mrb[90].mxu0 }
 0x771   :  { %v7527_v51 = vmax.f32 %v7526_v45, %v6628_v21  ;;  %v6632_v11 = vadd.f32 %v6631_v2, %v13286_v14  ;;  %v6633_v9 = vpop.f32.mrb[91].mxu0 }
 0x772   :  { %v7620_v6 = vmax.f32 %v7619_v37, %v6630_v50  ;;  %v6634_v48 = vadd.f32 %v6633_v9, %v13289_v15  ;;  %v14702_v9 = vld [vmem:[#allocation10_spill] sm:$0xff] }
 0x773   :  { %v7528_v3 = vmax.f32 %v7527_v51, %v6632_v11  ;;  %6896 = vmatmul.mubr.bf16.gmra.mrb[196].mxu0 %v14694_v4 }
 0x774   :  { %v7621_v32 = vmax.f32 %v7620_v6, %v6634_v48  ;;  %6905 = vmatprep.mubr.bf16.mxu0 %v14695_v46 }
 0x776   :  { %v6637_v34 = vpop.f32.mrb[92].mxu0 }
 0x777   :  { %v6638_v42 = vadd.f32 %v6637_v34, %v13286_v14  ;;  %v6639_v22 = vpop.f32.mrb[93].mxu0 }
 0x778   :  { %v6640_v12 = vadd.f32 %v6639_v22, %v13289_v15  ;;  %v6641_v27 = vpop.f32.mrb[94].mxu0 }
 0x779   :  { %v7529_v10 = vmax.f32 %v7528_v3, %v6638_v42  ;;  %v6642_v44 = vadd.f32 %v6641_v27, %v13286_v14  ;;  %v6643_v41 = vpop.f32.mrb[95].mxu0 }
 0x77a   :  { %v7622_v19 = vmax.f32 %v7621_v32, %v6640_v12  ;;  %v6644_v52 = vadd.f32 %v6643_v41, %v13289_v15 }
 0x77b   :  { %v7530_v54 = vmax.f32 %v7529_v10, %v6642_v44  ;;  %6906 = vmatmul.mubr.bf16.gmra.mrb[200].mxu0 %v14696_v0 }
 0x77c   :  { %v7623_v53 = vmax.f32 %v7622_v19, %v6644_v52  ;;  %6915 = vmatprep.mubr.bf16.mxu0 %v14697_v26 }
 0x77e   :  { %v6647_v17 = vpop.f32.mrb[96].mxu0 }
 0x77f   :  { %v6648_v40 = vadd.f32 %v6647_v17, %v13286_v14  ;;  %v6649_v39 = vpop.f32.mrb[97].mxu0 }
 0x780   :  { %v6650_v58 = vadd.f32 %v6649_v39, %v13289_v15  ;;  %v6651_v38 = vpop.f32.mrb[98].mxu0 }
 0x781   :  { %v7531_v49 = vmax.f32 %v7530_v54, %v6648_v40  ;;  %v6652_v59 = vadd.f32 %v6651_v38, %v13286_v14  ;;  %v6653_v62 = vpop.f32.mrb[99].mxu0 }
 0x782   :  { %v7624_v16 = vmax.f32 %v7623_v53, %v6650_v58  ;;  %v6654_v47 = vadd.f32 %v6653_v62, %v13289_v15 }
 0x783   :  { %v7532_v30 = vmax.f32 %v7531_v49, %v6652_v59  ;;  %6916 = vmatmul.mubr.bf16.gmra.mrb[204].mxu0 %v14698_v13 }
 0x784   :  { %v7625_v63 = vmax.f32 %v7624_v16, %v6654_v47  ;;  %6925 = vmatprep.mubr.bf16.mxu0 %v14699_v36 }
 0x786   :  { %v6657_v1 = vpop.f32.mrb[100].mxu0 }
 0x787   :  { %v6658_v28 = vadd.f32 %v6657_v1, %v13286_v14  ;;  %v6659_v8 = vpop.f32.mrb[101].mxu0 }
 0x788   :  { %v6660_v55 = vadd.f32 %v6659_v8, %v13289_v15  ;;  %v6661_v29 = vpop.f32.mrb[102].mxu0 }
 0x789   :  { %v7533_v18 = vmax.f32 %v7532_v30, %v6658_v28  ;;  %v6662_v20 = vadd.f32 %v6661_v29, %v13286_v14  ;;  %v6663_v7 = vpop.f32.mrb[103].mxu0 }
 0x78a   :  { %v7626_v60 = vmax.f32 %v7625_v63, %v6660_v55  ;;  %v6664_v43 = vadd.f32 %v6663_v7, %v13289_v15 }
 0x78b   :  { %v7534_v23 = vmax.f32 %v7533_v18, %v6662_v20  ;;  %6926 = vmatmul.mubr.bf16.gmra.mrb[208].mxu0 %v14700_v56 }
 0x78c   :  { %v7627_v61 = vmax.f32 %v7626_v60, %v6664_v43  ;;  %6935 = vmatprep.mubr.bf16.mxu0 %v14701_v57 }
 0x78e   :  { %v6667_v45 = vpop.f32.mrb[104].mxu0 }
 0x78f   :  { %v6668_v35 = vadd.f32 %v6667_v45, %v13286_v14  ;;  %v6669_v37 = vpop.f32.mrb[105].mxu0 }
 0x790   :  { %v6670_v24 = vadd.f32 %v6669_v37, %v13289_v15  ;;  %v6671_v25 = vpop.f32.mrb[106].mxu0 }
 0x791   :  { %v7535_v21 = vmax.f32 %v7534_v23, %v6668_v35  ;;  %v6672_v5 = vadd.f32 %v6671_v25, %v13286_v14  ;;  %v6673_v50 = vpop.f32.mrb[107].mxu0 }
 0x792   :  { %v7628_v2 = vmax.f32 %v7627_v61, %v6670_v24  ;;  %v6674_v51 = vadd.f32 %v6673_v50, %v13289_v15 }
 0x793   :  { %v7536_v11 = vmax.f32 %v7535_v21, %v6672_v5  ;;  %6936 = vmatmul.mubr.bf16.gmra.mrb[212].mxu0 %v14702_v9 }
 0x794   :  { %v7629_v6 = vmax.f32 %v7628_v2, %v6674_v51 }
 0x796   :  { %v6677_v48 = vpop.f32.mrb[108].mxu0 }
 0x797   :  { %v6678_v3 = vadd.f32 %v6677_v48, %v13286_v14  ;;  %v6679_v4 = vpop.f32.mrb[109].mxu0 }
 0x798   :  { %v6680_v32 = vadd.f32 %v6679_v4, %v13289_v15  ;;  %v6681_v46 = vpop.f32.mrb[110].mxu0 }
 0x799   :  { %v7537_v34 = vmax.f32 %v7536_v11, %v6678_v3  ;;  %v6682_v42 = vadd.f32 %v6681_v46, %v13286_v14  ;;  %v6683_v22 = vpop.f32.mrb[111].mxu0 }
 0x79a   :  { %v7630_v12 = vmax.f32 %v7629_v6, %v6680_v32  ;;  %v6684_v27 = vadd.f32 %v6683_v22, %v13289_v15 }
 0x79b   :  { %v7538_v10 = vmax.f32 %v7537_v34, %v6682_v42  ;;  %v9489_v34 = vld [vmem:[%s14134_s10 + $0x104] ss:$8 sps:$4 sm:$0xff]  }
 0x79c   :  { %v7631_v44 = vmax.f32 %v7630_v12, %v6684_v27  ;;  %v9487_v27 = vld [vmem:[%s14134_s10 + $0x100] ss:$8 sps:$4 sm:$0xff]   ;;  %8164 = vmatprep.subr.bf16.mxu1 %v9489_v34 }
 0x79d   :  { %8165 = vmatpush1.bf16.msra.mxu1 %v9487_v27  ;;  %v9513_v27 = vld [vmem:[%s14134_s10 + $0x184] ss:$8 sps:$4 sm:$0xff]  }
 0x79e   :  { %v6687_v41 = vpop.f32.mrb[112].mxu0 }
 0x79f   :  { %v6688_v19 = vadd.f32 %v6687_v41, %v13286_v14  ;;  %v6689_v52 = vpop.f32.mrb[113].mxu0 }
 0x7a0   :  { %v6690_v54 = vadd.f32 %v6689_v52, %v13289_v15  ;;  %v6691_v0 = vpop.f32.mrb[114].mxu0  ;;  %v9492_v52 = vld [vmem:[%s14134_s10 + $0x114] ss:$8 sps:$4 sm:$0xff]  }
 0x7a1   :  { %v7539_v53 = vmax.f32 %v7538_v10, %v6688_v19  ;;  %v6692_v26 = vadd.f32 %v6691_v0, %v13286_v14  ;;  %v6693_v17 = vpop.f32.mrb[115].mxu0  ;;  %8166 = vmatprep.subr.bf16.mxu1 %v9492_v52 }
 0x7a2   :  { %v7632_v40 = vmax.f32 %v7631_v44, %v6690_v54  ;;  %v6694_v39 = vadd.f32 %v6693_v17, %v13289_v15  ;;  %v9490_v54 = vld [vmem:[%s14134_s10 + $0x110] ss:$8 sps:$4 sm:$0xff]  }
 0x7a3   :  { %v7540_v58 = vmax.f32 %v7539_v53, %v6692_v26  ;;  %8167 = vmatpush1.bf16.msra.mxu1 %v9490_v54 }
 0x7a4   :  { %v7633_v38 = vmax.f32 %v7632_v40, %v6694_v39  ;;  %v9495_v39 = vld [vmem:[%s14134_s10 + $0x124] ss:$8 sps:$4 sm:$0xff]  }
 0x7a5   :  { %8168 = vmatprep.subr.bf16.mxu1 %v9495_v39 }
 0x7a6   :  { %v6697_v49 = vpop.f32.mrb[116].mxu0 }
 0x7a7   :  { %v6698_v59 = vadd.f32 %v6697_v49, %v13286_v14  ;;  %v6699_v62 = vpop.f32.mrb[117].mxu0 }
 0x7a8   :  { %v6700_v16 = vadd.f32 %v6699_v62, %v13289_v15  ;;  %v6701_v47 = vpop.f32.mrb[118].mxu0 }
 0x7a9   :  { %v7541_v30 = vmax.f32 %v7540_v58, %v6698_v59  ;;  %v6702_v13 = vadd.f32 %v6701_v47, %v13286_v14  ;;  %v6703_v63 = vpop.f32.mrb[119].mxu0  ;;  %v9493_v59 = vld [vmem:[%s14134_s10 + $0x120] ss:$8 sps:$4 sm:$0xff]  }
 0x7aa   :  { %v7634_v36 = vmax.f32 %v7633_v38, %v6700_v16  ;;  %v6704_v1 = vadd.f32 %v6703_v63, %v13289_v15  ;;  %8169 = vmatpush1.bf16.msra.mxu1 %v9493_v59  ;;  %v9496_v63 = vld [vmem:[%s14134_s10 + $0x130] ss:$8 sps:$4 sm:$0xff]   ;;  %v9519_v59 = vld [vmem:[%s14134_s10 + $0x1a4] ss:$8 sps:$4 sm:$0xff]  }
 0x7ab   :  { %v7542_v28 = vmax.f32 %v7541_v30, %v6702_v13  ;;  %v9498_v13 = vld [vmem:[%s14134_s10 + $0x134] ss:$8 sps:$4 sm:$0xff]  }
 0x7ac   :  { %v7635_v8 = vmax.f32 %v7634_v36, %v6704_v1  ;;  %8170 = vmatprep.subr.bf16.mxu1 %v9498_v13 }
 0x7ae   :  { %v6707_v55 = vpop.f32.mrb[120].mxu0  ;;  %8171 = vmatpush1.bf16.msra.mxu1 %v9496_v63 }
 0x7af   :  { %v6708_v29 = vadd.f32 %v6707_v55, %v13286_v14  ;;  %v6709_v18 = vpop.f32.mrb[121].mxu0 }
 0x7b0   :  { %v6710_v20 = vadd.f32 %v6709_v18, %v13289_v15  ;;  %v6711_v7 = vpop.f32.mrb[122].mxu0 }
 0x7b1   :  { %v7543_v60 = vmax.f32 %v7542_v28, %v6708_v29  ;;  %v6712_v43 = vadd.f32 %v6711_v7, %v13286_v14  ;;  %v6713_v23 = vpop.f32.mrb[123].mxu0  ;;  %v9501_v29 = vld [vmem:[%s14134_s10 + $0x144] ss:$8 sps:$4 sm:$0xff]  }
 0x7b2   :  { %v7636_v56 = vmax.f32 %v7635_v8, %v6710_v20  ;;  %v6714_v61 = vadd.f32 %v6713_v23, %v13289_v15  ;;  %8172 = vmatprep.subr.bf16.mxu1 %v9501_v29 }
 0x7b3   :  { %v7544_v57 = vmax.f32 %v7543_v60, %v6712_v43  ;;  %v9499_v60 = vld [vmem:[%s14134_s10 + $0x140] ss:$8 sps:$4 sm:$0xff]  }
 0x7b4   :  { %v7637_v45 = vmax.f32 %v7636_v56, %v6714_v61  ;;  %8173 = vmatpush1.bf16.msra.mxu1 %v9499_v60  ;;  %v9525_v60 = vld [vmem:[%s14134_s10 + $0x1c4] ss:$8 sps:$4 sm:$0xff]  }
 0x7b6   :  { %v6717_v35 = vpop.f32.mrb[124].mxu0 }
 0x7b7   :  { %v6718_v37 = vadd.f32 %v6717_v35, %v13286_v14  ;;  %v6719_v24 = vpop.f32.mrb[125].mxu0 }
 0x7b8   :  { %v6720_v25 = vadd.f32 %v6719_v24, %v13289_v15  ;;  %v6721_v21 = vpop.f32.mrb[126].mxu0 }
 0x7b9   :  { %v7545_v5 = vmax.f32 %v7544_v57, %v6718_v37  ;;  %v6722_v50 = vadd.f32 %v6721_v21, %v13286_v14  ;;  %v6723_v2 = vpop.f32.mrb[127].mxu0  ;;  %v9504_v57 = vld [vmem:[%s14134_s10 + $0x154] ss:$8 sps:$4 sm:$0xff]  }
 0x7ba   :  { %v7638_v51 = vmax.f32 %v7637_v45, %v6720_v25  ;;  %v6724_v11 = vadd.f32 %v6723_v2, %v13289_v15  ;;  %v9502_v45 = vld [vmem:[%s14134_s10 + $0x150] ss:$8 sps:$4 sm:$0xff]   ;;  %8174 = vmatprep.subr.bf16.mxu1 %v9504_v57 }
 0x7bb   :  { %v7546_v9 = vmax.f32 %v7545_v5, %v6722_v50  ;;  %8175 = vmatpush1.bf16.msra.mxu1 %v9502_v45  ;;  %v9507_v5 = vld [vmem:[%s14134_s10 + $0x164] ss:$8 sps:$4 sm:$0xff]  }
 0x7bc   :  { %v7639_v6 = vmax.f32 %v7638_v51, %v6724_v11  ;;  %v9505_v11 = vld [vmem:[%s14134_s10 + $0x160] ss:$8 sps:$4 sm:$0xff]   ;;  %8176 = vmatprep.subr.bf16.mxu1 %v9507_v5 }
 0x7be   :  { %v6727_v48 = vpop.f32.mrb[128].mxu0 }
 0x7bf   :  { %v6728_v3 = vadd.f32 %v6727_v48, %v13286_v14  ;;  %v6729_v4 = vpop.f32.mrb[129].mxu0  ;;  %8177 = vmatpush1.bf16.msra.mxu1 %v9505_v11  ;;  %v9531_v11 = vld [vmem:[%s14134_s10 + $0x1e4] ss:$8 sps:$4 sm:$0xff]  }
 0x7c0   :  { %v6730_v32 = vadd.f32 %v6729_v4, %v13289_v15  ;;  %v6731_v46 = vpop.f32.mrb[130].mxu0  ;;  %v9510_v4 = vld [vmem:[%s14134_s10 + $0x174] ss:$8 sps:$4 sm:$0xff]  }
 0x7c1   :  { %v7547_v42 = vmax.f32 %v7546_v9, %v6728_v3  ;;  %v6732_v22 = vadd.f32 %v6731_v46, %v13286_v14  ;;  %v6733_v12 = vpop.f32.mrb[131].mxu0  ;;  %8178 = vmatprep.subr.bf16.mxu1 %v9510_v4 }
 0x7c2   :  { %v7640_v10 = vmax.f32 %v7639_v6, %v6730_v32  ;;  %v6734_v44 = vadd.f32 %v6733_v12, %v13289_v15  ;;  %v9508_v32 = vld [vmem:[%s14134_s10 + $0x170] ss:$8 sps:$4 sm:$0xff]  }
 0x7c3   :  { %v7548_v41 = vmax.f32 %v7547_v42, %v6732_v22  ;;  %8179 = vmatpush1.bf16.msra.mxu1 %v9508_v32 }
 0x7c4   :  { %v7641_v19 = vmax.f32 %v7640_v10, %v6734_v44  ;;  %8180 = vmatprep.subr.bf16.mxu1 %v9513_v27 }
 0x7c6   :  { %v6737_v0 = vpop.f32.mrb[132].mxu0 }
 0x7c7   :  { %v6738_v53 = vadd.f32 %v6737_v0, %v13286_v14  ;;  %v6739_v26 = vpop.f32.mrb[133].mxu0 }
 0x7c8   :  { %v6740_v17 = vadd.f32 %v6739_v26, %v13289_v15  ;;  %v6741_v40 = vpop.f32.mrb[134].mxu0  ;;  %v9516_v26 = vld [vmem:[%s14134_s10 + $0x194] ss:$8 sps:$4 sm:$0xff]  }
 0x7c9   :  { %v7549_v58 = vmax.f32 %v7548_v41, %v6738_v53  ;;  %v6742_v38 = vadd.f32 %v6741_v40, %v13286_v14  ;;  %v6743_v49 = vpop.f32.mrb[135].mxu0 }
 0x7ca   :  { %v7642_v62 = vmax.f32 %v7641_v19, %v6740_v17  ;;  %v6744_v16 = vadd.f32 %v6743_v49, %v13289_v15  ;;  %v9511_v19 = vld [vmem:[%s14134_s10 + $0x180] ss:$8 sps:$4 sm:$0xff]   ;;  %v9514_v17 = vld [vmem:[%s14134_s10 + $0x190] ss:$8 sps:$4 sm:$0xff]  }
 0x7cb   :  { %v7550_v47 = vmax.f32 %v7549_v58, %v6742_v38  ;;  %8181 = vmatpush1.bf16.msra.mxu1 %v9511_v19 }
 0x7cc   :  { %v7643_v30 = vmax.f32 %v7642_v62, %v6744_v16  ;;  %8182 = vmatprep.subr.bf16.mxu1 %v9516_v26 }
 0x7ce   :  { %v6747_v36 = vpop.f32.mrb[136].mxu0 }
 0x7cf   :  { %v6748_v1 = vadd.f32 %v6747_v36, %v13286_v14  ;;  %v6749_v28 = vpop.f32.mrb[137].mxu0  ;;  %8183 = vmatpush1.bf16.msra.mxu1 %v9514_v17  ;;  %v9614_v17 = vmov 0.0  }
 0x7d0   :  { %v6750_v8 = vadd.f32 %v6749_v28, %v13289_v15  ;;  %v6751_v55 = vpop.f32.mrb[138].mxu0  ;;  %8184 = vmatprep.subr.bf16.mxu1 %v9519_v59  ;;  %v9522_v28 = vld [vmem:[%s14134_s10 + $0x1b4] ss:$8 sps:$4 sm:$0xff]  }
 0x7d1   :  { %v7551_v18 = vmax.f32 %v7550_v47, %v6748_v1  ;;  %v6752_v20 = vadd.f32 %v6751_v55, %v13286_v14  ;;  %v6753_v7 = vpop.f32.mrb[139].mxu0 }
 0x7d2   :  { %v7644_v43 = vmax.f32 %v7643_v30, %v6750_v8  ;;  %v6754_v23 = vadd.f32 %v6753_v7, %v13289_v15  ;;  %v9517_v30 = vld [vmem:[%s14134_s10 + $0x1a0] ss:$8 sps:$4 sm:$0xff]   ;;  %v9520_v8 = vld [vmem:[%s14134_s10 + $0x1b0] ss:$8 sps:$4 sm:$0xff]  }
 0x7d3   :  { %v7552_v56 = vmax.f32 %v7551_v18, %v6752_v20  ;;  %8185 = vmatpush1.bf16.msra.mxu1 %v9517_v30 }
 0x7d4   :  { %v7645_v61 = vmax.f32 %v7644_v43, %v6754_v23  ;;  %8186 = vmatprep.subr.bf16.mxu1 %v9522_v28 }
 0x7d6   :  { %v6757_v35 = vpop.f32.mrb[140].mxu0 }
 0x7d7   :  { %v6758_v37 = vadd.f32 %v6757_v35, %v13286_v14  ;;  %v6759_v24 = vpop.f32.mrb[141].mxu0  ;;  %8187 = vmatpush1.bf16.msra.mxu1 %v9520_v8 }
 0x7d8   :  { %v6760_v25 = vadd.f32 %v6759_v24, %v13289_v15  ;;  %v6761_v21 = vpop.f32.mrb[142].mxu0  ;;  %8188 = vmatprep.subr.bf16.mxu1 %v9525_v60  ;;  %v9528_v24 = vld [vmem:[%s14134_s10 + $0x1d4] ss:$8 sps:$4 sm:$0xff]  }
 0x7d9   :  { %v7553_v50 = vmax.f32 %v7552_v56, %v6758_v37  ;;  %v6762_v2 = vadd.f32 %v6761_v21, %v13286_v14  ;;  %v6763_v51 = vpop.f32.mrb[143].mxu0 }
 0x7da   :  { %v7646_v9 = vmax.f32 %v7645_v61, %v6760_v25  ;;  %v6764_v6 = vadd.f32 %v6763_v51, %v13289_v15  ;;  %v9523_v61 = vld [vmem:[%s14134_s10 + $0x1c0] ss:$8 sps:$4 sm:$0xff]   ;;  %v9526_v25 = vld [vmem:[%s14134_s10 + $0x1d0] ss:$8 sps:$4 sm:$0xff]  }
 0x7db   :  { %v7554_v48 = vmax.f32 %v7553_v50, %v6762_v2  ;;  %8189 = vmatpush1.bf16.msra.mxu1 %v9523_v61 }
 0x7dc   :  { %v7647_v3 = vmax.f32 %v7646_v9, %v6764_v6  ;;  %8190 = vmatprep.subr.bf16.mxu1 %v9528_v24 }
 0x7de   :  { %v6767_v46 = vpop.f32.mrb[144].mxu0 }
 0x7df   :  { %v6768_v34 = vadd.f32 %v6767_v46, %v13286_v14  ;;  %v6769_v42 = vpop.f32.mrb[145].mxu0  ;;  %8191 = vmatpush1.bf16.msra.mxu1 %v9526_v25 }
 0x7e0   :  { %v6770_v22 = vadd.f32 %v6769_v42, %v13289_v15  ;;  %v6771_v12 = vpop.f32.mrb[146].mxu0  ;;  %8192 = vmatprep.subr.bf16.mxu1 %v9531_v11  ;;  %v9534_v42 = vld [vmem:[%s14134_s10 + $0x1f4] ss:$8 sps:$4 sm:$0xff]  }
 0x7e1   :  { %v7555_v10 = vmax.f32 %v7554_v48, %v6768_v34  ;;  %v6772_v44 = vadd.f32 %v6771_v12, %v13286_v14  ;;  %v6773_v41 = vpop.f32.mrb[147].mxu0 }
 0x7e2   :  { %v7648_v52 = vmax.f32 %v7647_v3, %v6770_v22  ;;  %v6774_v54 = vadd.f32 %v6773_v41, %v13289_v15  ;;  %v9529_v3 = vld [vmem:[%s14134_s10 + $0x1e0] ss:$8 sps:$4 sm:$0xff]   ;;  %v9532_v22 = vld [vmem:[%s14134_s10 + $0x1f0] ss:$8 sps:$4 sm:$0xff]  }
 0x7e3   :  { %v7556_v0 = vmax.f32 %v7555_v10, %v6772_v44  ;;  %8193 = vmatpush1.bf16.msra.mxu1 %v9529_v3 }
 0x7e4   :  { %v7649_v53 = vmax.f32 %v7648_v52, %v6774_v54  ;;  %8194 = vmatprep.subr.bf16.mxu1 %v9534_v42 }
 0x7e6   :  { %v6777_v40 = vpop.f32.mrb[148].mxu0 }
 0x7e7   :  { %v6778_v39 = vadd.f32 %v6777_v40, %v13286_v14  ;;  %v6779_v58 = vpop.f32.mrb[149].mxu0  ;;  %8195 = vmatpush1.bf16.msra.mxu1 %v9532_v22 }
 0x7e8   :  { %v6780_v38 = vadd.f32 %v6779_v58, %v13289_v15  ;;  %v6781_v49 = vpop.f32.mrb[150].mxu0  ;;  %9283 = vmatprep.subr.bf16.mxu1 %v9614_v17 }
 0x7e9   :  { %v7557_v62 = vmax.f32 %v7556_v0, %v6778_v39  ;;  %v6782_v16 = vadd.f32 %v6781_v49, %v13286_v14  ;;  %v6783_v47 = vpop.f32.mrb[151].mxu0 }
 0x7ea   :  { %v7650_v13 = vmax.f32 %v7649_v53, %v6780_v38  ;;  %v6784_v63 = vadd.f32 %v6783_v47, %v13289_v15 }
 0x7eb   :  { %v7558_v36 = vmax.f32 %v7557_v62, %v6782_v16 }
 0x7ec   :  { %v7651_v1 = vmax.f32 %v7650_v13, %v6784_v63 }
 0x7ee   :  { %v6787_v55 = vpop.f32.mrb[152].mxu0 }
 0x7ef   :  { %v6788_v29 = vadd.f32 %v6787_v55, %v13286_v14  ;;  %v6789_v18 = vpop.f32.mrb[153].mxu0 }
 0x7f0   :  { %v6790_v20 = vadd.f32 %v6789_v18, %v13289_v15  ;;  %v6791_v7 = vpop.f32.mrb[154].mxu0 }
 0x7f1   :  { %v7559_v43 = vmax.f32 %v7558_v36, %v6788_v29  ;;  %v6792_v23 = vadd.f32 %v6791_v7, %v13286_v14  ;;  %v6793_v56 = vpop.f32.mrb[155].mxu0 }
 0x7f2   :  { %v7652_v57 = vmax.f32 %v7651_v1, %v6790_v20  ;;  %v6794_v45 = vadd.f32 %v6793_v56, %v13289_v15 }
 0x7f3   :  { %v7560_v35 = vmax.f32 %v7559_v43, %v6792_v23 }
 0x7f4   :  { %v7653_v37 = vmax.f32 %v7652_v57, %v6794_v45 }
 0x7f6   :  { %v6797_v21 = vpop.f32.mrb[156].mxu0 }
 0x7f7   :  { %v6798_v5 = vadd.f32 %v6797_v21, %v13286_v14  ;;  %v6799_v50 = vpop.f32.mrb[157].mxu0 }
 0x7f8   :  { %v6800_v2 = vadd.f32 %v6799_v50, %v13289_v15  ;;  %v6801_v51 = vpop.f32.mrb[158].mxu0 }
 0x7f9   :  { %v7561_v9 = vmax.f32 %v7560_v35, %v6798_v5  ;;  %v6802_v6 = vadd.f32 %v6801_v51, %v13286_v14  ;;  %v6803_v48 = vpop.f32.mrb[159].mxu0 }
 0x7fa   :  { %v7654_v4 = vmax.f32 %v7653_v37, %v6800_v2  ;;  %v6804_v32 = vadd.f32 %v6803_v48, %v13289_v15 }
 0x7fb   :  { %v7562_v46 = vmax.f32 %v7561_v9, %v6802_v6 }
 0x7fc   :  { %v7655_v34 = vmax.f32 %v7654_v4, %v6804_v32 }
 0x7fe   :  { %v6807_v12 = vpop.f32.mrb[160].mxu0 }
 0x7ff   :  { %v6808_v27 = vadd.f32 %v6807_v12, %v13286_v14  ;;  %v6809_v10 = vpop.f32.mrb[161].mxu0 }
 0x800   :  { %v6810_v44 = vadd.f32 %v6809_v10, %v13289_v15  ;;  %v6811_v41 = vpop.f32.mrb[162].mxu0 }
 0x801   :  { %v7563_v19 = vmax.f32 %v7562_v46, %v6808_v27  ;;  %v6812_v52 = vadd.f32 %v6811_v41, %v13286_v14  ;;  %v6813_v54 = vpop.f32.mrb[163].mxu0 }
 0x802   :  { %v7656_v0 = vmax.f32 %v7655_v34, %v6810_v44  ;;  %v6814_v53 = vadd.f32 %v6813_v54, %v13289_v15 }
 0x803   :  { %v7564_v26 = vmax.f32 %v7563_v19, %v6812_v52 }
 0x804   :  { %v7657_v40 = vmax.f32 %v7656_v0, %v6814_v53 }
 0x806   :  { %v6817_v39 = vpop.f32.mrb[164].mxu0 }
 0x807   :  { %v6818_v58 = vadd.f32 %v6817_v39, %v13286_v14  ;;  %v6819_v38 = vpop.f32.mrb[165].mxu0 }
 0x808   :  { %v6820_v49 = vadd.f32 %v6819_v38, %v13289_v15  ;;  %v6821_v59 = vpop.f32.mrb[166].mxu0 }
 0x809   :  { %v7565_v62 = vmax.f32 %v7564_v26, %v6818_v58  ;;  %v6822_v16 = vadd.f32 %v6821_v59, %v13286_v14  ;;  %v6823_v47 = vpop.f32.mrb[167].mxu0 }
 0x80a   :  { %v7658_v30 = vmax.f32 %v7657_v40, %v6820_v49  ;;  %v6824_v13 = vadd.f32 %v6823_v47, %v13289_v15 }
 0x80b   :  { %v7566_v63 = vmax.f32 %v7565_v62, %v6822_v16 }
 0x80c   :  { %v7659_v36 = vmax.f32 %v7658_v30, %v6824_v13 }
 0x80e   :  { %v6827_v1 = vpop.f32.mrb[168].mxu0 }
 0x80f   :  { %v6828_v28 = vadd.f32 %v6827_v1, %v13286_v14  ;;  %v6829_v8 = vpop.f32.mrb[169].mxu0 }
 0x810   :  { %v6830_v55 = vadd.f32 %v6829_v8, %v13289_v15  ;;  %v6831_v29 = vpop.f32.mrb[170].mxu0 }
 0x811   :  { %v7567_v18 = vmax.f32 %v7566_v63, %v6828_v28  ;;  %v6832_v20 = vadd.f32 %v6831_v29, %v13286_v14  ;;  %v6833_v7 = vpop.f32.mrb[171].mxu0 }
 0x812   :  { %v7660_v60 = vmax.f32 %v7659_v36, %v6830_v55  ;;  %v6834_v43 = vadd.f32 %v6833_v7, %v13289_v15 }
 0x813   :  { %v7568_v23 = vmax.f32 %v7567_v18, %v6832_v20 }
 0x814   :  { %v7661_v56 = vmax.f32 %v7660_v60, %v6834_v43 }
 0x816   :  { %v6837_v61 = vpop.f32.mrb[172].mxu0 }
 0x817   :  { %v6838_v57 = vadd.f32 %v6837_v61, %v13286_v14  ;;  %v6839_v45 = vpop.f32.mrb[173].mxu0 }
 0x818   :  { %v6840_v35 = vadd.f32 %v6839_v45, %v13289_v15  ;;  %v6841_v37 = vpop.f32.mrb[174].mxu0 }
 0x819   :  { %v7569_v24 = vmax.f32 %v7568_v23, %v6838_v57  ;;  %v6842_v25 = vadd.f32 %v6841_v37, %v13286_v14  ;;  %v6843_v21 = vpop.f32.mrb[175].mxu0 }
 0x81a   :  { %v7662_v5 = vmax.f32 %v7661_v56, %v6840_v35  ;;  %v6844_v50 = vadd.f32 %v6843_v21, %v13289_v15 }
 0x81b   :  { %v7570_v2 = vmax.f32 %v7569_v24, %v6842_v25 }
 0x81c   :  { %v7663_v51 = vmax.f32 %v7662_v5, %v6844_v50 }
 0x81e   :  { %v6847_v11 = vpop.f32.mrb[176].mxu0 }
 0x81f   :  { %v6848_v9 = vadd.f32 %v6847_v11, %v13286_v14  ;;  %v6849_v6 = vpop.f32.mrb[177].mxu0 }
 0x820   :  { %v6850_v48 = vadd.f32 %v6849_v6, %v13289_v15  ;;  %v6851_v3 = vpop.f32.mrb[178].mxu0 }
 0x821   :  { %v7571_v4 = vmax.f32 %v7570_v2, %v6848_v9  ;;  %v6852_v32 = vadd.f32 %v6851_v3, %v13286_v14  ;;  %v6853_v46 = vpop.f32.mrb[179].mxu0 }
 0x822   :  { %v7664_v34 = vmax.f32 %v7663_v51, %v6850_v48  ;;  %v6854_v42 = vadd.f32 %v6853_v46, %v13289_v15 }
 0x823   :  { %v7572_v22 = vmax.f32 %v7571_v4, %v6852_v32 }
 0x824   :  { %v7665_v12 = vmax.f32 %v7664_v34, %v6854_v42 }
 0x826   :  { %v6857_v27 = vpop.f32.mrb[180].mxu0 }
 0x827   :  { %v6858_v10 = vadd.f32 %v6857_v27, %v13286_v14  ;;  %v6859_v44 = vpop.f32.mrb[181].mxu0 }
 0x828   :  { %v6860_v41 = vadd.f32 %v6859_v44, %v13289_v15  ;;  %v6861_v19 = vpop.f32.mrb[182].mxu0 }
 0x829   :  { %v7573_v52 = vmax.f32 %v7572_v22, %v6858_v10  ;;  %v6862_v54 = vadd.f32 %v6861_v19, %v13286_v14  ;;  %v6863_v0 = vpop.f32.mrb[183].mxu0 }
 0x82a   :  { %v7666_v53 = vmax.f32 %v7665_v12, %v6860_v41  ;;  %v6864_v26 = vadd.f32 %v6863_v0, %v13289_v15 }
 0x82b   :  { %v7574_v40 = vmax.f32 %v7573_v52, %v6862_v54 }
 0x82c   :  { %v7667_v39 = vmax.f32 %v7666_v53, %v6864_v26 }
 0x82e   :  { %v6867_v58 = vpop.f32.mrb[184].mxu0 }
 0x82f   :  { %v6868_v38 = vadd.f32 %v6867_v58, %v13286_v14  ;;  %v6869_v49 = vpop.f32.mrb[185].mxu0 }
 0x830   :  { %v6870_v59 = vadd.f32 %v6869_v49, %v13289_v15  ;;  %v6871_v62 = vpop.f32.mrb[186].mxu0 }
 0x831   :  { %v7575_v16 = vmax.f32 %v7574_v40, %v6868_v38  ;;  %v6872_v47 = vadd.f32 %v6871_v62, %v13286_v14  ;;  %v6873_v30 = vpop.f32.mrb[187].mxu0 }
 0x832   :  { %v7668_v13 = vmax.f32 %v7667_v39, %v6870_v59  ;;  %v6874_v63 = vadd.f32 %v6873_v30, %v13289_v15 }
 0x833   :  { %v7576_v36 = vmax.f32 %v7575_v16, %v6872_v47 }
 0x834   :  { %v7669_v1 = vmax.f32 %v7668_v13, %v6874_v63 }
 0x836   :  { %v6877_v28 = vpop.f32.mrb[188].mxu0 }
 0x837   :  { %v6878_v8 = vadd.f32 %v6877_v28, %v13286_v14  ;;  %v6879_v55 = vpop.f32.mrb[189].mxu0 }
 0x838   :  { %v6880_v29 = vadd.f32 %v6879_v55, %v13289_v15  ;;  %v6881_v18 = vpop.f32.mrb[190].mxu0  ;;  %v7219_v55 = vrot.slane %v13745_v33, 4 }
 0x839   :  { %v7577_v20 = vmax.f32 %v7576_v36, %v6878_v8  ;;  %v6882_v7 = vadd.f32 %v6881_v18, %v13286_v14  ;;  %v6883_v60 = vpop.f32.mrb[191].mxu0 }
 0x83a   :  { %v7670_v43 = vmax.f32 %v7669_v1, %v6880_v29  ;;  %v6884_v23 = vadd.f32 %v6883_v60, %v13289_v15 }
 0x83b   :  { %v7578_v56 = vmax.f32 %v7577_v20, %v6882_v7  ;;  %v7312_v20 = vrot.slane %v13748_v31, 4 }
 0x83c   :  { %v7671_v61 = vmax.f32 %v7670_v43, %v6884_v23 }
 0x83e   :  { %v6887_v57 = vpop.f32.mrb[192].mxu0 }
 0x83f   :  { %v6888_v45 = vadd.f32 %v6887_v57, %v13286_v14  ;;  %v6889_v35 = vpop.f32.mrb[193].mxu0 }
 0x840   :  { %v6890_v37 = vadd.f32 %v6889_v35, %v13289_v15  ;;  %v6891_v24 = vpop.f32.mrb[194].mxu0 }
 0x841   :  { %v7579_v25 = vmax.f32 %v7578_v56, %v6888_v45  ;;  %v6892_v21 = vadd.f32 %v6891_v24, %v13286_v14  ;;  %v6893_v5 = vpop.f32.mrb[195].mxu0  ;;  %v7220_v45 = vmax.f32 %v13745_v33, %v7219_v55 }
 0x842   :  { %v7672_v50 = vmax.f32 %v7671_v61, %v6890_v37  ;;  %v6894_v2 = vadd.f32 %v6893_v5, %v13289_v15  ;;  %v7313_v37 = vmax.f32 %v13748_v31, %v7312_v20  ;;  %v9536_v20 = vld [vmem:[%s14138_s14] sm:$0xff]  }
 0x843   :  { %v7580_v51 = vmax.f32 %v7579_v25, %v6892_v21  ;;  %v7221_v21 = vrot.slane %v7220_v45, 2 }
 0x844   :  { %v7673_v11 = vmax.f32 %v7672_v50, %v6894_v2  ;;  %v7314_v2 = vrot.slane %v7313_v37, 2 }
 0x846   :  { %v6897_v9 = vpop.f32.mrb[196].mxu0  ;;  %v7315_v31 = vmax.f32 %v7313_v37, %v7314_v2 }
 0x847   :  { %v6898_v6 = vadd.f32 %v6897_v9, %v13286_v14  ;;  %v6899_v48 = vpop.f32.mrb[197].mxu0 }
 0x848   :  { %v6900_v3 = vadd.f32 %v6899_v48, %v13289_v15  ;;  %v6901_v4 = vpop.f32.mrb[198].mxu0 }
 0x849   :  { %v7581_v32 = vmax.f32 %v7580_v51, %v6898_v6  ;;  %v6902_v46 = vadd.f32 %v6901_v4, %v13286_v14  ;;  %v6903_v34 = vpop.f32.mrb[199].mxu0  ;;  %v7222_v4 = vmax.f32 %v7220_v45, %v7221_v21 }
 0x84a   :  { %v7674_v42 = vmax.f32 %v7673_v11, %v6900_v3  ;;  %v6904_v22 = vadd.f32 %v6903_v34, %v13289_v15 }
 0x84b   :  { %v7582_v12 = vmax.f32 %v7581_v32, %v6902_v46 }
 0x84c   :  { %v7675_v27 = vmax.f32 %v7674_v42, %v6904_v22  ;;  %v7223_v22 = vrot.slane %v7222_v4, 1 }
 0x84e   :  { %v6907_v10 = vpop.f32.mrb[200].mxu0 }
 0x84f   :  { %v6908_v44 = vadd.f32 %v6907_v10, %v13286_v14  ;;  %v6909_v41 = vpop.f32.mrb[201].mxu0 }
 0x850   :  { %v6910_v19 = vadd.f32 %v6909_v41, %v13289_v15  ;;  %v6911_v52 = vpop.f32.mrb[202].mxu0 }
 0x851   :  { %v7583_v54 = vmax.f32 %v7582_v12, %v6908_v44  ;;  %v6912_v0 = vadd.f32 %v6911_v52, %v13286_v14  ;;  %v6913_v53 = vpop.f32.mrb[203].mxu0 }
 0x852   :  { %v7676_v26 = vmax.f32 %v7675_v27, %v6910_v19  ;;  %v6914_v40 = vadd.f32 %v6913_v53, %v13289_v15  ;;  %v7316_v27 = vrot.slane %v7315_v31, 1  ;;  %v7224_v19 = vmax.f32 %v7222_v4, %v7223_v22 }
 0x853   :  { %v7584_v39 = vmax.f32 %v7583_v54, %v6912_v0 }
 0x854   :  { %v7677_v58 = vmax.f32 %v7676_v26, %v6914_v40  ;;  %v7317_v54 = vmax.f32 %v7315_v31, %v7316_v27 }
 0x856   :  { %v6917_v38 = vpop.f32.mrb[204].mxu0  ;;  %v7693_v40 = vpack.c.bf16 %v7317_v54, %v7317_v54 }
 0x857   :  { %v6918_v49 = vadd.f32 %v6917_v38, %v13286_v14  ;;  %v6919_v59 = vpop.f32.mrb[205].mxu0  ;;  %v14703_v38 = vmov 65535  }
 0x858   :  { %v6920_v62 = vadd.f32 %v6919_v59, %v13289_v15  ;;  %v6921_v16 = vpop.f32.mrb[206].mxu0 }
 0x859   :  { %v7585_v47 = vmax.f32 %v7584_v39, %v6918_v49  ;;  %v6922_v30 = vadd.f32 %v6921_v16, %v13286_v14  ;;  %v6923_v13 = vpop.f32.mrb[207].mxu0  ;;  %v8239_v49 = vsel %vm8237_vm5, 4294967295, %v14703_v38 }
 0x85a   :  { %v7678_v63 = vmax.f32 %v7677_v58, %v6920_v62  ;;  %v6924_v36 = vadd.f32 %v6923_v13, %v13289_v15 }
 0x85b   :  { %v7586_v1 = vmax.f32 %v7585_v47, %v6922_v30  ;;  %v9535_v47 = vld [vmem:[%s14136_s12] sm:$0x1f]   ;;  %v7785_v30 = vunpack.c.l.b16 %v7693_v40 }
 0x85c   :  { %v7679_v28 = vmax.f32 %v7678_v63, %v6924_v36  ;;  %v8240_v63 = vsel %vm8238_vm6, %v8239_v49, 0 }
 0x85e   :  { %v6927_v8 = vpop.f32.mrb[208].mxu0 }
 0x85f   :  { %v6928_v29 = vadd.f32 %v6927_v8, %v13286_v14  ;;  %v6929_v18 = vpop.f32.mrb[209].mxu0  ;;  %v8242_v8 = vand.u32 %v9535_v47, %v8240_v63 }
 0x860   :  { %v6930_v7 = vadd.f32 %v6929_v18, %v13289_v15  ;;  %v6931_v60 = vpop.f32.mrb[210].mxu0 }
 0x861   :  { %v7587_v43 = vmax.f32 %v7586_v1, %v6928_v29  ;;  %v6932_v23 = vadd.f32 %v6931_v60, %v13286_v14  ;;  %v6933_v56 = vpop.f32.mrb[211].mxu0  ;;  %v8217_v29 = vld [vmem:[%s14704_s9] sm:$0x3]  ;;  %v9538_v60 = vld [vmem:[%s14138_s14 + $0x10] sm:$0xff]  }
 0x862   :  { %v7680_v61 = vmax.f32 %v7679_v28, %v6930_v7  ;;  %v6934_v57 = vadd.f32 %v6933_v56, %v13289_v15  ;;  %v8218_v18 = vpack.c.bf16 %v8217_v29, %v8217_v29  ;;  %v9537_v7 = vld [vmem:[%s14138_s14 + $0x8] sm:$0xff]   ;;  %v14705_v56 = vld [vmem:[#allocation19_spill] sm:$0xff] }
 0x863   :  { %v7588_v35 = vmax.f32 %v7587_v43, %v6932_v23  ;;  %v9539_v43 = vld [vmem:[%s14138_s14 + $0x18] sm:$0xff]   ;;  %v7762_v23 = vld [vmem:[%s14135_s11] sm:$0x3]  ;;  %s9616_s11 = smov [#allocation2]  }
 0x864   :  { %v7681_v24 = vmax.f32 %v7680_v61, %v6934_v57  ;;  %v7767_v61 = vrot.slane %v7762_v23, %v14705_v56  ;;  %v14706_v57 = vld [vmem:[#allocation20_spill] sm:$0xff]  ;;  %s8376_s14 = sshll.u32 %s9616_s11, 4  ;;  %s8377_s14 = int_to_ptr.vmem [resolvable:$true] %s8376_s14 }
 0x865   :  { %v7771_v45 = vrot.slane %v7762_v23, %v14706_v57  ;;  %s9564_s7 = scalar_lea.vmem %s8377_s14, 64  ;;  %p9569_p1 = scmp.lt.s32.totalorder %s8377_s14, %s8377_s14 }
 0x866   :  { %v6937_v25 = vpop.f32.mrb[212].mxu0  ;;  %p9565_p0 = scmp.ne.s32.totalorder %s8377_s14, %s9564_s7  ;;  %p9570_p2 = scmp.lt.s32.totalorder %s9564_s7, %s9564_s7 }
 0x867   :  { %v6938_v5 = vadd.f32 %v6937_v25, %v13286_v14  ;;  %v6939_v50 = vpop.f32.mrb[213].mxu0 }
 0x868   :  { %v6940_v51 = vadd.f32 %v6939_v50, %v13289_v15  ;;  %v6941_v11 = vpop.f32.mrb[214].mxu0  ;;  %v8724_v50 = vld [vmem:[%s14137_s13] ss:$0 sm:$0xff]  ;;  %p9571_p3 = por %p9570_p2, %p9569_p1 }
 0x869   :  { %v7589_v9 = vmax.f32 %v7588_v35, %v6938_v5  ;;  %v6942_v6 = vadd.f32 %v6941_v11, %v13286_v14  ;;  %v6943_v48 = vpop.f32.mrb[215].mxu0 }
 0x86a   :  { %v7682_v3 = vmax.f32 %v7681_v24, %v6940_v51  ;;  %v6944_v33 = vadd.f32 %v6943_v48, %v13289_v15  ;;  %v7692_v15 = vpack.c.bf16 %v7224_v19, %v7224_v19  ;;  %p9572_p4 = pnand %p9571_p3, %p9565_p0 }
 0x86b   :  { %v7590_v32 = vmax.f32 %v7589_v9, %v6942_v6 }
 0x86c   :  { %v7683_v46 = vmax.f32 %v7682_v3, %v6944_v33  ;;  %v7784_v62 = vunpack.c.l.b16 %v7692_v15 }
 0x86d   :  { %v7591_v34 = vrot.slane %v7590_v32, 4 }
 0x86e   :  { %v7684_v42 = vrot.slane %v7683_v46, 4 }
 0x86f   :  { %v7592_v12 = vmax.f32 %v7590_v32, %v7591_v34 }
 0x870   :  { %v7685_v10 = vmax.f32 %v7683_v46, %v7684_v42 }
 0x871   :  { %v7593_v44 = vrot.slane %v7592_v12, 2 }
 0x872   :  { %v7686_v41 = vrot.slane %v7685_v10, 2 }
 0x873   :  { %v7594_v52 = vmax.f32 %v7592_v12, %v7593_v44 }
 0x874   :  { %v7687_v14 = vmax.f32 %v7685_v10, %v7686_v41 }
 0x875   :  { %v7595_v0 = vrot.slane %v7594_v52, 1 }
 0x876   :  { %v7688_v53 = vrot.slane %v7687_v14, 1 }
 0x877   :  { %v7596_v26 = vmax.f32 %v7594_v52, %v7595_v0 }
 0x878   :  { %v7689_v39 = vmax.f32 %v7687_v14, %v7688_v53 }
 0x879   :  { %v7696_v58 = vpack.c.bf16 %v7596_v26, %v7596_v26 }
 0x87a   :  { %v7697_v59 = vpack.c.bf16 %v7689_v39, %v7689_v39 }
 0x87b   :  { %v7788_v16 = vunpack.c.l.b16 %v7696_v58 }
 0x87c   :  { %v7789_v13 = vunpack.c.l.b16 %v7697_v59 }
 0x87d   :  { %v7793_v36 = vsel %vm7790_vm4, %v7788_v16, %v7784_v62 }
 0x87e   :  { %v7794_v1 = vsel %vm7790_vm4, %v7789_v13, %v7785_v30  ;;  %v7797_v55 = vpack.c.b16 %v7793_v36, %v7793_v36 }
 0x87f   :  { %v7798_v28 = vpack.c.b16 %v7794_v1, %v7794_v1 }
 0x881   :  { %8196 = vmatprep.mubr.bf16.mxu1 %v7798_v28 }
 0x882   :  { %8197 = vmatmul.mubr.bf16.vlgmr.msra.gmra.mrb[168].mxu1 %v7797_v55 }
 0x883   :  { %9284 = vmatpush3.bf16.msra.mxu1 %v8242_v8  ;;  %9285 = vmatprep.mubr.msk.bf16.mxu1 %vm9615_vm7, %v9614_v17 }
 0x884   :  { %9289 = vmatprep.subr.bf16.mxu1 %v9614_v17 }
 0x88a   :  { %9286 = vmatmul.mubr.msk.bf16.vlgmr.msra.gmra.mrb[172].mxu1 %vm8233_vm8, %v8218_v18 }
 0x88b   :  { %9297 = vmatprep.mubr.msk.bf16.mxu1 %vm9615_vm7, %v9614_v17  ;;  %9290 = vmatpush3.bf16.msra.mxu1 %v9536_v20 }
 0x88c   :  { %9291 = vmatprep.subr.bf16.mxu1 %v9614_v17 }
 0x88f   :  { %9292 = vmatpush3.bf16.msra.mxu1 %v9537_v7 }
 0x890   :  { %9293 = vmatprep.subr.bf16.mxu1 %v9614_v17 }
 0x893   :  { %9294 = vmatpush3.bf16.msra.mxu1 %v9538_v60 }
 0x894   :  { %9295 = vmatprep.subr.bf16.mxu1 %v9614_v17 }
 0x897   :  { %9296 = vmatpush3.bf16.msra.mxu1 %v9539_v43 }
 0x955   :  { %v8198_v35 = vpop.f32.mrb[168].mxu1 }
 0x956   :  { %v9303_v37 = vadd.f32 %v8198_v35, %v7767_v61  ;;  %v8200_v24 = vpop.f32.mrb[169].mxu1 }
 0x957   :  { %v9304_v25 = vadd.f32 %v8200_v24, %v7771_v45  ;;  %v8202_v21 = vpop.f32.mrb[170].mxu1 }
 0x958   :  { %v8203_v5 = vpop.f32.mrb[171].mxu1 }
 0x959   :  { %v8207_v17 = vcombine.low %v9303_v37, %v9304_v25 }
 0x95b   :  { %8723 = vst.sshfl [vmem:[#allocation2] sm:$0x33 pattern:$0x76325410] %v8207_v17 }
 0x95d   :  { %v8278_v2 = vpop.f32.mrb[172].mxu1 }
 0x95e   :  { %v8279_v51 = vadd.f32 %v8724_v50, %v8278_v2  ;;  %v9287_v11 = vpop.f32.mrb[173].mxu1 }
 0x95f   :  { %v8281_v9 = vpop.f32.mrb[174].mxu1 }
 0x960   :  { %v8284_v6 = vmax.f32 %v8279_v51, 0.0  ;;  %v9288_v48 = vpop.f32.mrb[175].mxu1 }
 0x962   :  { %v8285_v3 = vpack.c.bf16 %v8284_v6, %v8284_v6 }
 0x964   :  { %9298 = vmatmul.mubr.msk.bf16.vlgmr.msra.gmra.mrb[176].mxu1 %vm1899_vm3, %v8285_v3 }
 0x965   :  { %9575 = shalt.err (!%p9572_p4)
}
 0x966   :  { %s9576_s28 = scalar_lea.hbm %s14140_s16, 64 }
 0x967   :  { %p9577_p5 = scmp.ne.s32.totalorder %s14140_s16, %s9576_s28  ;;  %p9580_p6 = scmp.lt.u32.totalorder %s9576_s28, %s14140_s16 }
 0x969   :  { %p9582_p7 = pnand %p9580_p6, %p9577_p5 }
 0x96b   :  { %9585 = shalt.err (!%p9582_p7)
}
 0x96c   :  { %8379 = dma.vmem_to_hbm [thread:$0]  %s8377_s14, 64, %s14140_s16, [#allocation3]   ;;  %v8727_v33 = vld [vmem:[%s14139_s15] ss:$0 sm:$0xff]  ;;  %vm8368_vm9 = vcmask 517120  }
 0x96d   :  { %s9617_s27 = smov [#allocation4]  }
 0x96e   :  { %s8386_s9 = sshll.u32 %s9617_s27, 4  ;;  %s8387_s9 = int_to_ptr.vmem [resolvable:$true] %s8386_s9 }
 0x96f   :  { %s9586_s12 = scalar_lea.vmem %s8387_s9, 32  ;;  %p9591_p9 = scmp.lt.s32.totalorder %s8387_s9, %s8387_s9 }
 0x970   :  { %p9587_p8 = scmp.ne.s32.totalorder %s8387_s9, %s9586_s12  ;;  %p9592_p10 = scmp.lt.s32.totalorder %s9586_s12, %s9586_s12 }
 0x972   :  { %p9593_p11 = por %p9592_p10, %p9591_p9 }
 0x974   :  { %p9594_p12 = pnand %p9593_p11, %p9587_p8 }
 0xa37   :  { %v8362_v4 = vpop.f32.mrb[176].mxu1 }
 0xa38   :  { %v8363_v32 = vadd.f32 %v8727_v33, %v8362_v4  ;;  %v9299_v31 = vpop.f32.mrb[177].mxu1 }
 0xa39   :  { %v8365_v46 = vpop.f32.mrb[178].mxu1 }
 0xa3a   :  { %v9300_v34 = vpop.f32.mrb[179].mxu1  ;;  %8369 = vst.msk [vmem:[#allocation4] sm:$0x3] %vm8368_vm9, %v8363_v32 }
 0xa3b   :  { %9597 = shalt.err (!%p9594_p12)
}
 0xa3c   :  { %s9598_s15 = scalar_lea.hbm %s14141_s17, 32 }
 0xa3d   :  { %p9599_p13 = scmp.ne.s32.totalorder %s14141_s17, %s9598_s15  ;;  %p9602_p0 = scmp.lt.u32.totalorder %s9598_s15, %s14141_s17 }
 0xa3f   :  { %p9604_p1 = pnand %p9602_p0, %p9599_p13 }
 0xa41   :  { %9607 = shalt.err (!%p9604_p1)
}
 0xa42   :  { %8389 = dma.vmem_to_hbm [thread:$0]  %s8387_s9, 32, %s14141_s17, [#allocation5]  }
 0xa43   :  { %9608 = dma.done.wait [#allocation3], 64  }
 0xa44   :  { %9609 = vsyncadd [#allocation3], 4294967232 }
 0xa45   :  { %9610 = dma.done.wait [#allocation5], 32  }
 0xa46   :  { %9611 = vsyncadd [#allocation5], 4294967264 }
 0xa47   :  { %8396 = vsyncpa [#allocation3], 1 }
 0xa48   :  { %8397 = vsyncpa [#allocation5], 1 }

</bundles_post_ra>
